<compile_context>
chip_gen: v6e
topology: v6e:2x2x1
jax: 0.10.0
libtpu: 0.0.40
codegen_flags: <defaults>
</compile_context>

<pallas_src>
import jax
import jax.numpy as jnp
from jax import lax
from jax.experimental import pallas as pl
from jax.experimental.pallas import tpu as pltpu


# ------------------------------ fused kernel --------------------------------

def classifier_kernel(x_ref, k1_ref, b1_ref, k2_ref, b2_ref, w1h_ref, bf1_ref,
                      wf2_ref, bf2_ref, o_ref, xpad_ref, p1pad_ref, p2_ref):
    """Whole network for one batch tile of B images, entirely in VMEM.

    x_ref   : (B, 28, 28) f32   raw images
    k1_ref  : (3, 28, 896) bf16 banded conv1 weights, cols = 32*w + c
    b1_ref  : (1, 896) f32      conv1 bias tiled per w
    k2_ref  : (3, 864, 896) bf16 banded conv2 weights, rows = 64*w_in + c_in
    b2_ref  : (1, 896) f32      conv2 bias tiled per w
    w1h_ref : (7, 832, 128) bf16 fc1 split per pooled row, rows = 128*w' + c
    wf2_ref : (128, 128) bf16   fc2 weights, output padded 10 -> 128 lanes
    o_ref   : (B, 128) f32      padded logits (lane-dense, unmasked store)
    scratch : xpad (30, 28) bf16, p1pad (16, 864) bf16, p2 (B, 7, 832) bf16
    """
    B = o_ref.shape[0]
    bf16 = jnp.bfloat16

    # Zero the halo scratches once per grid step; the interiors are fully
    # overwritten per image, so only the padding rows have to stay zero.
    xpad_ref[...] = jnp.zeros(xpad_ref.shape, xpad_ref.dtype)
    p1pad_ref[...] = jnp.zeros(p1pad_ref.shape, p1pad_ref.dtype)

    def per_image(b, carry):
        # ------ stage 1: conv1 (3x3, SAME) + bias + ReLU + 2x2 max-pool ------
        xpad_ref[1:29, :] = x_ref[b].astype(bf16)            # rows 0/29 stay 0
        a1 = jnp.zeros((28, 896), jnp.float32)
        for dy in range(3):                                   # 3 banded matmuls
            a1 = a1 + jnp.dot(xpad_ref[dy:dy + 28, :], k1_ref[dy],
                              preferred_element_type=jnp.float32)
        a1 = jnp.maximum(a1 + b1_ref[...], 0.0)               # (28, 896)
        a1 = a1.reshape(14, 2, 896)
        hm = jnp.maximum(a1[:, 0, :], a1[:, 1, :])            # pool over h
        wm = jnp.maximum(hm[:, :864], hm[:, 32:])             # pool over w pairs
        # valid pooled values sit at lanes 64*w' + c; the other lane blocks
        # are junk and are zeroed inside k2's rows.
        p1pad_ref[1:15, :] = wm.astype(bf16)                  # rows 0/15 stay 0

        # ------ stage 2: conv2 (3x3, SAME) + bias + ReLU + 2x2 max-pool ------
        a2 = jnp.zeros((14, 896), jnp.float32)
        for dy in range(3):
            a2 = a2 + jnp.dot(p1pad_ref[dy:dy + 14, :], k2_ref[dy],
                              preferred_element_type=jnp.float32)
        a2 = jnp.maximum(a2 + b2_ref[...], 0.0)               # (14, 896)
        a2 = a2.reshape(7, 2, 896)
        hm2 = jnp.maximum(a2[:, 0, :], a2[:, 1, :])
        wm2 = jnp.maximum(hm2[:, :832], hm2[:, 64:])          # (7, 832)
        # valid pooled values at lanes 128*w' + c; junk blocks zeroed in w1h.
        p2_ref[b] = wm2.astype(bf16)
        return carry

    lax.fori_loop(0, B, per_image, 0)

    # ------------- FC head, batched over the B images of this tile ----------
    p2 = p2_ref[...]                                          # (B, 7, 832)
    acc = jnp.zeros((B, 128), jnp.float32)
    for h in range(7):                                        # fc1 as 7 matmuls
        acc = acc + jnp.dot(p2[:, h, :], w1h_ref[h],
                            preferred_element_type=jnp.float32)
    hid = jnp.maximum(acc + bf1_ref[...], 0.0).astype(bf16)
    out = jnp.dot(hid, wf2_ref[...],
                  preferred_element_type=jnp.float32) + bf2_ref[...]
    o_ref[...] = out.astype(o_ref.dtype)


# ------------------------------ wrapper --------------------------------------

def _pick_batch_tile(n):
    """Batch tile: multiple of 8 (lane/sublane friendly output block) with at
    least 2 grid steps when possible (v7x has 2 TensorCores)."""
    for b in (32, 16, 8):
        if n % b == 0 and n // b >= 2:
            return b
    if n % 8 == 0:
        return 8
    return n          # small / ragged batches: one grid step over everything


def classifier_forward(prep, x_nchw):
    # Dropout2d layers are identity at inference time.
    # TODO(synk): train-mode stochastic Dropout2d masking not implemented.
    N = x_nchw.shape[0]
    assert x_nchw.shape[1:] == (1, 28, 28)
    x = x_nchw.reshape(N, 28, 28).astype(jnp.float32)
    B = _pick_batch_tile(N)

    flops_per_img = 2 * (3 * 28 * 28 * 896 + 3 * 14 * 864 * 896
                         + 7 * 832 * 128 + 128 * 128)
    weight_bytes = 2 * (3 * 28 * 896 + 3 * 864 * 896 + 7 * 832 * 128 + 128 * 128)
    cost = pl.CostEstimate(
        flops=N * flops_per_img,
        transcendentals=0,
        bytes_accessed=4 * N * (28 * 28 + 128) + weight_bytes,
    )

    out = pl.pallas_call(
        classifier_kernel,
        out_shape=jax.ShapeDtypeStruct((N, 128), jnp.float32),
        grid=(N // B,),
        in_specs=[
            pl.BlockSpec((B, 28, 28), lambda i: (i, 0, 0)),      # images
            pl.BlockSpec((3, 28, 896), lambda i: (0, 0, 0)),     # conv1 banded
            pl.BlockSpec((1, 896), lambda i: (0, 0)),            # conv1 bias
            pl.BlockSpec((3, 864, 896), lambda i: (0, 0, 0)),    # conv2 banded
            pl.BlockSpec((1, 896), lambda i: (0, 0)),            # conv2 bias
            pl.BlockSpec((7, 832, 128), lambda i: (0, 0, 0)),    # fc1 split
            pl.BlockSpec((1, 128), lambda i: (0, 0)),            # fc1 bias
            pl.BlockSpec((128, 128), lambda i: (0, 0)),          # fc2 (padded)
            pl.BlockSpec((1, 128), lambda i: (0, 0)),            # fc2 bias
        ],
        out_specs=pl.BlockSpec((B, 128), lambda i: (i, 0)),
        scratch_shapes=[
            pltpu.VMEM((30, 28), jnp.bfloat16),     # row-padded conv1 input
            pltpu.VMEM((16, 864), jnp.bfloat16),    # row-padded conv2 input
            pltpu.VMEM((B, 7, 832), jnp.bfloat16),  # pooled conv2 features
        ],
        compiler_params=pltpu.CompilerParams(
            dimension_semantics=("parallel",),
            vmem_limit_bytes=32 * 1024 * 1024,
        ),
        cost_estimate=cost,
    )(x, prep["k1"], prep["b1"], prep["k2"], prep["b2"],
      prep["w1h"], prep["bf1"], prep["wf2"], prep["bf2"])
    return out[:, :10]


# -------------------- one-time parameter re-layout (hoisted) -----------------

def _banded_conv_weights(w_oihw, width, in_stride, out_rows):
    """Banded per-ky matmul weights for a 3x3 SAME conv along the W axis.

    Returns (3, out_rows, width*Cout) f32 with
      K[ky, in_stride*wi + ci, Cout*w + co] = w_oihw[co, ci, ky, wi - w + 1]
    inside the band and zero elsewhere (including the padding rows ci >= Cin,
    which absorb the junk lane blocks left by the in-kernel w-pooling).
    """
    Cout, Cin, KH, KW = w_oihw.shape
    K = jnp.zeros((KH, width, in_stride, width, Cout), jnp.float32)
    ii = jnp.arange(width)
    for dx in range(KW):
        sel = (ii[:, None] == ii[None, :] + dx - 1).astype(jnp.float32)  # (wi, w)
        wk = jnp.transpose(w_oihw[:, :, :, dx].astype(jnp.float32),
                           (2, 1, 0))                                    # (ky, ci, co)
        if in_stride > Cin:
            wk = jnp.concatenate(
                [wk, jnp.zeros((KH, in_stride - Cin, Cout), jnp.float32)], axis=1)
        K = K + sel[None, :, None, :, None] * wk[:, None, :, None, :]
    return K.reshape(KH, width * in_stride, width * Cout)[:, :out_rows, :]


def prepare_params(p):
    """PyTorch-layout params -> kernel-ready layouts. Call once, outside forward."""
    f32, bf16 = jnp.float32, jnp.bfloat16

    k1 = _banded_conv_weights(p["conv1_w"], width=28, in_stride=1, out_rows=28)
    k2 = _banded_conv_weights(p["conv2_w"], width=14, in_stride=64, out_rows=864)

    b1 = jnp.tile(p["conv1_b"].astype(f32), 28).reshape(1, 896)
    b2 = jnp.tile(p["conv2_b"].astype(f32), 14).reshape(1, 896)

    # fc1: split per pooled row h'; rows ordered 128*w' + c (c < 64 real,
    # c >= 64 zero to kill the junk lane blocks of the pooled activations).
    wf1 = p["fc1_w"].astype(f32).reshape(128, 64, 7, 7)       # (k, c, h, w)
    wf1 = jnp.transpose(wf1, (2, 3, 1, 0))                    # (h, w, c, k)
    wf1 = jnp.concatenate([wf1, jnp.zeros((7, 7, 64, 128), f32)], axis=2)
    w1h = wf1.reshape(7, 7 * 128, 128)[:, :832, :]            # (7, 832, 128)

    # fc2: transpose and pad output dim 10 -> 128 lanes (zero cols / bias).
    wf2 = jnp.pad(p["fc2_w"].astype(f32).T, ((0, 0), (0, 118)))  # (128, 128)
    bf2 = jnp.pad(p["fc2_b"].astype(f32), (0, 118)).reshape(1, 128)

    return dict(
        k1=k1.astype(bf16), b1=b1,
        k2=k2.astype(bf16), b2=b2,
        w1h=w1h.astype(bf16), bf1=p["fc1_b"].astype(f32).reshape(1, 128),
        wf2=wf2.astype(bf16), bf2=bf2,
    )


# ------------------------- parameters & reference ----------------------------

def init_params(key):
    ks = jax.random.split(key, 8)

    def u(k, shape, fan_in):
        bound = 1.0 / float(fan_in) ** 0.5
        return jax.random.uniform(k, shape, jnp.float32, -bound, bound)

    return dict(
        conv1_w=u(ks[0], (32, 1, 3, 3), 1 * 9),
        conv1_b=u(ks[1], (32,), 1 * 9),
        conv2_w=u(ks[2], (64, 32, 3, 3), 32 * 9),
        conv2_b=u(ks[3], (64,), 32 * 9),
        fc1_w=u(ks[4], (128, 64 * 7 * 7), 64 * 7 * 7),
        fc1_b=u(ks[5], (128,), 64 * 7 * 7),
        fc2_w=u(ks[6], (10, 128), 128),
        fc2_b=u(ks[7], (10,), 128),
    )


def reference_forward(params, x):
    """Pure-JAX reference (eval mode), NCHW like the PyTorch module."""
    def conv(x, w, b):
        y = lax.conv_general_dilated(x, w, (1, 1), "SAME",
                                     dimension_numbers=("NCHW", "OIHW", "NCHW"),
                                     precision=lax.Precision.HIGHEST)
        return jax.nn.relu(y + b[None, :, None, None])

    def pool(y):
        N, C, H, W = y.shape
        return y.reshape(N, C, H // 2, 2, W // 2, 2).max(axis=(3, 5))

    y = pool(conv(x, params["conv1_w"], params["conv1_b"]))
    y = pool(conv(y, params["conv2_w"], params["conv2_b"]))
    f = y.reshape(y.shape[0], -1)
    h = jax.nn.relu(f @ params["fc1_w"].T + params["fc1_b"])
    return h @ params["fc2_w"].T + params["fc2_b"]


if __name__ == "__main__":
    key = jax.random.PRNGKey(0)
    pkey, xkey = jax.random.split(key)
    params = init_params(pkey)
    prep = jax.tree_util.tree_map(jax.device_put, prepare_params(params))

    # fc1 = Linear(64*7*7, 128) implies 28x28 single-channel input.
    x = jax.random.normal(xkey, (2, 1, 28, 28), jnp.float32)

    out = jax.jit(classifier_forward)(prep, x)
    out = jax.block_until_ready(out)

    assert out.shape == (2, 10) and out.dtype == jnp.float32

    ref = reference_forward(params, x)
    err = float(jnp.max(jnp.abs(out - ref)))
    if not (err < 5e-2):
        raise AssertionError(f"Pallas output mismatch vs reference: max abs err = {err}")

    print("KERNEL_OK")
</pallas_src>

<mosaic_0001>
module attributes {stable_mosaic.version = 11 : i64} {
  func.func @classifier_kernel(%arg0: i32, %arg1: memref<2x28x28xf32, #tpu.memory_space<vmem>>, %arg2: memref<3x28x896xbf16, #tpu.memory_space<vmem>>, %arg3: memref<1x896xf32, #tpu.memory_space<vmem>>, %arg4: memref<3x864x896xbf16, #tpu.memory_space<vmem>>, %arg5: memref<1x896xf32, #tpu.memory_space<vmem>>, %arg6: memref<7x832x128xbf16, #tpu.memory_space<vmem>>, %arg7: memref<1x128xf32, #tpu.memory_space<vmem>>, %arg8: memref<128x128xbf16, #tpu.memory_space<vmem>>, %arg9: memref<1x128xf32, #tpu.memory_space<vmem>>, %arg10: memref<2x128xf32, #tpu.memory_space<vmem>>, %arg11: memref<30x28xbf16, #tpu.memory_space<vmem>>, %arg12: memref<16x864xbf16, #tpu.memory_space<vmem>>, %arg13: memref<2x7x832xbf16, #tpu.memory_space<vmem>>) attributes {dimension_semantics = [#tpu.dimension_semantics<parallel>], iteration_bounds = array<i64: 1>, scalar_prefetch = 0 : i64, scratch_operands = 3 : i64, tpu.core_type = #tpu.core_type<tc>, window_params = [{transform_indices = @transform_0, window_bounds = array<i64: 2, 28, 28>}, {pipeline_mode = #tpu.pipeline_mode<synchronous>, transform_indices = @transform_1, window_bounds = array<i64: 3, 28, 896>}, {pipeline_mode = #tpu.pipeline_mode<synchronous>, transform_indices = @transform_2, window_bounds = array<i64: 1, 896>}, {pipeline_mode = #tpu.pipeline_mode<synchronous>, transform_indices = @transform_3, window_bounds = array<i64: 3, 864, 896>}, {pipeline_mode = #tpu.pipeline_mode<synchronous>, transform_indices = @transform_4, window_bounds = array<i64: 1, 896>}, {pipeline_mode = #tpu.pipeline_mode<synchronous>, transform_indices = @transform_5, window_bounds = array<i64: 7, 832, 128>}, {pipeline_mode = #tpu.pipeline_mode<synchronous>, transform_indices = @transform_6, window_bounds = array<i64: 1, 128>}, {pipeline_mode = #tpu.pipeline_mode<synchronous>, transform_indices = @transform_7, window_bounds = array<i64: 128, 128>}, {pipeline_mode = #tpu.pipeline_mode<synchronous>, transform_indices = @transform_8, window_bounds = array<i64: 1, 128>}, {transform_indices = @transform_9, window_bounds = array<i64: 2, 128>}]} {
    %cst = arith.constant 0.000000e+00 : bf16
    %0 = vector.broadcast %cst : bf16 to vector<30x28xbf16>
    %c0 = arith.constant 0 : index
    %c0_0 = arith.constant 0 : index
    %1 = vector.load %arg11[%c0, %c0_0] : memref<30x28xbf16, #tpu.memory_space<vmem>>, vector<30x28xbf16>
    tpu.vector_store %arg11[%c0, %c0_0], %0 {strides = array<i32>} : memref<30x28xbf16, #tpu.memory_space<vmem>>, vector<30x28xbf16>,
    %cst_1 = arith.constant 0.000000e+00 : bf16
    %2 = vector.broadcast %cst_1 : bf16 to vector<16x864xbf16>
    %c0_2 = arith.constant 0 : index
    %c0_3 = arith.constant 0 : index
    %3 = vector.load %arg12[%c0_2, %c0_3] : memref<16x864xbf16, #tpu.memory_space<vmem>>, vector<16x864xbf16>
    tpu.vector_store %arg12[%c0_2, %c0_3], %2 {strides = array<i32>} : memref<16x864xbf16, #tpu.memory_space<vmem>>, vector<16x864xbf16>,
    %c0_i32 = arith.constant 0 : i32
    %c2_i32 = arith.constant 2 : i32
    %4 = arith.addi %c0_i32, %c2_i32 : i32
    %c1_i32 = arith.constant 1 : i32
    scf.for %arg14 = %c0_i32 to %4 step %c1_i32  : i32 {
      %61 = arith.index_cast %arg14 : i32 to index
      %c0_41 = arith.constant 0 : index
      %c0_42 = arith.constant 0 : index
      %62 = vector.load %arg1[%61, %c0_41, %c0_42] : memref<2x28x28xf32, #tpu.memory_space<vmem>>, vector<1x28x28xf32>
      %63 = vector.shape_cast %62 : vector<1x28x28xf32> to vector<28x28xf32>
      %64 = arith.truncf %63 : vector<28x28xf32> to vector<28x28xbf16>
      %c1_43 = arith.constant 1 : index
      %c0_44 = arith.constant 0 : index
      %65 = vector.load %arg11[%c1_43, %c0_44] : memref<30x28xbf16, #tpu.memory_space<vmem>>, vector<28x28xbf16>
      tpu.vector_store %arg11[%c1_43, %c0_44], %64 {strides = array<i32>} : memref<30x28xbf16, #tpu.memory_space<vmem>>, vector<28x28xbf16>,
      %cst_45 = arith.constant 0.000000e+00 : f32
      %66 = vector.broadcast %cst_45 : f32 to vector<28x896xf32>
      %c0_46 = arith.constant 0 : index
      %c0_47 = arith.constant 0 : index
      %67 = vector.load %arg11[%c0_46, %c0_47] : memref<30x28xbf16, #tpu.memory_space<vmem>>, vector<28x28xbf16>
      %c0_48 = arith.constant 0 : index
      %c0_49 = arith.constant 0 : index
      %c0_50 = arith.constant 0 : index
      %68 = vector.load %arg2[%c0_48, %c0_49, %c0_50] : memref<3x28x896xbf16, #tpu.memory_space<vmem>>, vector<1x28x896xbf16>
      %69 = vector.shape_cast %68 : vector<1x28x896xbf16> to vector<28x896xbf16>
      %cst_51 = arith.constant dense<0.000000e+00> : vector<28x896xf32>
      %70 = tpu.matmul %67, %69, %cst_51 {dimension_numbers = #tpu.dot_dimension_numbers<[1], [0], [0], [1], [0, 0, 1, 1], [], []>} : vector<28x28xbf16>, vector<28x896xbf16>, vector<28x896xf32> -> vector<28x896xf32>
      %71 = arith.addf %66, %70 : vector<28x896xf32>
      %c1_52 = arith.constant 1 : index
      %c0_53 = arith.constant 0 : index
      %72 = vector.load %arg11[%c1_52, %c0_53] : memref<30x28xbf16, #tpu.memory_space<vmem>>, vector<28x28xbf16>
      %c1_54 = arith.constant 1 : index
      %c0_55 = arith.constant 0 : index
      %c0_56 = arith.constant 0 : index
      %73 = vector.load %arg2[%c1_54, %c0_55, %c0_56] : memref<3x28x896xbf16, #tpu.memory_space<vmem>>, vector<1x28x896xbf16>
      %74 = vector.shape_cast %73 : vector<1x28x896xbf16> to vector<28x896xbf16>
      %cst_57 = arith.constant dense<0.000000e+00> : vector<28x896xf32>
      %75 = tpu.matmul %72, %74, %cst_57 {dimension_numbers = #tpu.dot_dimension_numbers<[1], [0], [0], [1], [0, 0, 1, 1], [], []>} : vector<28x28xbf16>, vector<28x896xbf16>, vector<28x896xf32> -> vector<28x896xf32>
      %76 = arith.addf %71, %75 : vector<28x896xf32>
      %c2_58 = arith.constant 2 : index
      %c0_59 = arith.constant 0 : index
      %77 = vector.load %arg11[%c2_58, %c0_59] : memref<30x28xbf16, #tpu.memory_space<vmem>>, vector<28x28xbf16>
      %c2_60 = arith.constant 2 : index
      %c0_61 = arith.constant 0 : index
      %c0_62 = arith.constant 0 : index
      %78 = vector.load %arg2[%c2_60, %c0_61, %c0_62] : memref<3x28x896xbf16, #tpu.memory_space<vmem>>, vector<1x28x896xbf16>
      %79 = vector.shape_cast %78 : vector<1x28x896xbf16> to vector<28x896xbf16>
      %cst_63 = arith.constant dense<0.000000e+00> : vector<28x896xf32>
      %80 = tpu.matmul %77, %79, %cst_63 {dimension_numbers = #tpu.dot_dimension_numbers<[1], [0], [0], [1], [0, 0, 1, 1], [], []>} : vector<28x28xbf16>, vector<28x896xbf16>, vector<28x896xf32> -> vector<28x896xf32>
      %81 = arith.addf %76, %80 : vector<28x896xf32>
      %c0_64 = arith.constant 0 : index
      %c0_65 = arith.constant 0 : index
      %82 = vector.load %arg3[%c0_64, %c0_65] : memref<1x896xf32, #tpu.memory_space<vmem>>, vector<1x896xf32>
      %83 = vector.broadcast %82 : vector<1x896xf32> to vector<28x896xf32>
      %84 = arith.addf %81, %83 : vector<28x896xf32>
      %cst_66 = arith.constant 0.000000e+00 : f32
      %85 = vector.broadcast %cst_66 : f32 to vector<28x896xf32>
      %86 = arith.maximumf %84, %85 : vector<28x896xf32>
      %87 = vector.shape_cast %86 : vector<28x896xf32> to vector<14x2x896xf32>
      %88 = vector.extract_strided_slice %87 {offsets = [0, 0, 0], sizes = [14, 1, 896], strides = [1, 1, 1]} : vector<14x2x896xf32> to vector<14x1x896xf32>
      %89 = vector.shape_cast %88 : vector<14x1x896xf32> to vector<14x896xf32>
      %90 = vector.extract_strided_slice %87 {offsets = [0, 1, 0], sizes = [14, 1, 896], strides = [1, 1, 1]} : vector<14x2x896xf32> to vector<14x1x896xf32>
      %91 = vector.shape_cast %90 : vector<14x1x896xf32> to vector<14x896xf32>
      %92 = arith.maximumf %89, %91 : vector<14x896xf32>
      %93 = vector.extract_strided_slice %92 {offsets = [0, 0], sizes = [14, 864], strides = [1, 1]} : vector<14x896xf32> to vector<14x864xf32>
      %94 = vector.extract_strided_slice %92 {offsets = [0, 32], sizes = [14, 864], strides = [1, 1]} : vector<14x896xf32> to vector<14x864xf32>
      %95 = arith.maximumf %93, %94 : vector<14x864xf32>
      %96 = arith.truncf %95 : vector<14x864xf32> to vector<14x864xbf16>
      %c1_67 = arith.constant 1 : index
      %c0_68 = arith.constant 0 : index
      %97 = vector.load %arg12[%c1_67, %c0_68] : memref<16x864xbf16, #tpu.memory_space<vmem>>, vector<14x864xbf16>
      tpu.vector_store %arg12[%c1_67, %c0_68], %96 {strides = array<i32>} : memref<16x864xbf16, #tpu.memory_space<vmem>>, vector<14x864xbf16>,
      %cst_69 = arith.constant 0.000000e+00 : f32
      %98 = vector.broadcast %cst_69 : f32 to vector<14x896xf32>
      %c0_70 = arith.constant 0 : index
      %c0_71 = arith.constant 0 : index
      %99 = vector.load %arg12[%c0_70, %c0_71] : memref<16x864xbf16, #tpu.memory_space<vmem>>, vector<14x864xbf16>
      %c0_72 = arith.constant 0 : index
      %c0_73 = arith.constant 0 : index
      %c0_74 = arith.constant 0 : index
      %100 = vector.load %arg4[%c0_72, %c0_73, %c0_74] : memref<3x864x896xbf16, #tpu.memory_space<vmem>>, vector<1x864x896xbf16>
      %101 = vector.shape_cast %100 : vector<1x864x896xbf16> to vector<864x896xbf16>
      %cst_75 = arith.constant dense<0.000000e+00> : vector<14x896xf32>
      %102 = tpu.matmul %99, %101, %cst_75 {dimension_numbers = #tpu.dot_dimension_numbers<[1], [0], [0], [1], [0, 0, 1, 1], [], []>} : vector<14x864xbf16>, vector<864x896xbf16>, vector<14x896xf32> -> vector<14x896xf32>
      %103 = arith.addf %98, %102 : vector<14x896xf32>
      %c1_76 = arith.constant 1 : index
      %c0_77 = arith.constant 0 : index
      %104 = vector.load %arg12[%c1_76, %c0_77] : memref<16x864xbf16, #tpu.memory_space<vmem>>, vector<14x864xbf16>
      %c1_78 = arith.constant 1 : index
      %c0_79 = arith.constant 0 : index
      %c0_80 = arith.constant 0 : index
      %105 = vector.load %arg4[%c1_78, %c0_79, %c0_80] : memref<3x864x896xbf16, #tpu.memory_space<vmem>>, vector<1x864x896xbf16>
      %106 = vector.shape_cast %105 : vector<1x864x896xbf16> to vector<864x896xbf16>
      %cst_81 = arith.constant dense<0.000000e+00> : vector<14x896xf32>
      %107 = tpu.matmul %104, %106, %cst_81 {dimension_numbers = #tpu.dot_dimension_numbers<[1], [0], [0], [1], [0, 0, 1, 1], [], []>} : vector<14x864xbf16>, vector<864x896xbf16>, vector<14x896xf32> -> vector<14x896xf32>
      %108 = arith.addf %103, %107 : vector<14x896xf32>
      %c2_82 = arith.constant 2 : index
      %c0_83 = arith.constant 0 : index
      %109 = vector.load %arg12[%c2_82, %c0_83] : memref<16x864xbf16, #tpu.memory_space<vmem>>, vector<14x864xbf16>
      %c2_84 = arith.constant 2 : index
      %c0_85 = arith.constant 0 : index
      %c0_86 = arith.constant 0 : index
      %110 = vector.load %arg4[%c2_84, %c0_85, %c0_86] : memref<3x864x896xbf16, #tpu.memory_space<vmem>>, vector<1x864x896xbf16>
      %111 = vector.shape_cast %110 : vector<1x864x896xbf16> to vector<864x896xbf16>
      %cst_87 = arith.constant dense<0.000000e+00> : vector<14x896xf32>
      %112 = tpu.matmul %109, %111, %cst_87 {dimension_numbers = #tpu.dot_dimension_numbers<[1], [0], [0], [1], [0, 0, 1, 1], [], []>} : vector<14x864xbf16>, vector<864x896xbf16>, vector<14x896xf32> -> vector<14x896xf32>
      %113 = arith.addf %108, %112 : vector<14x896xf32>
      %c0_88 = arith.constant 0 : index
      %c0_89 = arith.constant 0 : index
      %114 = vector.load %arg5[%c0_88, %c0_89] : memref<1x896xf32, #tpu.memory_space<vmem>>, vector<1x896xf32>
      %115 = vector.broadcast %114 : vector<1x896xf32> to vector<14x896xf32>
      %116 = arith.addf %113, %115 : vector<14x896xf32>
      %cst_90 = arith.constant 0.000000e+00 : f32
      %117 = vector.broadcast %cst_90 : f32 to vector<14x896xf32>
      %118 = arith.maximumf %116, %117 : vector<14x896xf32>
      %119 = vector.shape_cast %118 : vector<14x896xf32> to vector<7x2x896xf32>
      %120 = vector.extract_strided_slice %119 {offsets = [0, 0, 0], sizes = [7, 1, 896], strides = [1, 1, 1]} : vector<7x2x896xf32> to vector<7x1x896xf32>
      %121 = vector.shape_cast %120 : vector<7x1x896xf32> to vector<7x896xf32>
      %122 = vector.extract_strided_slice %119 {offsets = [0, 1, 0], sizes = [7, 1, 896], strides = [1, 1, 1]} : vector<7x2x896xf32> to vector<7x1x896xf32>
      %123 = vector.shape_cast %122 : vector<7x1x896xf32> to vector<7x896xf32>
      %124 = arith.maximumf %121, %123 : vector<7x896xf32>
      %125 = vector.extract_strided_slice %124 {offsets = [0, 0], sizes = [7, 832], strides = [1, 1]} : vector<7x896xf32> to vector<7x832xf32>
      %126 = vector.extract_strided_slice %124 {offsets = [0, 64], sizes = [7, 832], strides = [1, 1]} : vector<7x896xf32> to vector<7x832xf32>
      %127 = arith.maximumf %125, %126 : vector<7x832xf32>
      %128 = arith.truncf %127 : vector<7x832xf32> to vector<7x832xbf16>
      %129 = arith.index_cast %arg14 : i32 to index
      %c0_91 = arith.constant 0 : index
      %c0_92 = arith.constant 0 : index
      %130 = vector.load %arg13[%129, %c0_91, %c0_92] : memref<2x7x832xbf16, #tpu.memory_space<vmem>>, vector<1x7x832xbf16>
      %131 = vector.shape_cast %130 : vector<1x7x832xbf16> to vector<7x832xbf16>
      %132 = vector.shape_cast %128 : vector<7x832xbf16> to vector<1x7x832xbf16>
      tpu.vector_store %arg13[%129, %c0_91, %c0_92], %132 {strides = array<i32>} : memref<2x7x832xbf16, #tpu.memory_space<vmem>>, vector<1x7x832xbf16>,
    }
    %c2_i32_4 = arith.constant 2 : i32
    %c0_5 = arith.constant 0 : index
    %c0_6 = arith.constant 0 : index
    %c0_7 = arith.constant 0 : index
    %5 = vector.load %arg13[%c0_5, %c0_6, %c0_7] : memref<2x7x832xbf16, #tpu.memory_space<vmem>>, vector<2x7x832xbf16>
    %cst_8 = arith.constant 0.000000e+00 : f32
    %6 = vector.broadcast %cst_8 : f32 to vector<2x128xf32>
    %7 = vector.extract_strided_slice %5 {offsets = [0, 0, 0], sizes = [2, 1, 832], strides = [1, 1, 1]} : vector<2x7x832xbf16> to vector<2x1x832xbf16>
    %8 = vector.shape_cast %7 : vector<2x1x832xbf16> to vector<2x832xbf16>
    %c0_9 = arith.constant 0 : index
    %c0_10 = arith.constant 0 : index
    %c0_11 = arith.constant 0 : index
    %9 = vector.load %arg6[%c0_9, %c0_10, %c0_11] : memref<7x832x128xbf16, #tpu.memory_space<vmem>>, vector<1x832x128xbf16>
    %10 = vector.shape_cast %9 : vector<1x832x128xbf16> to vector<832x128xbf16>
    %cst_12 = arith.constant dense<0.000000e+00> : vector<2x128xf32>
    %11 = tpu.matmul %8, %10, %cst_12 {dimension_numbers = #tpu.dot_dimension_numbers<[1], [0], [0], [1], [0, 0, 1, 1], [], []>} : vector<2x832xbf16>, vector<832x128xbf16>, vector<2x128xf32> -> vector<2x128xf32>
    %12 = arith.addf %6, %11 : vector<2x128xf32>
    %13 = vector.extract_strided_slice %5 {offsets = [0, 1, 0], sizes = [2, 1, 832], strides = [1, 1, 1]} : vector<2x7x832xbf16> to vector<2x1x832xbf16>
    %14 = vector.shape_cast %13 : vector<2x1x832xbf16> to vector<2x832xbf16>
    %c1 = arith.constant 1 : index
    %c0_13 = arith.constant 0 : index
    %c0_14 = arith.constant 0 : index
    %15 = vector.load %arg6[%c1, %c0_13, %c0_14] : memref<7x832x128xbf16, #tpu.memory_space<vmem>>, vector<1x832x128xbf16>
    %16 = vector.shape_cast %15 : vector<1x832x128xbf16> to vector<832x128xbf16>
    %cst_15 = arith.constant dense<0.000000e+00> : vector<2x128xf32>
    %17 = tpu.matmul %14, %16, %cst_15 {dimension_numbers = #tpu.dot_dimension_numbers<[1], [0], [0], [1], [0, 0, 1, 1], [], []>} : vector<2x832xbf16>, vector<832x128xbf16>, vector<2x128xf32> -> vector<2x128xf32>
    %18 = arith.addf %12, %17 : vector<2x128xf32>
    %19 = vector.extract_strided_slice %5 {offsets = [0, 2, 0], sizes = [2, 1, 832], strides = [1, 1, 1]} : vector<2x7x832xbf16> to vector<2x1x832xbf16>
    %20 = vector.shape_cast %19 : vector<2x1x832xbf16> to vector<2x832xbf16>
    %c2 = arith.constant 2 : index
    %c0_16 = arith.constant 0 : index
    %c0_17 = arith.constant 0 : index
    %21 = vector.load %arg6[%c2, %c0_16, %c0_17] : memref<7x832x128xbf16, #tpu.memory_space<vmem>>, vector<1x832x128xbf16>
    %22 = vector.shape_cast %21 : vector<1x832x128xbf16> to vector<832x128xbf16>
    %cst_18 = arith.constant dense<0.000000e+00> : vector<2x128xf32>
    %23 = tpu.matmul %20, %22, %cst_18 {dimension_numbers = #tpu.dot_dimension_numbers<[1], [0], [0], [1], [0, 0, 1, 1], [], []>} : vector<2x832xbf16>, vector<832x128xbf16>, vector<2x128xf32> -> vector<2x128xf32>
    %24 = arith.addf %18, %23 : vector<2x128xf32>
    %25 = vector.extract_strided_slice %5 {offsets = [0, 3, 0], sizes = [2, 1, 832], strides = [1, 1, 1]} : vector<2x7x832xbf16> to vector<2x1x832xbf16>
    %26 = vector.shape_cast %25 : vector<2x1x832xbf16> to vector<2x832xbf16>
    %c3 = arith.constant 3 : index
    %c0_19 = arith.constant 0 : index
    %c0_20 = arith.constant 0 : index
    %27 = vector.load %arg6[%c3, %c0_19, %c0_20] : memref<7x832x128xbf16, #tpu.memory_space<vmem>>, vector<1x832x128xbf16>
    %28 = vector.shape_cast %27 : vector<1x832x128xbf16> to vector<832x128xbf16>
    %cst_21 = arith.constant dense<0.000000e+00> : vector<2x128xf32>
    %29 = tpu.matmul %26, %28, %cst_21 {dimension_numbers = #tpu.dot_dimension_numbers<[1], [0], [0], [1], [0, 0, 1, 1], [], []>} : vector<2x832xbf16>, vector<832x128xbf16>, vector<2x128xf32> -> vector<2x128xf32>
    %30 = arith.addf %24, %29 : vector<2x128xf32>
    %31 = vector.extract_strided_slice %5 {offsets = [0, 4, 0], sizes = [2, 1, 832], strides = [1, 1, 1]} : vector<2x7x832xbf16> to vector<2x1x832xbf16>
    %32 = vector.shape_cast %31 : vector<2x1x832xbf16> to vector<2x832xbf16>
    %c4 = arith.constant 4 : index
    %c0_22 = arith.constant 0 : index
    %c0_23 = arith.constant 0 : index
    %33 = vector.load %arg6[%c4, %c0_22, %c0_23] : memref<7x832x128xbf16, #tpu.memory_space<vmem>>, vector<1x832x128xbf16>
    %34 = vector.shape_cast %33 : vector<1x832x128xbf16> to vector<832x128xbf16>
    %cst_24 = arith.constant dense<0.000000e+00> : vector<2x128xf32>
    %35 = tpu.matmul %32, %34, %cst_24 {dimension_numbers = #tpu.dot_dimension_numbers<[1], [0], [0], [1], [0, 0, 1, 1], [], []>} : vector<2x832xbf16>, vector<832x128xbf16>, vector<2x128xf32> -> vector<2x128xf32>
    %36 = arith.addf %30, %35 : vector<2x128xf32>
    %37 = vector.extract_strided_slice %5 {offsets = [0, 5, 0], sizes = [2, 1, 832], strides = [1, 1, 1]} : vector<2x7x832xbf16> to vector<2x1x832xbf16>
    %38 = vector.shape_cast %37 : vector<2x1x832xbf16> to vector<2x832xbf16>
    %c5 = arith.constant 5 : index
    %c0_25 = arith.constant 0 : index
    %c0_26 = arith.constant 0 : index
    %39 = vector.load %arg6[%c5, %c0_25, %c0_26] : memref<7x832x128xbf16, #tpu.memory_space<vmem>>, vector<1x832x128xbf16>
    %40 = vector.shape_cast %39 : vector<1x832x128xbf16> to vector<832x128xbf16>
    %cst_27 = arith.constant dense<0.000000e+00> : vector<2x128xf32>
    %41 = tpu.matmul %38, %40, %cst_27 {dimension_numbers = #tpu.dot_dimension_numbers<[1], [0], [0], [1], [0, 0, 1, 1], [], []>} : vector<2x832xbf16>, vector<832x128xbf16>, vector<2x128xf32> -> vector<2x128xf32>
    %42 = arith.addf %36, %41 : vector<2x128xf32>
    %43 = vector.extract_strided_slice %5 {offsets = [0, 6, 0], sizes = [2, 1, 832], strides = [1, 1, 1]} : vector<2x7x832xbf16> to vector<2x1x832xbf16>
    %44 = vector.shape_cast %43 : vector<2x1x832xbf16> to vector<2x832xbf16>
    %c6 = arith.constant 6 : index
    %c0_28 = arith.constant 0 : index
    %c0_29 = arith.constant 0 : index
    %45 = vector.load %arg6[%c6, %c0_28, %c0_29] : memref<7x832x128xbf16, #tpu.memory_space<vmem>>, vector<1x832x128xbf16>
    %46 = vector.shape_cast %45 : vector<1x832x128xbf16> to vector<832x128xbf16>
    %cst_30 = arith.constant dense<0.000000e+00> : vector<2x128xf32>
    %47 = tpu.matmul %44, %46, %cst_30 {dimension_numbers = #tpu.dot_dimension_numbers<[1], [0], [0], [1], [0, 0, 1, 1], [], []>} : vector<2x832xbf16>, vector<832x128xbf16>, vector<2x128xf32> -> vector<2x128xf32>
    %48 = arith.addf %42, %47 : vector<2x128xf32>
    %c0_31 = arith.constant 0 : index
    %c0_32 = arith.constant 0 : index
    %49 = vector.load %arg7[%c0_31, %c0_32] : memref<1x128xf32, #tpu.memory_space<vmem>>, vector<1x128xf32>
    %50 = vector.broadcast %49 : vector<1x128xf32> to vector<2x128xf32>
    %51 = arith.addf %48, %50 : vector<2x128xf32>
    %cst_33 = arith.constant 0.000000e+00 : f32
    %52 = vector.broadcast %cst_33 : f32 to vector<2x128xf32>
    %53 = arith.maximumf %51, %52 : vector<2x128xf32>
    %54 = arith.truncf %53 : vector<2x128xf32> to vector<2x128xbf16>
    %c0_34 = arith.constant 0 : index
    %c0_35 = arith.constant 0 : index
    %55 = vector.load %arg8[%c0_34, %c0_35] : memref<128x128xbf16, #tpu.memory_space<vmem>>, vector<128x128xbf16>
    %cst_36 = arith.constant dense<0.000000e+00> : vector<2x128xf32>
    %56 = tpu.matmul %54, %55, %cst_36 {dimension_numbers = #tpu.dot_dimension_numbers<[1], [0], [0], [1], [0, 0, 1, 1], [], []>} : vector<2x128xbf16>, vector<128x128xbf16>, vector<2x128xf32> -> vector<2x128xf32>
    %c0_37 = arith.constant 0 : index
    %c0_38 = arith.constant 0 : index
    %57 = vector.load %arg9[%c0_37, %c0_38] : memref<1x128xf32, #tpu.memory_space<vmem>>, vector<1x128xf32>
    %58 = vector.broadcast %57 : vector<1x128xf32> to vector<2x128xf32>
    %59 = arith.addf %56, %58 : vector<2x128xf32>
    %c0_39 = arith.constant 0 : index
    %c0_40 = arith.constant 0 : index
    %60 = vector.load %arg10[%c0_39, %c0_40] : memref<2x128xf32, #tpu.memory_space<vmem>>, vector<2x128xf32>
    tpu.vector_store %arg10[%c0_39, %c0_40], %59 {strides = array<i32>} : memref<2x128xf32, #tpu.memory_space<vmem>>, vector<2x128xf32>,
    return
  }
  func.func @transform_0(%arg0: i32) -> (i32, i32, i32) {
    %c0_i32 = arith.constant 0 : i32
    %c0_i32_0 = arith.constant 0 : i32
    %c0_i32_1 = arith.constant 0 : i32
    return %arg0, %c0_i32, %c0_i32_0 : i32, i32, i32
  }
  func.func @transform_1(%arg0: i32) -> (i32, i32, i32) {
    %c0_i32 = arith.constant 0 : i32
    %c0_i32_0 = arith.constant 0 : i32
    %c0_i32_1 = arith.constant 0 : i32
    %c0_i32_2 = arith.constant 0 : i32
    return %c0_i32, %c0_i32_0, %c0_i32_1 : i32, i32, i32
  }
  func.func @transform_2(%arg0: i32) -> (i32, i32) {
    %c0_i32 = arith.constant 0 : i32
    %c0_i32_0 = arith.constant 0 : i32
    %c0_i32_1 = arith.constant 0 : i32
    return %c0_i32, %c0_i32_0 : i32, i32
  }
  func.func @transform_3(%arg0: i32) -> (i32, i32, i32) {
    %c0_i32 = arith.constant 0 : i32
    %c0_i32_0 = arith.constant 0 : i32
    %c0_i32_1 = arith.constant 0 : i32
    %c0_i32_2 = arith.constant 0 : i32
    return %c0_i32, %c0_i32_0, %c0_i32_1 : i32, i32, i32
  }
  func.func @transform_4(%arg0: i32) -> (i32, i32) {
    %c0_i32 = arith.constant 0 : i32
    %c0_i32_0 = arith.constant 0 : i32
    %c0_i32_1 = arith.constant 0 : i32
    return %c0_i32, %c0_i32_0 : i32, i32
  }
  func.func @transform_5(%arg0: i32) -> (i32, i32, i32) {
    %c0_i32 = arith.constant 0 : i32
    %c0_i32_0 = arith.constant 0 : i32
    %c0_i32_1 = arith.constant 0 : i32
    %c0_i32_2 = arith.constant 0 : i32
    return %c0_i32, %c0_i32_0, %c0_i32_1 : i32, i32, i32
  }
  func.func @transform_6(%arg0: i32) -> (i32, i32) {
    %c0_i32 = arith.constant 0 : i32
    %c0_i32_0 = arith.constant 0 : i32
    %c0_i32_1 = arith.constant 0 : i32
    return %c0_i32, %c0_i32_0 : i32, i32
  }
  func.func @transform_7(%arg0: i32) -> (i32, i32) {
    %c0_i32 = arith.constant 0 : i32
    %c0_i32_0 = arith.constant 0 : i32
    %c0_i32_1 = arith.constant 0 : i32
    return %c0_i32, %c0_i32_0 : i32, i32
  }
  func.func @transform_8(%arg0: i32) -> (i32, i32) {
    %c0_i32 = arith.constant 0 : i32
    %c0_i32_0 = arith.constant 0 : i32
    %c0_i32_1 = arith.constant 0 : i32
    return %c0_i32, %c0_i32_0 : i32, i32
  }
  func.func @transform_9(%arg0: i32) -> (i32, i32) {
    %c0_i32 = arith.constant 0 : i32
    %c0_i32_0 = arith.constant 0 : i32
    return %arg0, %c0_i32 : i32, i32
  }
}

</mosaic_0001>

<bundles_post_ra>
// kernel: classifier_forward.1
= control target key start
LH: loop header
LB: loop body
LE: loop exit
PB: predicated region body
PF: predicated region fallthrough
CT: control target
= control target key end

     0   :  { %14 = vsyncpa [#allocation6], 0  ;;  %s25428_s0 = inlined_call_operand.vmem [shape: f32[2,28,28], index: 0, kind: input, shape index: {}]   ;;  %s25429_s1 = inlined_call_operand.hbm [shape: bf16[3,28,896], index: 1, kind: input, shape index: {}]   ;;  %s25430_s2 = inlined_call_operand.hbm [shape: f32[1,896], index: 2, kind: input, shape index: {}]   ;;  %s25431_s3 = inlined_call_operand.hbm [shape: bf16[3,864,896], index: 3, kind: input, shape index: {}]   ;;  %s25432_s4 = inlined_call_operand.hbm [shape: f32[1,896], index: 4, kind: input, shape index: {}]   ;;  %s25433_s5 = inlined_call_operand.hbm [shape: bf16[7,832,128], index: 5, kind: input, shape index: {}]   ;;  %s25434_s6 = inlined_call_operand.hbm [shape: f32[1,128], index: 6, kind: input, shape index: {}]   ;;  %s25435_s7 = inlined_call_operand.hbm [shape: bf16[128,128], index: 7, kind: input, shape index: {}]   ;;  %s25436_s8 = inlined_call_operand.hbm [shape: f32[1,128], index: 8, kind: input, shape index: {}]   ;;  %s25437_s9 = inlined_call_operand.hbm [shape: f32[2,128], index: 9, kind: output, shape index: {}]  }
   0x1   :  { %15 = vsyncpa [#allocation9], 0 }
   0x2   :  { %16 = vsyncpa [#allocation12], 0 }
   0x3   :  { %17 = vsyncpa [#allocation15], 0 }
   0x4   :  { %18 = vsyncpa [#allocation18], 0 }
   0x5   :  { %19 = vsyncpa [#allocation7], 0  ;;  %s23202_s30 = smov [#allocation8]   ;;  %s23203_s11 = smov [#allocation11]  }
   0x6   :  { %s40_s10 = sshll.u32 %s23202_s30, 4  ;;  %s62_s12 = sshll.u32 %s23203_s11, 4  ;;  %s41_s10 = int_to_ptr.vmem [resolvable:$true] %s40_s10  ;;  %s63_s12 = int_to_ptr.vmem [resolvable:$true] %s62_s12 }
   0x7   :  { %s23010_s13 = scalar_lea.vmem %s41_s10, 112  ;;  %s23014_s14 = scalar_lea.vmem %s41_s10, 128 }
   0x8   :  { %p23011_p0 = scmp.ne.s32.totalorder %s41_s10, %s23010_s13  ;;  %p23015_p1 = scmp.lt.s32.totalorder %s41_s10, %s41_s10 }
   0x9   :  { %p23016_p2 = scmp.lt.s32.totalorder %s23014_s14, %s23010_s13 }
   0xb   :  { %p23017_p3 = por %p23016_p2, %p23015_p1 }
   0xd   :  { %p23018_p4 = pnand %p23017_p3, %p23011_p0 }
   0xf   :  { %23021 = shalt.err (!%p23018_p4)
}
  0x10   :  { %43 = dma.hbm_to_vmem [thread:$0]  %s25430_s2, 112, %s41_s10, [#allocation9]  }
  0x11   :  { %s23030_s17 = scalar_lea.vmem %s63_s12, 112  ;;  %s23034_s18 = scalar_lea.vmem %s63_s12, 128 }
  0x12   :  { %p23031_p5 = scmp.ne.s32.totalorder %s63_s12, %s23030_s17  ;;  %p23035_p6 = scmp.lt.s32.totalorder %s63_s12, %s63_s12 }
  0x13   :  { %p23036_p7 = scmp.lt.s32.totalorder %s23034_s18, %s23030_s17 }
  0x15   :  { %p23037_p8 = por %p23036_p7, %p23035_p6 }
  0x17   :  { %p23038_p9 = pnand %p23037_p8, %p23031_p5 }
  0x19   :  { %23041 = shalt.err (!%p23038_p9)
}
  0x1a   :  { %65 = dma.hbm_to_vmem [thread:$0]  %s25432_s4, 112, %s63_s12, [#allocation12]  }
  0x1b   :  { %s23204_s21 = smov [#allocation14]   ;;  %s23205_s23 = smov [#allocation5]  }
  0x1c   :  { %s84_s22 = sshll.u32 %s23204_s21, 4  ;;  %s27_s24 = sshll.u32 %s23205_s23, 4  ;;  %s85_s22 = int_to_ptr.vmem [resolvable:$true] %s84_s22  ;;  %s28_s24 = int_to_ptr.vmem [resolvable:$true] %s27_s24 }
  0x1d   :  { %s23050_s25 = scalar_lea.vmem %s85_s22, 16  ;;  %s23054_s2 = scalar_lea.vmem %s85_s22, 32 }
  0x1e   :  { %p23051_p10 = scmp.ne.s32.totalorder %s85_s22, %s23050_s25  ;;  %p23055_p11 = scmp.lt.s32.totalorder %s85_s22, %s85_s22 }
  0x1f   :  { %p23056_p12 = scmp.lt.s32.totalorder %s23054_s2, %s23050_s25 }
  0x21   :  { %p23057_p13 = por %p23056_p12, %p23055_p11 }
  0x23   :  { %p23058_p0 = pnand %p23057_p13, %p23051_p10 }
  0x25   :  { %23061 = shalt.err (!%p23058_p0)
}
  0x26   :  { %87 = dma.hbm_to_vmem [thread:$0]  %s25434_s6, 16, %s85_s22, [#allocation15]  }
  0x27   :  { %s23070_s28 = scalar_lea.vmem %s28_s24, 5376  ;;  %p23075_p2 = scmp.lt.s32.totalorder %s28_s24, %s28_s24 }
  0x28   :  { %p23071_p1 = scmp.ne.s32.totalorder %s28_s24, %s23070_s28  ;;  %p23076_p3 = scmp.lt.s32.totalorder %s23070_s28, %s23070_s28 }
  0x2a   :  { %p23077_p4 = por %p23076_p3, %p23075_p2 }
  0x2c   :  { %p23078_p5 = pnand %p23077_p4, %p23071_p1 }
  0x2e   :  { %23081 = shalt.err (!%p23078_p5)
}
  0x2f   :  { %s23206_s4 = smov 448   ;;  %s23207_s29 = smov 28  }
  0x30   :  { %33 = dma.hbm_to_vmem [thread:$0]  %s25429_s1, 5376, %s28_s24, [#allocation6], %s23206_s4, %s23206_s4, %s23207_s29  }
  0x31   :  { %s23208_s11 = smov [#allocation10]   ;;  %s23209_s13 = smov [#allocation13]  }
  0x32   :  { %s49_s12 = sshll.u32 %s23208_s11, 4  ;;  %s71_s14 = sshll.u32 %s23209_s13, 4  ;;  %s50_s12 = int_to_ptr.vmem [resolvable:$true] %s49_s12  ;;  %s72_s14 = int_to_ptr.vmem [resolvable:$true] %s71_s14 }
  0x33   :  { %s23090_s6 = scalar_lea.vmem %s50_s12, 145152  ;;  %p23095_p7 = scmp.lt.s32.totalorder %s50_s12, %s50_s12 }
  0x34   :  { %p23091_p6 = scmp.ne.s32.totalorder %s50_s12, %s23090_s6  ;;  %p23096_p8 = scmp.lt.s32.totalorder %s23090_s6, %s23090_s6 }
  0x36   :  { %p23097_p9 = por %p23096_p8, %p23095_p7 }
  0x38   :  { %p23098_p10 = pnand %p23097_p9, %p23091_p6 }
  0x3a   :  { %23101 = shalt.err (!%p23098_p10)
}
  0x3b   :  { %55 = dma.hbm_to_vmem [thread:$0]  %s25431_s3, 145152, %s50_s12, [#allocation9], %s23206_s4, %s23206_s4, %s23207_s29  }
  0x3c   :  { %s23110_s17 = scalar_lea.vmem %s72_s14, 46592  ;;  %p23115_p12 = scmp.lt.s32.totalorder %s72_s14, %s72_s14 }
  0x3d   :  { %p23111_p11 = scmp.ne.s32.totalorder %s72_s14, %s23110_s17  ;;  %p23116_p13 = scmp.lt.s32.totalorder %s23110_s17, %s23110_s17 }
  0x3f   :  { %p23117_p0 = por %p23116_p13, %p23115_p12 }
  0x41   :  { %p23118_p1 = pnand %p23117_p0, %p23111_p11 }
  0x43   :  { %23121 = shalt.err (!%p23118_p1)
}
  0x44   :  { %s23210_s1 = smov 64   ;;  %s23211_s18 = smov 4  }
  0x45   :  { %77 = dma.hbm_to_vmem [thread:$0]  %s25433_s5, 46592, %s72_s14, [#allocation12], %s23210_s1, %s23210_s1, %s23211_s18  }
  0x46   :  { %s23212_s21 = smov [#allocation16]   ;;  %s23213_s23 = smov [#allocation17]  }
  0x47   :  { %s93_s22 = sshll.u32 %s23212_s21, 4  ;;  %s106_s24 = sshll.u32 %s23213_s23, 4  ;;  %s94_s22 = int_to_ptr.vmem [resolvable:$true] %s93_s22  ;;  %s107_s24 = int_to_ptr.vmem [resolvable:$true] %s106_s24 }
  0x48   :  { %s23130_s3 = scalar_lea.vmem %s94_s22, 1024  ;;  %p23135_p3 = scmp.lt.s32.totalorder %s94_s22, %s94_s22 }
  0x49   :  { %p23131_p2 = scmp.ne.s32.totalorder %s94_s22, %s23130_s3  ;;  %p23136_p4 = scmp.lt.s32.totalorder %s23130_s3, %s23130_s3 }
  0x4b   :  { %p23137_p5 = por %p23136_p4, %p23135_p3 }
  0x4d   :  { %p23138_p6 = pnand %p23137_p5, %p23131_p2 }
  0x4f   :  { %23141 = shalt.err (!%p23138_p6)
}
  0x50   :  { %99 = dma.hbm_to_vmem [thread:$0]  %s25435_s7, 1024, %s94_s22, [#allocation15], %s23210_s1, %s23210_s1, %s23211_s18  }
  0x51   :  { %s23150_s26 = scalar_lea.vmem %s107_s24, 16  ;;  %s23154_s5 = scalar_lea.vmem %s107_s24, 32 }
  0x52   :  { %p23151_p7 = scmp.ne.s32.totalorder %s107_s24, %s23150_s26  ;;  %p23155_p8 = scmp.lt.s32.totalorder %s107_s24, %s107_s24 }
  0x53   :  { %p23156_p9 = scmp.lt.s32.totalorder %s23154_s5, %s23150_s26 }
  0x55   :  { %p23157_p10 = por %p23156_p9, %p23155_p8 }
  0x57   :  { %p23158_p11 = pnand %p23157_p10, %p23151_p7 }
  0x59   :  { %23161 = shalt.err (!%p23158_p11)
}
  0x5a   :  { %109 = dma.hbm_to_vmem [thread:$0]  %s25436_s8, 16, %s107_s24, [#allocation18]  }
  0x5b   :  { %23186 = dma.done.wait [#allocation6], 5376  }
  0x5c   :  { %23187 = vsyncadd [#allocation6], 4294961920 }
  0x5d   :  { %23188 = dma.done.wait [#allocation9], 145264  }
  0x5e   :  { %23189 = vsyncadd [#allocation9], 4294822032 }
  0x5f   :  { %23190 = dma.done.wait [#allocation12], 46704  }
  0x60   :  { %23191 = vsyncadd [#allocation12], 4294920592 }
  0x61   :  { %23192 = dma.done.wait [#allocation15], 1040  }
  0x62   :  { %23193 = vsyncadd [#allocation15], 4294966256 }
  0x63   :  { %23194 = dma.done.wait [#allocation18], 16  }
  0x64   :  { %23195 = vsyncadd [#allocation18], 4294967280  ;;  %vm25459_vm0 = vcmask 224256   ;;  %vm25460_vm1 = vcmask 223232   ;;  %vm144_vm2 = vcmask 781312   ;;  %v23214_v0 = vmov 0  }
  0x65   :  { %136 = vst.msk [vmem:[#allocation2] sm:$0xf] %vm25459_vm0, %v23214_v0  ;;  %137 = vst.msk [vmem:[#allocation2 + $0x4] sm:$0xf] %vm25459_vm0, %v23214_v0  ;;  %s23304_s7 = smov 0  }
  0x66   :  { %138 = vst.msk [vmem:[#allocation2 + $0x8] sm:$0xf] %vm25459_vm0, %v23214_v0  ;;  %141 = vst [vmem:[#allocation3] sm:$0xff] %v23214_v0 }
  0x67   :  { %142 = vst [vmem:[#allocation3 + $0x8] sm:$0xff] %v23214_v0  ;;  %143 = vst [vmem:[#allocation3 + $0x10] sm:$0xff] %v23214_v0 }
  0x68   :  { %146 = vst [vmem:[#allocation3 + $0x1c] sm:$0xff] %v23214_v0  ;;  %147 = vst [vmem:[#allocation3 + $0x24] sm:$0xff] %v23214_v0 }
  0x69   :  { %148 = vst [vmem:[#allocation3 + $0x2c] sm:$0xff] %v23214_v0  ;;  %140 = vst.msk [vmem:[#allocation2 + $0xc] sm:$0x7] %vm25460_vm1, %v23214_v0 }
  0x6a   :  { %145 = vst.msk [vmem:[#allocation3 + $0x18] sm:$0xf] %vm144_vm2, %v23214_v0  ;;  %149 = vst.msk [vmem:[#allocation3 + $0x34] sm:$0xf] %vm144_vm2, %v23214_v0 }
  0x6b LB: > { %v20921_v1 = vld [vmem:[#allocation5 + $0xac] ss:$28 sps:$4 sm:$0x3f]   ;;  %vm365_vm3 = vcmask 1045504   ;;  %v20927_v6 = vld [vmem:[#allocation5 + $0x74] ss:$28 sps:$4 sm:$0xff]   ;;  %s23200_s7 = sphi %s23304_s7, %s155_s7  }
  0x6c   : > { %v20923_v2 = vld [vmem:[#allocation5 + $0xa8] ss:$28 sps:$4 sm:$0x3f]   ;;  %18025 = vmatprep.subr.msk.bf16.mxu0 %vm365_vm3, %v20921_v1  ;;  %v20924_v3 = vld [vmem:[#allocation5 + $0xb4] ss:$28 sps:$4 sm:$0x3f]  }
  0x6d   : > { %v367_v4 = vsel %vm365_vm3, %v20923_v2, 0  ;;  %v20926_v5 = vld [vmem:[#allocation5 + $0xb0] ss:$28 sps:$4 sm:$0x3f]   ;;  %20779 = vmatprep.subr.msk.bf16.mxu1 %vm365_vm3, %v20924_v3  ;;  %s18004_s8 = sshll.u32 %s23200_s7, 5  ;;  %v25438_v11 = vmov 0  }
  0x6e   : > { %400 = vmatpush1.bf16.msra.mxu0 %v367_v4  ;;  %v20929_v7 = vld [vmem:[#allocation5 + $0x70] ss:$28 sps:$4 sm:$0xff]   ;;  %v23314_v8 = vsel %vm365_vm3, %v20926_v5, 0  ;;  %v23316_v9 = vld [vmem:[#allocation5 + $0x7c] ss:$28 sps:$4 sm:$0xff]   ;;  %419 = vmatprep.mubr.bf16.mxu0 %v25438_v11  ;;  %s157_s30 = scalar_lea.vmem %s25428_s0, %s18004_s8  ;;  %vm25465_vm0 = vcmask 224256  }
  0x6f   : > { %401 = vmatprep.subr.bf16.mxu0 %v20927_v6  ;;  %v23318_v10 = vld [vmem:[#allocation5 + $0x78] ss:$28 sps:$4 sm:$0xff]   ;;  %20781 = vmatpush1.bf16.msra.mxu1 %v23314_v8  ;;  %v158_v12 = vld [vmem:[%s157_s30] sm:$0xff]  ;;  %v159_v13 = vld [vmem:[%s157_s30 + $0x8] sm:$0xff]  ;;  %vm174_vm4 = vsmask.f32 256 }
  0x70   : > { %482 = vmatprep.mubr.bf16.mxu1 %v25438_v11  ;;  %v160_v14 = vld [vmem:[%s157_s30 + $0x10] sm:$0xff]  ;;  %20780 = vmatprep.subr.bf16.mxu1 %v23316_v9  ;;  %v161_v15 = vld [vmem:[%s157_s30 + $0x18] sm:$0xf]  ;;  %v19777_v16 = vpack.c.bf16 %v158_v12, %v158_v12  ;;  %v19778_v17 = vpack.c.bf16 %v159_v13, %v159_v13  ;;  %vm175_vm5 = vsmask.f32 4368  ;;  %vm25468_vm1 = vcmask 223232  }
  0x71   : > { %v19779_v18 = vpack.c.bf16 %v160_v14, %v160_v14  ;;  %v19780_v19 = vpack.c.bf16 %v161_v15, %v161_v15  ;;  %vm216_vm6 = vsmask.f32 7938  ;;  %vm23329_vm7 = vmor %vm174_vm4, %vm175_vm5  ;;  %vm224_vm8 = vsmask.f32 2304  ;;  %v218_v34 = vld [vmem:[#allocation2] sm:$0xf] }
  0x72   : > { %402 = vmatpush1.bf16.msra.mxu0 %v20929_v7  ;;  %v178_v20 = vshrl.u32 %v19777_v16, 16  ;;  %v181_v21 = vshll.u32 %v19777_v16, 16  ;;  %v186_v22 = vshrl.u32 %v19778_v17, 16  ;;  %v189_v23 = vshll.u32 %v19778_v17, 16  ;;  %vm23335_vm9 = vmand %vm25465_vm0, %vm216_vm6  ;;  %v226_v35 = vld [vmem:[#allocation2 + $0xc] sm:$0x7] }
  0x73   : > { %18028 = vmatprep.subr.msk.bf16.mxu0 %vm365_vm3, %v20924_v3  ;;  %20782 = vmatpush1.bf16.msra.mxu1 %v23318_v10  ;;  %v195_v24 = vshrl.u32 %v19779_v18, 16  ;;  %v198_v25 = vshll.u32 %v19779_v18, 16  ;;  %v204_v26 = vshrl.u32 %v19780_v19, 16  ;;  %v207_v27 = vshll.u32 %v19780_v19, 16  ;;  %vm225_vm10 = vmand %vm25468_vm1, %vm224_vm8  ;;  %v20936_v1 = vld [vmem:[#allocation5 + $0x88] ss:$28 sps:$4 sm:$0xff]  }
  0x74   : > { %v180_v29 = vrot.slane %v178_v20, 7  ;;  %v188_v30 = vrot.slane %v186_v22, 7  ;;  %v20935_v43 = vld [vmem:[#allocation5 + $0xc0] ss:$28 sps:$4 sm:$0x3f]   ;;  %vm358_vm12 = vcmask 228352  }
  0x75   : > { %v197_v31 = vrot.slane %v195_v24, 7  ;;  %v206_v32 = vrot.slane %v204_v26, 7  ;;  %20783 = vmatprep.subr.msk.bf16.mxu1 %vm365_vm3, %v20935_v43  ;;  %vm277_vm11 = vsmask.f32 7424  ;;  %v385_v0 = vsel %vm365_vm3, %v20935_v43, 0  ;;  %s23217_s10 = smov 96  }
  0x76   : > { %v183_v36 = vor.u32 %v181_v21, %v180_v29  ;;  %v184_v37 = vrot.slane %v180_v29, 4  ;;  %v191_v38 = vor.u32 %v189_v23, %v188_v30  ;;  %v193_v39 = vrot.slane %v188_v30, 4  ;;  %v20937_v2 = vld [vmem:[#allocation5 + $0x3c] ss:$28 sps:$4 sm:$0x3f]   ;;  %s23220_s11 = smov 64  }
  0x77   : > { %v200_v40 = vor.u32 %v198_v25, %v197_v31  ;;  %v202_v41 = vrot.slane %v197_v31, 4  ;;  %v209_v42 = vor.u32 %v207_v27, %v206_v32  ;;  %v20943_v3 = vld [vmem:[#allocation5 + $0xbc] ss:$28 sps:$4 sm:$0x3f]   ;;  %v20942_v6 = vld [vmem:[#allocation5 + $0x4] ss:$28 sps:$4 sm:$0xff]  }
  0x78   : > { %v192_v44 = vsel %vm23329_vm7, %v184_v37, %v191_v38  ;;  %v219_v45 = vsel %vm23335_vm9, %v183_v36, %v218_v34  ;;  %v20939_v4 = vld [vmem:[#allocation5 + $0x38] ss:$28 sps:$4 sm:$0x3f]   ;;  %v20948_v12 = vld [vmem:[#allocation5 + $0x84] ss:$28 sps:$4 sm:$0xff]   ;;  %vm918_vm13 = vcmask 1046528  }
  0x79   : > { %v201_v46 = vsel %vm23329_vm7, %v193_v39, %v200_v40  ;;  %v210_v47 = vsel %vm23329_vm7, %v202_v41, %v209_v42  ;;  %220 = vst [vmem:[#allocation2] sm:$0xf] %v219_v45  ;;  %221 = vst.msk [vmem:[#allocation2 + $0x4] sm:$0xf] %vm25465_vm0, %v192_v44  ;;  %v669_v5 = vsel %vm365_vm3, %v20939_v4, 0  ;;  %vm1872_vm14 = vcmask 785408  }
  0x7a   : > { %222 = vst.msk [vmem:[#allocation2 + $0x8] sm:$0xf] %vm25465_vm0, %v201_v46  ;;  %v227_v48 = vsel %vm225_vm10, %v210_v47, %v226_v35  ;;  %v20945_v7 = vld [vmem:[#allocation5 + $0xb8] ss:$28 sps:$4 sm:$0x3f]   ;;  %vm2938_vm15 = vcmask 1042434  }
  0x7b   : > { %228 = vst [vmem:[#allocation2 + $0xc] sm:$0x7] %v227_v48  ;;  %v379_v13 = vsel %vm365_vm3, %v20945_v7, 0  ;;  %v20958_v14 = vld [vmem:[#allocation5 + $0x14] ss:$28 sps:$4 sm:$0xff]   ;;  %vm25462_vm4 = vcmask 1043459  }
  0x7c   : > { %v20946_v15 = vld [vmem:[#allocation5 + $0x80] ss:$28 sps:$4 sm:$0xff]   ;;  %v20956_v20 = vld [vmem:[#allocation5 + $0x10] ss:$28 sps:$4 sm:$0xff]   ;;  %v20959_v25 = vld [vmem:[#allocation5 + $0x8] ss:$28 sps:$4 sm:$0xff]  }
  0x7d   : > { %v20949_v16 = vld [vmem:[#allocation5 + $0x44] ss:$28 sps:$4 sm:$0x3f]   ;;  %v20961_v22 = vld [vmem:[#allocation5 + $0xc] ss:$28 sps:$4 sm:$0xff]   ;;  %vm3034_vm5 = vcmask 1041409  }
  0x7e   : > { %v20952_v18 = vld [vmem:[#allocation5 + $0x40] ss:$28 sps:$4 sm:$0x3f]   ;;  %v20962_v26 = vld [vmem:[#allocation5 + $0x50] ss:$28 sps:$4 sm:$0x3f]  }
  0x7f   : > { %v20963_v21 = vld [vmem:[#allocation5 + $0x124] ss:$28 sps:$4 sm:$0x3f]   ;;  %v675_v24 = vsel %vm365_vm3, %v20952_v18, 0  ;;  %v20968_v28 = vld [vmem:[#allocation5 + $0xec] ss:$28 sps:$4 sm:$0xff]  }
  0x80   : > { %v229_v49 = vld [vmem:[#allocation2] sm:$0xf]  ;;  %v23351_v50 = vld [vmem:[#allocation2 + $0x4] sm:$0xf]  ;;  %v20969_v33 = vld [vmem:[#allocation5 + $0x18] ss:$28 sps:$4 sm:$0xff]  }
  0x81   : > { %v23353_v51 = vld [vmem:[#allocation2 + $0x8] sm:$0xf]  ;;  %v23356_v52 = vcombine.low %v229_v49, %v23351_v50  ;;  %v20965_v27 = vld [vmem:[#allocation5 + $0x120] ss:$28 sps:$4 sm:$0x3f]   ;;  %v687_v34 = vsel %vm365_vm3, %v20962_v26, 0 }
  0x82   : > { %v249_v53 = vld [vmem:[#allocation2 + $0xc] sm:$0x7]  ;;  %v1000_v29 = vsel %vm365_vm3, %v20965_v27, 0  ;;  %v20966_v30 = vld [vmem:[#allocation5 + $0xe8] ss:$28 sps:$4 sm:$0xff]   ;;  %vm25461_vm7 = vcmask 1044484  }
  0x83   : > { %v23359_v54 = vcombine.low %v23353_v51, %v249_v53  ;;  %v279_v55 = vshrl.u32 %v23356_v52, 16  ;;  %v281_v56 = vshll.u32 %v23356_v52, 16  ;;  %v232_v17 = vld [vmem:[#allocation2 + $0xc] sm:$0x3]  ;;  %v897_v31 = vld [vmem:[#allocation2] sm:$0xe] }
  0x84   : > { %v18036_v23 = vcombine.low %v23353_v51, %v232_v17  ;;  %v20974_v32 = vld [vmem:[#allocation5 + $0x130] ss:$28 sps:$4 sm:$0x3f]   ;;  %v18062_v35 = vcombine.low %v897_v31, %v23351_v50  ;;  %v20971_v36 = vld [vmem:[#allocation5 + $0x11c] ss:$28 sps:$4 sm:$0x3f]  }
  0x85   : > { %v283_v57 = vrot.slane %v281_v56, 1  ;;  %v286_v58 = vshll.u32 %v23359_v54, 16  ;;  %v290_v59 = vshrl.u32 %v23359_v54, 16  ;;  %v920_v37 = vrot.slane %v23359_v54, 1  ;;  %v20978_v39 = vld [vmem:[#allocation5 + $0xf8] ss:$28 sps:$4 sm:$0xff]  }
  0x86   : > { %v919_v38 = vrot.slane %v18062_v35, 1  ;;  %v1012_v41 = vsel %vm365_vm3, %v20974_v32, 0  ;;  %v20973_v42 = vld [vmem:[#allocation5 + $0x118] ss:$28 sps:$4 sm:$0x3f]   ;;  %vm2947_vm8 = vcmask 1045509  }
  0x87   : > { %v284_v60 = vor.u32 %v283_v57, %v279_v55  ;;  %v288_v61 = vrot.slane %v286_v58, 1  ;;  %v20977_v43 = vld [vmem:[#allocation5 + $0xe4] ss:$28 sps:$4 sm:$0xff]   ;;  %v994_v44 = vsel %vm365_vm3, %v20973_v42, 0  ;;  %v20984_v48 = vld [vmem:[#allocation5 + $0xf4] ss:$28 sps:$4 sm:$0xff]  }
  0x88   : > { %v921_v40 = vsel %vm918_vm13, %v919_v38, %v920_v37  ;;  %v20975_v45 = vld [vmem:[#allocation5 + $0xe0] ss:$28 sps:$4 sm:$0xff]   ;;  %v20979_v46 = vld [vmem:[#allocation5 + $0x12c] ss:$28 sps:$4 sm:$0x3f]   ;;  %vm3134_vm9 = vcmask 1043456  }
  0x89   : > { %v289_v62 = vsel %vm277_vm11, %v284_v60, %v288_v61  ;;  %v23366_v63 = vor.u32 %v290_v59, %v288_v61  ;;  %v20981_v47 = vld [vmem:[#allocation5 + $0x128] ss:$28 sps:$4 sm:$0x3f]   ;;  %v20982_v50 = vld [vmem:[#allocation5 + $0xf0] ss:$28 sps:$4 sm:$0xff]   ;;  %vm2950_vm13 = vcmask 1046534  }
  0x8a   : > { %18026 = vmatmul.mubr.msk.bf16.vlgmr.msra.gmra.mxu0 %vm358_vm12, %v289_v62  ;;  %v1006_v49 = vsel %vm365_vm3, %v20981_v47, 0  ;;  %v20985_v51 = vld [vmem:[#allocation10 + $0xd58] ss:$28 sps:$4 sm:$0xff]   ;;  %vm3154_vm10 = vsmask.f32 3328  ;;  %s19865_s12 = smul.u32 28, %s23200_s7 }
  0x8b   : > { %453 = vmatpush1.bf16.msra.mxu0 %v23314_v8  ;;  %18030 = vmatmul.mubr.msk.bf16.vlgmr.msra.gmra.mxu1 %vm358_vm12, %v23366_v63  ;;  %v20940_v8 = vld [vmem:[#allocation5] ss:$28 sps:$4 sm:$0xff]   ;;  %v20988_v53 = vld [vmem:[#allocation10 + $0x10d8] ss:$28 sps:$4 sm:$0xff]   ;;  %vm24356_vm0 = vmand %vm3134_vm9, %vm3154_vm10  ;;  %s155_s7 = sadd.s32 1, %s23200_s7  }
  0x8c   : > { %20604 = vmatpush3.bf16.msra.mxu1 %v385_v0  ;;  %429 = vmatprep.mubr.bf16.mxu0 %v25438_v11  ;;  %v20990_v54 = vld [vmem:[#allocation10 + $0x10dc] ss:$28 sps:$4 sm:$0xff]   ;;  %s25140_s13 = scalar_lea.vmem [#allocation4], %s19865_s12  ;;  %p152_p12 = scmp.ge.s32.totalorder %s155_s7, 2  }
  0x8d   : > { %20605 = vmatprep.subr.bf16.mxu1 %v20936_v1  ;;  %454 = vmatprep.subr.bf16.mxu0 %v23316_v9  ;;  %v20953_v9 = vld [vmem:[#allocation5 + $0x4c] ss:$28 sps:$4 sm:$0x3f]   ;;  %s23223_s0 = smov (%p152_p12), [#allocation19]  }
  0x8e   : > { %20607 = vmatprep.mubr.msk.bf16.mxu1 %vm358_vm12, %v289_v62  ;;  %s17982_s14 = sshll.u32 (%p152_p12), %s23223_s0, 4  ;;  %s17983_s14 = int_to_ptr.vmem [resolvable:$true] %s17982_s14 }
  0x8f   : > { %455 = vmatpush1.bf16.msra.mxu0 %v23318_v10  ;;  %v20955_v10 = vld [vmem:[#allocation5 + $0x48] ss:$28 sps:$4 sm:$0x3f]   ;;  %s23162_s6 = scalar_lea.vmem (%p152_p12), %s17983_s14, 32  ;;  %p23167_p0 = scmp.lt.s32.totalorder (%p152_p12), %s17983_s14, %s17983_s14 }
  0x90   : > { %20606 = vmatpush3.bf16.msra.mxu1 %v20936_v1  ;;  %18031 = vmatprep.subr.msk.bf16.mxu0 %vm365_vm3, %v20943_v3  ;;  %v681_v19 = vsel %vm365_vm3, %v20955_v10, 0  ;;  %p23163_p13 = scmp.ne.s32.totalorder (%p152_p12), %s17983_s14, %s23162_s6  ;;  %p23168_p1 = scmp.lt.s32.totalorder (%p152_p12), %s23162_s6, %s23162_s6 }
  0x91   : > { %18051 = vmatprep.subr.msk.bf16.mxu1 %vm365_vm3, %v20937_v2 }
  0x92   : > { %18027 = vmatmul.mubr.msk.bf16.gmra.mxu0 %vm358_vm12, %v23366_v63  ;;  %p23169_p2 = por (%p152_p12), %p23168_p1, %p23167_p0 }
  0x93   : > { %20608 = vmatmul.mubr.msk.bf16.vlgmr.msra.gmra.mxu1 %vm358_vm12, %v23366_v63  ;;  %472 = vmatprep.mubr.bf16.mxu0 %v25438_v11 }
  0x94   : > { %702 = vmatpush1.bf16.msra.mxu1 %v669_v5  ;;  %721 = vmatprep.mubr.bf16.mxu1 %v25438_v11  ;;  %p23170_p3 = pnand (%p152_p12), %p23169_p2, %p23163_p13 }
  0x95   : > { %703 = vmatprep.subr.bf16.mxu1 %v20942_v6 }
  0x98   : > { %704 = vmatpush1.bf16.msra.mxu1 %v20940_v8 }
  0x99   : > { %18057 = vmatprep.subr.msk.bf16.mxu1 %vm365_vm3, %v20953_v9 }
  0x9a   : > { %18029 = vmatmul.mubr.msk.bf16.vlgmr.msra.gmra.mxu0 %vm358_vm12, %v289_v62 }
  0x9b   : > { %506 = vmatpush1.bf16.msra.mxu0 %v379_v13  ;;  %18052 = vmatmul.mubr.msk.bf16.vlgmr.msra.gmra.mxu1 %vm358_vm12, %v23356_v52 }
  0x9c   : > { %507 = vmatprep.subr.bf16.mxu0 %v20948_v12  ;;  %525 = vmatprep.mubr.bf16.mxu0 %v25438_v11 }
  0x9d   : > { %731 = vmatprep.mubr.bf16.mxu1 %v25438_v11  ;;  %808 = vmatpush1.bf16.msra.mxu1 %v681_v19 }
  0x9e   : > { %809 = vmatprep.subr.bf16.mxu1 %v20958_v14 }
  0x9f   : > { %508 = vmatpush1.bf16.msra.mxu0 %v20946_v15 }
  0xa0   : > { %18054 = vmatprep.subr.msk.bf16.mxu0 %vm365_vm3, %v20949_v16 }
  0xa1   : > { %810 = vmatpush1.bf16.msra.mxu1 %v20956_v20 }
  0xa2   : > { %18032 = vmatmul.mubr.msk.bf16.vlgmr.msra.gmra.mxu0 %vm358_vm12, %v289_v62  ;;  %18080 = vmatprep.subr.msk.bf16.mxu1 %vm365_vm3, %v20963_v21 }
  0xa3   : > { %18053 = vmatmul.mubr.msk.bf16.gmra.mxu1 %vm358_vm12, %v18036_v23  ;;  %755 = vmatpush1.bf16.msra.mxu0 %v675_v24 }
  0xa4   : > { %535 = vmatprep.mubr.bf16.mxu0 %v25438_v11  ;;  %756 = vmatprep.subr.bf16.mxu0 %v20961_v22 }
  0xa5   : > { %827 = vmatprep.mubr.bf16.mxu1 %v25438_v11 }
  0xa7   : > { %757 = vmatpush1.bf16.msra.mxu0 %v20959_v25 }
  0xa8   : > { %20784 = vmatprep.subr.msk.bf16.mxu0 %vm365_vm3, %v20962_v26 }
  0xaa   : > { %18033 = vmatmul.mubr.msk.bf16.gmra.mxu0 %vm358_vm12, %v23366_v63 }
  0xab   : > { %18058 = vmatmul.mubr.msk.bf16.vlgmr.msra.gmra.mxu1 %vm358_vm12, %v23356_v52  ;;  %774 = vmatprep.mubr.bf16.mxu0 %v25438_v11 }
  0xac   : > { %837 = vmatprep.mubr.bf16.mxu1 %v25438_v11  ;;  %1080 = vmatpush1.bf16.msra.mxu1 %v1000_v29 }
  0xad   : > { %1081 = vmatprep.subr.bf16.mxu1 %v20968_v28 }
  0xb0   : > { %1082 = vmatpush1.bf16.msra.mxu1 %v20966_v30 }
  0xb1   : > { %20785 = vmatprep.subr.msk.bf16.mxu1 %vm365_vm3, %v20974_v32  ;;  %v1252_v32 = vlaneseq }
  0xb2   : > { %18055 = vmatmul.mubr.msk.bf16.vlgmr.msra.gmra.mxu0 %vm358_vm12, %v23356_v52 }
  0xb3   : > { %18059 = vmatmul.mubr.msk.bf16.gmra.mxu1 %vm358_vm12, %v18036_v23  ;;  %20612 = vmatpush3.bf16.msra.mxu0 %v687_v34 }
  0xb4   : > { %784 = vmatprep.mubr.bf16.mxu0 %v25438_v11  ;;  %20613 = vmatprep.subr.bf16.mxu0 %v20969_v33 }
  0xb5   : > { %1099 = vmatprep.mubr.bf16.mxu1 %v25438_v11 }
  0xb7   : > { %20614 = vmatpush3.bf16.msra.mxu0 %v20969_v33 }
  0xb8   : > { %18077 = vmatprep.subr.msk.bf16.mxu0 %vm365_vm3, %v20971_v36 }
  0xba   : > { %18056 = vmatmul.mubr.msk.bf16.gmra.mxu0 %vm358_vm12, %v18036_v23 }
  0xbb   : > { %18081 = vmatmul.mubr.msk.bf16.vlgmr.msra.gmra.mxu1 %vm358_vm12, %v921_v40  ;;  %20615 = vmatprep.mubr.msk.bf16.mxu0 %vm358_vm12, %v23356_v52  ;;  %v20987_v52 = vld [vmem:[#allocation10 + $0xd5c] ss:$28 sps:$4 sm:$0xff]  }
  0xbc   : > { %1109 = vmatprep.mubr.bf16.mxu1 %v25438_v11  ;;  %20620 = vmatpush3.bf16.msra.mxu1 %v1012_v41 }
  0xbd   : > { %20621 = vmatprep.subr.bf16.mxu1 %v20978_v39 }
  0xc0   : > { %20622 = vmatpush3.bf16.msra.mxu1 %v20978_v39  ;;  %v23216_v39 = vmov 1983009808  }
  0xc1   : > { %6122 = vmatprep.subr.bf16.mxu1 %v20990_v54 }
  0xc2   : > { %20616 = vmatmul.mubr.msk.bf16.vlgmr.msra.gmra.mxu0 %vm358_vm12, %v18036_v23 }
  0xc3   : > { %1027 = vmatpush1.bf16.msra.mxu0 %v994_v44  ;;  %18082 = vmatmul.mubr.msk.bf16.gmra.mxu1 %vm358_vm12, %v920_v37 }
  0xc4   : > { %1028 = vmatprep.subr.bf16.mxu0 %v20977_v43  ;;  %1046 = vmatprep.mubr.bf16.mxu0 %v25438_v11  ;;  %v1250_v43 = vld [vmem:[#allocation8] sm:$0xff] }
  0xc5   : > { %20623 = vmatprep.mubr.msk.bf16.mxu1 %vm358_vm12, %v921_v40 }
  0xc7   : > { %1029 = vmatpush1.bf16.msra.mxu0 %v20975_v45 }
  0xc8   : > { %18083 = vmatprep.subr.msk.bf16.mxu0 %vm365_vm3, %v20979_v46 }
  0xca   : > { %18078 = vmatmul.mubr.msk.bf16.vlgmr.msra.gmra.mxu0 %vm358_vm12, %v921_v40 }
  0xcb   : > { %1133 = vmatpush1.bf16.msra.mxu0 %v1006_v49  ;;  %20624 = vmatmul.mubr.msk.bf16.vlgmr.msra.gmra.mxu1 %vm358_vm12, %v920_v37 }
  0xcc   : > { %1056 = vmatprep.mubr.bf16.mxu0 %v25438_v11  ;;  %1134 = vmatprep.subr.bf16.mxu0 %v20984_v48 }
  0xcd   : > { %6123 = vmatpush1.bf16.msra.mxu1 %v20988_v53 }
  0xcf   : > { %1135 = vmatpush1.bf16.msra.mxu0 %v20982_v50 }
  0xd0   : > { %6079 = vmatprep.subr.bf16.mxu0 %v20987_v52 }
  0xd2   : > { %18079 = vmatmul.mubr.msk.bf16.gmra.mxu0 %vm358_vm12, %v920_v37 }
  0xd3   : > { %1152 = vmatprep.mubr.bf16.mxu0 %v25438_v11 }
  0xda   : > { %18084 = vmatmul.mubr.msk.bf16.vlgmr.msra.gmra.mxu0 %vm358_vm12, %v921_v40  ;;  %v1376_v40 = vunpack.c.l.s4 %v23216_v39 }
  0xdb   : > { %1162 = vmatprep.mubr.bf16.mxu0 %v25438_v11  ;;  %6080 = vmatpush1.bf16.msra.mxu0 %v20985_v51 }
  0xdc   : > { %v1377_v49 = vunpack.c.0.s8 %v1376_v40 }
  0xe2   : > { %18085 = vmatmul.mubr.msk.bf16.gmra.mxu0 %vm358_vm12, %v920_v37  ;;  %v23515_v37 = vshrl.u32 %v1252_v32, 7  ;;  %vm3136_vm12 = vcmask 1047556  }
  0xe3   : > { %vm3156_vm1 = vmand %vm3136_vm12, %vm277_vm11  ;;  %vm3137_vm11 = vsmask.f32 7954 }
  0xe4   : > { %25473 = vst [vmem:[#allocation30_spill] sm:$0xff] %v23515_v37  ;;  %v25440_v44 = vsub.s32 3, %v23515_v37  ;;  %v23523_v46 = vsub.s32 2, %v23515_v37  ;;  %v23526_v48 = vsub.s32 0, %v23515_v37  ;;  %v23529_v52 = vsub.s32 4, %v23515_v37 }
  0xe5   : > { %v23532_v53 = vsub.s32 6, %v23515_v37 }
  0xe6   : > { %25474 = vst [vmem:[#allocation31_spill] sm:$0xff] %v23523_v46  ;;  %25475 = vst [vmem:[#allocation32_spill] sm:$0xff] %v23526_v48  ;;  %v23537_v11 = vrot.slane %v1250_v43, %v25440_v44  ;;  %v23547_v54 = vrot.slane %v1250_v43, %v23526_v48  ;;  %v25480_v48 = vsub.s32 5, %v23515_v37 }
  0xe7   : > { %25476 = vst [vmem:[#allocation33_spill] sm:$0xff] %v23529_v52  ;;  %25477 = vst [vmem:[#allocation34_spill] sm:$0xff] %v23532_v53  ;;  %v23550_v44 = vrot.slane %v1250_v43, %v23532_v53 }
 0x14a   : > { %v23441_v55 = vpop.f32.mrf.mxu0 }
 0x14b   : > { %v23443_v56 = vpop.f32.mrf.mxu1 }
 0x14c   : > { %v23445_v57 = vpop.f32.mrf.mxu0 }
 0x14d   : > { %v23447_v58 = vpop.f32.mrf.mxu1 }
 0x14e   : > { %v23449_v59 = vpop.f32.mrf.mxu0 }
 0x14f   : > { %v23451_v60 = vpop.f32.mrf.mxu1 }
 0x150   : > { %v23453_v61 = vpop.f32.mrf.mxu0 }
 0x151   : > { %v23455_v62 = vpop.f32.mrf.mxu1 }
 0x152   : > { %v23457_v63 = vpop.f32.mrf.mxu0 }
 0x153   : > { %v23459_v0 = vpop.f32.mrf.mxu1 }
 0x154   : > { %25469 = vst [vmem:[#allocation26_spill] sm:$0xff] %v23459_v0  ;;  %v23461_v1 = vpop.f32.mrf.mxu0 }
 0x155   : > { %v23463_v2 = vpop.f32.mrf.mxu1 }
 0x156   : > { %25470 = vst [vmem:[#allocation27_spill] sm:$0xff] %v23463_v2  ;;  %v23465_v3 = vpop.f32.mrf.mxu0  ;;  %v23544_v2 = vsub.s32 %v1377_v49, %v23515_v37 }
 0x157   : > { %v23467_v4 = vpop.f32.mrf.mxu1 }
 0x158   : > { %25471 = vst [vmem:[#allocation28_spill] sm:$0xff] %v23467_v4  ;;  %v23469_v5 = vpop.f32.mrf.mxu0  ;;  %25478 = vst [vmem:[#allocation35_spill] sm:$0xff] %v23544_v2 }
 0x159   : > { %v23471_v6 = vpop.f32.mrf.mxu1 }
 0x15a   : > { %25472 = vst [vmem:[#allocation29_spill] sm:$0xff] %v23471_v6  ;;  %v474_v7 = vpop.f32.mrf.mxu0  ;;  %v25479_v6 = vsub.s32 1, %v23515_v37 }
 0x15b   : > { %v723_v8 = vpop.f32.mrf.mxu1 }
 0x15c   : > { %v476_v9 = vpop.f32.mrf.mxu0 }
 0x15d   : > { %v23473_v10 = vpop.f32.mrf.mxu1 }
 0x15e   : > { %v478_v12 = vpop.f32.mrf.mxu0 }
 0x15f   : > { %v23475_v13 = vpop.f32.mrf.mxu1 }
 0x160   : > { %v480_v14 = vpop.f32.mrf.mxu0 }
 0x161   : > { %v23477_v15 = vpop.f32.mrf.mxu1 }
 0x162   : > { %v23479_v16 = vpop.f32.mrf.mxu0 }
 0x163   : > { %v23481_v17 = vpop.f32.mrf.mxu1 }
 0x164   : > { %v23483_v18 = vpop.f32.mrf.mxu0 }
 0x165   : > { %v23485_v19 = vpop.f32.mrf.mxu1 }
 0x166   : > { %v23487_v20 = vpop.f32.mrf.mxu0 }
 0x167   : > { %v23489_v21 = vpop.f32.mrf.mxu1 }
 0x168   : > { %v23491_v22 = vpop.f32.mrf.mxu0 }
 0x169   : > { %v23493_v23 = vpop.f32.mrf.mxu1 }
 0x16a   : > { %v23495_v24 = vpop.f32.mrf.mxu0 }
 0x16b   : > { %v23497_v25 = vpop.f32.mrf.mxu1 }
 0x16c   : > { %v23499_v26 = vpop.f32.mrf.mxu0 }
 0x16d   : > { %v23501_v27 = vpop.f32.mrf.mxu1 }
 0x16e   : > { %v23503_v28 = vpop.f32.mrf.mxu0 }
 0x16f   : > { %v23505_v29 = vpop.f32.mrf.mxu1 }
 0x170   : > { %v23507_v30 = vpop.f32.mrf.mxu0 }
 0x171   : > { %v23509_v31 = vpop.f32.mrf.mxu1 }
 0x172   : > { %v776_v33 = vpop.f32.mrf.mxu0 }
 0x173   : > { %v23511_v34 = vpop.f32.mrf.mxu1  ;;  %v777_v50 = vadd.f32 %v776_v33, %v474_v7  ;;  %v23541_v7 = vrot.slane %v1250_v43, %v23523_v46 }
 0x174   : > { %v778_v35 = vpop.f32.mrf.mxu0 }
 0x175   : > { %v23513_v36 = vpop.f32.mrf.mxu1  ;;  %v779_v32 = vadd.f32 %v778_v35, %v476_v9 }
 0x176   : > { %v780_v38 = vpop.f32.mrf.mxu0 }
 0x177   : > { %v23517_v41 = vpop.f32.mrf.mxu1  ;;  %v781_v9 = vadd.f32 %v780_v38, %v478_v12  ;;  %v23563_v12 = vrot.slane %v1250_v43, %v25480_v48  ;;  %v23567_v38 = vadd.f32 %v23473_v10, %v23445_v57  ;;  %v23584_v57 = vadd.f32 %v23485_v19, %v23461_v1 }
 0x178   : > { %v782_v42 = vpop.f32.mrf.mxu0  ;;  %v23601_v1 = vadd.f32 %v23501_v27, %v23483_v18  ;;  %v23616_v18 = vadd.f32 %v23511_v34, %v23495_v24  ;;  %v23621_v27 = vadd.f32 %v23513_v36, %v23499_v26 }
 0x179   : > { %v23520_v45 = vpop.f32.mrf.mxu1  ;;  %v783_v49 = vadd.f32 %v782_v42, %v480_v14  ;;  %v23580_v14 = vadd.f32 %v23481_v17, %v23457_v63  ;;  %v23597_v63 = vadd.f32 %v23497_v25, %v23479_v16  ;;  %v23612_v16 = vadd.f32 %v23509_v31, %v23491_v22 }
 0x17a   : > { %v786_v47 = vpop.f32.mrf.mxu0  ;;  %v23626_v22 = vadd.f32 %v23517_v41, %v23503_v28  ;;  %v23630_v24 = vadd.f32 %v23520_v45, %v23507_v30 }
 0x17b   : > { %v1101_v51 = vpop.f32.mrf.mxu1 }
 0x17c   : > { %v788_v39 = vpop.f32.mrf.mxu0  ;;  %v1224_v4 = vadd.f32 %v1101_v51, %v777_v50  ;;  %v23554_v50 = vrot.slane %v1250_v43, %v25479_v6  ;;  %v23557_v51 = vrot.slane %v1250_v43, %v23529_v52  ;;  %v23571_v6 = vadd.f32 %v23475_v13, %v23449_v59 }
 0x17d   : > { %v1103_v33 = vpop.f32.mrf.mxu1  ;;  %v23588_v59 = vadd.f32 %v23489_v21, %v23465_v3  ;;  %v23605_v3 = vadd.f32 %v23505_v29, %v23487_v20  ;;  %v789_v17 = vadd.f32 %v788_v39, %v23447_v58 }
 0x17e   : > { %v1225_v40 = vadd.f32 %v1103_v33, %v779_v32  ;;  %v790_v0 = vpop.f32.mrf.mxu0  ;;  %v724_v32 = vadd.f32 %v723_v8, %v23441_v55  ;;  %v1289_v53 = vadd.f32 %v23541_v7, %v1224_v4  ;;  %v23576_v8 = vadd.f32 %v23477_v15, %v23453_v61 }
 0x17f   : > { %v1105_v35 = vpop.f32.mrf.mxu1  ;;  %v23592_v4 = vadd.f32 %v23493_v23, %v23469_v5  ;;  %v787_v61 = vadd.f32 %v786_v47, %v23443_v56  ;;  %v791_v20 = vadd.f32 %v790_v0, %v23451_v60 }
 0x180   : > { %v1290_v33 = vadd.f32 %v23537_v11, %v1225_v40  ;;  %v792_v46 = vpop.f32.mrf.mxu0  ;;  %v1231_v52 = vadd.f32 %v1105_v35, %v781_v9  ;;  %v1317_v19 = vmax.f32 %v1289_v53, 0.0  ;;  %v25481_v53 = vld [vmem:[#allocation26_spill] sm:$0xff]  ;;  %v25482_v35 = vld [vmem:[#allocation27_spill] sm:$0xff] }
 0x181   : > { %v1107_v55 = vpop.f32.mrf.mxu1  ;;  %v793_v26 = vadd.f32 %v792_v46, %v23455_v62 }
 0x182   : > { %v1232_v10 = vadd.f32 %v1107_v55, %v783_v49  ;;  %v20617_v42 = vpop.f32.mrf.mxu0  ;;  %v1318_v13 = vmax.f32 %v1290_v33, 0.0  ;;  %v1296_v56 = vadd.f32 %v23541_v7, %v1231_v52 }
 0x183   : > { %v1111_v15 = vpop.f32.mrf.mxu1  ;;  %v891_v39 = vadd.f32 %v20617_v42, %v25481_v53  ;;  %v25483_v42 = vld [vmem:[#allocation28_spill] sm:$0xff] }
 0x184   : > { %v882_v5 = vpop.f32.mrf.mxu0  ;;  %v1297_v21 = vadd.f32 %v23537_v11, %v1232_v10  ;;  %v1238_v23 = vadd.f32 %v1111_v15, %v787_v61  ;;  %v1373_v29 = vcombine.low %v1317_v19, %v1318_v13  ;;  %v1374_v47 = vcombine.high %v1317_v19, %v1318_v13 }
 0x185   : > { %v1113_v43 = vpop.f32.mrf.mxu1  ;;  %v1324_v34 = vmax.f32 %v1296_v56, 0.0  ;;  %v883_v49 = vadd.f32 %v882_v5, %v25482_v35 }
 0x186   : > { %v1239_v25 = vadd.f32 %v1113_v43, %v789_v17  ;;  %v20618_v58 = vpop.f32.mrf.mxu0  ;;  %v1303_v48 = vadd.f32 %v23541_v7, %v1238_v23  ;;  %v1325_v36 = vmax.f32 %v1297_v21, 0.0  ;;  %v23638_v30 = vrot.slane %v1373_v29, %v23544_v2 }
 0x187   : > { %v1115_v52 = vpop.f32.mrf.mxu1  ;;  %v23641_v45 = vrot.slane %v1374_v47, %v23544_v2  ;;  %v894_v13 = vadd.f32 %v20618_v58, %v25483_v42 }
 0x188   : > { %v1304_v60 = vadd.f32 %v23537_v11, %v1239_v25  ;;  %v1245_v0 = vadd.f32 %v1115_v52, %v791_v20  ;;  %v885_v31 = vpop.f32.mrf.mxu0  ;;  %v1331_v9 = vmax.f32 %v1303_v48, 0.0  ;;  %v1444_v5 = vcombine.low %v1324_v34, %v1325_v36 }
 0x189   : > { %v1117_v40 = vpop.f32.mrf.mxu1  ;;  %v1445_v23 = vcombine.high %v1324_v34, %v1325_v36 }
 0x18a   : > { %v1332_v28 = vmax.f32 %v1304_v60, 0.0  ;;  %v1310_v41 = vadd.f32 %v23541_v7, %v1245_v0  ;;  %v1048_v33 = vpop.f32.mrf.mxu0  ;;  %v1246_v55 = vadd.f32 %v1117_v40, %v793_v26  ;;  %v25484_v60 = vld [vmem:[#allocation29_spill] sm:$0xff]  ;;  %v23653_v34 = vrot.slane %v1444_v5, %v23544_v2 }
 0x18b   : > { %v1222_v10 = vadd.f32 %v1048_v33, %v724_v32  ;;  %v20625_v62 = vpop.f32.mrf.mxu1 }
 0x18c   : > { %v1515_v46 = vcombine.low %v1331_v9, %v1332_v28  ;;  %v1516_v61 = vcombine.high %v1331_v9, %v1332_v28  ;;  %v1242_v15 = vadd.f32 %v20625_v62, %v891_v39  ;;  %v1050_v17 = vpop.f32.mrf.mxu0  ;;  %v1311_v19 = vadd.f32 %v23537_v11, %v1246_v55 }
 0x18d   : > { %v1287_v7 = vadd.f32 %v23547_v54, %v1222_v10  ;;  %v1223_v56 = vadd.f32 %v1050_v17, %v23567_v38  ;;  %v1207_v21 = vpop.f32.mrf.mxu1  ;;  %v1338_v43 = vmax.f32 %v1310_v41, 0.0  ;;  %v886_v11 = vadd.f32 %v885_v31, %v25484_v60 }
 0x18e   : > { %v1307_v20 = vadd.f32 %v23550_v44, %v1242_v15  ;;  %v1228_v32 = vadd.f32 %v1207_v21, %v883_v49  ;;  %v1052_v25 = vpop.f32.mrf.mxu0  ;;  %v1339_v29 = vmax.f32 %v1311_v19, 0.0  ;;  %v23658_v9 = vrot.slane %v1445_v23, %v23544_v2 }
 0x18f   : > { %v1315_v47 = vmax.f32 %v1287_v7, 0.0  ;;  %v1288_v58 = vadd.f32 %v23554_v50, %v1223_v56  ;;  %v1229_v48 = vadd.f32 %v1052_v25, %v23571_v6  ;;  %v20626_v52 = vpop.f32.mrf.mxu1  ;;  %v23662_v41 = vrot.slane %v1515_v46, %v23544_v2 }
 0x190   : > { %v1335_v0 = vmax.f32 %v1307_v20, 0.0  ;;  %v1293_v26 = vadd.f32 %v23550_v44, %v1228_v32  ;;  %v1249_v38 = vadd.f32 %v20626_v52, %v894_v13  ;;  %v1054_v53 = vpop.f32.mrf.mxu0  ;;  %v1585_v6 = vcombine.low %v1338_v43, %v1339_v29 }
 0x191   : > { %v1316_v36 = vmax.f32 %v1288_v58, 0.0  ;;  %v1294_v39 = vadd.f32 %v23547_v54, %v1229_v48  ;;  %v1230_v40 = vadd.f32 %v1054_v53, %v23576_v8  ;;  %v1210_v49 = vpop.f32.mrf.mxu1  ;;  %v23665_v62 = vrot.slane %v1516_v61, %v23544_v2 }
 0x192   : > { %v1321_v35 = vmax.f32 %v1293_v26, 0.0  ;;  %v1314_v31 = vadd.f32 %v23550_v44, %v1249_v38  ;;  %v1058_v28 = vpop.f32.mrf.mxu0  ;;  %v1551_v42 = vcombine.high %v1335_v0, %v1335_v0  ;;  %v23668_v8 = vrot.slane %v1335_v0, %v23544_v2 }
 0x193   : > { %v1371_v33 = vcombine.low %v1315_v47, %v1316_v36  ;;  %v1372_v55 = vcombine.high %v1315_v47, %v1316_v36  ;;  %v1322_v10 = vmax.f32 %v1294_v39, 0.0  ;;  %v1295_v19 = vadd.f32 %v23554_v50, %v1230_v40 }
 0x194   : > { %v1342_v13 = vmax.f32 %v1314_v31, 0.0  ;;  %v1060_v15 = vpop.f32.mrf.mxu0  ;;  %v1235_v46 = vadd.f32 %v1210_v49, %v886_v11  ;;  %v23674_v7 = vrot.slane %v1585_v6, %v23544_v2  ;;  %v1409_v56 = vcombine.high %v1321_v35, %v1321_v35 }
 0x195   : > { %v1381_v17 = vrot.slane %v1371_v33, %v23544_v2  ;;  %v1388_v5 = vrot.slane %v1372_v55, %v23544_v2  ;;  %v1236_v61 = vadd.f32 %v1058_v28, %v23580_v14  ;;  %v1237_v21 = vadd.f32 %v1060_v15, %v23584_v57 }
 0x196   : > { %v1062_v23 = vpop.f32.mrf.mxu0  ;;  %v1323_v43 = vmax.f32 %v1295_v19, 0.0  ;;  %v1300_v20 = vadd.f32 %v23550_v44, %v1235_v46  ;;  %v23690_v53 = vrot.slane %v1551_v42, %v23544_v2  ;;  %v23693_v36 = vrot.slane %v1321_v35, %v23544_v2 }
 0x197   : > { %v1243_v32 = vadd.f32 %v1062_v23, %v23588_v59  ;;  %v1405_v25 = vcombine.low %v1388_v5, %v23641_v45  ;;  %v1301_v29 = vadd.f32 %v23547_v54, %v1236_v61  ;;  %v1302_v47 = vadd.f32 %v23554_v50, %v1237_v21 }
 0x198   : > { %v1064_v58 = vpop.f32.mrf.mxu0  ;;  %v1403_v48 = vcombine.low %v1381_v17, %v23638_v30  ;;  %v23685_v52 = vcombine.high %v1388_v5, %v23641_v45  ;;  %v1442_v14 = vcombine.low %v1322_v10, %v1323_v43  ;;  %v1443_v57 = vcombine.high %v1322_v10, %v1323_v43 }
 0x199   : > { %v1328_v60 = vmax.f32 %v1300_v20, 0.0  ;;  %v1308_v11 = vadd.f32 %v23547_v54, %v1243_v32  ;;  %v1329_v44 = vmax.f32 %v1301_v29, 0.0  ;;  %v1330_v0 = vmax.f32 %v1302_v47, 0.0 }
 0x19a   : > { %v1244_v59 = vadd.f32 %v1064_v58, %v23592_v4  ;;  %v1154_v26 = vpop.f32.mrf.mxu0  ;;  %v18092_v38 = vrot.slane %v1405_v25, 9  ;;  %v1437_v45 = vrot.slane %v1409_v56, %v23544_v2  ;;  %v23698_v28 = vrot.slane %v1342_v13, %v23544_v2 }
 0x19b   : > { %v1480_v39 = vcombine.high %v1328_v60, %v1328_v60  ;;  %v1513_v40 = vcombine.low %v1329_v44, %v1330_v0  ;;  %v1514_v6 = vcombine.high %v1329_v44, %v1330_v0  ;;  %v1336_v31 = vmax.f32 %v1308_v11, 0.0 }
 0x19c   : > { %v1309_v54 = vadd.f32 %v23554_v50, %v1244_v59  ;;  %v1156_v49 = vpop.f32.mrf.mxu0  ;;  %v23701_v4 = vrot.slane %v1442_v14, %v23544_v2  ;;  %v1226_v33 = vadd.f32 %v1154_v26, %v23597_v63  ;;  %v23706_v55 = vrot.slane %v1443_v57, %v23544_v2 }
 0x19d   : > { %v1227_v35 = vadd.f32 %v1156_v49, %v23601_v1  ;;  %v23709_v10 = vrot.slane %v1513_v40, %v23544_v2  ;;  %v18088_v50 = vrot.slane %v1403_v48, 9  ;;  %v18094_v46 = vrot.slane %v23685_v52, 9 }
 0x19e   : > { %v1337_v42 = vmax.f32 %v1309_v54, 0.0  ;;  %v1158_v15 = vpop.f32.mrf.mxu0  ;;  %v1291_v5 = vadd.f32 %v23557_v51, %v1226_v33  ;;  %v23716_v63 = vrot.slane %v1328_v60, %v23544_v2  ;;  %v23719_v1 = vrot.slane %v1480_v39, %v23544_v2 }
 0x19f   : > { %v1292_v13 = vadd.f32 %v23563_v12, %v1227_v35  ;;  %v1233_v19 = vadd.f32 %v1158_v15, %v23605_v3  ;;  %v1404_v61 = vcombine.high %v1381_v17, %v23638_v30  ;;  %v23724_v21 = vcombine.low %v23709_v10, %v23662_v41 }
 0x1a0   : > { %v1160_v56 = vpop.f32.mrf.mxu0  ;;  %v1319_v23 = vmax.f32 %v1291_v5, 0.0  ;;  %v23729_v32 = vrot.slane %v1514_v6, %v23544_v2  ;;  %v23731_v47 = vmax.f32 %v1405_v25, %v18092_v38  ;;  %v1584_v11 = vcombine.low %v1336_v31, %v1337_v42 }
 0x1a1   : > { %v1320_v43 = vmax.f32 %v1292_v13, 0.0  ;;  %v1298_v20 = vadd.f32 %v23557_v51, %v1233_v19  ;;  %v1234_v3 = vadd.f32 %v1160_v56, %v23612_v16  ;;  %v18090_v58 = vrot.slane %v1404_v61, 9 }
 0x1a2   : > { %v1164_v29 = vpop.f32.mrf.mxu0  ;;  %v18104_v14 = vrot.slane %v23724_v21, 9  ;;  %v23736_v59 = vmax.f32 %v1403_v48, %v18088_v50  ;;  %v23740_v16 = vcombine.high %v23706_v55, %v23658_v9  ;;  %v23753_v48 = vcombine.low %v23701_v4, %v23653_v34 }
 0x1a3   : > { %v1407_v30 = vcombine.low %v1319_v23, %v1320_v43  ;;  %v1408_v17 = vcombine.high %v1319_v23, %v1320_v43  ;;  %v1326_v57 = vmax.f32 %v1298_v20, 0.0  ;;  %v1299_v60 = vadd.f32 %v23563_v12, %v1234_v3 }
 0x1a4   : > { %v1240_v44 = vadd.f32 %v1164_v29, %v23616_v18  ;;  %v1166_v0 = vpop.f32.mrf.mxu0  ;;  %v18102_v31 = vrot.slane %v23740_v16, 9  ;;  %v23749_v18 = vcombine.low %v23729_v32, %v23665_v62 }
 0x1a5   : > { %v1416_v25 = vrot.slane %v1407_v30, %v23544_v2  ;;  %v1423_v26 = vrot.slane %v1408_v17, %v23544_v2  ;;  %v1327_v38 = vmax.f32 %v1299_v60, 0.0  ;;  %v1241_v39 = vadd.f32 %v1166_v0, %v23621_v27 }
 0x1a6   : > { %v1305_v40 = vadd.f32 %v23557_v51, %v1240_v44  ;;  %v1168_v6 = vpop.f32.mrf.mxu0 }
 0x1a7   : > { %v1478_v54 = vcombine.low %v1326_v57, %v1327_v38  ;;  %v1479_v49 = vcombine.high %v1326_v57, %v1327_v38  ;;  %v1306_v33 = vadd.f32 %v23563_v12, %v1241_v39  ;;  %v1247_v35 = vadd.f32 %v1168_v6, %v23626_v22 }
 0x1a8   : > { %v1333_v27 = vmax.f32 %v1305_v40, 0.0  ;;  %v1170_v42 = vpop.f32.mrf.mxu0  ;;  %v1440_v15 = vcombine.low %v1423_v26, %v1437_v45  ;;  %v1438_v50 = vcombine.low %v1416_v25, %v23693_v36  ;;  %v1441_v5 = vcombine.high %v1423_v26, %v1437_v45 }
 0x1a9   : > { %v1487_v13 = vrot.slane %v1478_v54, %v23544_v2  ;;  %v23760_v19 = vrot.slane %v1479_v49, %v23544_v2  ;;  %v1334_v56 = vmax.f32 %v1306_v33, 0.0  ;;  %v1312_v23 = vadd.f32 %v23557_v51, %v1247_v35 }
 0x1aa   : > { %v1248_v43 = vadd.f32 %v1170_v42, %v23630_v24  ;;  %v18093_v20 = vrot.slane %v1440_v15, 9  ;;  %v18089_v3 = vrot.slane %v1438_v50, 9  ;;  %v18095_v29 = vrot.slane %v1441_v5, 9 }
 0x1ab   : > { %v1549_v22 = vcombine.low %v1333_v27, %v1334_v56  ;;  %v1550_v30 = vcombine.high %v1333_v27, %v1334_v56  ;;  %v1340_v17 = vmax.f32 %v1312_v23, 0.0  ;;  %v1439_v57 = vcombine.high %v1416_v25, %v23693_v36 }
 0x1ac   : > { %v1313_v45 = vadd.f32 %v23563_v12, %v1248_v43  ;;  %v23766_v60 = vmax.f32 %v1440_v15, %v18093_v20  ;;  %v23768_v44 = vmax.f32 %v1438_v50, %v18089_v3  ;;  %v23770_v0 = vmax.f32 %v1441_v5, %v18095_v29 }
 0x1ad   : > { %v1558_v51 = vrot.slane %v1549_v22, %v23544_v2  ;;  %v1565_v24 = vrot.slane %v1550_v30, %v23544_v2  ;;  %v18091_v26 = vrot.slane %v1439_v57, 9  ;;  %v1512_v38 = vcombine.high %v23760_v19, %v23719_v1 }
 0x1ae   : > { %v1341_v39 = vmax.f32 %v1313_v45, 0.0  ;;  %v20826_v36 = vpack.i.bf16 %v23766_v60, %v23731_v47  ;;  %v20816_v12 = vpack.i.bf16 %v23768_v44, %v23736_v59  ;;  %v23783_v25 = vmax.f32 %v23685_v52, %v18094_v46 }
 0x1af   : > { %v23785_v40 = vmax.f32 %v1404_v61, %v18090_v58  ;;  %v23787_v6 = vmax.f32 %v1439_v57, %v18091_v26  ;;  %v1580_v54 = vcombine.low %v1558_v51, %v23668_v8  ;;  %v18103_v49 = vrot.slane %v1512_v38, 9 }
 0x1b0   : > { %v1602_v33 = vcombine.low %v1340_v17, %v1341_v39  ;;  %20827 = vrot.lane.b32.xlu1 %v20826_v36, %s23217_s10  ;;  %20817 = vrot.lane.b32.xlu0 %v20816_v12, %s23217_s10  ;;  %v1582_v35 = vcombine.low %v1565_v24, %v23690_v53  ;;  %v18108_v27 = vrot.slane %v23749_v18, 9  ;;  %v1509_v52 = vcombine.low %v1487_v13, %v23716_v63  ;;  %v20991_v36 = vld [vmem:[#allocation10 + $0xd20] ss:$28 sps:$4 sm:$0xff]  }
 0x1b1   : > { %v1592_v46 = vrot.slane %v1584_v11, %v23544_v2  ;;  %v20831_v61 = vpack.i.bf16 %v23770_v0, %v23783_v25  ;;  %v18105_v58 = vrot.slane %v1580_v54, 9  ;;  %v18096_v42 = vrot.slane %v23753_v48, 9  ;;  %v20993_v12 = vld [vmem:[#allocation10 + $0xd24] ss:$28 sps:$4 sm:$0xff]  }
 0x1b2   : > { %v20821_v15 = vpack.i.bf16 %v23787_v6, %v23785_v40  ;;  %v23801_v50 = vmax.f32 %v1512_v38, %v18103_v49  ;;  %v18109_v5 = vrot.slane %v1582_v35, 9  ;;  %v18097_v56 = vrot.slane %v1509_v52, 9  ;;  %6081 = vmatprep.subr.bf16.mxu0 %v20993_v12  ;;  %v21018_v12 = vld [vmem:[#allocation10 + $0xfc0] ss:$28 sps:$4 sm:$0xff]  }
 0x1b3   : > { %v1609_v23 = vrot.slane %v1602_v33, %v23544_v2  ;;  %v23807_v43 = vmax.f32 %v23724_v21, %v18104_v14  ;;  %v23809_v11 = vmax.f32 %v1580_v54, %v18105_v58  ;;  %v1548_v20 = vcombine.high %v23729_v32, %v23665_v62  ;;  %6082 = vmatpush1.bf16.msra.mxu0 %v20991_v36  ;;  %v21002_v58 = vld [vmem:[#allocation10 + $0x106c] ss:$28 sps:$4 sm:$0xff]   ;;  %v21015_v36 = vld [vmem:[#allocation10 + $0xc40] ss:$28 sps:$4 sm:$0xff]  }
 0x1b4   : > { %20832 = vrot.lane.b32.xlu1 %v20831_v61, %s23217_s10  ;;  %20822 = vrot.lane.b32.xlu0 %v20821_v15, %s23217_s10  ;;  %v23816_v3 = vmax.f32 %v23740_v16, %v18102_v31  ;;  %v23818_v29 = vmax.f32 %v1582_v35, %v18109_v5  ;;  %v1583_v22 = vcombine.high %v1565_v24, %v23690_v53  ;;  %v21072_v2 = vld [vmem:[#allocation10 + $0x1148] ss:$28 sps:$4 sm:$0xff]  }
 0x1b5   : > { %v20851_v21 = vpack.i.bf16 %v23809_v11, %v23807_v43  ;;  %v18110_v14 = vrot.slane %v1548_v20, 9  ;;  %v1475_v30 = vcombine.high %v23701_v4, %v23653_v34  ;;  %v1510_v62 = vcombine.high %v1487_v13, %v23716_v63 }
 0x1b6   : > { %v20836_v32 = vpack.i.bf16 %v23801_v50, %v23816_v3  ;;  %v23828_v17 = vmax.f32 %v1509_v52, %v18097_v56  ;;  %v18111_v16 = vrot.slane %v1583_v22, 9  ;;  %v1600_v31 = vcombine.low %v1592_v46, %v23674_v7 }
 0x1b7   : > { %v23832_v57 = vmax.f32 %v23749_v18, %v18108_v27  ;;  %v18098_v53 = vrot.slane %v1475_v30, 9  ;;  %v18099_v45 = vrot.slane %v1510_v62, 9  ;;  %v1617_v24 = vcombine.low %v1609_v23, %v23698_v28 }
 0x1b8   : > { %20852 = vrot.lane.b32.xlu1 %v20851_v21, %s23217_s10  ;;  %20837 = vrot.lane.b32.xlu0 %v20836_v32, %s23217_s10  ;;  %v23838_v34 = vmax.f32 %v23753_v48, %v18096_v42  ;;  %v18112_v4 = vrot.slane %v1600_v31, 9  ;;  %v1546_v63 = vcombine.high %v23709_v10, %v23662_v41  ;;  %v1581_v13 = vcombine.high %v1558_v51, %v23668_v8  ;;  %v20994_v41 = vld [vmem:[#allocation10 + $0x10a0] ss:$28 sps:$4 sm:$0xff]  }
 0x1b9   : > { %v20866_v18 = vpack.i.bf16 %v23818_v29, %v23832_v57  ;;  %v23845_v26 = vmax.f32 %v1583_v22, %v18111_v16  ;;  %v18113_v38 = vrot.slane %v1617_v24, 9  ;;  %v1601_v39 = vcombine.high %v1592_v46, %v23674_v7  ;;  %v20996_v10 = vld [vmem:[#allocation10 + $0x10a4] ss:$28 sps:$4 sm:$0xff]  }
 0x1ba   : > { %v20841_v48 = vpack.i.bf16 %v23828_v17, %v23838_v34  ;;  %v23850_v54 = vmax.f32 %v1510_v62, %v18099_v45  ;;  %v18106_v49 = vrot.slane %v1546_v63, 9  ;;  %v18107_v33 = vrot.slane %v1581_v13, 9  ;;  %6124 = vmatprep.subr.bf16.mxu1 %v20996_v10  ;;  %v21003_v45 = vld [vmem:[#allocation10 + $0xcb0] ss:$28 sps:$4 sm:$0xff]  }
 0x1bb   : > { %v23852_v8 = vmax.f32 %v1548_v20, %v18110_v14  ;;  %v1618_v51 = vcombine.high %v1609_v23, %v23698_v28  ;;  %v18114_v35 = vrot.slane %v1601_v39, 9  ;;  %v23857_v7 = vmax.f32 %v1475_v30, %v18098_v53  ;;  %v20999_v28 = vld [vmem:[#allocation10 + $0xcec] ss:$28 sps:$4 sm:$0xff]   ;;  %6125 = vmatpush1.bf16.msra.mxu1 %v20994_v41  ;;  %v21008_v53 = vld [vmem:[#allocation10 + $0x1034] ss:$28 sps:$4 sm:$0xff]  }
 0x1bc   : > { %20867 = vrot.lane.b32.xlu1 %v20866_v18, %s23217_s10  ;;  %20842 = vrot.lane.b32.xlu0 %v20841_v48, %s23217_s10  ;;  %v1476_v27 = vcombine.low %v23706_v55, %v23658_v9  ;;  %v1511_v61 = vcombine.low %v23760_v19, %v23719_v1  ;;  %v23867_v15 = vmax.f32 %v1617_v24, %v18113_v38  ;;  %v20997_v9 = vld [vmem:[#allocation10 + $0xce8] ss:$28 sps:$4 sm:$0xff]   ;;  %v21006_v24 = vld [vmem:[#allocation10 + $0x1030] ss:$28 sps:$4 sm:$0xff]   ;;  %v21012_v18 = vld [vmem:[#allocation10 + $0xff8] ss:$28 sps:$4 sm:$0xff]  }
 0x1bd   : > { %v20871_v52 = vpack.i.bf16 %v23845_v26, %v23852_v8  ;;  %v18115_v46 = vrot.slane %v1618_v51, 9  ;;  %v20846_v42 = vpack.i.bf16 %v23850_v54, %v23857_v7  ;;  %v23869_v5 = vmax.f32 %v1581_v13, %v18107_v33  ;;  %v21000_v55 = vld [vmem:[#allocation10 + $0x1068] ss:$28 sps:$4 sm:$0xff]   ;;  %6083 = vmatprep.subr.bf16.mxu0 %v20999_v28  ;;  %6126 = vmatprep.subr.bf16.mxu1 %v21002_v58  ;;  %v21009_v13 = vld [vmem:[#allocation10 + $0xc78] ss:$28 sps:$4 sm:$0xff]  }
 0x1be   : > { %v18100_v56 = vrot.slane %v1476_v27, 9  ;;  %v18101_v23 = vrot.slane %v1511_v61, 9  ;;  %v23873_v1 = vmax.f32 %v1600_v31, %v18112_v4  ;;  %v23875_v19 = vmax.f32 %v1546_v63, %v18106_v49  ;;  %6084 = vmatpush1.bf16.msra.mxu0 %v20997_v9  ;;  %v21005_v31 = vld [vmem:[#allocation10 + $0xcb4] ss:$28 sps:$4 sm:$0xff]   ;;  %v21011_v4 = vld [vmem:[#allocation10 + $0xc7c] ss:$28 sps:$4 sm:$0xff]  }
 0x1bf   : > { %25485 = vst [vmem:[#allocation26_spill] sm:$0xff] %v23869_v5  ;;  %v23881_v21 = vmax.f32 %v1618_v51, %v18115_v46  ;;  %6127 = vmatpush1.bf16.msra.mxu1 %v21000_v55  ;;  %v23887_v30 = vmax.f32 %v1601_v39, %v18114_v35  ;;  %6085 = vmatprep.subr.bf16.mxu0 %v21005_v31  ;;  %v21014_v63 = vld [vmem:[#allocation10 + $0xffc] ss:$28 sps:$4 sm:$0xff]   ;;  %v21017_v38 = vld [vmem:[#allocation10 + $0xc44] ss:$28 sps:$4 sm:$0xff]  }
 0x1c0   : > { %20872 = vrot.lane.b32.xlu1 %v20871_v52, %s23217_s10  ;;  %20847 = vrot.lane.b32.xlu0 %v20846_v42, %s23217_s10  ;;  %25486 = vst [vmem:[#allocation27_spill] sm:$0xff] %v23875_v19  ;;  %v20876_v20 = vpack.i.bf16 %v23867_v15, %v23873_v1  ;;  %v20856_v22 = vpack.i.bf16 %v23869_v5, %v23875_v19  ;;  %v21020_v39 = vld [vmem:[#allocation10 + $0xfc4] ss:$28 sps:$4 sm:$0xff]   ;;  %v21023_v48 = vld [vmem:[#allocation10 + $0xc0c] ss:$28 sps:$4 sm:$0xff]  }
 0x1c1   : > { %25487 = vst [vmem:[#allocation28_spill] sm:$0xff] %v23881_v21  ;;  %v23883_v14 = vmax.f32 %v1511_v61, %v18101_v23  ;;  %25489 = vst [vmem:[#allocation36_spill] sm:$0xff] %v23887_v30  ;;  %v23889_v62 = vmax.f32 %v1476_v27, %v18100_v56  ;;  %v20881_v32 = vpack.i.bf16 %v23881_v21, %v23887_v30  ;;  %6128 = vmatprep.subr.bf16.mxu1 %v21008_v53  ;;  %v21026_v49 = vld [vmem:[#allocation10 + $0xf8c] ss:$28 sps:$4 sm:$0xff]   ;;  %v21029_v10 = vld [vmem:[#allocation10 + $0xbd4] ss:$28 sps:$4 sm:$0xff]  }
 0x1c2   : > { %6086 = vmatpush1.bf16.msra.mxu0 %v21003_v45  ;;  %v21021_v33 = vld [vmem:[#allocation10 + $0xc08] ss:$28 sps:$4 sm:$0xff]   ;;  %v21032_v51 = vld [vmem:[#allocation10 + $0xf54] ss:$28 sps:$4 sm:$0xff]   ;;  %v21035_v52 = vld [vmem:[#allocation10 + $0xf1c] ss:$28 sps:$4 sm:$0xff]  }
 0x1c3   : > { %25488 = vst [vmem:[#allocation29_spill] sm:$0xff] %v23883_v14  ;;  %25490 = vst [vmem:[#allocation37_spill] sm:$0xff] %v23889_v62  ;;  %v20861_v16 = vpack.i.bf16 %v23883_v14, %v23889_v62  ;;  %6129 = vmatpush1.bf16.msra.mxu1 %v21006_v24  ;;  %6087 = vmatprep.subr.bf16.mxu0 %v21011_v4  ;;  %v21024_v41 = vld [vmem:[#allocation10 + $0xf88] ss:$28 sps:$4 sm:$0xff]   ;;  %v21027_v35 = vld [vmem:[#allocation10 + $0xbd0] ss:$28 sps:$4 sm:$0xff]  }
 0x1c4   : > { %20877 = vrot.lane.b32.xlu1 %v20876_v20, %s23217_s10  ;;  %20857 = vrot.lane.b32.xlu0 %v20856_v22, %s23217_s10  ;;  %v21030_v27 = vld [vmem:[#allocation10 + $0xf50] ss:$28 sps:$4 sm:$0xff]   ;;  %v21038_v46 = vld [vmem:[#allocation10 + $0x129c] ss:$28 sps:$4 sm:$0xff]   ;;  %v21041_v31 = vld [vmem:[#allocation10 + $0xee4] ss:$28 sps:$4 sm:$0xff]  }
 0x1c5   : > { %6130 = vmatprep.subr.bf16.mxu1 %v21014_v63  ;;  %v21033_v58 = vld [vmem:[#allocation10 + $0xf18] ss:$28 sps:$4 sm:$0xff]   ;;  %v21039_v53 = vld [vmem:[#allocation10 + $0xee0] ss:$28 sps:$4 sm:$0xff]  }
 0x1c6   : > { %6088 = vmatpush1.bf16.msra.mxu0 %v21009_v13  ;;  %v21036_v42 = vld [vmem:[#allocation10 + $0x1298] ss:$28 sps:$4 sm:$0xff]   ;;  %v21042_v45 = vld [vmem:[#allocation10 + $0x1260] ss:$28 sps:$4 sm:$0xff]  }
 0x1c7   : > { %6131 = vmatpush1.bf16.msra.mxu1 %v21012_v18  ;;  %6089 = vmatprep.subr.bf16.mxu0 %v21017_v38  ;;  %v21044_v24 = vld [vmem:[#allocation10 + $0x1264] ss:$28 sps:$4 sm:$0xff]  }
 0x1c8   : > { %20882 = vrot.lane.b32.xlu1 %v20881_v32, %s23217_s10  ;;  %20862 = vrot.lane.b32.xlu0 %v20861_v16, %s23217_s10 }
 0x1c9   : > { %6132 = vmatprep.subr.bf16.mxu1 %v21020_v39 }
 0x1ca   : > { %6090 = vmatpush1.bf16.msra.mxu0 %v21015_v36 }
 0x1cb   : > { %6133 = vmatpush1.bf16.msra.mxu1 %v21018_v12  ;;  %6091 = vmatprep.subr.bf16.mxu0 %v21023_v48  ;;  %v21047_v12 = vld [vmem:[#allocation10 + $0xeac] ss:$28 sps:$4 sm:$0xff]  }
 0x1cc   : > { %6134 = vmatprep.subr.bf16.mxu1 %v21026_v49  ;;  %v21050_v48 = vld [vmem:[#allocation10 + $0x122c] ss:$28 sps:$4 sm:$0xff]  }
 0x1cd   : > { %v25491_v49 = vld [vmem:[#allocation32_spill] sm:$0xff] }
 0x1ce   : > { %6092 = vmatpush1.bf16.msra.mxu0 %v21021_v33 }
 0x1cf   : > { %6135 = vmatpush1.bf16.msra.mxu1 %v21024_v41  ;;  %6093 = vmatprep.subr.bf16.mxu0 %v21029_v10  ;;  %v25492_v41 = vld [vmem:[#allocation31_spill] sm:$0xff] }
 0x1d0   : > { %6136 = vmatprep.subr.bf16.mxu1 %v21032_v51  ;;  %v25493_v51 = vld [vmem:[#allocation33_spill] sm:$0xff] }
 0x1d2   : > { %6094 = vmatpush1.bf16.msra.mxu0 %v21027_v35 }
 0x1d3   : > { %6137 = vmatpush1.bf16.msra.mxu1 %v21030_v27  ;;  %6095 = vmatprep.subr.bf16.mxu0 %v21035_v52  ;;  %v21048_v52 = vld [vmem:[#allocation10 + $0x1228] ss:$28 sps:$4 sm:$0xff]  }
 0x1d4   : > { %6138 = vmatprep.subr.bf16.mxu1 %v21038_v46 }
 0x1d6   : > { %6096 = vmatpush2.bf16.msra.mxu0 %v21033_v58 }
 0x1d7   : > { %6139 = vmatpush2.bf16.msra.mxu1 %v21036_v42  ;;  %6097 = vmatprep.subr.bf16.mxu0 %v21041_v31  ;;  %v25494_v42 = vld [vmem:[#allocation34_spill] sm:$0xff]  ;;  %v21054_v31 = vld [vmem:[#allocation10 + $0x11f0] ss:$28 sps:$4 sm:$0xff]  }
 0x1d8   : > { %6140 = vmatprep.subr.bf16.mxu1 %v21044_v24 }
 0x1da   : > { %6098 = vmatpush2.bf16.msra.mxu0 %v21039_v53 }
 0x1db   : > { %6141 = vmatpush2.bf16.msra.mxu1 %v21042_v45  ;;  %6099 = vmatprep.subr.bf16.mxu0 %v21047_v12 }
 0x1dc   : > { %6142 = vmatprep.subr.bf16.mxu1 %v21050_v48 }
 0x1df   : > { %6143 = vmatpush2.bf16.msra.mxu1 %v21048_v52 }
 0x222   : > { %v20828_v61 = vpop.permute.xlu1 %20827  ;;  %v20818_v28 = vpop.permute.xlu0 %20817 }
 0x223   : > { %v20830_v56 = vunpack.i.h.bf16 %v20828_v61  ;;  %v20829_v9 = vunpack.i.l.bf16 %v20828_v61  ;;  %v20820_v55 = vunpack.i.h.bf16 %v20818_v28  ;;  %v20819_v23 = vunpack.i.l.bf16 %v20818_v28 }
 0x225   : > { %v1848_v20 = vrot.slane %v20830_v56, 2  ;;  %v1847_v22 = vrot.slane %v20829_v9, 2  ;;  %v1844_v32 = vrot.slane %v20820_v55, 2  ;;  %v1843_v16 = vrot.slane %v20819_v23, 2 }
 0x227   : > { %v1880_v4 = vsel %vm1872_vm14, %v20830_v56, %v1848_v20  ;;  %v1878_v63 = vsel %vm365_vm3, %v1847_v22, %v1848_v20  ;;  %v1874_v13 = vsel %vm1872_vm14, %v20820_v55, %v1844_v32  ;;  %v1871_v39 = vsel %vm365_vm3, %v1843_v16, %v1844_v32  ;;  %v21053_v55 = vld [vmem:[#allocation10 + $0xe74] ss:$28 sps:$4 sm:$0xff]  }
 0x228   : > { %v1947_v18 = vmax.f32 %v23766_v60, %v1880_v4  ;;  %v1879_v38 = vsel %vm1872_vm14, %v20829_v9, %v1878_v63  ;;  %v1943_v27 = vmax.f32 %v23768_v44, %v1874_v13  ;;  %v21045_v60 = vld [vmem:[#allocation10 + $0xea8] ss:$28 sps:$4 sm:$0xff]   ;;  %v23913_v9 = vpop.permute.xlu1 %20832  ;;  %v21056_v44 = vld [vmem:[#allocation10 + $0x11f4] ss:$28 sps:$4 sm:$0xff]  }
 0x229   : > { %v1946_v36 = vmax.f32 %v23731_v47, %v1879_v38  ;;  %v1873_v47 = vsel %vm1872_vm14, %v20819_v23, %v1871_v39  ;;  %6100 = vmatpush2.bf16.msra.mxu0 %v21045_v60  ;;  %v21051_v23 = vld [vmem:[#allocation10 + $0xe70] ss:$28 sps:$4 sm:$0xff]   ;;  %v20835_v45 = vunpack.i.h.bf16 %v23913_v9  ;;  %v20834_v24 = vunpack.i.l.bf16 %v23913_v9  ;;  %6144 = vmatprep.subr.bf16.mxu1 %v21056_v44  ;;  %v23923_v38 = vpop.permute.xlu0 %20822 }
 0x22a   : > { %v2073_v33 = vrot.slane %v1947_v18, %v25491_v49  ;;  %v2077_v10 = vrot.slane %v1947_v18, %v25492_v41  ;;  %v2081_v35 = vrot.slane %v1947_v18, %v25493_v51  ;;  %v2017_v22 = vrot.slane %v1943_v27, %v25491_v49  ;;  %6101 = vmatprep.subr.bf16.mxu0 %v21053_v55 }
 0x22b   : > { %v2057_v46 = vrot.slane %v1946_v36, %v25491_v49  ;;  %v2061_v61 = vrot.slane %v1946_v36, %v25492_v41  ;;  %v2065_v58 = vrot.slane %v1946_v36, %v25493_v51  ;;  %v2069_v56 = vrot.slane %v1946_v36, %v25494_v42  ;;  %6145 = vmatpush2.bf16.msra.mxu1 %v21054_v31 }
 0x22c   : > { %v19791_v28 = vpack.c.bf16 %v2077_v10, %v2073_v33  ;;  %v19792_v20 = vpack.c.bf16 %v2081_v35, %v2081_v35  ;;  %v2021_v32 = vrot.slane %v1943_v27, %v25492_v41  ;;  %v1942_v16 = vmax.f32 %v23736_v59, %v1873_v47  ;;  %v21059_v59 = vld [vmem:[#allocation10 + $0xe3c] ss:$28 sps:$4 sm:$0xff]  }
 0x22d   : > { %v19789_v53 = vpack.c.bf16 %v2061_v61, %v2057_v46  ;;  %v19790_v63 = vpack.c.bf16 %v2069_v56, %v2065_v58  ;;  %v23921_v18 = vrot.slane %v1943_v27, %v25493_v51  ;;  %6102 = vmatpush2.bf16.msra.mxu0 %v21051_v23  ;;  %v21057_v33 = vld [vmem:[#allocation10 + $0xe38] ss:$28 sps:$4 sm:$0xff]   ;;  %v1850_v27 = vrot.slane %v20835_v45, 2 }
 0x22e   : > { %v2856_v4 = vunpack.c.l.b16 %v19791_v28  ;;  %v2857_v13 = vunpack.c.h.b16 %v19791_v28  ;;  %v23925_v39 = vunpack.c.l.b16 %v19792_v20  ;;  %v23927_v36 = vpack.c.bf16 %v2021_v32, %v2017_v22  ;;  %v21060_v10 = vld [vmem:[#allocation10 + $0x11b8] ss:$28 sps:$4 sm:$0xff]   ;;  %6103 = vmatprep.subr.bf16.mxu0 %v21059_v59  ;;  %v21065_v20 = vld [vmem:[#allocation10 + $0xe04] ss:$28 sps:$4 sm:$0xff]  }
 0x22f   : > { %v2001_v12 = vrot.slane %v1942_v16, %v25491_v49  ;;  %v2005_v48 = vrot.slane %v1942_v16, %v25492_v41  ;;  %v21062_v35 = vld [vmem:[#allocation10 + $0x11bc] ss:$28 sps:$4 sm:$0xff]   ;;  %v2852_v60 = vunpack.c.l.b16 %v19789_v53  ;;  %v2853_v52 = vunpack.c.h.b16 %v19789_v53  ;;  %v21068_v22 = vld [vmem:[#allocation10 + $0x1184] ss:$28 sps:$4 sm:$0xff]  }
 0x230   : > { %v1849_v46 = vrot.slane %v20834_v24, 2  ;;  %v23931_v61 = vrot.slane %v2856_v4, 5  ;;  %v2854_v47 = vunpack.c.l.b16 %v19790_v63  ;;  %v2855_v28 = vunpack.c.h.b16 %v19790_v63  ;;  %6146 = vmatprep.subr.bf16.mxu1 %v21062_v35  ;;  %v21063_v4 = vld [vmem:[#allocation10 + $0xe00] ss:$28 sps:$4 sm:$0xff]  }
 0x231   : > { %v20825_v58 = vunpack.i.h.bf16 %v23923_v38  ;;  %v23934_v56 = vrot.slane %v2857_v13, 5  ;;  %v2009_v9 = vrot.slane %v1942_v16, %v25493_v51  ;;  %v2013_v55 = vrot.slane %v1942_v16, %v25494_v42  ;;  %6104 = vmatpush2.bf16.msra.mxu0 %v21057_v33  ;;  %6147 = vmatpush2.bf16.msra.mxu1 %v21060_v10  ;;  %v21066_v63 = vld [vmem:[#allocation10 + $0x1180] ss:$28 sps:$4 sm:$0xff]   ;;  %v21069_v13 = vld [vmem:[#allocation10 + $0xdc8] ss:$28 sps:$4 sm:$0xff]  }
 0x232   : > { %v1883_v44 = vsel %vm1872_vm14, %v20835_v45, %v1850_v27  ;;  %v1881_v23 = vsel %vm365_vm3, %v1849_v46, %v1850_v27  ;;  %v20824_v53 = vunpack.i.l.bf16 %v23923_v38  ;;  %v23943_v59 = vrot.slane %v2852_v60, 5  ;;  %6105 = vmatprep.subr.bf16.mxu0 %v21065_v20  ;;  %6148 = vmatprep.subr.bf16.mxu1 %v21068_v22 }
 0x233   : > { %v1949_v32 = vmax.f32 %v23770_v0, %v1883_v44  ;;  %v1846_v31 = vrot.slane %v20825_v58, 2  ;;  %v19784_v16 = vpack.c.bf16 %v23921_v18, %v23921_v18  ;;  %v2842_v45 = vunpack.c.l.b16 %v23927_v36  ;;  %v21071_v18 = vld [vmem:[#allocation10 + $0xdcc] ss:$28 sps:$4 sm:$0xff]  }
 0x234   : > { %v23948_v0 = vrot.slane %v2853_v52, 5  ;;  %v1882_v10 = vsel %vm1872_vm14, %v20834_v24, %v1881_v23  ;;  %v23953_v35 = vrot.slane %v2854_v47, 5  ;;  %v19781_v27 = vpack.c.bf16 %v2005_v48, %v2001_v12  ;;  %v21074_v44 = vld [vmem:[#allocation10 + $0x114c] ss:$28 sps:$4 sm:$0xff]   ;;  %v21077_v47 = vld [vmem:[#allocation10 + $0xd94] ss:$28 sps:$4 sm:$0xff]  }
 0x235   : > { %v2101_v33 = vrot.slane %v1949_v32, %v25491_v49  ;;  %v2105_v38 = vrot.slane %v1949_v32, %v25492_v41  ;;  %v19782_v60 = vpack.c.bf16 %v2013_v55, %v2009_v9  ;;  %v1877_v46 = vsel %vm1872_vm14, %v20825_v58, %v1846_v31  ;;  %6106 = vmatpush2.bf16.msra.mxu0 %v21063_v4  ;;  %v21075_v48 = vld [vmem:[#allocation10 + $0xd90] ss:$28 sps:$4 sm:$0xff]  }
 0x236   : > { %v2109_v20 = vrot.slane %v1949_v32, %v25493_v51  ;;  %v1945_v52 = vmax.f32 %v23787_v6, %v1877_v46  ;;  %v1845_v22 = vrot.slane %v20824_v53, 2  ;;  %6149 = vmatpush2.bf16.msra.mxu1 %v21066_v63  ;;  %v23958_v37 = vrot.slane %v2855_v28, 5  ;;  %6107 = vmatprep.subr.bf16.mxu0 %v21071_v18  ;;  %v21080_v32 = vld [vmem:[#allocation10 + $0x1114] ss:$28 sps:$4 sm:$0xff]  }
 0x237   : > { %v23960_v24 = vrot.slane %v2842_v45, 7  ;;  %v1948_v12 = vmax.f32 %v23783_v25, %v1882_v10  ;;  %v2843_v58 = vunpack.c.h.b16 %v23927_v36  ;;  %v23964_v9 = vunpack.c.l.b16 %v19784_v16  ;;  %6150 = vmatprep.subr.bf16.mxu1 %v21074_v44  ;;  %v23968_v45 = vpop.permute.xlu1 %20852  ;;  %v21078_v16 = vld [vmem:[#allocation10 + $0x1110] ss:$28 sps:$4 sm:$0xff]  }
 0x238   : > { %v19795_v55 = vpack.c.bf16 %v2105_v38, %v2101_v33  ;;  %v2045_v6 = vrot.slane %v1945_v52, %v25491_v49  ;;  %v2838_v23 = vunpack.c.l.b16 %v19781_v27  ;;  %v2839_v4 = vunpack.c.h.b16 %v19781_v27 }
 0x239   : > { %v2840_v28 = vunpack.c.l.b16 %v19782_v60  ;;  %v2049_v63 = vrot.slane %v1945_v52, %v25492_v41  ;;  %6108 = vmatpush2.bf16.msra.mxu0 %v21069_v13  ;;  %v2841_v25 = vunpack.c.h.b16 %v19782_v60  ;;  %v19796_v10 = vpack.c.bf16 %v2109_v20, %v2109_v20 }
 0x23a   : > { %v2053_v46 = vrot.slane %v1945_v52, %v25493_v51  ;;  %v1875_v36 = vsel %vm365_vm3, %v1845_v22, %v1846_v31  ;;  %6151 = vmatpush2.bf16.msra.mxu1 %v21072_v2  ;;  %6109 = vmatprep.subr.bf16.mxu0 %v21077_v47  ;;  %v2085_v33 = vrot.slane %v1948_v12, %v25491_v49  ;;  %v2863_v44 = vunpack.c.l.b16 %v19795_v55  ;;  %v21083_v47 = vld [vmem:[#allocation10 + $0x145c] ss:$28 sps:$4 sm:$0xff]  }
 0x23b   : > { %v2089_v38 = vrot.slane %v1948_v12, %v25492_v41  ;;  %v2093_v27 = vrot.slane %v1948_v12, %v25493_v51  ;;  %v2097_v18 = vrot.slane %v1948_v12, %v25494_v42  ;;  %6152 = vmatprep.subr.bf16.mxu1 %v21080_v32  ;;  %v19787_v13 = vpack.c.bf16 %v2049_v63, %v2045_v6  ;;  %v23993_v63 = vpop.permute.xlu0 %20837 }
 0x23c   : > { %v1876_v60 = vsel %vm1872_vm14, %v20824_v53, %v1875_v36  ;;  %v20855_v20 = vunpack.i.h.bf16 %v23968_v45  ;;  %v3007_v52 = vrot.slane %v2843_v58, 7  ;;  %v3020_v2 = vrot.slane %v23964_v9, 7  ;;  %v21086_v53 = vld [vmem:[#allocation10 + $0x176c] ss:$28 sps:$4 sm:$0xff]  }
 0x23d   : > { %v23979_v31 = vrot.slane %v2838_v23, 7  ;;  %v2864_v22 = vunpack.c.h.b16 %v19795_v55  ;;  %6110 = vmatpush2.bf16.msra.mxu0 %v21075_v48  ;;  %v23981_v62 = vrot.slane %v2839_v4, 7  ;;  %v23983_v14 = vrot.slane %v2840_v28, 7 }
 0x23e   : > { %v19788_v12 = vpack.c.bf16 %v2053_v46, %v2053_v46  ;;  %v1944_v6 = vmax.f32 %v23785_v40, %v1876_v60  ;;  %6153 = vmatpush2.bf16.msra.mxu1 %v21078_v16  ;;  %v23986_v32 = vrot.slane %v2841_v25, 7  ;;  %v23988_v58 = vunpack.c.l.b16 %v19796_v10  ;;  %6165 = vmatprep.subr.bf16.mxu0 %v21083_v47 }
 0x23f   : > { %v19793_v9 = vpack.c.bf16 %v2089_v38, %v2085_v33  ;;  %v1860_v23 = vrot.slane %v20855_v20, 2  ;;  %v23990_v55 = vrot.slane %v2863_v44, 4  ;;  %v19794_v48 = vpack.c.bf16 %v2097_v18, %v2093_v27  ;;  %6212 = vmatprep.subr.bf16.mxu1 %v21086_v53 }
 0x240   : > { %v2849_v4 = vunpack.c.l.b16 %v19787_v13  ;;  %v2029_v28 = vrot.slane %v1944_v6, %v25491_v49  ;;  %v23995_v40 = vrot.slane %v2864_v22, 4  ;;  %v2033_v25 = vrot.slane %v1944_v6, %v25492_v41 }
 0x241   : > { %v2037_v10 = vrot.slane %v1944_v6, %v25493_v51  ;;  %v2041_v46 = vrot.slane %v1944_v6, %v25494_v42  ;;  %v2850_v36 = vunpack.c.h.b16 %v19787_v13  ;;  %v2851_v16 = vunpack.c.l.b16 %v19788_v12 }
 0x242   : > { %v1898_v33 = vsel %vm1872_vm14, %v20855_v20, %v1860_v23  ;;  %v20854_v38 = vunpack.i.l.bf16 %v23968_v45  ;;  %v2859_v27 = vunpack.c.l.b16 %v19793_v9  ;;  %v2860_v18 = vunpack.c.h.b16 %v19793_v9 }
 0x243   : > { %v19785_v44 = vpack.c.bf16 %v2033_v25, %v2029_v28  ;;  %v20840_v60 = vunpack.i.h.bf16 %v23993_v63  ;;  %v2995_v47 = vrot.slane %v2849_v4, 6  ;;  %v2861_v53 = vunpack.c.l.b16 %v19794_v48 }
 0x244   : > { %v19786_v30 = vpack.c.bf16 %v2041_v46, %v2037_v10  ;;  %v1959_v21 = vmax.f32 %v23809_v11, %v1898_v33  ;;  %v2862_v19 = vunpack.c.h.b16 %v19794_v48  ;;  %v3008_v6 = vrot.slane %v2850_v36, 6 }
 0x245   : > { %v3021_v13 = vrot.slane %v2851_v16, 6  ;;  %v1859_v12 = vrot.slane %v20854_v38, 2  ;;  %v24005_v5 = vrot.slane %v2859_v27, 4  ;;  %v24007_v20 = vrot.slane %v2860_v18, 4 }
 0x246   : > { %v2845_v45 = vunpack.c.l.b16 %v19785_v44  ;;  %v1858_v9 = vrot.slane %v20840_v60, 2  ;;  %v2846_v28 = vunpack.c.h.b16 %v19785_v44  ;;  %v2996_v4 = vsel %vm2938_vm15, %v2995_v47, %v23960_v24 }
 0x247   : > { %v1896_v25 = vsel %vm365_vm3, %v1859_v12, %v1860_v23  ;;  %v20839_v10 = vunpack.i.l.bf16 %v23993_v63  ;;  %v2847_v46 = vunpack.c.l.b16 %v19786_v30  ;;  %v2848_v11 = vunpack.c.h.b16 %v19786_v30  ;;  %v20868_v63 = vpop.permute.xlu1 %20867 }
 0x248   : > { %v2241_v48 = vrot.slane %v1959_v21, %v25491_v49  ;;  %v2245_v36 = vrot.slane %v1959_v21, %v25492_v41  ;;  %v24015_v16 = vrot.slane %v2861_v53, 4  ;;  %v24017_v33 = vrot.slane %v2862_v19, 4 }
 0x249   : > { %v3009_v27 = vsel %vm2938_vm15, %v3008_v6, %v3007_v52  ;;  %v3022_v18 = vsel %vm2938_vm15, %v3021_v13, %v3020_v2  ;;  %v2937_v44 = vrot.slane %v2845_v45, 6  ;;  %v24023_v24 = vsel %vm25462_vm4, %v23931_v61, %v2996_v4 }
 0x24a   : > { %v2249_v23 = vrot.slane %v1959_v21, %v25493_v51  ;;  %v1897_v30 = vsel %vm1872_vm14, %v20854_v38, %v1896_v25  ;;  %v2956_v47 = vrot.slane %v2846_v28, 6  ;;  %v1895_v19 = vsel %vm1872_vm14, %v20840_v60, %v1858_v9 }
 0x24b   : > { %v1958_v53 = vmax.f32 %v23807_v43, %v1897_v30  ;;  %v1857_v12 = vrot.slane %v20839_v10, 2  ;;  %v2969_v22 = vrot.slane %v2847_v46, 6  ;;  %v2982_v52 = vrot.slane %v2848_v11, 6 }
 0x24c   : > { %v19815_v6 = vpack.c.bf16 %v2245_v36, %v2241_v48  ;;  %v1957_v2 = vmax.f32 %v23801_v50, %v1895_v19  ;;  %v20870_v45 = vunpack.i.h.bf16 %v20868_v63  ;;  %v20869_v21 = vunpack.i.l.bf16 %v20868_v63 }
 0x24d   : > { %v2225_v13 = vrot.slane %v1958_v53, %v25491_v49  ;;  %v2229_v61 = vrot.slane %v1958_v53, %v25492_v41  ;;  %v19816_v4 = vpack.c.bf16 %v2249_v23, %v2249_v23  ;;  %v2233_v38 = vrot.slane %v1958_v53, %v25493_v51  ;;  %v20843_v23 = vpop.permute.xlu0 %20842 }
 0x24e   : > { %v2237_v28 = vrot.slane %v1958_v53, %v25494_v42  ;;  %v1893_v43 = vsel %vm365_vm3, %v1857_v12, %v1858_v9  ;;  %v2939_v60 = vsel %vm2938_vm15, %v2937_v44, %v23979_v31  ;;  %v2957_v25 = vsel %vm2938_vm15, %v2956_v47, %v23981_v62 }
 0x24f   : > { %v24041_v50 = vsel %vm25462_vm4, %v23934_v56, %v3009_v27  ;;  %v25495_v46 = vrot.slane %v23925_v39, 5  ;;  %v2970_v48 = vsel %vm2938_vm15, %v2969_v22, %v23983_v14  ;;  %v2983_v9 = vsel %vm2938_vm15, %v2982_v52, %v23986_v32 }
 0x250   : > { %v2213_v31 = vrot.slane %v1957_v2, %v25491_v49  ;;  %v2217_v36 = vrot.slane %v1957_v2, %v25492_v41  ;;  %v19813_v62 = vpack.c.bf16 %v2229_v61, %v2225_v13  ;;  %v1894_v44 = vsel %vm1872_vm14, %v20839_v10, %v1893_v43 }
 0x251   : > { %v24046_v11 = vsel %vm25462_vm4, %v25495_v46, %v3022_v18  ;;  %v1864_v56 = vrot.slane %v20870_v45, 2  ;;  %v1863_v27 = vrot.slane %v20869_v21, 2  ;;  %v2898_v39 = vunpack.c.l.b16 %v19815_v6 }
 0x252   : > { %v2899_v30 = vunpack.c.h.b16 %v19815_v6  ;;  %v2900_v18 = vunpack.c.l.b16 %v19816_v4  ;;  %v19814_v63 = vpack.c.bf16 %v2237_v28, %v2233_v38  ;;  %v24057_v14 = vsel %vm25462_vm4, %v23943_v59, %v2939_v60 }
 0x253   : > { %v24061_v32 = vsel %vm25462_vm4, %v23948_v0, %v2957_v25  ;;  %v24065_v22 = vsel %vm25462_vm4, %v23953_v35, %v2970_v48  ;;  %v2221_v10 = vrot.slane %v1957_v2, %v25493_v51  ;;  %v24070_v47 = vsel %vm25462_vm4, %v23958_v37, %v2983_v9 }
 0x254   : > { %v1956_v53 = vmax.f32 %v23816_v3, %v1894_v44  ;;  %v20845_v19 = vunpack.i.h.bf16 %v20843_v23  ;;  %v20844_v59 = vunpack.i.l.bf16 %v20843_v23  ;;  %v2894_v12 = vunpack.c.l.b16 %v19813_v62 }
 0x255   : > { %v19811_v52 = vpack.c.bf16 %v2217_v36, %v2213_v31  ;;  %v1904_v0 = vsel %vm1872_vm14, %v20870_v45, %v1864_v56  ;;  %v1902_v6 = vsel %vm365_vm3, %v1863_v27, %v1864_v56  ;;  %v3082_v13 = vrot.slane %v2898_v39, 7 }
 0x256   : > { %v2895_v35 = vunpack.c.h.b16 %v19813_v62  ;;  %v2896_v61 = vunpack.c.l.b16 %v19814_v63  ;;  %v1903_v4 = vsel %vm1872_vm14, %v20869_v21, %v1902_v6  ;;  %v3094_v2 = vrot.slane %v2899_v30, 7 }
 0x257   : > { %v3106_v38 = vrot.slane %v2900_v18, 7  ;;  %v19812_v28 = vpack.c.bf16 %v2221_v10, %v2221_v10  ;;  %v1963_v37 = vmax.f32 %v23818_v29, %v1904_v0  ;;  %v2897_v3 = vunpack.c.h.b16 %v19814_v63 }
 0x258   : > { %v2197_v43 = vrot.slane %v1956_v53, %v25491_v49  ;;  %v2201_v60 = vrot.slane %v1956_v53, %v25492_v41  ;;  %v1962_v45 = vmax.f32 %v23832_v57, %v1903_v4  ;;  %v3033_v25 = vrot.slane %v2894_v12, 7 }
 0x259   : > { %v2891_v46 = vunpack.c.l.b16 %v19811_v52  ;;  %v1852_v48 = vrot.slane %v20845_v19, 2  ;;  %v1851_v9 = vrot.slane %v20844_v59, 2  ;;  %v3046_v31 = vrot.slane %v2895_v35, 7 }
 0x25a   : > { %v3058_v36 = vrot.slane %v2896_v61, 7  ;;  %v2205_v21 = vrot.slane %v1956_v53, %v25493_v51  ;;  %v2209_v62 = vrot.slane %v1956_v53, %v25494_v42  ;;  %v2892_v44 = vunpack.c.h.b16 %v19811_v52 }
 0x25b   : > { %v2893_v29 = vunpack.c.l.b16 %v19812_v28  ;;  %v2297_v56 = vrot.slane %v1963_v37, %v25491_v49  ;;  %v2301_v27 = vrot.slane %v1963_v37, %v25492_v41  ;;  %v19809_v23 = vpack.c.bf16 %v2201_v60, %v2197_v43 }
 0x25c   : > { %v2305_v39 = vrot.slane %v1963_v37, %v25493_v51  ;;  %v2281_v57 = vrot.slane %v1962_v45, %v25491_v49  ;;  %v2285_v30 = vrot.slane %v1962_v45, %v25492_v41  ;;  %v2289_v18 = vrot.slane %v1962_v45, %v25493_v51 }
 0x25d   : > { %v2293_v63 = vrot.slane %v1962_v45, %v25494_v42  ;;  %v1886_v10 = vsel %vm1872_vm14, %v20845_v19, %v1852_v48  ;;  %v1884_v53 = vsel %vm365_vm3, %v1851_v9, %v1852_v48  ;;  %v3070_v12 = vrot.slane %v2897_v3, 7 }
 0x25e   : > { %v24092_v52 = vsel %vm3034_vm5, %v3082_v13, %v2891_v46  ;;  %v24095_v0 = vsel %vm3034_vm5, %v3094_v2, %v2892_v44  ;;  %v19810_v6 = vpack.c.bf16 %v2209_v62, %v2205_v21  ;;  %v24098_v35 = vsel %vm3034_vm5, %v3106_v38, %v2893_v29  ;;  %v20873_v62 = vpop.permute.xlu1 %20872 }
 0x25f   : > { %v19823_v61 = vpack.c.bf16 %v2301_v27, %v2297_v56  ;;  %v1951_v4 = vmax.f32 %v23828_v17, %v1886_v10  ;;  %v1885_v28 = vsel %vm1872_vm14, %v20844_v59, %v1884_v53  ;;  %v2887_v37 = vunpack.c.l.b16 %v19809_v23 }
 0x260   : > { %v19824_v19 = vpack.c.bf16 %v2305_v39, %v2305_v39  ;;  %v19821_v43 = vpack.c.bf16 %v2285_v30, %v2281_v57  ;;  %v1950_v3 = vmax.f32 %v23838_v34, %v1885_v28  ;;  %v2888_v60 = vunpack.c.h.b16 %v19809_v23 }
 0x261   : > { %v19822_v13 = vpack.c.bf16 %v2293_v63, %v2289_v18  ;;  %v2129_v45 = vrot.slane %v1951_v4, %v25491_v49  ;;  %v2133_v2 = vrot.slane %v1951_v4, %v25492_v41  ;;  %v2889_v46 = vunpack.c.l.b16 %v19810_v6 }
 0x262   : > { %v2890_v48 = vunpack.c.h.b16 %v19810_v6  ;;  %v2137_v38 = vrot.slane %v1951_v4, %v25493_v51  ;;  %v24109_v17 = vsel %vm25461_vm7, %v24005_v5, %v24057_v14  ;;  %v24112_v59 = vsel %vm3034_vm5, %v3033_v25, %v2887_v37  ;;  %v24141_v4 = vpop.permute.xlu0 %20847 }
 0x263   : > { %v24115_v34 = vsel %vm3034_vm5, %v3046_v31, %v2888_v60  ;;  %v2912_v9 = vunpack.c.l.b16 %v19823_v61  ;;  %v2913_v21 = vunpack.c.h.b16 %v19823_v61  ;;  %v24117_v44 = vunpack.c.l.b16 %v19824_v19  ;;  %v24149_v19 = vpop.permute.xlu1 %20877 }
 0x264   : > { %v2908_v29 = vunpack.c.l.b16 %v19821_v43  ;;  %v2113_v56 = vrot.slane %v1950_v3, %v25491_v49  ;;  %v2117_v27 = vrot.slane %v1950_v3, %v25492_v41  ;;  %v2909_v23 = vunpack.c.h.b16 %v19821_v43 }
 0x265   : > { %v2910_v39 = vunpack.c.l.b16 %v19822_v13  ;;  %v2911_v5 = vunpack.c.h.b16 %v19822_v13  ;;  %v19799_v14 = vpack.c.bf16 %v2133_v2, %v2129_v45  ;;  %v24122_v25 = vsel %vm3034_vm5, %v3058_v36, %v2889_v46 }
 0x266   : > { %v24125_v31 = vsel %vm3034_vm5, %v3070_v12, %v2890_v48  ;;  %v19800_v57 = vpack.c.bf16 %v2137_v38, %v2137_v38  ;;  %v24130_v30 = vsel %vm25461_vm7, %v24007_v20, %v24061_v32  ;;  %v24132_v18 = vrot.slane %v2912_v9, 5 }
 0x267   : > { %v24134_v63 = vrot.slane %v2913_v21, 5  ;;  %v2121_v10 = vrot.slane %v1950_v3, %v25493_v51  ;;  %v2125_v53 = vrot.slane %v1950_v3, %v25494_v42  ;;  %v24139_v6 = vrot.slane %v2908_v29, 5 }
 0x268   : > { %v19797_v12 = vpack.c.bf16 %v2117_v27, %v2113_v56  ;;  %v20875_v61 = vunpack.i.h.bf16 %v20873_v62  ;;  %v24143_v28 = vrot.slane %v2909_v23, 5  ;;  %v24145_v20 = vrot.slane %v2910_v39, 5 }
 0x269   : > { %v24147_v32 = vrot.slane %v2911_v5, 5  ;;  %v2870_v37 = vunpack.c.l.b16 %v19799_v14  ;;  %v2871_v43 = vunpack.c.h.b16 %v19799_v14  ;;  %v2872_v60 = vunpack.c.l.b16 %v19800_v57 }
 0x26a   : > { %v24154_v3 = vsel %vm25461_vm7, %v24015_v16, %v24065_v22  ;;  %v1866_v13 = vrot.slane %v20875_v61, 2  ;;  %v24156_v45 = vpack.c.bf16 %v2125_v53, %v2121_v10  ;;  %v20874_v2 = vunpack.i.l.bf16 %v20873_v62 }
 0x26b   : > { %25496 = vst [vmem:[#allocation32_spill] sm:$0xff] %v24154_v3  ;;  %v20850_v46 = vunpack.i.h.bf16 %v24141_v4  ;;  %v20849_v48 = vunpack.i.l.bf16 %v24141_v4  ;;  %v2866_v38 = vunpack.c.l.b16 %v19797_v12  ;;  %v2867_v9 = vunpack.c.h.b16 %v19797_v12 }
 0x26c   : > { %v1907_v21 = vsel %vm1872_vm14, %v20875_v61, %v1866_v13  ;;  %v20880_v29 = vunpack.i.h.bf16 %v24149_v19  ;;  %v3001_v56 = vrot.slane %v2870_v37, 3  ;;  %v1865_v16 = vrot.slane %v20874_v2, 2 }
 0x26d   : > { %v1965_v27 = vmax.f32 %v23845_v26, %v1907_v21  ;;  %v1854_v22 = vrot.slane %v20850_v46, 2  ;;  %v3014_v23 = vrot.slane %v2871_v43, 3  ;;  %v3027_v39 = vrot.slane %v2872_v60, 3 }
 0x26e   : > { %v1853_v5 = vrot.slane %v20849_v48, 2  ;;  %v1868_v14 = vrot.slane %v20880_v29, 2  ;;  %v24166_v62 = vsel %vm25461_vm7, %v24017_v33, %v24070_v47  ;;  %v3000_v57 = vsel %vm25461_vm7, %v23990_v55, %v24023_v24 }
 0x26f   : > { %25497 = vst [vmem:[#allocation31_spill] sm:$0xff] %v24166_v62  ;;  %v3013_v10 = vsel %vm25461_vm7, %v23995_v40, %v24041_v50  ;;  %v1905_v26 = vsel %vm365_vm3, %v1865_v16, %v1866_v13  ;;  %v2868_v53 = vunpack.c.l.b16 %v24156_v45  ;;  %v2325_v12 = vrot.slane %v1965_v27, %v25491_v49 }
 0x270   : > { %v1906_v61 = vsel %vm1872_vm14, %v20874_v2, %v1905_v26  ;;  %v1889_v4 = vsel %vm1872_vm14, %v20850_v46, %v1854_v22  ;;  %v2329_v33 = vrot.slane %v1965_v27, %v25492_v41  ;;  %v1910_v24 = vsel %vm1872_vm14, %v20880_v29, %v1868_v14 }
 0x271   : > { %v1964_v47 = vmax.f32 %v23852_v8, %v1906_v61  ;;  %v1953_v55 = vmax.f32 %v23850_v54, %v1889_v4  ;;  %v2946_v37 = vrot.slane %v2866_v38, 3  ;;  %v24183_v40 = vrot.slane %v2867_v9, 3 }
 0x272   : > { %v2333_v50 = vrot.slane %v1965_v27, %v25493_v51  ;;  %v20879_v43 = vunpack.i.l.bf16 %v24149_v19  ;;  %v25498_v13 = vrot.slane %v23988_v58, 4  ;;  %v1887_v54 = vsel %vm365_vm3, %v1853_v5, %v1854_v22  ;;  %v24198_v19 = vpop.permute.xlu0 %20857 }
 0x273   : > { %v2309_v8 = vrot.slane %v1964_v47, %v25491_v49  ;;  %v2313_v46 = vrot.slane %v1964_v47, %v25492_v41  ;;  %v2317_v38 = vrot.slane %v1964_v47, %v25493_v51  ;;  %v2321_v9 = vrot.slane %v1964_v47, %v25494_v42 }
 0x274   : > { %v3026_v2 = vsel %vm25461_vm7, %v25498_v13, %v24046_v11  ;;  %v1967_v21 = vmax.f32 %v23867_v15, %v1910_v24  ;;  %v24200_v29 = vrot.slane %v2868_v53, 3  ;;  %v19827_v27 = vpack.c.bf16 %v2329_v33, %v2325_v12 }
 0x275   : > { %v2157_v58 = vrot.slane %v1953_v55, %v25491_v49  ;;  %v2161_v11 = vrot.slane %v1953_v55, %v25492_v41  ;;  %v24205_v16 = vsel %vm2947_vm8, %v3001_v56, %v3000_v57  ;;  %v19828_v22 = vpack.c.bf16 %v2333_v50, %v2333_v50 }
 0x276   : > { %25499 = vst [vmem:[#allocation33_spill] sm:$0xff] %v24200_v29  ;;  %v19825_v5 = vpack.c.bf16 %v2313_v46, %v2309_v8  ;;  %v1867_v26 = vrot.slane %v20879_v43, 2  ;;  %v24208_v61 = vsel %vm2947_vm8, %v3014_v23, %v3013_v10  ;;  %v24211_v15 = vsel %vm2947_vm8, %v3027_v39, %v3026_v2 }
 0x277   : > { %25500 = vst [vmem:[#allocation34_spill] sm:$0xff] %v24208_v61  ;;  %25501 = vst [vmem:[#allocation38_spill] sm:$0xff] %v24211_v15  ;;  %v1888_v53 = vsel %vm1872_vm14, %v20849_v48, %v1887_v54  ;;  %v20860_v12 = vunpack.i.h.bf16 %v24198_v19  ;;  %v19826_v4 = vpack.c.bf16 %v2321_v9, %v2317_v38  ;;  %v2353_v33 = vrot.slane %v1967_v21, %v25491_v49 }
 0x278   : > { %v2357_v47 = vrot.slane %v1967_v21, %v25492_v41  ;;  %v2361_v56 = vrot.slane %v1967_v21, %v25493_v51  ;;  %v24220_v57 = vsel %vm2947_vm8, %v2946_v37, %v24109_v17  ;;  %v2919_v23 = vunpack.c.l.b16 %v19827_v27 }
 0x279   : > { %25502 = vst [vmem:[#allocation39_spill] sm:$0xff] %v24220_v57  ;;  %v2165_v10 = vrot.slane %v1953_v55, %v25493_v51  ;;  %v19803_v39 = vpack.c.bf16 %v2161_v11, %v2157_v58  ;;  %v2920_v24 = vunpack.c.h.b16 %v19827_v27  ;;  %v24223_v50 = vunpack.c.l.b16 %v19828_v22 }
 0x27a   : > { %v2915_v48 = vunpack.c.l.b16 %v19825_v5  ;;  %v24226_v13 = vmax.f32 %v23857_v7, %v1888_v53  ;;  %v2916_v2 = vunpack.c.h.b16 %v19825_v5  ;;  %v1908_v8 = vsel %vm365_vm3, %v1867_v26, %v1868_v14 }
 0x27b   : > { %v1862_v54 = vrot.slane %v20860_v12, 2  ;;  %v20859_v46 = vunpack.i.l.bf16 %v24198_v19  ;;  %v2917_v38 = vunpack.c.l.b16 %v19826_v4  ;;  %v2918_v17 = vunpack.c.h.b16 %v19826_v4 }
 0x27c   : > { %v19831_v37 = vpack.c.bf16 %v2357_v47, %v2353_v33  ;;  %v19832_v9 = vpack.c.bf16 %v2361_v56, %v2361_v56  ;;  %v24230_v21 = vrot.slane %v2919_v23, 4  ;;  %v19804_v55 = vpack.c.bf16 %v2165_v10, %v2165_v10 }
 0x27d   : > { %v2877_v27 = vunpack.c.l.b16 %v19803_v39  ;;  %v2878_v58 = vunpack.c.h.b16 %v19803_v39  ;;  %v24232_v11 = vrot.slane %v2920_v24, 4  ;;  %v24235_v22 = vrot.slane %v2915_v48, 4  ;;  %v25505_v48 = vld [vmem:[#allocation26_spill] sm:$0xff] }
 0x27e   : > { %v2141_v14 = vrot.slane %v24226_v13, %v25491_v49  ;;  %v24239_v5 = vrot.slane %v2916_v2, 4  ;;  %v2145_v19 = vrot.slane %v24226_v13, %v25492_v41  ;;  %v2926_v26 = vunpack.c.l.b16 %v19831_v37 }
 0x27f   : > { %v1909_v53 = vsel %vm1872_vm14, %v20879_v43, %v1908_v8  ;;  %v24244_v4 = vrot.slane %v2917_v38, 4  ;;  %v24246_v33 = vrot.slane %v2918_v17, 4  ;;  %v2927_v47 = vunpack.c.h.b16 %v19831_v37  ;;  %v24262_v38 = vpop.permute.xlu1 %20882 }
 0x280   : > { %v24248_v56 = vunpack.c.l.b16 %v19832_v9  ;;  %v24250_v23 = vunpack.c.l.b16 %v19804_v55  ;;  %v24252_v10 = vrot.slane %v2877_v27, 2  ;;  %v24254_v39 = vrot.slane %v2878_v58, 2 }
 0x281   : > { %v1966_v24 = vmax.f32 %v23873_v1, %v1909_v53  ;;  %v1901_v2 = vsel %vm1872_vm14, %v20860_v12, %v1862_v54  ;;  %v1861_v8 = vrot.slane %v20859_v46, 2  ;;  %v24264_v17 = vpack.c.bf16 %v2145_v19, %v2141_v14  ;;  %v24270_v1 = vpop.permute.xlu0 %20862 }
 0x282   : > { %25503 = vst [vmem:[#allocation40_spill] sm:$0xff] %v24252_v10  ;;  %25504 = vst [vmem:[#allocation41_spill] sm:$0xff] %v24254_v39  ;;  %v24266_v37 = vrot.slane %v2926_v26, 3  ;;  %v24272_v27 = vrot.slane %v2927_v47, 3  ;;  %v1961_v14 = vmax.f32 %v25505_v48, %v1901_v2  ;;  %v20885_v26 = vunpack.i.h.bf16 %v24262_v38 }
 0x283   : > { %v2337_v9 = vrot.slane %v1966_v24, %v25491_v49  ;;  %v2341_v55 = vrot.slane %v1966_v24, %v25492_v41  ;;  %v2345_v53 = vrot.slane %v1966_v24, %v25493_v51  ;;  %v2349_v12 = vrot.slane %v1966_v24, %v25494_v42 }
 0x284   : > { %v1899_v19 = vsel %vm365_vm3, %v1861_v8, %v1862_v54  ;;  %v20884_v36 = vunpack.i.l.bf16 %v24262_v38  ;;  %v2269_v62 = vrot.slane %v1961_v14, %v25491_v49  ;;  %v2273_v24 = vrot.slane %v1961_v14, %v25492_v41  ;;  %v25506_v54 = vld [vmem:[#allocation27_spill] sm:$0xff] }
 0x285   : > { %v19829_v43 = vpack.c.bf16 %v2341_v55, %v2337_v9  ;;  %v19830_v60 = vpack.c.bf16 %v2349_v12, %v2345_v53  ;;  %v1900_v7 = vsel %vm1872_vm14, %v20859_v46, %v1899_v19  ;;  %v2277_v48 = vrot.slane %v1961_v14, %v25493_v51 }
 0x286   : > { %v1960_v2 = vmax.f32 %v25506_v54, %v1900_v7  ;;  %v19819_v46 = vpack.c.bf16 %v2273_v24, %v2269_v62  ;;  %v1870_v38 = vrot.slane %v20885_v26, 2  ;;  %v1869_v62 = vrot.slane %v20884_v36, 2 }
 0x287   : > { %v2922_v57 = vunpack.c.l.b16 %v19829_v43  ;;  %v2923_v58 = vunpack.c.h.b16 %v19829_v43  ;;  %v2924_v9 = vunpack.c.l.b16 %v19830_v60  ;;  %v2925_v55 = vunpack.c.h.b16 %v19830_v60 }
 0x288   : > { %v19820_v43 = vpack.c.bf16 %v2277_v48, %v2277_v48  ;;  %v2253_v47 = vrot.slane %v1960_v2, %v25491_v49  ;;  %v2905_v29 = vunpack.c.l.b16 %v19819_v46  ;;  %v2906_v3 = vunpack.c.h.b16 %v19819_v46 }
 0x289   : > { %v24287_v8 = vrot.slane %v2922_v57, 3  ;;  %v24289_v53 = vrot.slane %v2923_v58, 3  ;;  %v24291_v12 = vrot.slane %v2924_v9, 3  ;;  %v24293_v19 = vrot.slane %v2925_v55, 3  ;;  %v25507_v55 = vld [vmem:[#allocation28_spill] sm:$0xff] }
 0x28a   : > { %v2257_v60 = vrot.slane %v1960_v2, %v25492_v41  ;;  %v2261_v14 = vrot.slane %v1960_v2, %v25493_v51  ;;  %v2907_v7 = vunpack.c.l.b16 %v19820_v43  ;;  %v2265_v57 = vrot.slane %v1960_v2, %v25494_v42 }
 0x28b   : > { %v1913_v58 = vsel %vm1872_vm14, %v20885_v26, %v1870_v38  ;;  %v3084_v24 = vrot.slane %v2905_v29, 6  ;;  %v3096_v9 = vrot.slane %v2906_v3, 6  ;;  %v1911_v61 = vsel %vm365_vm3, %v1869_v62, %v1870_v38 }
 0x28c   : > { %v19817_v54 = vpack.c.bf16 %v2257_v60, %v2253_v47  ;;  %v1969_v15 = vmax.f32 %v25507_v55, %v1913_v58  ;;  %v3108_v48 = vrot.slane %v2907_v7, 6  ;;  %v19818_v39 = vpack.c.bf16 %v2265_v57, %v2261_v14 }
 0x28d   : > { %v25508_v46 = vunpack.i.h.bf16 %v24270_v1  ;;  %v3085_v26 = vsel %vm2938_vm15, %v3084_v24, %v24092_v52  ;;  %v3097_v3 = vsel %vm2938_vm15, %v3096_v9, %v24095_v0  ;;  %v25509_v0 = vrot.slane %v24117_v44, 5 }
 0x28e   : > { %v2901_v43 = vunpack.c.l.b16 %v19817_v54  ;;  %v2902_v2 = vunpack.c.h.b16 %v19817_v54  ;;  %v2903_v29 = vunpack.c.l.b16 %v19818_v39  ;;  %v2904_v47 = vunpack.c.h.b16 %v19818_v39 }
 0x28f   : > { %v24304_v10 = vrot.slane %v25508_v46, 2  ;;  %v3087_v38 = vsel %vm25462_vm4, %v24132_v18, %v3085_v26  ;;  %v3099_v60 = vsel %vm25462_vm4, %v24134_v63, %v3097_v3  ;;  %v3109_v57 = vsel %vm2938_vm15, %v3108_v48, %v24098_v35 }
 0x290   : > { %v3036_v14 = vrot.slane %v2901_v43, 6  ;;  %v3048_v7 = vrot.slane %v2902_v2, 6  ;;  %v2381_v58 = vrot.slane %v1969_v15, %v25491_v49  ;;  %v3060_v52 = vrot.slane %v2903_v29, 6 }
 0x291   : > { %v3072_v62 = vrot.slane %v2904_v47, 6  ;;  %v3111_v24 = vsel %vm25462_vm4, %v25509_v0, %v3109_v57  ;;  %v2385_v39 = vrot.slane %v1969_v15, %v25492_v41  ;;  %v2389_v9 = vrot.slane %v1969_v15, %v25493_v51 }
 0x292   : > { %v3037_v18 = vsel %vm2938_vm15, %v3036_v14, %v24112_v59  ;;  %v3049_v63 = vsel %vm2938_vm15, %v3048_v7, %v24115_v34  ;;  %v1912_v35 = vsel %vm1872_vm14, %v20884_v36, %v1911_v61  ;;  %v3061_v55 = vsel %vm2938_vm15, %v3060_v52, %v24122_v25  ;;  %v25510_v61 = vld [vmem:[#allocation36_spill] sm:$0xff] }
 0x293   : > { %v3039_v54 = vsel %vm25462_vm4, %v24139_v6, %v3037_v18  ;;  %v3051_v44 = vsel %vm25462_vm4, %v24143_v28, %v3049_v63  ;;  %v3073_v48 = vsel %vm2938_vm15, %v3072_v62, %v24125_v31  ;;  %v3063_v59 = vsel %vm25462_vm4, %v24145_v20, %v3061_v55 }
 0x294   : > { %v3075_v34 = vsel %vm25462_vm4, %v24147_v32, %v3073_v48  ;;  %v19835_v15 = vpack.c.bf16 %v2385_v39, %v2381_v58  ;;  %v19836_v36 = vpack.c.bf16 %v2389_v9, %v2389_v9  ;;  %v1968_v6 = vmax.f32 %v25510_v61, %v1912_v35  ;;  %vm24394_vm4 = vmand %vm144_vm2, %vm3154_vm10  ;;  %v3168_v61 = vld [vmem:[#allocation3 + $0x34] sm:$0xf] }
 0x295   : > { %v3041_v28 = vsel %vm25461_vm7, %v24235_v22, %v3039_v54  ;;  %v3053_v25 = vsel %vm25461_vm7, %v24239_v5, %v3051_v44  ;;  %v3065_v31 = vsel %vm25461_vm7, %v24244_v4, %v3063_v59  ;;  %v3077_v58 = vsel %vm25461_vm7, %v24246_v33, %v3075_v34  ;;  %v3158_v54 = vld [vmem:[#allocation3 + $0x1c] sm:$0xff] }
 0x296   : > { %v2933_v46 = vunpack.c.l.b16 %v19835_v15  ;;  %v2934_v43 = vunpack.c.h.b16 %v19835_v15  ;;  %v2935_v20 = vunpack.c.l.b16 %v19836_v36  ;;  %v3043_v32 = vsel %vm2947_vm8, %v24287_v8, %v3041_v28  ;;  %v25520_v59 = vld [vmem:[#allocation29_spill] sm:$0xff]  ;;  %v3164_v36 = vld [vmem:[#allocation3 + $0x2c] sm:$0xff] }
 0x297   : > { %v2365_v2 = vrot.slane %v1968_v6, %v25491_v49  ;;  %v2369_v26 = vrot.slane %v1968_v6, %v25492_v41  ;;  %v2373_v3 = vrot.slane %v1968_v6, %v25493_v51  ;;  %v2377_v22 = vrot.slane %v1968_v6, %v25494_v42  ;;  %v3161_v15 = vld [vmem:[#allocation3 + $0x24] sm:$0xff] }
 0x298   : > { %v3092_v29 = vrot.slane %v2933_v46, 2  ;;  %v3104_v47 = vrot.slane %v2934_v43, 2  ;;  %v3116_v5 = vrot.slane %v2935_v20, 2  ;;  %v3055_v4 = vsel %vm2947_vm8, %v24289_v53, %v3053_v25 }
 0x299   : > { %v19833_v8 = vpack.c.bf16 %v2369_v26, %v2365_v2  ;;  %v19834_v7 = vpack.c.bf16 %v2377_v22, %v2373_v3  ;;  %v3067_v57 = vsel %vm2947_vm8, %v24291_v12, %v3065_v31  ;;  %v3079_v53 = vsel %vm2947_vm8, %v24293_v19, %v3077_v58 }
 0x29a   : > { %v3089_v52 = vsel %vm25461_vm7, %v24230_v21, %v3087_v38  ;;  %v3101_v62 = vsel %vm25461_vm7, %v24232_v11, %v3099_v60  ;;  %v25513_v0 = vrot.slane %v24223_v50, 4  ;;  %v25514_v35 = vrot.slane %v24248_v56, 3  ;;  %v22622_v38 = vld [vmem:[#allocation13 + $0x1d0] sm:$0xff] (%p152_p12)  }
 0x29b   : > { %v2929_v12 = vunpack.c.l.b16 %v19833_v8  ;;  %v2930_v18 = vunpack.c.h.b16 %v19833_v8  ;;  %v2931_v63 = vunpack.c.l.b16 %v19834_v7  ;;  %v2932_v33 = vunpack.c.h.b16 %v19834_v7 }
 0x29c   : > { %v3113_v39 = vsel %vm25461_vm7, %v25513_v0, %v3111_v24  ;;  %v3091_v9 = vsel %vm2947_vm8, %v24266_v37, %v3089_v52  ;;  %v3103_v19 = vsel %vm2947_vm8, %v24272_v27, %v3101_v62  ;;  %v25515_v11 = vunpack.i.h.bf16 %v24270_v1  ;;  %vm24388_vm7 = vmor %vm3156_vm1, %vm24356_vm0 }
 0x29d   : > { %v3115_v21 = vsel %vm2947_vm8, %v25514_v35, %v3113_v39  ;;  %v3044_v37 = vrot.slane %v2929_v12, 2  ;;  %v3056_v60 = vrot.slane %v2930_v18, 2  ;;  %v3068_v24 = vrot.slane %v2931_v63, 2  ;;  %v25524_v63 = vld [vmem:[#allocation40_spill] sm:$0xff]  ;;  %vm24452_vm1 = vmand %vm3134_vm9, %vm216_vm6 }
 0x29e   : > { %v1892_v50 = vsel %vm1872_vm14, %v25515_v11, %v24304_v10  ;;  %v3080_v27 = vrot.slane %v2932_v33, 2  ;;  %v3093_v44 = vsel %vm2950_vm13, %v3092_v29, %v3091_v9  ;;  %v3105_v55 = vsel %vm2950_vm13, %v3104_v47, %v3103_v19  ;;  %v25525_v33 = vld [vmem:[#allocation34_spill] sm:$0xff]  ;;  %v25526_v9 = vld [vmem:[#allocation41_spill] sm:$0xff]  ;;  %vm24467_vm9 = vmand %vm144_vm2, %vm216_vm6 }
 0x29f   : > { %v3117_v48 = vsel %vm2950_vm13, %v3116_v5, %v3115_v21  ;;  %v1955_v34 = vmax.f32 %v25520_v59, %v1892_v50  ;;  %v3045_v6 = vsel %vm2950_vm13, %v3044_v37, %v3043_v32  ;;  %v3057_v28 = vsel %vm2950_vm13, %v3056_v60, %v3055_v4 }
 0x2a0   : > { %v3069_v25 = vsel %vm2950_vm13, %v3068_v24, %v3067_v57  ;;  %v3081_v31 = vsel %vm2950_vm13, %v3080_v27, %v3079_v53  ;;  %vm2953_vm0 = vcmask 1047559   ;;  %v3122_v46 = vpack.c.b16 %v3057_v28, %v3045_v6  ;;  %v25530_v24 = vld [vmem:[#allocation38_spill] sm:$0xff]  ;;  %v3146_v6 = vld [vmem:[#allocation3 + $0x10] sm:$0xff]  ;;  %v3151_v28 = vld [vmem:[#allocation3 + $0x18] sm:$0xf] }
 0x2a1   : > { %v3123_v43 = vpack.c.b16 %v3081_v31, %v3069_v25  ;;  %v3124_v20 = vpack.c.b16 %v3105_v55, %v3093_v44  ;;  %v3125_v2 = vpack.c.b16 %v3117_v48, %v3117_v48  ;;  %v2185_v26 = vrot.slane %v1955_v34, %v25491_v49 }
 0x2a2   : > { %v2189_v3 = vrot.slane %v1955_v34, %v25492_v41  ;;  %v2193_v22 = vrot.slane %v1955_v34, %v25493_v51  ;;  %v20864_v29 = vunpack.i.l.bf16 %v24270_v1  ;;  %v24412_v32 = vsel %vm24388_vm7, %v3122_v46, %v3158_v54 }
 0x2a3   : > { %v24416_v47 = vsel %vm24388_vm7, %v3123_v43, %v3161_v15  ;;  %v24420_v5 = vsel %vm24388_vm7, %v3124_v20, %v3164_v36  ;;  %v3169_v4 = vsel %vm24394_vm4, %v3125_v2, %v3168_v61  ;;  %v2963_v14 = vsel %vm2947_vm8, %v24183_v40, %v24130_v30  ;;  %3160 = vst [vmem:[#allocation3 + $0x1c] sm:$0xff] %v24412_v32  ;;  %vm3138_vm4 = vmand %vm3136_vm12, %vm3137_vm11  ;;  %v25535_v20 = vld [vmem:[#allocation32_spill] sm:$0xff]  ;;  %v25536_v2 = vld [vmem:[#allocation33_spill] sm:$0xff] }
 0x2a4   : > { %3163 = vst [vmem:[#allocation3 + $0x24] sm:$0xff] %v24416_v47  ;;  %3166 = vst [vmem:[#allocation3 + $0x2c] sm:$0xff] %v24420_v5  ;;  %v19807_v1 = vpack.c.bf16 %v2189_v3, %v2185_v26  ;;  %v19808_v8 = vpack.c.bf16 %v2193_v22, %v2193_v22  ;;  %v1855_v7 = vrot.slane %v20864_v29, 2  ;;  %v25521_v57 = vunpack.c.h.b16 %v24156_v45  ;;  %v25537_v3 = vld [vmem:[#allocation31_spill] sm:$0xff] }
 0x2a5   : > { %3170 = vst [vmem:[#allocation3 + $0x34] sm:$0xf] %v3169_v4  ;;  %v3029_v53 = vrot.slane %v24250_v23, 2  ;;  %v25522_v52 = vrot.slane %v24226_v13, %v25493_v51  ;;  %v25523_v30 = vrot.slane %v24226_v13, %v25494_v42  ;;  %v2873_v62 = vunpack.c.l.b16 %v24264_v17  ;;  %vm24476_vm12 = vmor %vm3138_vm4, %vm24452_vm1 }
 0x2a6   : > { %v2988_v58 = vrot.slane %v25521_v57, 3  ;;  %v2884_v0 = vunpack.c.l.b16 %v19807_v1  ;;  %v2885_v39 = vunpack.c.h.b16 %v19807_v1  ;;  %v2886_v12 = vunpack.c.l.b16 %v19808_v8 }
 0x2a7   : > { %v19802_v40 = vpack.c.bf16 %v25523_v30, %v25522_v52  ;;  %v1890_v18 = vsel %vm365_vm3, %v1855_v7, %v24304_v10  ;;  %v2874_v45 = vunpack.c.h.b16 %v24264_v17  ;;  %v3004_v23 = vsel %vm2950_vm13, %v25524_v63, %v24205_v16  ;;  %v25529_v17 = vld [vmem:[#allocation37_spill] sm:$0xff] }
 0x2a8   : > { %v3017_v19 = vsel %vm2950_vm13, %v25526_v9, %v25525_v33  ;;  %v1891_v13 = vsel %vm1872_vm14, %v20864_v29, %v1890_v18  ;;  %v3005_v21 = vrot.slane %v2884_v0, 1  ;;  %v3018_v10 = vrot.slane %v2885_v39, 1  ;;  %v3143_v33 = vld [vmem:[#allocation3 + $0x8] sm:$0xff] }
 0x2a9   : > { %v3031_v11 = vrot.slane %v2886_v12, 1  ;;  %v1954_v50 = vmax.f32 %v25529_v17, %v1891_v13  ;;  %v2875_v16 = vunpack.c.l.b16 %v19802_v40  ;;  %v2876_v37 = vunpack.c.h.b16 %v19802_v40 }
 0x2aa   : > { %v2949_v60 = vrot.slane %v2873_v62, 2  ;;  %v3030_v27 = vsel %vm2950_vm13, %v3029_v53, %v25530_v24  ;;  %v2964_v59 = vrot.slane %v2874_v45, 2  ;;  %v3006_v34 = vsel %vm2953_vm0, %v3005_v21, %v3004_v23  ;;  %v25538_v53 = vld [vmem:[#allocation39_spill] sm:$0xff]  ;;  %v3140_v23 = vld [vmem:[#allocation3] sm:$0xff] }
 0x2ab   : > { %v2169_v56 = vrot.slane %v1954_v50, %v25491_v49  ;;  %v2173_v54 = vrot.slane %v1954_v50, %v25492_v41  ;;  %v2177_v44 = vrot.slane %v1954_v50, %v25493_v51  ;;  %v2181_v55 = vrot.slane %v1954_v50, %v25494_v42 }
 0x2ac   : > { %v3019_v15 = vsel %vm2953_vm0, %v3018_v10, %v3017_v19  ;;  %v3032_v36 = vsel %vm2953_vm0, %v3031_v11, %v3030_v27  ;;  %v2976_v26 = vsel %vm2947_vm8, %v25536_v2, %v25535_v20  ;;  %v2989_v22 = vsel %vm2947_vm8, %v2988_v58, %v25537_v3  ;;  %v21089_v20 = vld [vmem:[#allocation10 + $0x1424] ss:$28 sps:$4 sm:$0xff]   ;;  %v21092_v2 = vld [vmem:[#allocation10 + $0x1734] ss:$28 sps:$4 sm:$0xff]  }
 0x2ad   : > { %v19805_v25 = vpack.c.bf16 %v2173_v54, %v2169_v56  ;;  %v19806_v31 = vpack.c.bf16 %v2181_v55, %v2177_v44  ;;  %v3120_v46 = vpack.c.b16 %v3019_v15, %v3006_v34  ;;  %v3121_v43 = vpack.c.b16 %v3032_v36, %v3032_v36  ;;  %v21087_v3 = vld [vmem:[#allocation10 + $0x1420] ss:$28 sps:$4 sm:$0xff]  }
 0x2ae   : > { %v2977_v29 = vrot.slane %v2875_v16, 2  ;;  %v2990_v4 = vrot.slane %v2876_v37, 2  ;;  %v2951_v52 = vsel %vm2950_vm13, %v2949_v60, %v25538_v53  ;;  %v2965_v30 = vsel %vm2950_vm13, %v2964_v59, %v2963_v14  ;;  %v21104_v53 = vld [vmem:[#allocation10 + $0x16c4] ss:$28 sps:$4 sm:$0xff]  }
 0x2af   : > { %v2880_v1 = vunpack.c.l.b16 %v19805_v25  ;;  %v2881_v8 = vunpack.c.h.b16 %v19805_v25  ;;  %v2882_v7 = vunpack.c.l.b16 %v19806_v31  ;;  %v2883_v57 = vunpack.c.h.b16 %v19806_v31  ;;  %v21084_v31 = vld [vmem:[#allocation10 + $0x1768] ss:$28 sps:$4 sm:$0xff]  }
 0x2b0   : > { %v3147_v40 = vsel %vm24476_vm12, %v3120_v46, %v3146_v6  ;;  %v3152_v62 = vsel %vm24467_vm9, %v3121_v43, %v3151_v28  ;;  %v2978_v18 = vsel %vm2950_vm13, %v2977_v29, %v2976_v26  ;;  %v2991_v45 = vsel %vm2950_vm13, %v2990_v4, %v2989_v22  ;;  %v21090_v22 = vld [vmem:[#allocation10 + $0x1730] ss:$28 sps:$4 sm:$0xff]   ;;  %v21098_v4 = vld [vmem:[#allocation10 + $0x16fc] ss:$28 sps:$4 sm:$0xff]  }
 0x2b1   : > { %v2952_v0 = vrot.slane %v2880_v1, 1  ;;  %v2966_v39 = vrot.slane %v2881_v8, 1  ;;  %v2979_v58 = vrot.slane %v2882_v7, 1  ;;  %v2992_v12 = vrot.slane %v2883_v57, 1  ;;  %3148 = vst [vmem:[#allocation3 + $0x10] sm:$0xff] %v3147_v40 }
 0x2b2   : > { %3153 = vst [vmem:[#allocation3 + $0x18] sm:$0xf] %v3152_v62  ;;  %v18177_v63 = vcombine.high %v3147_v40, %v24420_v5  ;;  %v24496_v14 = vcombine.low %v3147_v40, %v24420_v5  ;;  %v21095_v29 = vld [vmem:[#allocation10 + $0x13ec] ss:$28 sps:$4 sm:$0xff]   ;;  %v25539_v1 = vmov 0   ;;  %vm23219_vm6 = vmmov 0  }
 0x2b3   : > { %v2954_v9 = vsel %vm2953_vm0, %v2952_v0, %v2951_v52  ;;  %v2967_v19 = vsel %vm2953_vm0, %v2966_v39, %v2965_v30  ;;  %v2980_v13 = vsel %vm2953_vm0, %v2979_v58, %v2978_v18  ;;  %v2993_v35 = vsel %vm2953_vm0, %v2992_v12, %v2991_v45  ;;  %v21093_v8 = vld [vmem:[#allocation10 + $0x13e8] ss:$28 sps:$4 sm:$0xff]   ;;  %v21096_v7 = vld [vmem:[#allocation10 + $0x16f8] ss:$28 sps:$4 sm:$0xff]   ;;  %v3614_v30 = vld [vmem:[#allocation3 + $0x34] sm:$0xf] }
 0x2b4   : > { %v3118_v21 = vpack.c.b16 %v2967_v19, %v2954_v9  ;;  %v3119_v10 = vpack.c.b16 %v2993_v35, %v2980_v13  ;;  %v4115_v5 = vshll.u32 %v18177_v63, 16  ;;  %v4113_v43 = vshrl.u32 %v18177_v63, 16  ;;  %v21101_v57 = vld [vmem:[#allocation10 + $0x13b4] ss:$28 sps:$4 sm:$0xff]   ;;  %v21102_v62 = vld [vmem:[#allocation10 + $0x16c0] ss:$28 sps:$4 sm:$0xff]  }
 0x2b5   : > { %v21099_v40 = vld [vmem:[#allocation10 + $0x13b0] ss:$28 sps:$4 sm:$0xff]   ;;  %v21107_v0 = vld [vmem:[#allocation10 + $0x137c] ss:$28 sps:$4 sm:$0xff]   ;;  %v21108_v18 = vld [vmem:[#allocation10 + $0x1688] ss:$28 sps:$4 sm:$0xff]  }
 0x2b6   : > { %v3141_v11 = vsel %vm24476_vm12, %v3118_v21, %v3140_v23  ;;  %v3144_v17 = vsel %vm24476_vm12, %v3119_v10, %v3143_v33  ;;  %v4117_v44 = vrot.slane %v4115_v5, 1  ;;  %v21110_v39 = vld [vmem:[#allocation10 + $0x168c] ss:$28 sps:$4 sm:$0xff]   ;;  %v21105_v12 = vld [vmem:[#allocation10 + $0x1378] ss:$28 sps:$4 sm:$0xff]   ;;  %vm25545_vm11 = vcmask 1043459  }
 0x2b7   : > { %3142 = vst [vmem:[#allocation3] sm:$0xff] %v3141_v11  ;;  %3145 = vst [vmem:[#allocation3 + $0x8] sm:$0xff] %v3144_v17  ;;  %v18173_v50 = vcombine.high %v3141_v11, %v24412_v32  ;;  %v18175_v16 = vcombine.high %v3144_v17, %v24416_v47  ;;  %v18172_v37 = vcombine.low %v3141_v11, %v24412_v32  ;;  %v21081_v32 = vld [vmem:[#allocation10 + $0x1458] ss:$28 sps:$4 sm:$0xff]   ;;  %v21113_v45 = vld [vmem:[#allocation10 + $0x1344] ss:$28 sps:$4 sm:$0xff]  }
 0x2b8   : > { %v18174_v60 = vcombine.low %v3144_v17, %v24416_v47  ;;  %v24522_v26 = vor.u32 %v4117_v44, %v4113_v43  ;;  %v21116_v63 = vld [vmem:[#allocation10 + $0x1654] ss:$28 sps:$4 sm:$0xff]   ;;  %v21111_v33 = vld [vmem:[#allocation10 + $0x1340] ss:$28 sps:$4 sm:$0xff]   ;;  %v21119_v19 = vld [vmem:[#allocation10 + $0x130c] ss:$28 sps:$4 sm:$0xff]  }
 0x2b9   : > { %v4087_v24 = vshll.u32 %v18173_v50, 16  ;;  %v4101_v27 = vshll.u32 %v18175_v16, 16  ;;  %v4080_v56 = vshll.u32 %v18172_v37, 16  ;;  %v4085_v55 = vshrl.u32 %v18173_v50, 16  ;;  %v3174_v52 = vld [vmem:[#allocation3 + $0x18] sm:$0xf]  ;;  %vm25546_vm0 = vmmov %vm25545_vm11 }
 0x2ba   : > { %v4094_v54 = vshll.u32 %v18174_v60, 16  ;;  %v4099_v59 = vshrl.u32 %v18175_v16, 16  ;;  %v4078_v15 = vshrl.u32 %v18172_v37, 16  ;;  %v4092_v61 = vshrl.u32 %v18174_v60, 16  ;;  %v21114_v9 = vld [vmem:[#allocation10 + $0x1650] ss:$28 sps:$4 sm:$0xff]   ;;  %vm25548_vm1 = vmmov %vm25546_vm0 }
 0x2bb   : > { %v4089_v48 = vrot.slane %v4087_v24, 1  ;;  %v4103_v34 = vrot.slane %v4101_v27, 1  ;;  %v4082_v36 = vrot.slane %v4080_v56, 1  ;;  %v18178_v58 = vcombine.low %v3174_v52, %v3614_v30  ;;  %v21123_v35 = vld [vmem:[#allocation10 + $0xd64] ss:$28 sps:$4 sm:$0xff]   ;;  %vm25549_vm4 = vmmov %vm25546_vm0 }
 0x2bc   : > { %v4096_v6 = vrot.slane %v4094_v54, 1  ;;  %v21117_v10 = vld [vmem:[#allocation10 + $0x1308] ss:$28 sps:$4 sm:$0xff]   ;;  %v21121_v11 = vld [vmem:[#allocation10 + $0xd60] ss:$28 sps:$4 sm:$0xff]   ;;  %vm25550_vm9 = vmmov %vm25546_vm0  ;;  %vm23222_vm2 = vmmov (%p152_p12), 0  }
 0x2bd   : > { %v24510_v28 = vor.u32 %v4089_v48, %v4085_v55  ;;  %v24512_v25 = vor.u32 %v4103_v34, %v4099_v59  ;;  %v24514_v47 = vor.u32 %v4082_v36, %v4078_v15  ;;  %v4122_v23 = vshll.u32 %v18178_v58, 16  ;;  %v21126_v5 = vld [vmem:[#allocation10 + $0x12d4] ss:$28 sps:$4 sm:$0xff]   ;;  %v21129_v50 = vld [vmem:[#allocation10 + $0xd2c] ss:$28 sps:$4 sm:$0xff]   ;;  %vm25551_vm12 = vmmov %vm25546_vm0 }
 0x2be   : > { %v24516_v46 = vor.u32 %v4096_v6, %v4092_v61  ;;  %v4120_v21 = vshrl.u32 %v18178_v58, 16  ;;  %v21124_v16 = vld [vmem:[#allocation10 + $0x12d0] ss:$28 sps:$4 sm:$0xff]   ;;  %v21127_v37 = vld [vmem:[#allocation10 + $0xd28] ss:$28 sps:$4 sm:$0xff]  }
 0x2bf   : > { %6111 = vmatprep.mubr.bf16.mxu0 %v24510_v28  ;;  %6154 = vmatprep.mubr.bf16.mxu1 %v24512_v25  ;;  %v4124_v13 = vrot.slane %v4122_v23, 1  ;;  %v21132_v60 = vld [vmem:[#allocation10 + $0x161c] ss:$28 sps:$4 sm:$0xff]   ;;  %v21135_v24 = vld [vmem:[#allocation10 + $0xcf4] ss:$28 sps:$4 sm:$0xff]  }
 0x2c0   : > { %6112 = vmatmul.mubr.bf16.vlgmr.msra.gmra.mxu0 %v24514_v47  ;;  %6155 = vmatmul.mubr.bf16.vlgmr.msra.gmra.mxu1 %v24516_v46  ;;  %v21130_v27 = vld [vmem:[#allocation10 + $0x1618] ss:$28 sps:$4 sm:$0xff]   ;;  %v21133_v56 = vld [vmem:[#allocation10 + $0xcf0] ss:$28 sps:$4 sm:$0xff]   ;;  %v21138_v54 = vld [vmem:[#allocation10 + $0x15e4] ss:$28 sps:$4 sm:$0xff]  }
 0x2c1   : > { %6166 = vmatpush1.bf16.msra.mxu0 %v21081_v32  ;;  %6213 = vmatpush1.bf16.msra.mxu1 %v21084_v31  ;;  %v24526_v17 = vor.u32 %v4124_v13, %v4120_v21  ;;  %v21141_v44 = vld [vmem:[#allocation10 + $0xcbc] ss:$28 sps:$4 sm:$0xff]   ;;  %v21144_v59 = vld [vmem:[#allocation10 + $0x15ac] ss:$28 sps:$4 sm:$0xff]   ;;  %v21147_v34 = vld [vmem:[#allocation10 + $0xc84] ss:$28 sps:$4 sm:$0xff]  }
 0x2c2   : > { %6197 = vmatprep.mubr.bf16.mxu0 %v24522_v26  ;;  %6167 = vmatprep.subr.bf16.mxu0 %v21089_v20  ;;  %v21136_v55 = vld [vmem:[#allocation10 + $0x15e0] ss:$28 sps:$4 sm:$0xff]   ;;  %v21139_v48 = vld [vmem:[#allocation10 + $0xcb8] ss:$28 sps:$4 sm:$0xff]   ;;  %v21142_v15 = vld [vmem:[#allocation10 + $0x15a8] ss:$28 sps:$4 sm:$0xff]  }
 0x2c3   : > { %6214 = vmatprep.subr.bf16.mxu1 %v21092_v2  ;;  %6240 = vmatprep.mubr.bf16.mxu1 %v25539_v1  ;;  %v21145_v36 = vld [vmem:[#allocation10 + $0xc80] ss:$28 sps:$4 sm:$0xff]   ;;  %v21150_v61 = vld [vmem:[#allocation10 + $0x1574] ss:$28 sps:$4 sm:$0xff]   ;;  %v21153_v6 = vld [vmem:[#allocation10 + $0xc4c] ss:$28 sps:$4 sm:$0xff]  }
 0x2c4   : > { %v21148_v32 = vld [vmem:[#allocation10 + $0x1570] ss:$28 sps:$4 sm:$0xff]   ;;  %v21151_v31 = vld [vmem:[#allocation10 + $0xc48] ss:$28 sps:$4 sm:$0xff]   ;;  %v21156_v43 = vld [vmem:[#allocation10 + $0x153c] ss:$28 sps:$4 sm:$0xff]  }
 0x2c5   : > { %6168 = vmatpush1.bf16.msra.mxu0 %v21087_v3  ;;  %6215 = vmatpush1.bf16.msra.mxu1 %v21090_v22  ;;  %v21159_v20 = vld [vmem:[#allocation10 + $0xc14] ss:$28 sps:$4 sm:$0xff]   ;;  %v21162_v22 = vld [vmem:[#allocation10 + $0x1504] ss:$28 sps:$4 sm:$0xff]  }
 0x2c6   : > { %6169 = vmatprep.subr.bf16.mxu0 %v21095_v29  ;;  %6216 = vmatprep.subr.bf16.mxu1 %v21098_v4  ;;  %v21154_v2 = vld [vmem:[#allocation10 + $0x1538] ss:$28 sps:$4 sm:$0xff]   ;;  %v21157_v3 = vld [vmem:[#allocation10 + $0xc10] ss:$28 sps:$4 sm:$0xff]   ;;  %v21160_v4 = vld [vmem:[#allocation10 + $0x1500] ss:$28 sps:$4 sm:$0xff]  }
 0x2c7   : > { %v21165_v29 = vld [vmem:[#allocation10 + $0xbdc] ss:$28 sps:$4 sm:$0xff]   ;;  %v21174_v30 = vld [vmem:[#allocation10 + $0x1494] ss:$28 sps:$4 sm:$0xff]  }
 0x2c8   : > { %v21169_v52 = vld [vmem:[#allocation10 + $0xf20] ss:$28 sps:$4 sm:$0xff]   ;;  %v21184_v13 = vld [vmem:[#allocation10 + $0xe78] ss:$28 sps:$4 sm:$0xff]  }
 0x2c9   : > { %6170 = vmatpush1.bf16.msra.mxu0 %v21093_v8  ;;  %6217 = vmatpush1.bf16.msra.mxu1 %v21096_v7  ;;  %v21163_v8 = vld [vmem:[#allocation10 + $0xbd8] ss:$28 sps:$4 sm:$0xff]   ;;  %v21168_v7 = vld [vmem:[#allocation10 + $0x14cc] ss:$28 sps:$4 sm:$0xff]   ;;  %v21181_v23 = vld [vmem:[#allocation10 + $0x10e0] ss:$28 sps:$4 sm:$0xff]  }
 0x2ca   : > { %6171 = vmatprep.subr.bf16.mxu0 %v21101_v57  ;;  %6218 = vmatprep.subr.bf16.mxu1 %v21104_v53  ;;  %v21171_v57 = vld [vmem:[#allocation10 + $0xf24] ss:$28 sps:$4 sm:$0xff]   ;;  %v21195_v21 = vld [vmem:[#allocation10 + $0x1074] ss:$28 sps:$4 sm:$0xff]  }
 0x2cb   : > { %v21166_v53 = vld [vmem:[#allocation10 + $0x14c8] ss:$28 sps:$4 sm:$0xff]  }
 0x2cd   : > { %6172 = vmatpush1.bf16.msra.mxu0 %v21099_v40  ;;  %6219 = vmatpush1.bf16.msra.mxu1 %v21102_v62  ;;  %v21177_v40 = vld [vmem:[#allocation10 + $0xeec] ss:$28 sps:$4 sm:$0xff]   ;;  %v4108_v62 = vshll.u32 %v24496_v14, 16 }
 0x2ce   : > { %6173 = vmatprep.subr.bf16.mxu0 %v21107_v0  ;;  %6220 = vmatprep.subr.bf16.mxu1 %v21110_v39  ;;  %v21172_v0 = vld [vmem:[#allocation10 + $0x1490] ss:$28 sps:$4 sm:$0xff]   ;;  %v21175_v39 = vld [vmem:[#allocation10 + $0xee8] ss:$28 sps:$4 sm:$0xff]  }
 0x2cf   : > { %v4110_v58 = vrot.slane %v4108_v62, 1  ;;  %v21244_v62 = vld [vmem:[#allocation10 + $0x11f8] ss:$28 sps:$4 sm:$0xff]  }
 0x2d1   : > { %6174 = vmatpush1.bf16.msra.mxu0 %v21105_v12  ;;  %6221 = vmatpush1.bf16.msra.mxu1 %v21108_v18  ;;  %v21180_v12 = vld [vmem:[#allocation10 + $0xeb4] ss:$28 sps:$4 sm:$0xff]   ;;  %v21183_v18 = vld [vmem:[#allocation10 + $0x10e4] ss:$28 sps:$4 sm:$0xff]  }
 0x2d2   : > { %6175 = vmatprep.subr.bf16.mxu0 %v21113_v45  ;;  %6222 = vmatprep.subr.bf16.mxu1 %v21116_v63  ;;  %v4106_v45 = vshrl.u32 %v24496_v14, 16  ;;  %v21178_v63 = vld [vmem:[#allocation10 + $0xeb0] ss:$28 sps:$4 sm:$0xff]   ;;  %v21192_v14 = vld [vmem:[#allocation10 + $0xe44] ss:$28 sps:$4 sm:$0xff]  }
 0x2d5   : > { %6176 = vmatpush1.bf16.msra.mxu0 %v21111_v33  ;;  %6223 = vmatpush1.bf16.msra.mxu1 %v21114_v9  ;;  %v24533_v33 = vor.u32 %v4110_v58, %v4106_v45  ;;  %v21186_v9 = vld [vmem:[#allocation10 + $0xe7c] ss:$28 sps:$4 sm:$0xff]   ;;  %v21255_v58 = vld [vmem:[#allocation10 + $0x1314] ss:$28 sps:$4 sm:$0xff]   ;;  %v21258_v45 = vld [vmem:[#allocation10 + $0x118c] ss:$28 sps:$4 sm:$0xff]  }
 0x2d6   : > { %6177 = vmatprep.subr.bf16.mxu0 %v21119_v19  ;;  %6251 = vmatprep.subr.bf16.mxu1 %v21123_v35  ;;  %v21189_v19 = vld [vmem:[#allocation10 + $0x10ac] ss:$28 sps:$4 sm:$0xff]  }
 0x2d7   : > { %v21187_v35 = vld [vmem:[#allocation10 + $0x10a8] ss:$28 sps:$4 sm:$0xff]  }
 0x2d8   : > { %18557 = vmatmul.mubr.msk.bf16.vlgmr.msra.gmra.mxu1 %vm1872_vm14, %v24526_v17 }
 0x2d9   : > { %6178 = vmatpush1.bf16.msra.mxu0 %v21117_v10  ;;  %6252 = vmatpush1.bf16.msra.mxu1 %v21121_v11  ;;  %v21190_v10 = vld [vmem:[#allocation10 + $0xe40] ss:$28 sps:$4 sm:$0xff]   ;;  %v21193_v11 = vld [vmem:[#allocation10 + $0x1070] ss:$28 sps:$4 sm:$0xff]  }
 0x2da   : > { %6283 = vmatprep.mubr.bf16.mxu1 %v24510_v28  ;;  %6179 = vmatprep.subr.bf16.mxu0 %v21126_v5  ;;  %v21198_v5 = vld [vmem:[#allocation10 + $0xe0c] ss:$28 sps:$4 sm:$0xff]  }
 0x2db   : > { %6253 = vmatprep.subr.bf16.mxu1 %v21129_v50  ;;  %v21201_v50 = vld [vmem:[#allocation10 + $0x103c] ss:$28 sps:$4 sm:$0xff]  }
 0x2dd   : > { %6180 = vmatpush1.bf16.msra.mxu0 %v21124_v16  ;;  %6254 = vmatpush1.bf16.msra.mxu1 %v21127_v37  ;;  %v21196_v16 = vld [vmem:[#allocation10 + $0xe08] ss:$28 sps:$4 sm:$0xff]   ;;  %v21199_v37 = vld [vmem:[#allocation10 + $0x1038] ss:$28 sps:$4 sm:$0xff]  }
 0x2de   : > { %6181 = vmatprep.subr.bf16.mxu0 %v21132_v60  ;;  %6255 = vmatprep.subr.bf16.mxu1 %v21135_v24  ;;  %v21204_v60 = vld [vmem:[#allocation10 + $0xdd4] ss:$28 sps:$4 sm:$0xff]   ;;  %v21207_v24 = vld [vmem:[#allocation10 + $0x1004] ss:$28 sps:$4 sm:$0xff]  }
 0x2e1   : > { %6182 = vmatpush2.bf16.msra.mxu0 %v21130_v27  ;;  %6256 = vmatpush1.bf16.msra.mxu1 %v21133_v56  ;;  %v21202_v27 = vld [vmem:[#allocation10 + $0xdd0] ss:$28 sps:$4 sm:$0xff]   ;;  %v21205_v56 = vld [vmem:[#allocation10 + $0x1000] ss:$28 sps:$4 sm:$0xff]  }
 0x2e2   : > { %6183 = vmatprep.subr.bf16.mxu0 %v21138_v54  ;;  %6257 = vmatprep.subr.bf16.mxu1 %v21141_v44  ;;  %v21210_v54 = vld [vmem:[#allocation10 + $0xd9c] ss:$28 sps:$4 sm:$0xff]   ;;  %v21213_v44 = vld [vmem:[#allocation10 + $0xfcc] ss:$28 sps:$4 sm:$0xff]  }
 0x2e5   : > { %6184 = vmatpush2.bf16.msra.mxu0 %v21136_v55  ;;  %6258 = vmatpush1.bf16.msra.mxu1 %v21139_v48  ;;  %v21208_v55 = vld [vmem:[#allocation10 + $0xd98] ss:$28 sps:$4 sm:$0xff]   ;;  %v21211_v48 = vld [vmem:[#allocation10 + $0xfc8] ss:$28 sps:$4 sm:$0xff]  }
 0x2e6   : > { %6185 = vmatprep.subr.bf16.mxu0 %v21144_v59  ;;  %6259 = vmatprep.subr.bf16.mxu1 %v21147_v34  ;;  %v21216_v59 = vld [vmem:[#allocation10 + $0xf94] ss:$28 sps:$4 sm:$0xff]   ;;  %v21219_v34 = vld [vmem:[#allocation10 + $0x1464] ss:$28 sps:$4 sm:$0xff]  }
 0x2e9   : > { %6186 = vmatpush2.bf16.msra.mxu0 %v21142_v15  ;;  %6260 = vmatpush1.bf16.msra.mxu1 %v21145_v36  ;;  %v21214_v15 = vld [vmem:[#allocation10 + $0xf90] ss:$28 sps:$4 sm:$0xff]   ;;  %v21217_v36 = vld [vmem:[#allocation10 + $0x1460] ss:$28 sps:$4 sm:$0xff]  }
 0x2ea   : > { %6187 = vmatprep.subr.bf16.mxu0 %v21150_v61  ;;  %6261 = vmatprep.subr.bf16.mxu1 %v21153_v6  ;;  %v21222_v61 = vld [vmem:[#allocation10 + $0xf5c] ss:$28 sps:$4 sm:$0xff]   ;;  %v21225_v6 = vld [vmem:[#allocation10 + $0x142c] ss:$28 sps:$4 sm:$0xff]  }
 0x2ed   : > { %6188 = vmatpush2.bf16.msra.mxu0 %v21148_v32  ;;  %6262 = vmatpush1.bf16.msra.mxu1 %v21151_v31  ;;  %v21220_v32 = vld [vmem:[#allocation10 + $0xf58] ss:$28 sps:$4 sm:$0xff]   ;;  %v21223_v31 = vld [vmem:[#allocation10 + $0x1428] ss:$28 sps:$4 sm:$0xff]  }
 0x2ee   : > { %6189 = vmatprep.subr.bf16.mxu0 %v21156_v43  ;;  %6263 = vmatprep.subr.bf16.mxu1 %v21159_v20  ;;  %v21228_v43 = vld [vmem:[#allocation10 + $0x12a4] ss:$28 sps:$4 sm:$0xff]   ;;  %v21231_v20 = vld [vmem:[#allocation10 + $0x13f4] ss:$28 sps:$4 sm:$0xff]  }
 0x2f1   : > { %6190 = vmatpush2.bf16.msra.mxu0 %v21154_v2  ;;  %6264 = vmatpush1.bf16.msra.mxu1 %v21157_v3  ;;  %v21226_v2 = vld [vmem:[#allocation10 + $0x12a0] ss:$28 sps:$4 sm:$0xff]   ;;  %v21229_v3 = vld [vmem:[#allocation10 + $0x13f0] ss:$28 sps:$4 sm:$0xff]  }
 0x2f2   : > { %6191 = vmatprep.subr.bf16.mxu0 %v21162_v22  ;;  %6265 = vmatprep.subr.bf16.mxu1 %v21165_v29  ;;  %v21234_v22 = vld [vmem:[#allocation10 + $0x126c] ss:$28 sps:$4 sm:$0xff]   ;;  %v21237_v29 = vld [vmem:[#allocation10 + $0x13bc] ss:$28 sps:$4 sm:$0xff]  }
 0x2f5   : > { %6192 = vmatpush2.bf16.msra.mxu0 %v21160_v4  ;;  %6266 = vmatpush1.bf16.msra.mxu1 %v21163_v8  ;;  %v21232_v4 = vld [vmem:[#allocation10 + $0x1268] ss:$28 sps:$4 sm:$0xff]   ;;  %v21235_v8 = vld [vmem:[#allocation10 + $0x13b8] ss:$28 sps:$4 sm:$0xff]  }
 0x2f6   : > { %6193 = vmatprep.subr.bf16.mxu0 %v21168_v7  ;;  %6267 = vmatprep.subr.bf16.mxu1 %v21171_v57  ;;  %v21240_v7 = vld [vmem:[#allocation10 + $0x1234] ss:$28 sps:$4 sm:$0xff]   ;;  %v21243_v57 = vld [vmem:[#allocation10 + $0x1384] ss:$28 sps:$4 sm:$0xff]  }
 0x2f9   : > { %6194 = vmatpush2.bf16.msra.mxu0 %v21166_v53  ;;  %6268 = vmatpush2.bf16.msra.mxu1 %v21169_v52  ;;  %v21238_v53 = vld [vmem:[#allocation10 + $0x1230] ss:$28 sps:$4 sm:$0xff]   ;;  %v21241_v52 = vld [vmem:[#allocation10 + $0x1380] ss:$28 sps:$4 sm:$0xff]  }
 0x2fa   : > { %6195 = vmatprep.subr.bf16.mxu0 %v21174_v30  ;;  %6269 = vmatprep.subr.bf16.mxu1 %v21177_v40  ;;  %v21246_v30 = vld [vmem:[#allocation10 + $0x11fc] ss:$28 sps:$4 sm:$0xff]   ;;  %v21249_v40 = vld [vmem:[#allocation10 + $0x134c] ss:$28 sps:$4 sm:$0xff]  }
 0x2fd   : > { %6196 = vmatpush2.bf16.msra.mxu0 %v21172_v0  ;;  %6270 = vmatpush2.bf16.msra.mxu1 %v21175_v39  ;;  %v21247_v0 = vld [vmem:[#allocation10 + $0x1348] ss:$28 sps:$4 sm:$0xff]  }
 0x2fe   : > { %6271 = vmatprep.subr.bf16.mxu1 %v21180_v12  ;;  %6294 = vmatprep.subr.bf16.mxu0 %v21183_v18  ;;  %v21252_v39 = vld [vmem:[#allocation10 + $0x11c4] ss:$28 sps:$4 sm:$0xff]   ;;  %v21253_v18 = vld [vmem:[#allocation10 + $0x1310] ss:$28 sps:$4 sm:$0xff]  }
 0x2ff   : > { %v21250_v12 = vld [vmem:[#allocation10 + $0x11c0] ss:$28 sps:$4 sm:$0xff]  }
 0x300   : > { %6198 = vmatmul.mubr.bf16.vlgmr.msra.gmra.mxu0 %v24533_v33 }
 0x301   : > { %6272 = vmatpush2.bf16.msra.mxu1 %v21178_v63  ;;  %6295 = vmatpush1.bf16.msra.mxu0 %v21181_v23  ;;  %v21261_v63 = vld [vmem:[#allocation10 + $0x12dc] ss:$28 sps:$4 sm:$0xff]   ;;  %v21256_v23 = vld [vmem:[#allocation10 + $0x1188] ss:$28 sps:$4 sm:$0xff]  }
 0x302   : > { %6326 = vmatprep.mubr.bf16.mxu0 %v24512_v25  ;;  %6273 = vmatprep.subr.bf16.mxu1 %v21186_v9  ;;  %v21259_v9 = vld [vmem:[#allocation10 + $0x12d8] ss:$28 sps:$4 sm:$0xff]  }
 0x303   : > { %6296 = vmatprep.subr.bf16.mxu0 %v21189_v19  ;;  %v21264_v19 = vld [vmem:[#allocation10 + $0x1154] ss:$28 sps:$4 sm:$0xff]  }
 0x305   : > { %6274 = vmatpush2.bf16.msra.mxu1 %v21184_v13  ;;  %6297 = vmatpush1.bf16.msra.mxu0 %v21187_v35  ;;  %v21267_v13 = vld [vmem:[#allocation10 + $0x1624] ss:$28 sps:$4 sm:$0xff]   ;;  %v21262_v35 = vld [vmem:[#allocation10 + $0x1150] ss:$28 sps:$4 sm:$0xff]  }
 0x306   : > { %6275 = vmatprep.subr.bf16.mxu1 %v21192_v14  ;;  %6298 = vmatprep.subr.bf16.mxu0 %v21195_v21  ;;  %v21265_v14 = vld [vmem:[#allocation10 + $0x1620] ss:$28 sps:$4 sm:$0xff]  }
 0x307   : > { %v21270_v21 = vld [vmem:[#allocation10 + $0x111c] ss:$28 sps:$4 sm:$0xff]  }
 0x309   : > { %6276 = vmatpush2.bf16.msra.mxu1 %v21190_v10  ;;  %6299 = vmatpush1.bf16.msra.mxu0 %v21193_v11  ;;  %v21273_v10 = vld [vmem:[#allocation10 + $0x15ec] ss:$28 sps:$4 sm:$0xff]   ;;  %v21268_v11 = vld [vmem:[#allocation10 + $0x1118] ss:$28 sps:$4 sm:$0xff]  }
 0x30a   : > { %6277 = vmatprep.subr.bf16.mxu1 %v21198_v5  ;;  %6300 = vmatprep.subr.bf16.mxu0 %v21201_v50  ;;  %v21271_v5 = vld [vmem:[#allocation10 + $0x15e8] ss:$28 sps:$4 sm:$0xff]   ;;  %v21276_v50 = vld [vmem:[#allocation10 + $0x15b4] ss:$28 sps:$4 sm:$0xff]  }
 0x30d   : > { %6278 = vmatpush2.bf16.msra.mxu1 %v21196_v16  ;;  %6301 = vmatpush1.bf16.msra.mxu0 %v21199_v37  ;;  %v21279_v16 = vld [vmem:[#allocation10 + $0x1774] ss:$28 sps:$4 sm:$0xff]  }
 0x30e   : > { %6279 = vmatprep.subr.bf16.mxu1 %v21204_v60  ;;  %6302 = vmatprep.subr.bf16.mxu0 %v21207_v24  ;;  %v21274_v37 = vld [vmem:[#allocation10 + $0x15b0] ss:$28 sps:$4 sm:$0xff]   ;;  %v21282_v24 = vld [vmem:[#allocation10 + $0x157c] ss:$28 sps:$4 sm:$0xff]  }
 0x30f   : > { %v21277_v60 = vld [vmem:[#allocation10 + $0x1770] ss:$28 sps:$4 sm:$0xff]  }
 0x311   : > { %6280 = vmatpush2.bf16.msra.mxu1 %v21202_v27  ;;  %6303 = vmatpush1.bf16.msra.mxu0 %v21205_v56  ;;  %v21285_v27 = vld [vmem:[#allocation10 + $0x173c] ss:$28 sps:$4 sm:$0xff]  }
 0x312   : > { %6281 = vmatprep.subr.bf16.mxu1 %v21210_v54  ;;  %6304 = vmatprep.subr.bf16.mxu0 %v21213_v44  ;;  %v21280_v56 = vld [vmem:[#allocation10 + $0x1578] ss:$28 sps:$4 sm:$0xff]   ;;  %v21288_v44 = vld [vmem:[#allocation10 + $0x1544] ss:$28 sps:$4 sm:$0xff]  }
 0x313   : > { %v21283_v54 = vld [vmem:[#allocation10 + $0x1738] ss:$28 sps:$4 sm:$0xff]  }
 0x315   : > { %6282 = vmatpush2.bf16.msra.mxu1 %v21208_v55  ;;  %6305 = vmatpush1.bf16.msra.mxu0 %v21211_v48  ;;  %v21291_v55 = vld [vmem:[#allocation10 + $0x1704] ss:$28 sps:$4 sm:$0xff]  }
 0x316   : > { %6306 = vmatprep.subr.bf16.mxu0 %v21216_v59  ;;  %6337 = vmatprep.subr.bf16.mxu1 %v21219_v34  ;;  %v21286_v48 = vld [vmem:[#allocation10 + $0x1540] ss:$28 sps:$4 sm:$0xff]   ;;  %v21294_v34 = vld [vmem:[#allocation10 + $0x150c] ss:$28 sps:$4 sm:$0xff]  }
 0x317   : > { %v21289_v59 = vld [vmem:[#allocation10 + $0x1700] ss:$28 sps:$4 sm:$0xff]  }
 0x318   : > { %6284 = vmatmul.mubr.bf16.vlgmr.msra.gmra.mxu1 %v24514_v47 }
 0x319   : > { %6307 = vmatpush1.bf16.msra.mxu0 %v21214_v15  ;;  %6338 = vmatpush1.bf16.msra.mxu1 %v21217_v36  ;;  %v21297_v15 = vld [vmem:[#allocation10 + $0x16cc] ss:$28 sps:$4 sm:$0xff]  }
 0x31a   : > { %6369 = vmatprep.mubr.bf16.mxu1 %v24522_v26  ;;  %6308 = vmatprep.subr.bf16.mxu0 %v21222_v61  ;;  %v21292_v36 = vld [vmem:[#allocation10 + $0x1508] ss:$28 sps:$4 sm:$0xff]  }
 0x31b   : > { %6339 = vmatprep.subr.bf16.mxu1 %v21225_v6  ;;  %v21295_v61 = vld [vmem:[#allocation10 + $0x16c8] ss:$28 sps:$4 sm:$0xff]   ;;  %v21300_v6 = vld [vmem:[#allocation10 + $0x14d4] ss:$28 sps:$4 sm:$0xff]  }
 0x31d   : > { %6309 = vmatpush1.bf16.msra.mxu0 %v21220_v32  ;;  %6340 = vmatpush1.bf16.msra.mxu1 %v21223_v31  ;;  %v21303_v32 = vld [vmem:[#allocation10 + $0x1694] ss:$28 sps:$4 sm:$0xff]  }
 0x31e   : > { %6310 = vmatprep.subr.bf16.mxu0 %v21228_v43  ;;  %6341 = vmatprep.subr.bf16.mxu1 %v21231_v20  ;;  %v21298_v31 = vld [vmem:[#allocation10 + $0x14d0] ss:$28 sps:$4 sm:$0xff]   ;;  %v21306_v20 = vld [vmem:[#allocation10 + $0x149c] ss:$28 sps:$4 sm:$0xff]  }
 0x31f   : > { %v21301_v43 = vld [vmem:[#allocation10 + $0x1690] ss:$28 sps:$4 sm:$0xff]  }
 0x321   : > { %6311 = vmatpush2.bf16.msra.mxu0 %v21226_v2  ;;  %6342 = vmatpush1.bf16.msra.mxu1 %v21229_v3  ;;  %v21309_v2 = vld [vmem:[#allocation10 + $0x165c] ss:$28 sps:$4 sm:$0xff]  }
 0x322   : > { %6312 = vmatprep.subr.bf16.mxu0 %v21234_v22  ;;  %6343 = vmatprep.subr.bf16.mxu1 %v21237_v29  ;;  %v21304_v3 = vld [vmem:[#allocation10 + $0x1498] ss:$28 sps:$4 sm:$0xff]   ;;  %v21312_v29 = vld [vmem:[#allocation10 + $0xd6c] ss:$28 sps:$4 sm:$0xff]  }
 0x323   : > { %v21307_v22 = vld [vmem:[#allocation10 + $0x1658] ss:$28 sps:$4 sm:$0xff]  }
 0x325   : > { %6313 = vmatpush2.bf16.msra.mxu0 %v21232_v4  ;;  %6344 = vmatpush1.bf16.msra.mxu1 %v21235_v8  ;;  %v21315_v4 = vld [vmem:[#allocation10 + $0x10ec] ss:$28 sps:$4 sm:$0xff]  }
 0x326   : > { %6314 = vmatprep.subr.bf16.mxu0 %v21240_v7  ;;  %6345 = vmatprep.subr.bf16.mxu1 %v21243_v57  ;;  %v21310_v8 = vld [vmem:[#allocation10 + $0xd68] ss:$28 sps:$4 sm:$0xff]   ;;  %v21318_v57 = vld [vmem:[#allocation10 + $0xd34] ss:$28 sps:$4 sm:$0xff]  }
 0x327   : > { %v21313_v7 = vld [vmem:[#allocation10 + $0x10e8] ss:$28 sps:$4 sm:$0xff]  }
 0x329   : > { %6315 = vmatpush2.bf16.msra.mxu0 %v21238_v53  ;;  %6346 = vmatpush1.bf16.msra.mxu1 %v21241_v52  ;;  %v21321_v53 = vld [vmem:[#allocation10 + $0x10b4] ss:$28 sps:$4 sm:$0xff]  }
 0x32a   : > { %6316 = vmatprep.subr.bf16.mxu0 %v21246_v30  ;;  %6347 = vmatprep.subr.bf16.mxu1 %v21249_v40  ;;  %v21316_v52 = vld [vmem:[#allocation10 + $0xd30] ss:$28 sps:$4 sm:$0xff]   ;;  %v21324_v40 = vld [vmem:[#allocation10 + $0xcfc] ss:$28 sps:$4 sm:$0xff]  }
 0x32b   : > { %v21319_v30 = vld [vmem:[#allocation10 + $0x10b0] ss:$28 sps:$4 sm:$0xff]  }
 0x32d   : > { %6317 = vmatpush2.bf16.msra.mxu0 %v21244_v62  ;;  %6348 = vmatpush1.bf16.msra.mxu1 %v21247_v0  ;;  %v21327_v62 = vld [vmem:[#allocation10 + $0x107c] ss:$28 sps:$4 sm:$0xff]  }
 0x32e   : > { %6318 = vmatprep.subr.bf16.mxu0 %v21252_v39  ;;  %6349 = vmatprep.subr.bf16.mxu1 %v21255_v58  ;;  %v21322_v0 = vld [vmem:[#allocation10 + $0xcf8] ss:$28 sps:$4 sm:$0xff]   ;;  %v21330_v58 = vld [vmem:[#allocation10 + $0xcc4] ss:$28 sps:$4 sm:$0xff]  }
 0x32f   : > { %v21325_v39 = vld [vmem:[#allocation10 + $0x1078] ss:$28 sps:$4 sm:$0xff]  }
 0x331   : > { %6319 = vmatpush2.bf16.msra.mxu0 %v21250_v12  ;;  %6350 = vmatpush1.bf16.msra.mxu1 %v21253_v18  ;;  %v21333_v12 = vld [vmem:[#allocation10 + $0x1044] ss:$28 sps:$4 sm:$0xff]  }
 0x332   : > { %6320 = vmatprep.subr.bf16.mxu0 %v21258_v45  ;;  %6351 = vmatprep.subr.bf16.mxu1 %v21261_v63  ;;  %v21328_v18 = vld [vmem:[#allocation10 + $0xcc0] ss:$28 sps:$4 sm:$0xff]   ;;  %v21336_v63 = vld [vmem:[#allocation10 + $0xc8c] ss:$28 sps:$4 sm:$0xff]  }
 0x333   : > { %v21331_v45 = vld [vmem:[#allocation10 + $0x1040] ss:$28 sps:$4 sm:$0xff]  }
 0x335   : > { %6321 = vmatpush2.bf16.msra.mxu0 %v21256_v23  ;;  %6352 = vmatpush1.bf16.msra.mxu1 %v21259_v9  ;;  %v21339_v23 = vld [vmem:[#allocation10 + $0x100c] ss:$28 sps:$4 sm:$0xff]  }
 0x336   : > { %6322 = vmatprep.subr.bf16.mxu0 %v21264_v19  ;;  %6353 = vmatprep.subr.bf16.mxu1 %v21267_v13  ;;  %v21334_v9 = vld [vmem:[#allocation10 + $0xc88] ss:$28 sps:$4 sm:$0xff]   ;;  %v21342_v13 = vld [vmem:[#allocation10 + $0xc54] ss:$28 sps:$4 sm:$0xff]  }
 0x337   : > { %v21337_v19 = vld [vmem:[#allocation10 + $0x1008] ss:$28 sps:$4 sm:$0xff]  }
 0x339   : > { %6323 = vmatpush2.bf16.msra.mxu0 %v21262_v35  ;;  %6354 = vmatpush2.bf16.msra.mxu1 %v21265_v14  ;;  %v21345_v35 = vld [vmem:[#allocation10 + $0xfd4] ss:$28 sps:$4 sm:$0xff]  }
 0x33a   : > { %6324 = vmatprep.subr.bf16.mxu0 %v21270_v21  ;;  %6355 = vmatprep.subr.bf16.mxu1 %v21273_v10  ;;  %v21340_v14 = vld [vmem:[#allocation10 + $0xc50] ss:$28 sps:$4 sm:$0xff]   ;;  %v21348_v10 = vld [vmem:[#allocation10 + $0xc1c] ss:$28 sps:$4 sm:$0xff]  }
 0x33b   : > { %v21343_v21 = vld [vmem:[#allocation10 + $0xfd0] ss:$28 sps:$4 sm:$0xff]  }
 0x33d   : > { %6325 = vmatpush2.bf16.msra.mxu0 %v21268_v11  ;;  %6356 = vmatpush2.bf16.msra.mxu1 %v21271_v5  ;;  %v21351_v11 = vld [vmem:[#allocation10 + $0xf9c] ss:$28 sps:$4 sm:$0xff]  }
 0x33e   : > { %6357 = vmatprep.subr.bf16.mxu1 %v21276_v50  ;;  %6384 = vmatprep.subr.bf16.mxu0 %v21279_v16  ;;  %v21346_v5 = vld [vmem:[#allocation10 + $0xc18] ss:$28 sps:$4 sm:$0xff]   ;;  %v21354_v16 = vld [vmem:[#allocation10 + $0xbe4] ss:$28 sps:$4 sm:$0xff]  }
 0x33f   : > { %v21349_v50 = vld [vmem:[#allocation10 + $0xf98] ss:$28 sps:$4 sm:$0xff]  }
 0x340   : > { %6327 = vmatmul.mubr.bf16.vlgmr.msra.gmra.mxu0 %v24516_v46 }
 0x341   : > { %6358 = vmatpush2.bf16.msra.mxu1 %v21274_v37  ;;  %6385 = vmatpush1.bf16.msra.mxu0 %v21277_v60  ;;  %v21357_v37 = vld [vmem:[#allocation10 + $0xf64] ss:$28 sps:$4 sm:$0xff]  }
 0x342   : > { %6359 = vmatprep.subr.bf16.mxu1 %v21282_v24  ;;  %6386 = vmatprep.subr.bf16.mxu0 %v21285_v27  ;;  %v21352_v60 = vld [vmem:[#allocation10 + $0xbe0] ss:$28 sps:$4 sm:$0xff]   ;;  %v21360_v27 = vld [vmem:[#allocation10 + $0xf2c] ss:$28 sps:$4 sm:$0xff]  }
 0x343   : > { %6412 = vmatprep.mubr.bf16.mxu0 %v25539_v1  ;;  %v21355_v24 = vld [vmem:[#allocation10 + $0xf60] ss:$28 sps:$4 sm:$0xff]  }
 0x345   : > { %6360 = vmatpush2.bf16.msra.mxu1 %v21280_v56  ;;  %6387 = vmatpush1.bf16.msra.mxu0 %v21283_v54  ;;  %v21363_v56 = vld [vmem:[#allocation10 + $0x12ac] ss:$28 sps:$4 sm:$0xff]  }
 0x346   : > { %6361 = vmatprep.subr.bf16.mxu1 %v21288_v44  ;;  %6388 = vmatprep.subr.bf16.mxu0 %v21291_v55  ;;  %v21358_v54 = vld [vmem:[#allocation10 + $0xf28] ss:$28 sps:$4 sm:$0xff]   ;;  %v21366_v55 = vld [vmem:[#allocation10 + $0xef4] ss:$28 sps:$4 sm:$0xff]  }
 0x347   : > { %v21361_v44 = vld [vmem:[#allocation10 + $0x12a8] ss:$28 sps:$4 sm:$0xff]  }
 0x349   : > { %6362 = vmatpush2.bf16.msra.mxu1 %v21286_v48  ;;  %6389 = vmatpush1.bf16.msra.mxu0 %v21289_v59  ;;  %v21369_v48 = vld [vmem:[#allocation10 + $0x1274] ss:$28 sps:$4 sm:$0xff]  }
 0x34a   : > { %6363 = vmatprep.subr.bf16.mxu1 %v21294_v34  ;;  %6390 = vmatprep.subr.bf16.mxu0 %v21297_v15  ;;  %v21364_v59 = vld [vmem:[#allocation10 + $0xef0] ss:$28 sps:$4 sm:$0xff]   ;;  %v21372_v15 = vld [vmem:[#allocation10 + $0xebc] ss:$28 sps:$4 sm:$0xff]  }
 0x34b   : > { %v21367_v34 = vld [vmem:[#allocation10 + $0x1270] ss:$28 sps:$4 sm:$0xff]  }
 0x34d   : > { %6364 = vmatpush2.bf16.msra.mxu1 %v21292_v36  ;;  %6391 = vmatpush1.bf16.msra.mxu0 %v21295_v61  ;;  %v21375_v36 = vld [vmem:[#allocation10 + $0x123c] ss:$28 sps:$4 sm:$0xff]  }
 0x34e   : > { %6365 = vmatprep.subr.bf16.mxu1 %v21300_v6  ;;  %6392 = vmatprep.subr.bf16.mxu0 %v21303_v32  ;;  %v21370_v61 = vld [vmem:[#allocation10 + $0xeb8] ss:$28 sps:$4 sm:$0xff]   ;;  %v21378_v32 = vld [vmem:[#allocation10 + $0xe84] ss:$28 sps:$4 sm:$0xff]  }
 0x34f   : > { %v21373_v6 = vld [vmem:[#allocation10 + $0x1238] ss:$28 sps:$4 sm:$0xff]  }
 0x351   : > { %6366 = vmatpush2.bf16.msra.mxu1 %v21298_v31  ;;  %6393 = vmatpush1.bf16.msra.mxu0 %v21301_v43  ;;  %v21381_v31 = vld [vmem:[#allocation10 + $0x1204] ss:$28 sps:$4 sm:$0xff]  }
 0x352   : > { %6367 = vmatprep.subr.bf16.mxu1 %v21306_v20  ;;  %6394 = vmatprep.subr.bf16.mxu0 %v21309_v2 }
 0x355   : > { %6368 = vmatpush2.bf16.msra.mxu1 %v21304_v3  ;;  %6395 = vmatpush1.bf16.msra.mxu0 %v21307_v22  ;;  %v21376_v3 = vld [vmem:[#allocation10 + $0xe80] ss:$28 sps:$4 sm:$0xff]  }
 0x356   : > { %6423 = vmatprep.subr.bf16.mxu0 %v21312_v29  ;;  %6466 = vmatprep.subr.bf16.mxu1 %v21315_v4  ;;  %v21379_v4 = vld [vmem:[#allocation10 + $0x1200] ss:$28 sps:$4 sm:$0xff]  }
 0x358   : > { %6370 = vmatmul.mubr.bf16.vlgmr.msra.gmra.mxu1 %v24533_v33  ;;  %18558 = vmatmul.mubr.msk.bf16.vlgmr.msra.gmra.mxu0 %vm1872_vm14, %v24526_v17 }
 0x359   : > { %6424 = vmatpush1.bf16.msra.mxu0 %v21310_v8  ;;  %6455 = vmatprep.mubr.bf16.mxu0 %v24510_v28  ;;  %v21384_v8 = vld [vmem:[#allocation10 + $0xe4c] ss:$28 sps:$4 sm:$0xff]  }
 0x35a   : > { %6467 = vmatpush1.bf16.msra.mxu1 %v21313_v7  ;;  %6498 = vmatprep.mubr.bf16.mxu1 %v24512_v25 }
 0x35b   : > { %6425 = vmatprep.subr.bf16.mxu0 %v21318_v57  ;;  %6468 = vmatprep.subr.bf16.mxu1 %v21321_v53  ;;  %v21387_v57 = vld [vmem:[#allocation10 + $0x11cc] ss:$28 sps:$4 sm:$0xff]  }
 0x35d   : > { %6426 = vmatpush1.bf16.msra.mxu0 %v21316_v52 }
 0x35e   : > { %6469 = vmatpush1.bf16.msra.mxu1 %v21319_v30  ;;  %6427 = vmatprep.subr.bf16.mxu0 %v21324_v40  ;;  %v21382_v40 = vld [vmem:[#allocation10 + $0xe48] ss:$28 sps:$4 sm:$0xff]  }
 0x35f   : > { %6470 = vmatprep.subr.bf16.mxu1 %v21327_v62 }
 0x361   : > { %6428 = vmatpush1.bf16.msra.mxu0 %v21322_v0 }
 0x362   : > { %6471 = vmatpush1.bf16.msra.mxu1 %v21325_v39  ;;  %6429 = vmatprep.subr.bf16.mxu0 %v21330_v58  ;;  %v21385_v39 = vld [vmem:[#allocation10 + $0x11c8] ss:$28 sps:$4 sm:$0xff]   ;;  %v21390_v58 = vld [vmem:[#allocation10 + $0xe14] ss:$28 sps:$4 sm:$0xff]  }
 0x363   : > { %6472 = vmatprep.subr.bf16.mxu1 %v21333_v12 }
 0x365   : > { %6430 = vmatpush1.bf16.msra.mxu0 %v21328_v18  ;;  %v21393_v18 = vld [vmem:[#allocation10 + $0x1194] ss:$28 sps:$4 sm:$0xff]  }
 0x366   : > { %6473 = vmatpush1.bf16.msra.mxu1 %v21331_v45  ;;  %6431 = vmatprep.subr.bf16.mxu0 %v21336_v63  ;;  %v21388_v45 = vld [vmem:[#allocation10 + $0xe10] ss:$28 sps:$4 sm:$0xff]  }
 0x367   : > { %6474 = vmatprep.subr.bf16.mxu1 %v21339_v23  ;;  %v21391_v63 = vld [vmem:[#allocation10 + $0x1190] ss:$28 sps:$4 sm:$0xff]   ;;  %v21396_v23 = vld [vmem:[#allocation10 + $0xddc] ss:$28 sps:$4 sm:$0xff]  }
 0x369   : > { %6432 = vmatpush1.bf16.msra.mxu0 %v21334_v9  ;;  %v21399_v9 = vld [vmem:[#allocation10 + $0x115c] ss:$28 sps:$4 sm:$0xff]  }
 0x36a   : > { %6475 = vmatpush1.bf16.msra.mxu1 %v21337_v19  ;;  %6433 = vmatprep.subr.bf16.mxu0 %v21342_v13  ;;  %v21394_v19 = vld [vmem:[#allocation10 + $0xdd8] ss:$28 sps:$4 sm:$0xff]  }
 0x36b   : > { %6476 = vmatprep.subr.bf16.mxu1 %v21345_v35  ;;  %v21397_v13 = vld [vmem:[#allocation10 + $0x1158] ss:$28 sps:$4 sm:$0xff]   ;;  %v21402_v35 = vld [vmem:[#allocation10 + $0xda4] ss:$28 sps:$4 sm:$0xff]  }
 0x36d   : > { %6434 = vmatpush1.bf16.msra.mxu0 %v21340_v14  ;;  %v21405_v14 = vld [vmem:[#allocation10 + $0x1124] ss:$28 sps:$4 sm:$0xff]  }
 0x36e   : > { %6477 = vmatpush1.bf16.msra.mxu1 %v21343_v21  ;;  %6435 = vmatprep.subr.bf16.mxu0 %v21348_v10  ;;  %v21400_v21 = vld [vmem:[#allocation10 + $0xda0] ss:$28 sps:$4 sm:$0xff]  }
 0x36f   : > { %6478 = vmatprep.subr.bf16.mxu1 %v21351_v11  ;;  %v21403_v10 = vld [vmem:[#allocation10 + $0x1120] ss:$28 sps:$4 sm:$0xff]   ;;  %v21408_v11 = vld [vmem:[#allocation10 + $0x146c] ss:$28 sps:$4 sm:$0xff]  }
 0x371   : > { %6436 = vmatpush1.bf16.msra.mxu0 %v21346_v5  ;;  %v21411_v5 = vld [vmem:[#allocation10 + $0x177c] ss:$28 sps:$4 sm:$0xff]  }
 0x372   : > { %6479 = vmatpush1.bf16.msra.mxu1 %v21349_v50  ;;  %6437 = vmatprep.subr.bf16.mxu0 %v21354_v16  ;;  %v21406_v50 = vld [vmem:[#allocation10 + $0x1468] ss:$28 sps:$4 sm:$0xff]   ;;  %v21409_v16 = vld [vmem:[#allocation10 + $0x1778] ss:$28 sps:$4 sm:$0xff]  }
 0x373   : > { %6480 = vmatprep.subr.bf16.mxu1 %v21357_v37  ;;  %v21414_v37 = vld [vmem:[#allocation10 + $0x1434] ss:$28 sps:$4 sm:$0xff]  }
 0x375   : > { %6438 = vmatpush1.bf16.msra.mxu0 %v21352_v60  ;;  %v21417_v60 = vld [vmem:[#allocation10 + $0x1744] ss:$28 sps:$4 sm:$0xff]  }
 0x376   : > { %6481 = vmatpush1.bf16.msra.mxu1 %v21355_v24  ;;  %6439 = vmatprep.subr.bf16.mxu0 %v21360_v27  ;;  %v21412_v24 = vld [vmem:[#allocation10 + $0x1430] ss:$28 sps:$4 sm:$0xff]   ;;  %v21415_v27 = vld [vmem:[#allocation10 + $0x1740] ss:$28 sps:$4 sm:$0xff]  }
 0x377   : > { %6482 = vmatprep.subr.bf16.mxu1 %v21363_v56  ;;  %v21420_v56 = vld [vmem:[#allocation10 + $0x13fc] ss:$28 sps:$4 sm:$0xff]  }
 0x379   : > { %6440 = vmatpush2.bf16.msra.mxu0 %v21358_v54  ;;  %v21423_v54 = vld [vmem:[#allocation10 + $0x170c] ss:$28 sps:$4 sm:$0xff]  }
 0x37a   : > { %6483 = vmatpush2.bf16.msra.mxu1 %v21361_v44  ;;  %6441 = vmatprep.subr.bf16.mxu0 %v21366_v55  ;;  %v21418_v44 = vld [vmem:[#allocation10 + $0x13f8] ss:$28 sps:$4 sm:$0xff]   ;;  %v21421_v55 = vld [vmem:[#allocation10 + $0x1708] ss:$28 sps:$4 sm:$0xff]  }
 0x37b   : > { %6484 = vmatprep.subr.bf16.mxu1 %v21369_v48  ;;  %v21426_v48 = vld [vmem:[#allocation10 + $0x13c4] ss:$28 sps:$4 sm:$0xff]  }
 0x37d   : > { %6442 = vmatpush2.bf16.msra.mxu0 %v21364_v59  ;;  %v21429_v59 = vld [vmem:[#allocation10 + $0x16d4] ss:$28 sps:$4 sm:$0xff]  }
 0x37e   : > { %6485 = vmatpush2.bf16.msra.mxu1 %v21367_v34  ;;  %6443 = vmatprep.subr.bf16.mxu0 %v21372_v15  ;;  %v21424_v34 = vld [vmem:[#allocation10 + $0x13c0] ss:$28 sps:$4 sm:$0xff]   ;;  %v21427_v15 = vld [vmem:[#allocation10 + $0x16d0] ss:$28 sps:$4 sm:$0xff]  }
 0x37f   : > { %6486 = vmatprep.subr.bf16.mxu1 %v21375_v36  ;;  %v21432_v36 = vld [vmem:[#allocation10 + $0x138c] ss:$28 sps:$4 sm:$0xff]  }
 0x380   : > { %v6113_v43 = vpop.f32.mrf.mxu0  ;;  %v6156_v20 = vpop.f32.mrf.mxu1 }
 0x381   : > { %v24546_v2 = vadd.f32 %v6156_v20, %v6113_v43  ;;  %6444 = vmatpush2.bf16.msra.mxu0 %v21370_v61  ;;  %v21435_v61 = vld [vmem:[#allocation10 + $0x169c] ss:$28 sps:$4 sm:$0xff]   ;;  %v21441_v43 = vld [vmem:[#allocation10 + $0x1664] ss:$28 sps:$4 sm:$0xff]   ;;  %v21436_v20 = vld [vmem:[#allocation10 + $0x1350] ss:$28 sps:$4 sm:$0xff]  }
 0x382   : > { %6487 = vmatpush2.bf16.msra.mxu1 %v21373_v6  ;;  %v6115_v22 = vpop.f32.mrf.mxu0  ;;  %v6158_v29 = vpop.f32.mrf.mxu1  ;;  %6445 = vmatprep.subr.bf16.mxu0 %v21378_v32  ;;  %v21430_v6 = vld [vmem:[#allocation10 + $0x1388] ss:$28 sps:$4 sm:$0xff]   ;;  %v21433_v32 = vld [vmem:[#allocation10 + $0x1698] ss:$28 sps:$4 sm:$0xff]  }
 0x383   : > { %v24548_v7 = vadd.f32 %v6158_v29, %v6115_v22  ;;  %6488 = vmatprep.subr.bf16.mxu1 %v21381_v31  ;;  %v21438_v31 = vld [vmem:[#allocation10 + $0x1354] ss:$28 sps:$4 sm:$0xff]   ;;  %v21444_v22 = vld [vmem:[#allocation10 + $0x131c] ss:$28 sps:$4 sm:$0xff]  }
 0x384   : > { %v6117_v53 = vpop.f32.mrf.mxu0  ;;  %v6160_v52 = vpop.f32.mrf.mxu1  ;;  %v21445_v29 = vld [vmem:[#allocation10 + $0xf30] ss:$28 sps:$4 sm:$0xff]  }
 0x385   : > { %v24550_v30 = vadd.f32 %v6160_v52, %v6117_v53  ;;  %6446 = vmatpush2.bf16.msra.mxu0 %v21376_v3  ;;  %v21439_v3 = vld [vmem:[#allocation10 + $0x1660] ss:$28 sps:$4 sm:$0xff]   ;;  %v21450_v53 = vld [vmem:[#allocation10 + $0xef8] ss:$28 sps:$4 sm:$0xff]  }
 0x386   : > { %6489 = vmatpush2.bf16.msra.mxu1 %v21379_v4  ;;  %v6119_v62 = vpop.f32.mrf.mxu0  ;;  %v6162_v0 = vpop.f32.mrf.mxu1  ;;  %6447 = vmatprep.subr.bf16.mxu0 %v21384_v8  ;;  %v21442_v4 = vld [vmem:[#allocation10 + $0x1318] ss:$28 sps:$4 sm:$0xff]   ;;  %v21446_v8 = vld [vmem:[#allocation10 + $0xd70] ss:$28 sps:$4 sm:$0xff]   ;;  %v21447_v52 = vld [vmem:[#allocation10 + $0x12e0] ss:$28 sps:$4 sm:$0xff]  }
 0x387   : > { %v24552_v12 = vadd.f32 %v6162_v0, %v6119_v62  ;;  %6490 = vmatprep.subr.bf16.mxu1 %v21387_v57  ;;  %v21449_v57 = vld [vmem:[#allocation10 + $0x12e4] ss:$28 sps:$4 sm:$0xff]   ;;  %v21454_v62 = vld [vmem:[#allocation10 + $0x162c] ss:$28 sps:$4 sm:$0xff]  }
 0x388   : > { %v21455_v0 = vld [vmem:[#allocation10 + $0xec0] ss:$28 sps:$4 sm:$0xff]  }
 0x389   : > { %6448 = vmatpush2.bf16.msra.mxu0 %v21382_v40  ;;  %v21451_v40 = vld [vmem:[#allocation10 + $0xd38] ss:$28 sps:$4 sm:$0xff]  }
 0x38a   : > { %6491 = vmatpush2.bf16.msra.mxu1 %v21385_v39  ;;  %6449 = vmatprep.subr.bf16.mxu0 %v21390_v58  ;;  %v21452_v39 = vld [vmem:[#allocation10 + $0x1628] ss:$28 sps:$4 sm:$0xff]   ;;  %v21456_v58 = vld [vmem:[#allocation10 + $0xd00] ss:$28 sps:$4 sm:$0xff]  }
 0x38b   : > { %6492 = vmatprep.subr.bf16.mxu1 %v21393_v18  ;;  %v21459_v18 = vld [vmem:[#allocation10 + $0x15f4] ss:$28 sps:$4 sm:$0xff]  }
 0x38d   : > { %6450 = vmatpush2.bf16.msra.mxu0 %v21388_v45  ;;  %v21460_v45 = vld [vmem:[#allocation10 + $0xe88] ss:$28 sps:$4 sm:$0xff]  }
 0x38e   : > { %6493 = vmatpush2.bf16.msra.mxu1 %v21391_v63  ;;  %6451 = vmatprep.subr.bf16.mxu0 %v21396_v23  ;;  %v21457_v63 = vld [vmem:[#allocation10 + $0x15f0] ss:$28 sps:$4 sm:$0xff]   ;;  %v21461_v23 = vld [vmem:[#allocation10 + $0xcc8] ss:$28 sps:$4 sm:$0xff]  }
 0x38f   : > { %6494 = vmatprep.subr.bf16.mxu1 %v21399_v9  ;;  %v21464_v9 = vld [vmem:[#allocation10 + $0x15bc] ss:$28 sps:$4 sm:$0xff]  }
 0x391   : > { %6452 = vmatpush2.bf16.msra.mxu0 %v21394_v19 }
 0x392   : > { %6495 = vmatpush2.bf16.msra.mxu1 %v21397_v13  ;;  %6453 = vmatprep.subr.bf16.mxu0 %v21402_v35  ;;  %v21462_v13 = vld [vmem:[#allocation10 + $0x15b8] ss:$28 sps:$4 sm:$0xff]   ;;  %v21466_v35 = vld [vmem:[#allocation10 + $0xc90] ss:$28 sps:$4 sm:$0xff]  }
 0x393   : > { %6496 = vmatprep.subr.bf16.mxu1 %v21405_v14  ;;  %v21469_v14 = vld [vmem:[#allocation10 + $0x1584] ss:$28 sps:$4 sm:$0xff]  }
 0x395   : > { %6454 = vmatpush2.bf16.msra.mxu0 %v21400_v21  ;;  %v21470_v21 = vld [vmem:[#allocation10 + $0xe18] ss:$28 sps:$4 sm:$0xff]  }
 0x396   : > { %6497 = vmatpush2.bf16.msra.mxu1 %v21403_v10  ;;  %6509 = vmatprep.subr.bf16.mxu0 %v21408_v11 }
 0x397   : > { %6556 = vmatprep.subr.bf16.mxu1 %v21411_v5 }
 0x398   : > { %6456 = vmatmul.mubr.bf16.vlgmr.msra.gmra.mxu0 %v24514_v47  ;;  %v6242_v19 = vpop.f32.mrf.mxu1 }
 0x399   : > { %6499 = vmatmul.mubr.bf16.vlgmr.msra.gmra.mxu1 %v24516_v46  ;;  %6510 = vmatpush1.bf16.msra.mxu0 %v21406_v50  ;;  %v21467_v50 = vld [vmem:[#allocation10 + $0x1580] ss:$28 sps:$4 sm:$0xff]  }
 0x39a   : > { %6541 = vmatprep.mubr.bf16.mxu0 %v24522_v26  ;;  %6557 = vmatpush1.bf16.msra.mxu1 %v21409_v16  ;;  %v6244_v10 = vpop.f32.mrf.mxu1 }
 0x39b   : > { %6511 = vmatprep.subr.bf16.mxu0 %v21414_v37  ;;  %6558 = vmatprep.subr.bf16.mxu1 %v21417_v60  ;;  %v21471_v37 = vld [vmem:[#allocation10 + $0xc58] ss:$28 sps:$4 sm:$0xff]   ;;  %v21474_v60 = vld [vmem:[#allocation10 + $0x154c] ss:$28 sps:$4 sm:$0xff]  }
 0x39c   : > { %6584 = vmatprep.mubr.bf16.mxu1 %v25539_v1 }
 0x39d   : > { %6512 = vmatpush1.bf16.msra.mxu0 %v21412_v24 }
 0x39e   : > { %6559 = vmatpush1.bf16.msra.mxu1 %v21415_v27  ;;  %6513 = vmatprep.subr.bf16.mxu0 %v21420_v56  ;;  %v21475_v27 = vld [vmem:[#allocation10 + $0xde0] ss:$28 sps:$4 sm:$0xff]  }
 0x39f   : > { %6560 = vmatprep.subr.bf16.mxu1 %v21423_v54  ;;  %v6246_v54 = vpop.f32.mrf.mxu1 }
 0x3a1   : > { %6514 = vmatpush1.bf16.msra.mxu0 %v21418_v44 }
 0x3a2   : > { %6561 = vmatpush1.bf16.msra.mxu1 %v21421_v55  ;;  %6515 = vmatprep.subr.bf16.mxu0 %v21426_v48  ;;  %v21472_v48 = vld [vmem:[#allocation10 + $0x1548] ss:$28 sps:$4 sm:$0xff]  }
 0x3a3   : > { %6562 = vmatprep.subr.bf16.mxu1 %v21429_v59 }
 0x3a5   : > { %6516 = vmatpush1.bf16.msra.mxu0 %v21424_v34  ;;  %v21476_v34 = vld [vmem:[#allocation10 + $0xc20] ss:$28 sps:$4 sm:$0xff]  }
 0x3a6   : > { %6563 = vmatpush1.bf16.msra.mxu1 %v21427_v15  ;;  %6517 = vmatprep.subr.bf16.mxu0 %v21432_v36  ;;  %v21479_v15 = vld [vmem:[#allocation10 + $0x1514] ss:$28 sps:$4 sm:$0xff]  }
 0x3a7   : > { %6564 = vmatprep.subr.bf16.mxu1 %v21435_v61 }
 0x3a9   : > { %6518 = vmatpush1.bf16.msra.mxu0 %v21430_v6  ;;  %v6248_v6 = vpop.f32.mrf.mxu1 }
 0x3aa   : > { %6565 = vmatpush1.bf16.msra.mxu1 %v21433_v32  ;;  %6519 = vmatprep.subr.bf16.mxu0 %v21438_v31  ;;  %v21477_v32 = vld [vmem:[#allocation10 + $0x1510] ss:$28 sps:$4 sm:$0xff]  }
 0x3ab   : > { %6566 = vmatprep.subr.bf16.mxu1 %v21441_v43  ;;  %v21484_v43 = vld [vmem:[#allocation10 + $0x14dc] ss:$28 sps:$4 sm:$0xff]  }
 0x3ad   : > { %6520 = vmatpush1.bf16.msra.mxu0 %v21436_v20  ;;  %v21485_v20 = vld [vmem:[#allocation10 + $0x12b0] ss:$28 sps:$4 sm:$0xff]  }
 0x3ae   : > { %6567 = vmatpush1.bf16.msra.mxu1 %v21439_v3  ;;  %6521 = vmatprep.subr.bf16.mxu0 %v21444_v22  ;;  %v21482_v3 = vld [vmem:[#allocation10 + $0x14d8] ss:$28 sps:$4 sm:$0xff]   ;;  %v21489_v22 = vld [vmem:[#allocation10 + $0x14a4] ss:$28 sps:$4 sm:$0xff]  }
 0x3af   : > { %19878 = vmatprep.subr.bf16.mxu1 %v21445_v29  ;;  %v21490_v29 = vld [vmem:[#allocation10 + $0x1278] ss:$28 sps:$4 sm:$0xff]  }
 0x3b1   : > { %18559 = vmatmul.mubr.msk.bf16.vlgmr.msra.gmra.mxu1 %vm1872_vm14, %v24526_v17  ;;  %6522 = vmatpush1.bf16.msra.mxu0 %v21442_v4  ;;  %v21487_v4 = vld [vmem:[#allocation10 + $0x14a0] ss:$28 sps:$4 sm:$0xff]  }
 0x3b2   : > { %19879 = vmatpush3.bf16.msra.mxu1 %v21446_v8  ;;  %6627 = vmatprep.mubr.bf16.mxu1 %v24510_v28  ;;  %v21465_v28 = vld [vmem:[#allocation10 + $0xe50] ss:$28 sps:$4 sm:$0xff]   ;;  %v21491_v8 = vld [vmem:[#allocation10 + $0x10b8] ss:$28 sps:$4 sm:$0xff]  }
 0x3b3   : > { %6523 = vmatprep.subr.bf16.mxu0 %v21449_v57  ;;  %19880 = vmatprep.subr.bf16.mxu1 %v21450_v53  ;;  %v21493_v57 = vld [vmem:[#allocation10 + $0x1630] ss:$28 sps:$4 sm:$0xff]   ;;  %v21492_v53 = vld [vmem:[#allocation10 + $0x1240] ss:$28 sps:$4 sm:$0xff]  }
 0x3b5   : > { %6524 = vmatpush1.bf16.msra.mxu0 %v21447_v52  ;;  %v21495_v52 = vld [vmem:[#allocation10 + $0x1470] ss:$28 sps:$4 sm:$0xff]  }
 0x3b6   : > { %19881 = vmatpush3.bf16.msra.mxu1 %v21451_v40  ;;  %6525 = vmatprep.subr.bf16.mxu0 %v21454_v62  ;;  %v21494_v40 = vld [vmem:[#allocation10 + $0x1080] ss:$28 sps:$4 sm:$0xff]   ;;  %v21497_v62 = vld [vmem:[#allocation10 + $0x15f8] ss:$28 sps:$4 sm:$0xff]  }
 0x3b7   : > { %19882 = vmatprep.subr.bf16.mxu1 %v21455_v0  ;;  %v21496_v0 = vld [vmem:[#allocation10 + $0x1208] ss:$28 sps:$4 sm:$0xff]  }
 0x3b9   : > { %6526 = vmatpush2.bf16.msra.mxu0 %v21452_v39  ;;  %v21501_v39 = vld [vmem:[#allocation10 + $0x15c0] ss:$28 sps:$4 sm:$0xff]  }
 0x3ba   : > { %19883 = vmatpush3.bf16.msra.mxu1 %v21456_v58  ;;  %6527 = vmatprep.subr.bf16.mxu0 %v21459_v18  ;;  %v21500_v58 = vld [vmem:[#allocation10 + $0x11d0] ss:$28 sps:$4 sm:$0xff]   ;;  %v21503_v18 = vld [vmem:[#allocation10 + $0x1400] ss:$28 sps:$4 sm:$0xff]  }
 0x3bb   : > { %19884 = vmatprep.subr.bf16.mxu1 %v21460_v45  ;;  %v21502_v45 = vld [vmem:[#allocation10 + $0x1010] ss:$28 sps:$4 sm:$0xff]  }
 0x3bd   : > { %6528 = vmatpush2.bf16.msra.mxu0 %v21457_v63  ;;  %v21505_v63 = vld [vmem:[#allocation10 + $0x1588] ss:$28 sps:$4 sm:$0xff]  }
 0x3be   : > { %19885 = vmatpush3.bf16.msra.mxu1 %v21461_v23  ;;  %6529 = vmatprep.subr.bf16.mxu0 %v21464_v9  ;;  %v21504_v23 = vld [vmem:[#allocation10 + $0x1198] ss:$28 sps:$4 sm:$0xff]   ;;  %v21507_v9 = vld [vmem:[#allocation10 + $0x13c8] ss:$28 sps:$4 sm:$0xff]  }
 0x3bf   : > { %19886 = vmatprep.subr.bf16.mxu1 %v21465_v28  ;;  %v21509_v28 = vld [vmem:[#allocation10 + $0x1550] ss:$28 sps:$4 sm:$0xff]  }
 0x3c0   : > { %v6199_v11 = vpop.f32.mrf.mxu0 }
 0x3c1   : > { %v6200_v5 = vadd.f32 %v6199_v11, %v24546_v2  ;;  %6530 = vmatpush2.bf16.msra.mxu0 %v21462_v13  ;;  %v21511_v13 = vld [vmem:[#allocation10 + $0x1390] ss:$28 sps:$4 sm:$0xff]   ;;  %v21514_v11 = vld [vmem:[#allocation10 + $0xf68] ss:$28 sps:$4 sm:$0xff]  }
 0x3c2   : > { %19887 = vmatpush3.bf16.msra.mxu1 %v21466_v35  ;;  %v6201_v16 = vpop.f32.mrf.mxu0  ;;  %6531 = vmatprep.subr.bf16.mxu0 %v21469_v14  ;;  %v21510_v35 = vld [vmem:[#allocation10 + $0xfa0] ss:$28 sps:$4 sm:$0xff]   ;;  %v21513_v14 = vld [vmem:[#allocation10 + $0x1518] ss:$28 sps:$4 sm:$0xff]  }
 0x3c3   : > { %v6202_v24 = vadd.f32 %v6201_v16, %v24548_v7  ;;  %19888 = vmatprep.subr.bf16.mxu1 %v21470_v21  ;;  %v24563_v56 = vadd.f32 %v6242_v19, %v6200_v5  ;;  %v21480_v7 = vld [vmem:[#allocation10 + $0xda8] ss:$28 sps:$4 sm:$0xff]   ;;  %v21508_v19 = vld [vmem:[#allocation10 + $0x1160] ss:$28 sps:$4 sm:$0xff]  }
 0x3c4   : > { %v6203_v44 = vpop.f32.mrf.mxu0  ;;  %v21512_v21 = vld [vmem:[#allocation10 + $0x1128] ss:$28 sps:$4 sm:$0xff]   ;;  %v21516_v5 = vld [vmem:[#allocation10 + $0x14e0] ss:$28 sps:$4 sm:$0xff]  }
 0x3c5   : > { %v6204_v55 = vadd.f32 %v6203_v44, %v24550_v30  ;;  %6532 = vmatpush2.bf16.msra.mxu0 %v21467_v50  ;;  %v24566_v2 = vadd.f32 %v6244_v10, %v6202_v24  ;;  %v21481_v30 = vld [vmem:[#allocation10 + $0xbe8] ss:$28 sps:$4 sm:$0xff]   ;;  %v21515_v10 = vld [vmem:[#allocation10 + $0x1358] ss:$28 sps:$4 sm:$0xff]   ;;  %v21517_v50 = vld [vmem:[#allocation10 + $0x1320] ss:$28 sps:$4 sm:$0xff]  }
 0x3c6   : > { %19889 = vmatpush3.bf16.msra.mxu1 %v21471_v37  ;;  %v6205_v59 = vpop.f32.mrf.mxu0  ;;  %6533 = vmatprep.subr.bf16.mxu0 %v21474_v60  ;;  %v21518_v16 = vld [vmem:[#allocation10 + $0x1780] ss:$28 sps:$4 sm:$0xff]   ;;  %v21519_v37 = vld [vmem:[#allocation10 + $0x14a8] ss:$28 sps:$4 sm:$0xff]   ;;  %v23218_v60 = vmov 0.0  }
 0x3c7   : > { %v6206_v36 = vadd.f32 %v6205_v59, %v24552_v12  ;;  %19890 = vmatprep.subr.bf16.mxu1 %v21475_v27  ;;  %v24569_v61 = vadd.f32 %v6246_v54, %v6204_v55  ;;  %v21486_v12 = vld [vmem:[#allocation10 + $0x10f0] ss:$28 sps:$4 sm:$0xff]   ;;  %v21520_v24 = vld [vmem:[#allocation10 + $0x12e8] ss:$28 sps:$4 sm:$0xff]   ;;  %v24582_v44 = vld [vmem:[#allocation3 + $0x1c] sm:$0x77] }
 0x3c8   : > { %v21521_v27 = vld [vmem:[#allocation10 + $0x1748] ss:$28 sps:$4 sm:$0xff]   ;;  %v24585_v59 = vld [vmem:[#allocation3] sm:$0xff] }
 0x3c9   : > { %6534 = vmatpush2.bf16.msra.mxu0 %v21472_v48  ;;  %v24571_v31 = vadd.f32 %v6248_v6, %v6206_v36  ;;  %v21524_v54 = vld [vmem:[#allocation10 + $0x18c] ss:$28 sps:$4 sm:$0xff]   ;;  %v21532_v6 = vld [vmem:[#allocation10 + $0x11c] ss:$28 sps:$4 sm:$0xff]  }
 0x3ca   : > { %19891 = vmatpush3.bf16.msra.mxu1 %v21476_v34  ;;  %6535 = vmatprep.subr.bf16.mxu0 %v21479_v15  ;;  %v21522_v55 = vld [vmem:[#allocation10 + $0x188] ss:$28 sps:$4 sm:$0xff]   ;;  %v21525_v48 = vld [vmem:[#allocation10 + $0x1710] ss:$28 sps:$4 sm:$0xff]   ;;  %v24589_v34 = vcombine.high %v24585_v59, %v24582_v44 }
 0x3cb   : > { %19892 = vmatprep.subr.bf16.mxu1 %v21480_v7  ;;  %v21526_v15 = vld [vmem:[#allocation10 + $0x150] ss:$28 sps:$4 sm:$0xff]   ;;  %v21529_v7 = vld [vmem:[#allocation10 + $0x16d8] ss:$28 sps:$4 sm:$0xff]  }
 0x3cd   : > { %6536 = vmatpush2.bf16.msra.mxu0 %v21477_v32  ;;  %v21530_v32 = vld [vmem:[#allocation10 + $0x118] ss:$28 sps:$4 sm:$0xff]  }
 0x3ce   : > { %19893 = vmatpush3.bf16.msra.mxu1 %v21481_v30  ;;  %6537 = vmatprep.subr.bf16.mxu0 %v21484_v43  ;;  %v21533_v43 = vld [vmem:[#allocation10 + $0x16a0] ss:$28 sps:$4 sm:$0xff]  }
 0x3cf   : > { %19900 = vmatprep.subr.bf16.mxu1 %v21485_v20  ;;  %v21536_v20 = vld [vmem:[#allocation10 + $0xe4] ss:$28 sps:$4 sm:$0xff]  }
 0x3d1   : > { %6628 = vmatmul.mubr.bf16.vlgmr.msra.gmra.mxu1 %v24514_v47  ;;  %6538 = vmatpush2.bf16.msra.mxu0 %v21482_v3  ;;  %v21499_v47 = vld [vmem:[#allocation10 + $0x1438] ss:$28 sps:$4 sm:$0xff]  }
 0x3d2   : > { %19901 = vmatpush3.bf16.msra.mxu1 %v21486_v12  ;;  %6668 = vmatprep.mubr.bf16.mxu1 %v24512_v25  ;;  %v21498_v25 = vld [vmem:[#allocation10 + $0x1048] ss:$28 sps:$4 sm:$0xff]   ;;  %v21534_v12 = vld [vmem:[#allocation10 + $0xe0] ss:$28 sps:$4 sm:$0xff]  }
 0x3d3   : > { %6539 = vmatprep.subr.bf16.mxu0 %v21489_v22  ;;  %19902 = vmatprep.subr.bf16.mxu1 %v21490_v29 }
 0x3d5   : > { %6540 = vmatpush2.bf16.msra.mxu0 %v21487_v4  ;;  %v21537_v4 = vld [vmem:[#allocation10 + $0x1668] ss:$28 sps:$4 sm:$0xff]  }
 0x3d6   : > { %19903 = vmatpush3.bf16.msra.mxu1 %v21491_v8  ;;  %19922 = vmatprep.subr.bf16.mxu0 %v21493_v57  ;;  %v21540_v8 = vld [vmem:[#allocation10 + $0xac] ss:$28 sps:$4 sm:$0xff]  }
 0x3d7   : > { %19904 = vmatprep.subr.bf16.mxu1 %v21492_v53  ;;  %v21543_v53 = vld [vmem:[#allocation10 + $0x50c] ss:$28 sps:$4 sm:$0xff]  }
 0x3d8   : > { %6542 = vmatmul.mubr.bf16.vlgmr.msra.gmra.mxu0 %v24533_v33  ;;  %v6285_v36 = vpop.f32.mrf.mxu1 }
 0x3d9   : > { %19923 = vmatpush3.bf16.msra.mxu0 %v21495_v52  ;;  %6709 = vmatprep.mubr.bf16.mxu0 %v24522_v26  ;;  %v21506_v26 = vld [vmem:[#allocation10 + $0xfd8] ss:$28 sps:$4 sm:$0xff]  }
 0x3da   : > { %19905 = vmatpush3.bf16.msra.mxu1 %v21494_v40  ;;  %19924 = vmatprep.subr.bf16.mxu0 %v21497_v62  ;;  %v6287_v30 = vpop.f32.mrf.mxu1  ;;  %v21538_v62 = vld [vmem:[#allocation10 + $0xa8] ss:$28 sps:$4 sm:$0xff]  }
 0x3db   : > { %19906 = vmatprep.subr.bf16.mxu1 %v21496_v0  ;;  %v24602_v0 = vld [vmem:[#allocation3 + $0x24] sm:$0x77] }
 0x3dc   : > { %v6289_v22 = vpop.f32.mrf.mxu1 }
 0x3dd   : > { %19925 = vmatpush3.bf16.msra.mxu0 %v21499_v47 }
 0x3de   : > { %19907 = vmatpush3.bf16.msra.mxu1 %v21498_v25  ;;  %19926 = vmatprep.subr.bf16.mxu0 %v21501_v39  ;;  %v6291_v47 = vpop.f32.mrf.mxu1  ;;  %v21541_v39 = vld [vmem:[#allocation10 + $0x508] ss:$28 sps:$4 sm:$0xff]  }
 0x3df   : > { %19908 = vmatprep.subr.bf16.mxu1 %v21500_v58 }
 0x3e1   : > { %19927 = vmatpush3.bf16.msra.mxu0 %v21503_v18  ;;  %v21546_v18 = vld [vmem:[#allocation10 + $0x74] ss:$28 sps:$4 sm:$0xff]  }
 0x3e2   : > { %19909 = vmatpush3.bf16.msra.mxu1 %v21502_v45  ;;  %19928 = vmatprep.subr.bf16.mxu0 %v21505_v63  ;;  %v21549_v45 = vld [vmem:[#allocation10 + $0x4d4] ss:$28 sps:$4 sm:$0xff]   ;;  %v24606_v63 = vld [vmem:[#allocation3 + $0x8] sm:$0xff] }
 0x3e3   : > { %19910 = vmatprep.subr.bf16.mxu1 %v21504_v23  ;;  %v24610_v23 = vcombine.high %v24606_v63, %v24602_v0 }
 0x3e5   : > { %19929 = vmatpush3.bf16.msra.mxu0 %v21507_v9  ;;  %v21544_v9 = vld [vmem:[#allocation10 + $0x70] ss:$28 sps:$4 sm:$0xff]  }
 0x3e6   : > { %19911 = vmatpush3.bf16.msra.mxu1 %v21506_v26  ;;  %19930 = vmatprep.subr.bf16.mxu0 %v21509_v28  ;;  %v21547_v26 = vld [vmem:[#allocation10 + $0x4d0] ss:$28 sps:$4 sm:$0xff]   ;;  %v21552_v28 = vld [vmem:[#allocation10 + $0x3c] ss:$28 sps:$4 sm:$0xff]  }
 0x3e7   : > { %19912 = vmatprep.subr.bf16.mxu1 %v21508_v19  ;;  %v21555_v19 = vld [vmem:[#allocation10 + $0x49c] ss:$28 sps:$4 sm:$0xff]  }
 0x3e9   : > { %19931 = vmatpush3.bf16.msra.mxu0 %v21511_v13  ;;  %v21550_v13 = vld [vmem:[#allocation10 + $0x38] ss:$28 sps:$4 sm:$0xff]  }
 0x3ea   : > { %19913 = vmatpush3.bf16.msra.mxu1 %v21510_v35  ;;  %19932 = vmatprep.subr.bf16.mxu0 %v21513_v14  ;;  %v21553_v35 = vld [vmem:[#allocation10 + $0x498] ss:$28 sps:$4 sm:$0xff]   ;;  %v21558_v14 = vld [vmem:[#allocation10 + $0x4] ss:$28 sps:$4 sm:$0xff]  }
 0x3eb   : > { %19914 = vmatprep.subr.bf16.mxu1 %v21512_v21  ;;  %v21561_v21 = vld [vmem:[#allocation10 + $0x464] ss:$28 sps:$4 sm:$0xff]  }
 0x3ed   : > { %19933 = vmatpush3.bf16.msra.mxu0 %v21515_v10  ;;  %v21559_v10 = vld [vmem:[#allocation10 + $0x460] ss:$28 sps:$4 sm:$0xff]  }
 0x3ee   : > { %19915 = vmatpush3.bf16.msra.mxu1 %v21514_v11  ;;  %19934 = vmatprep.subr.bf16.mxu0 %v21516_v5  ;;  %v21564_v11 = vld [vmem:[#allocation10 + $0x34c] ss:$28 sps:$4 sm:$0xff]  }
 0x3ef   : > { %20627 = vmatprep.subr.bf16.mxu1 %v23218_v60  ;;  %v21567_v5 = vld [vmem:[#allocation10 + $0x42c] ss:$28 sps:$4 sm:$0xff]  }
 0x3f1   : > { %6669 = vmatmul.mubr.bf16.vlgmr.msra.gmra.mxu1 %v24516_v46  ;;  %19935 = vmatpush3.bf16.msra.mxu0 %v21517_v50  ;;  %v21528_v46 = vld [vmem:[#allocation10 + $0x154] ss:$28 sps:$4 sm:$0xff]   ;;  %v21562_v50 = vld [vmem:[#allocation10 + $0x348] ss:$28 sps:$4 sm:$0xff]  }
 0x3f2   : > { %20628 = vmatpush3.bf16.msra.mxu1 %v21518_v16  ;;  %19936 = vmatprep.subr.bf16.mxu0 %v21519_v37  ;;  %v21565_v16 = vld [vmem:[#allocation10 + $0x428] ss:$28 sps:$4 sm:$0xff]   ;;  %v21570_v37 = vld [vmem:[#allocation10 + $0x314] ss:$28 sps:$4 sm:$0xff]  }
 0x3f3   : > { %20629 = vmatprep.subr.bf16.mxu1 %v23218_v60  ;;  %20639 = vmatprep.mubr.msk.bf16.mxu1 %vm23219_vm6, %v23218_v60 }
 0x3f5   : > { %19937 = vmatpush3.bf16.msra.mxu0 %v21520_v24  ;;  %v21573_v24 = vld [vmem:[#allocation10 + $0x3f4] ss:$28 sps:$4 sm:$0xff]  }
 0x3f6   : > { %20630 = vmatpush3.bf16.msra.mxu1 %v21521_v27  ;;  %8730 = vmatprep.subr.bf16.mxu0 %v21524_v54 }
 0x3f7   : > { %20631 = vmatprep.subr.bf16.mxu1 %v23218_v60 }
 0x3f8   : > { %6710 = vmatmul.mubr.bf16.vlgmr.msra.gmra.mxu0 %v24533_v33 }
 0x3f9   : > { %8731 = vmatpush1.bf16.msra.mxu0 %v21522_v55  ;;  %8762 = vmatprep.mubr.bf16.mxu0 %v24589_v34 }
 0x3fa   : > { %20632 = vmatpush3.bf16.msra.mxu1 %v21525_v48  ;;  %8732 = vmatprep.subr.bf16.mxu0 %v21528_v46  ;;  %v21568_v48 = vld [vmem:[#allocation10 + $0x310] ss:$28 sps:$4 sm:$0xff]  }
 0x3fb   : > { %20633 = vmatprep.subr.bf16.mxu1 %v23218_v60 }
 0x3fd   : > { %8733 = vmatpush1.bf16.msra.mxu0 %v21526_v15 }
 0x3fe   : > { %20634 = vmatpush3.bf16.msra.mxu1 %v21529_v7  ;;  %8734 = vmatprep.subr.bf16.mxu0 %v21532_v6  ;;  %v21576_v7 = vld [vmem:[#allocation10 + $0x2dc] ss:$28 sps:$4 sm:$0xff]  }
 0x3ff   : > { %20635 = vmatprep.subr.bf16.mxu1 %v23218_v60 }
 0x400   : > { %v6328_v33 = vpop.f32.mrf.mxu0 }
 0x401   : > { %v24595_v3 = vadd.f32 %v6328_v33, %v6285_v36  ;;  %8735 = vmatpush1.bf16.msra.mxu0 %v21530_v32  ;;  %v21571_v36 = vld [vmem:[#allocation10 + $0x3f0] ss:$28 sps:$4 sm:$0xff]  }
 0x402   : > { %20636 = vmatpush3.bf16.msra.mxu1 %v21533_v43  ;;  %v6330_v29 = vpop.f32.mrf.mxu0  ;;  %8736 = vmatprep.subr.bf16.mxu0 %v21536_v20 }
 0x403   : > { %v24597_v57 = vadd.f32 %v6330_v29, %v6287_v30  ;;  %20637 = vmatprep.subr.bf16.mxu1 %v23218_v60  ;;  %v21579_v30 = vld [vmem:[#allocation10 + $0x3bc] ss:$28 sps:$4 sm:$0xff]  }
 0x404   : > { %v6332_v52 = vpop.f32.mrf.mxu0  ;;  %v21577_v29 = vld [vmem:[#allocation10 + $0x3b8] ss:$28 sps:$4 sm:$0xff]  }
 0x405   : > { %v24600_v40 = vadd.f32 %v6332_v52, %v6289_v22  ;;  %8737 = vmatpush1.bf16.msra.mxu0 %v21534_v12  ;;  %v21574_v12 = vld [vmem:[#allocation10 + $0x2d8] ss:$28 sps:$4 sm:$0xff]  }
 0x406   : > { %20638 = vmatpush3.bf16.msra.mxu1 %v21537_v4  ;;  %v6334_v25 = vpop.f32.mrf.mxu0  ;;  %8738 = vmatprep.subr.bf16.mxu0 %v21540_v8  ;;  %v21582_v4 = vld [vmem:[#allocation10 + $0x2a4] ss:$28 sps:$4 sm:$0xff]  }
 0x407   : > { %v24604_v58 = vadd.f32 %v6334_v25, %v6291_v47  ;;  %8773 = vmatprep.subr.bf16.mxu1 %v21543_v53  ;;  %v21580_v47 = vld [vmem:[#allocation10 + $0x2a0] ss:$28 sps:$4 sm:$0xff]   ;;  %v21588_v25 = vld [vmem:[#allocation10 + $0x26c] ss:$28 sps:$4 sm:$0xff]  }
 0x409   : > { %20640 = vmatmul.mubr.msk.bf16.vlgmr.msra.gmra.mxu1 %vm1872_vm14, %v24526_v17  ;;  %8739 = vmatpush1.bf16.msra.mxu0 %v21538_v62  ;;  %v21556_v17 = vld [vmem:[#allocation10] ss:$28 sps:$4 sm:$0xff]  }
 0x40a   : > { %8774 = vmatpush1.bf16.msra.mxu1 %v21541_v39  ;;  %8805 = vmatprep.mubr.bf16.mxu1 %v24610_v23  ;;  %v21591_v39 = vld [vmem:[#allocation10 + $0x6cc] ss:$28 sps:$4 sm:$0xff]  }
 0x40b   : > { %8740 = vmatprep.subr.bf16.mxu0 %v21546_v18  ;;  %8775 = vmatprep.subr.bf16.mxu1 %v21549_v45  ;;  %v21586_v18 = vld [vmem:[#allocation10 + $0x268] ss:$28 sps:$4 sm:$0xff]  }
 0x40c   : > { %v21589_v45 = vld [vmem:[#allocation10 + $0x6c8] ss:$28 sps:$4 sm:$0xff]  }
 0x40d   : > { %8741 = vmatpush1.bf16.msra.mxu0 %v21544_v9  ;;  %v21594_v9 = vld [vmem:[#allocation10 + $0x234] ss:$28 sps:$4 sm:$0xff]  }
 0x40e   : > { %8776 = vmatpush1.bf16.msra.mxu1 %v21547_v26  ;;  %8742 = vmatprep.subr.bf16.mxu0 %v21552_v28  ;;  %v21592_v26 = vld [vmem:[#allocation10 + $0x230] ss:$28 sps:$4 sm:$0xff]  }
 0x40f   : > { %8777 = vmatprep.subr.bf16.mxu1 %v21555_v19  ;;  %v21595_v28 = vld [vmem:[#allocation10 + $0x690] ss:$28 sps:$4 sm:$0xff]   ;;  %v21600_v19 = vld [vmem:[#allocation10 + $0x1fc] ss:$28 sps:$4 sm:$0xff]  }
 0x411   : > { %8743 = vmatpush1.bf16.msra.mxu0 %v21550_v13  ;;  %v21603_v13 = vld [vmem:[#allocation10 + $0x65c] ss:$28 sps:$4 sm:$0xff]  }
 0x412   : > { %8778 = vmatpush1.bf16.msra.mxu1 %v21553_v35  ;;  %8744 = vmatprep.subr.bf16.mxu0 %v21558_v14  ;;  %v21598_v35 = vld [vmem:[#allocation10 + $0x1f8] ss:$28 sps:$4 sm:$0xff]  }
 0x413   : > { %8779 = vmatprep.subr.bf16.mxu1 %v21561_v21  ;;  %v21601_v14 = vld [vmem:[#allocation10 + $0x658] ss:$28 sps:$4 sm:$0xff]   ;;  %v21606_v21 = vld [vmem:[#allocation10 + $0x1c4] ss:$28 sps:$4 sm:$0xff]  }
 0x415   : > { %8745 = vmatpush1.bf16.msra.mxu0 %v21556_v17  ;;  %v21609_v17 = vld [vmem:[#allocation10 + $0x624] ss:$28 sps:$4 sm:$0xff]  }
 0x416   : > { %8780 = vmatpush1.bf16.msra.mxu1 %v21559_v10  ;;  %8746 = vmatprep.subr.bf16.mxu0 %v21564_v11  ;;  %v21604_v10 = vld [vmem:[#allocation10 + $0x1c0] ss:$28 sps:$4 sm:$0xff]  }
 0x417   : > { %8781 = vmatprep.subr.bf16.mxu1 %v21567_v5  ;;  %v21607_v11 = vld [vmem:[#allocation10 + $0x620] ss:$28 sps:$4 sm:$0xff]   ;;  %v21615_v5 = vld [vmem:[#allocation10 + $0x88c] ss:$28 sps:$4 sm:$0xff]  }
 0x418   : > { %v6371_v27 = vpop.f32.mrf.mxu1  ;;  %v6414_v54 = vpop.f32.mrf.mxu0 }
 0x419   : > { %v6372_v55 = vadd.f32 %v6371_v27, %v24595_v3  ;;  %8747 = vmatpush2.bf16.msra.mxu0 %v21562_v50  ;;  %v21612_v50 = vld [vmem:[#allocation10 + $0x5ec] ss:$28 sps:$4 sm:$0xff]  }
 0x41a   : > { %8782 = vmatpush1.bf16.msra.mxu1 %v21565_v16  ;;  %v6373_v46 = vpop.f32.mrf.mxu1  ;;  %v6416_v15 = vpop.f32.mrf.mxu0  ;;  %8748 = vmatprep.subr.bf16.mxu0 %v21570_v37  ;;  %v24627_v16 = vld [vmem:[#allocation3 + $0x2c] sm:$0x77] }
 0x41b   : > { %v24616_v6 = vadd.f32 %v6414_v54, %v6372_v55  ;;  %v6374_v32 = vadd.f32 %v6373_v46, %v24597_v57  ;;  %8783 = vmatprep.subr.bf16.mxu1 %v21573_v24  ;;  %v21585_v57 = vld [vmem:[#allocation10 + $0x384] ss:$28 sps:$4 sm:$0xff]   ;;  %v24631_v24 = vcombine.low %v24585_v59, %v24582_v44  ;;  %v21621_v54 = vld [vmem:[#allocation10 + $0x854] ss:$28 sps:$4 sm:$0xff]   ;;  %v24633_v55 = vld [vmem:[#allocation3 + $0x10] sm:$0xff] }
 0x41c   : > { %v6375_v43 = vpop.f32.mrf.mxu1  ;;  %v6418_v20 = vpop.f32.mrf.mxu0  ;;  %v21613_v37 = vld [vmem:[#allocation10 + $0x888] ss:$28 sps:$4 sm:$0xff]   ;;  %v21618_v46 = vld [vmem:[#allocation10 + $0x5b4] ss:$28 sps:$4 sm:$0xff]   ;;  %v21627_v59 = vld [vmem:[#allocation10 + $0x81c] ss:$28 sps:$4 sm:$0xff]  }
 0x41d   : > { %v24619_v33 = vadd.f32 %v6416_v15, %v6374_v32  ;;  %v6376_v3 = vadd.f32 %v6375_v43, %v24600_v40  ;;  %8749 = vmatpush2.bf16.msra.mxu0 %v21568_v48  ;;  %v21583_v40 = vld [vmem:[#allocation10 + $0x380] ss:$28 sps:$4 sm:$0xff]   ;;  %v21610_v27 = vld [vmem:[#allocation10 + $0x5e8] ss:$28 sps:$4 sm:$0xff]   ;;  %v24637_v48 = vcombine.high %v24633_v55, %v24627_v16  ;;  %v21619_v15 = vld [vmem:[#allocation10 + $0x850] ss:$28 sps:$4 sm:$0xff]  }
 0x41e   : > { %8784 = vmatpush1.bf16.msra.mxu1 %v21571_v36  ;;  %v6377_v22 = vpop.f32.mrf.mxu1  ;;  %8750 = vmatprep.subr.bf16.mxu0 %v21576_v7  ;;  %v6420_v52 = vpop.f32.mrf.mxu0  ;;  %v21616_v44 = vld [vmem:[#allocation10 + $0x5b0] ss:$28 sps:$4 sm:$0xff]   ;;  %v21624_v36 = vld [vmem:[#allocation10 + $0x57c] ss:$28 sps:$4 sm:$0xff]   ;;  %v21630_v43 = vld [vmem:[#allocation10 + $0x544] ss:$28 sps:$4 sm:$0xff]  }
 0x41f   : > { %v24622_v8 = vadd.f32 %v6418_v20, %v6376_v3  ;;  %v6378_v53 = vadd.f32 %v6377_v22, %v24604_v58  ;;  %8785 = vmatprep.subr.bf16.mxu1 %v21579_v30  ;;  %v21597_v58 = vld [vmem:[#allocation10 + $0x694] ss:$28 sps:$4 sm:$0xff]   ;;  %v21633_v30 = vld [vmem:[#allocation10 + $0x7e4] ss:$28 sps:$4 sm:$0xff]   ;;  %v21639_v22 = vld [vmem:[#allocation10 + $0xb9c] ss:$28 sps:$4 sm:$0xff]  }
 0x420   : > { %v21625_v7 = vld [vmem:[#allocation10 + $0x818] ss:$28 sps:$4 sm:$0xff]   ;;  %v21631_v20 = vld [vmem:[#allocation10 + $0x7e0] ss:$28 sps:$4 sm:$0xff]  }
 0x421   : > { %v24625_v62 = vadd.f32 %v6420_v52, %v6378_v53  ;;  %8751 = vmatpush2.bf16.msra.mxu0 %v21574_v12  ;;  %v21622_v32 = vld [vmem:[#allocation10 + $0x578] ss:$28 sps:$4 sm:$0xff]   ;;  %v21628_v3 = vld [vmem:[#allocation10 + $0x540] ss:$28 sps:$4 sm:$0xff]   ;;  %v21636_v12 = vld [vmem:[#allocation10 + $0x7ac] ss:$28 sps:$4 sm:$0xff]  }
 0x422   : > { %8786 = vmatpush1.bf16.msra.mxu1 %v21577_v29  ;;  %8752 = vmatprep.subr.bf16.mxu0 %v21582_v4  ;;  %v21634_v29 = vld [vmem:[#allocation10 + $0x7a8] ss:$28 sps:$4 sm:$0xff]   ;;  %v21637_v4 = vld [vmem:[#allocation10 + $0xb98] ss:$28 sps:$4 sm:$0xff]  }
 0x423   : > { %8787 = vmatprep.subr.bf16.mxu1 %v21585_v57  ;;  %v21642_v53 = vld [vmem:[#allocation10 + $0x774] ss:$28 sps:$4 sm:$0xff]   ;;  %v24643_v57 = vcombine.low %v24606_v63, %v24602_v0  ;;  %v21645_v52 = vld [vmem:[#allocation10 + $0xb64] ss:$28 sps:$4 sm:$0xff]  }
 0x424   : > { %v21649_v0 = vld [vmem:[#allocation10 + $0xb28] ss:$28 sps:$4 sm:$0xff]  }
 0x425   : > { %8753 = vmatpush2.bf16.msra.mxu0 %v21580_v47  ;;  %v21640_v47 = vld [vmem:[#allocation10 + $0x770] ss:$28 sps:$4 sm:$0xff]   ;;  %v21654_v63 = vld [vmem:[#allocation10 + $0x704] ss:$28 sps:$4 sm:$0xff]  }
 0x426   : > { %8788 = vmatpush1.bf16.msra.mxu1 %v21583_v40  ;;  %8754 = vmatprep.subr.bf16.mxu0 %v21588_v25  ;;  %v21643_v40 = vld [vmem:[#allocation10 + $0xb60] ss:$28 sps:$4 sm:$0xff]  }
 0x427   : > { %8789 = vmatprep.subr.bf16.mxu1 %v21591_v39  ;;  %v21648_v25 = vld [vmem:[#allocation10 + $0x73c] ss:$28 sps:$4 sm:$0xff]   ;;  %v21651_v39 = vld [vmem:[#allocation10 + $0xb2c] ss:$28 sps:$4 sm:$0xff]  }
 0x429   : > { %8755 = vmatpush2.bf16.msra.mxu0 %v21586_v18  ;;  %v21646_v18 = vld [vmem:[#allocation10 + $0x738] ss:$28 sps:$4 sm:$0xff]  }
 0x42a   : > { %8790 = vmatpush2.bf16.msra.mxu1 %v21589_v45  ;;  %8756 = vmatprep.subr.bf16.mxu0 %v21594_v9  ;;  %v21657_v45 = vld [vmem:[#allocation10 + $0xaf4] ss:$28 sps:$4 sm:$0xff]   ;;  %v21652_v9 = vld [vmem:[#allocation10 + $0x700] ss:$28 sps:$4 sm:$0xff]  }
 0x42b   : > { %8791 = vmatprep.subr.bf16.mxu1 %v21597_v58  ;;  %v21655_v58 = vld [vmem:[#allocation10 + $0xaf0] ss:$28 sps:$4 sm:$0xff]  }
 0x42d   : > { %8757 = vmatpush2.bf16.msra.mxu0 %v21592_v26  ;;  %v21660_v26 = vld [vmem:[#allocation10 + $0xa4c] ss:$28 sps:$4 sm:$0xff]  }
 0x42e   : > { %8792 = vmatpush2.bf16.msra.mxu1 %v21595_v28  ;;  %8758 = vmatprep.subr.bf16.mxu0 %v21600_v19  ;;  %v21663_v28 = vld [vmem:[#allocation10 + $0xabc] ss:$28 sps:$4 sm:$0xff]   ;;  %v21658_v19 = vld [vmem:[#allocation10 + $0xa48] ss:$28 sps:$4 sm:$0xff]  }
 0x42f   : > { %8793 = vmatprep.subr.bf16.mxu1 %v21603_v13  ;;  %v21661_v13 = vld [vmem:[#allocation10 + $0xab8] ss:$28 sps:$4 sm:$0xff]  }
 0x431   : > { %8759 = vmatpush2.bf16.msra.mxu0 %v21598_v35  ;;  %v21666_v35 = vld [vmem:[#allocation10 + $0xa14] ss:$28 sps:$4 sm:$0xff]  }
 0x432   : > { %8794 = vmatpush2.bf16.msra.mxu1 %v21601_v14  ;;  %8760 = vmatprep.subr.bf16.mxu0 %v21606_v21  ;;  %v21669_v14 = vld [vmem:[#allocation10 + $0xa84] ss:$28 sps:$4 sm:$0xff]  }
 0x433   : > { %8795 = vmatprep.subr.bf16.mxu1 %v21609_v17 }
 0x435   : > { %8761 = vmatpush2.bf16.msra.mxu0 %v21604_v10  ;;  %v21664_v10 = vld [vmem:[#allocation10 + $0xa10] ss:$28 sps:$4 sm:$0xff]  }
 0x436   : > { %8796 = vmatpush2.bf16.msra.mxu1 %v21607_v11  ;;  %8816 = vmatprep.subr.bf16.mxu0 %v21615_v5 }
 0x437   : > { %8797 = vmatprep.subr.bf16.mxu1 %v21612_v50  ;;  %v21667_v50 = vld [vmem:[#allocation10 + $0xa80] ss:$28 sps:$4 sm:$0xff]  }
 0x438   : > { %8763 = vmatmul.mubr.bf16.vlgmr.msra.gmra.mxu0 %v24631_v24 }
 0x439   : > { %8817 = vmatpush1.bf16.msra.mxu0 %v21613_v37  ;;  %8848 = vmatprep.mubr.bf16.mxu0 %v24637_v48  ;;  %v21672_v37 = vld [vmem:[#allocation10 + $0x9dc] ss:$28 sps:$4 sm:$0xff]  }
 0x43a   : > { %8798 = vmatpush2.bf16.msra.mxu1 %v21610_v27  ;;  %8818 = vmatprep.subr.bf16.mxu0 %v21621_v54  ;;  %v21676_v54 = vld [vmem:[#allocation10 + $0x194] ss:$28 sps:$4 sm:$0xff]  }
 0x43b   : > { %8799 = vmatprep.subr.bf16.mxu1 %v21618_v46 }
 0x43d   : > { %8819 = vmatpush1.bf16.msra.mxu0 %v21619_v15 }
 0x43e   : > { %8800 = vmatpush2.bf16.msra.mxu1 %v21616_v44  ;;  %8820 = vmatprep.subr.bf16.mxu0 %v21627_v59  ;;  %v3178_v44 = vld [vmem:[#allocation3 + $0x34] sm:$0x7] }
 0x43f   : > { %8801 = vmatprep.subr.bf16.mxu1 %v21624_v36  ;;  %v21670_v36 = vld [vmem:[#allocation10 + $0x9d8] ss:$28 sps:$4 sm:$0xff]  }
 0x441   : > { %8821 = vmatpush1.bf16.msra.mxu0 %v21625_v7 }
 0x442   : > { %8802 = vmatpush2.bf16.msra.mxu1 %v21622_v32  ;;  %8822 = vmatprep.subr.bf16.mxu0 %v21633_v30  ;;  %v21674_v30 = vld [vmem:[#allocation10 + $0x190] ss:$28 sps:$4 sm:$0xff]  }
 0x443   : > { %8803 = vmatprep.subr.bf16.mxu1 %v21630_v43 }
 0x445   : > { %8823 = vmatpush1.bf16.msra.mxu0 %v21631_v20  ;;  %v22611_v20 = vld [vmem:[#allocation3 + $0x18] sm:$0xf] }
 0x446   : > { %8804 = vmatpush2.bf16.msra.mxu1 %v21628_v3  ;;  %8824 = vmatprep.subr.bf16.mxu0 %v21636_v12  ;;  %v24653_v3 = vcombine.low %v22611_v20, %v3178_v44  ;;  %v21679_v12 = vld [vmem:[#allocation10 + $0x9a4] ss:$28 sps:$4 sm:$0xff]   ;;  %v21721_v44 = vld [vmem:[#allocation10 + $0x354] ss:$28 sps:$4 sm:$0xff]  }
 0x447   : > { %8863 = vmatprep.subr.bf16.mxu1 %v21639_v22  ;;  %v21682_v22 = vld [vmem:[#allocation10 + $0x15c] ss:$28 sps:$4 sm:$0xff]  }
 0x449   : > { %8806 = vmatmul.mubr.bf16.vlgmr.msra.gmra.mxu1 %v24643_v57  ;;  %8825 = vmatpush1.bf16.msra.mxu0 %v21634_v29 }
 0x44a   : > { %8864 = vmatpush1.bf16.msra.mxu1 %v21637_v4  ;;  %8826 = vmatprep.subr.bf16.mxu0 %v21642_v53  ;;  %v21677_v4 = vld [vmem:[#allocation10 + $0x9a0] ss:$28 sps:$4 sm:$0xff]   ;;  %v21680_v53 = vld [vmem:[#allocation10 + $0x158] ss:$28 sps:$4 sm:$0xff]  }
 0x44b   : > { %8865 = vmatprep.subr.bf16.mxu1 %v21645_v52  ;;  %8891 = vmatprep.mubr.bf16.mxu1 %v25539_v1  ;;  %v21685_v52 = vld [vmem:[#allocation10 + $0x96c] ss:$28 sps:$4 sm:$0xff]  }
 0x44d   : > { %8827 = vmatpush1.bf16.msra.mxu0 %v21640_v47  ;;  %v21688_v47 = vld [vmem:[#allocation10 + $0x124] ss:$28 sps:$4 sm:$0xff]  }
 0x44e   : > { %8866 = vmatpush1.bf16.msra.mxu1 %v21643_v40  ;;  %8828 = vmatprep.subr.bf16.mxu0 %v21648_v25  ;;  %v21683_v40 = vld [vmem:[#allocation10 + $0x968] ss:$28 sps:$4 sm:$0xff]   ;;  %v21686_v25 = vld [vmem:[#allocation10 + $0x120] ss:$28 sps:$4 sm:$0xff]  }
 0x44f   : > { %8867 = vmatprep.subr.bf16.mxu1 %v21651_v39  ;;  %v21691_v39 = vld [vmem:[#allocation10 + $0x934] ss:$28 sps:$4 sm:$0xff]  }
 0x451   : > { %8829 = vmatpush1.bf16.msra.mxu0 %v21646_v18  ;;  %v21694_v18 = vld [vmem:[#allocation10 + $0xec] ss:$28 sps:$4 sm:$0xff]  }
 0x452   : > { %8868 = vmatpush1.bf16.msra.mxu1 %v21649_v0  ;;  %8830 = vmatprep.subr.bf16.mxu0 %v21654_v63  ;;  %v21689_v0 = vld [vmem:[#allocation10 + $0x930] ss:$28 sps:$4 sm:$0xff]   ;;  %v21692_v63 = vld [vmem:[#allocation10 + $0xe8] ss:$28 sps:$4 sm:$0xff]  }
 0x453   : > { %8869 = vmatprep.subr.bf16.mxu1 %v21657_v45  ;;  %v21697_v45 = vld [vmem:[#allocation10 + $0x8fc] ss:$28 sps:$4 sm:$0xff]  }
 0x455   : > { %8831 = vmatpush1.bf16.msra.mxu0 %v21652_v9  ;;  %v21700_v9 = vld [vmem:[#allocation10 + $0xb4] ss:$28 sps:$4 sm:$0xff]  }
 0x456   : > { %8870 = vmatpush1.bf16.msra.mxu1 %v21655_v58  ;;  %8832 = vmatprep.subr.bf16.mxu0 %v21660_v26  ;;  %v21695_v58 = vld [vmem:[#allocation10 + $0x8f8] ss:$28 sps:$4 sm:$0xff]   ;;  %v21698_v26 = vld [vmem:[#allocation10 + $0xb0] ss:$28 sps:$4 sm:$0xff]  }
 0x457   : > { %8871 = vmatprep.subr.bf16.mxu1 %v21663_v28  ;;  %v21703_v28 = vld [vmem:[#allocation10 + $0x8c4] ss:$28 sps:$4 sm:$0xff]  }
 0x458   : > { %v6457_v21 = vpop.f32.mrf.mxu0 }
 0x459   : > { %v6500_v17 = vpop.f32.mrf.mxu1  ;;  %8833 = vmatpush2.bf16.msra.mxu0 %v21658_v19  ;;  %v21706_v19 = vld [vmem:[#allocation10 + $0x7c] ss:$28 sps:$4 sm:$0xff]  }
 0x45a   : > { %v24647_v11 = vadd.f32 %v6500_v17, %v6457_v21  ;;  %8872 = vmatpush1.bf16.msra.mxu1 %v21661_v13  ;;  %v6459_v5 = vpop.f32.mrf.mxu0  ;;  %8834 = vmatprep.subr.bf16.mxu0 %v21666_v35  ;;  %v21701_v13 = vld [vmem:[#allocation10 + $0x8c0] ss:$28 sps:$4 sm:$0xff]   ;;  %v21704_v35 = vld [vmem:[#allocation10 + $0x78] ss:$28 sps:$4 sm:$0xff]   ;;  %v21710_v17 = vld [vmem:[#allocation10 + $0x510] ss:$28 sps:$4 sm:$0xff]  }
 0x45b   : > { %v6502_v27 = vpop.f32.mrf.mxu1  ;;  %8873 = vmatprep.subr.bf16.mxu1 %v21669_v14  ;;  %v21712_v14 = vld [vmem:[#allocation10 + $0x514] ss:$28 sps:$4 sm:$0xff]   ;;  %v21709_v21 = vld [vmem:[#allocation10 + $0x44] ss:$28 sps:$4 sm:$0xff]  }
 0x45c   : > { %v24649_v46 = vadd.f32 %v6502_v27, %v6459_v5  ;;  %v6461_v15 = vpop.f32.mrf.mxu0  ;;  %v21707_v5 = vld [vmem:[#allocation10 + $0x40] ss:$28 sps:$4 sm:$0xff]   ;;  %v21716_v27 = vld [vmem:[#allocation10 + $0x4d8] ss:$28 sps:$4 sm:$0xff]  }
 0x45d   : > { %v6504_v59 = vpop.f32.mrf.mxu1  ;;  %8835 = vmatpush2.bf16.msra.mxu0 %v21664_v10  ;;  %v24662_v10 = vcombine.low %v24633_v55, %v24627_v16  ;;  %v21722_v16 = vld [vmem:[#allocation10 + $0x4a0] ss:$28 sps:$4 sm:$0xff]   ;;  %v21719_v55 = vld [vmem:[#allocation10 + $0x350] ss:$28 sps:$4 sm:$0xff]  }
 0x45e   : > { %v24651_v7 = vadd.f32 %v6504_v59, %v6461_v15  ;;  %8874 = vmatpush1.bf16.msra.mxu1 %v21667_v50  ;;  %v6463_v32 = vpop.f32.mrf.mxu0  ;;  %8836 = vmatprep.subr.bf16.mxu0 %v21672_v37  ;;  %v21718_v50 = vld [vmem:[#allocation10 + $0x4dc] ss:$28 sps:$4 sm:$0xff]   ;;  %v21715_v37 = vld [vmem:[#allocation10 + $0xc] ss:$28 sps:$4 sm:$0xff]   ;;  %v21724_v15 = vld [vmem:[#allocation10 + $0x4a4] ss:$28 sps:$4 sm:$0xff]  }
 0x45f   : > { %v6506_v43 = vpop.f32.mrf.mxu1  ;;  %8902 = vmatprep.subr.bf16.mxu1 %v21676_v54  ;;  %v21713_v54 = vld [vmem:[#allocation10 + $0x8] ss:$28 sps:$4 sm:$0xff]  }
 0x460   : > { %v24655_v29 = vadd.f32 %v6506_v43, %v6463_v32  ;;  %v21730_v59 = vld [vmem:[#allocation10 + $0x46c] ss:$28 sps:$4 sm:$0xff]   ;;  %v21736_v43 = vld [vmem:[#allocation10 + $0x434] ss:$28 sps:$4 sm:$0xff]  }
 0x461   : > { %18946 = vmatmul.mubr.msk.bf16.vlgmr.msra.gmra.mxu1 %vm1872_vm14, %v24653_v3  ;;  %8837 = vmatpush2.bf16.msra.mxu0 %v21670_v36  ;;  %v21727_v36 = vld [vmem:[#allocation10 + $0x31c] ss:$28 sps:$4 sm:$0xff]   ;;  %v21728_v32 = vld [vmem:[#allocation10 + $0x468] ss:$28 sps:$4 sm:$0xff]  }
 0x462   : > { %8903 = vmatpush1.bf16.msra.mxu1 %v21674_v30  ;;  %8934 = vmatprep.mubr.bf16.mxu1 %v24589_v34  ;;  %v21725_v30 = vld [vmem:[#allocation10 + $0x318] ss:$28 sps:$4 sm:$0xff]  }
 0x463   : > { %8838 = vmatprep.subr.bf16.mxu0 %v21679_v12  ;;  %8904 = vmatprep.subr.bf16.mxu1 %v21682_v22  ;;  %v21733_v12 = vld [vmem:[#allocation10 + $0x2e4] ss:$28 sps:$4 sm:$0xff]   ;;  %v21734_v22 = vld [vmem:[#allocation10 + $0x430] ss:$28 sps:$4 sm:$0xff]  }
 0x465   : > { %8839 = vmatpush2.bf16.msra.mxu0 %v21677_v4  ;;  %v21731_v4 = vld [vmem:[#allocation10 + $0x2e0] ss:$28 sps:$4 sm:$0xff]  }
 0x466   : > { %8905 = vmatpush1.bf16.msra.mxu1 %v21680_v53  ;;  %8840 = vmatprep.subr.bf16.mxu0 %v21685_v52  ;;  %v21742_v53 = vld [vmem:[#allocation10 + $0x3fc] ss:$28 sps:$4 sm:$0xff]  }
 0x467   : > { %8906 = vmatprep.subr.bf16.mxu1 %v21688_v47  ;;  %v21739_v47 = vld [vmem:[#allocation10 + $0x2ac] ss:$28 sps:$4 sm:$0xff]  }
 0x469   : > { %8841 = vmatpush2.bf16.msra.mxu0 %v21683_v40  ;;  %v21740_v40 = vld [vmem:[#allocation10 + $0x3f8] ss:$28 sps:$4 sm:$0xff]  }
 0x46a   : > { %8907 = vmatpush1.bf16.msra.mxu1 %v21686_v25  ;;  %8842 = vmatprep.subr.bf16.mxu0 %v21691_v39  ;;  %v21737_v25 = vld [vmem:[#allocation10 + $0x2a8] ss:$28 sps:$4 sm:$0xff]  }
 0x46b   : > { %8908 = vmatprep.subr.bf16.mxu1 %v21694_v18  ;;  %v21748_v39 = vld [vmem:[#allocation10 + $0x3c4] ss:$28 sps:$4 sm:$0xff]  }
 0x46d   : > { %8843 = vmatpush2.bf16.msra.mxu0 %v21689_v0  ;;  %v21745_v0 = vld [vmem:[#allocation10 + $0x274] ss:$28 sps:$4 sm:$0xff]  }
 0x46e   : > { %8909 = vmatpush1.bf16.msra.mxu1 %v21692_v63  ;;  %8844 = vmatprep.subr.bf16.mxu0 %v21697_v45  ;;  %v21746_v63 = vld [vmem:[#allocation10 + $0x3c0] ss:$28 sps:$4 sm:$0xff]   ;;  %v21743_v45 = vld [vmem:[#allocation10 + $0x270] ss:$28 sps:$4 sm:$0xff]  }
 0x46f   : > { %8910 = vmatprep.subr.bf16.mxu1 %v21700_v9  ;;  %v21754_v9 = vld [vmem:[#allocation10 + $0x38c] ss:$28 sps:$4 sm:$0xff]  }
 0x471   : > { %8845 = vmatpush2.bf16.msra.mxu0 %v21695_v58  ;;  %v24666_v20 = vpop.f32.mrf.mxu1 }
 0x472   : > { %8911 = vmatpush1.bf16.msra.mxu1 %v21698_v26  ;;  %8846 = vmatprep.subr.bf16.mxu0 %v21703_v28  ;;  %v21751_v26 = vld [vmem:[#allocation10 + $0x23c] ss:$28 sps:$4 sm:$0xff]  }
 0x473   : > { %8912 = vmatprep.subr.bf16.mxu1 %v21706_v19  ;;  %v6588_v52 = vpop.f32.mrf.mxu1  ;;  %v21752_v19 = vld [vmem:[#allocation10 + $0x388] ss:$28 sps:$4 sm:$0xff]  }
 0x475   : > { %8847 = vmatpush2.bf16.msra.mxu0 %v21701_v13  ;;  %v6590_v18 = vpop.f32.mrf.mxu1  ;;  %v21749_v13 = vld [vmem:[#allocation10 + $0x238] ss:$28 sps:$4 sm:$0xff]  }
 0x476   : > { %8913 = vmatpush1.bf16.msra.mxu1 %v21704_v35  ;;  %8945 = vmatprep.subr.bf16.mxu0 %v21712_v14  ;;  %v21760_v35 = vld [vmem:[#allocation10 + $0x6d4] ss:$28 sps:$4 sm:$0xff]  }
 0x477   : > { %8914 = vmatprep.subr.bf16.mxu1 %v21709_v21  ;;  %v6592_v58 = vpop.f32.mrf.mxu1  ;;  %v21757_v21 = vld [vmem:[#allocation10 + $0x204] ss:$28 sps:$4 sm:$0xff]  }
 0x478   : > { %8849 = vmatmul.mubr.bf16.vlgmr.msra.gmra.mxu0 %v24662_v10 }
 0x479   : > { %8946 = vmatpush1.bf16.msra.mxu0 %v21710_v17  ;;  %8977 = vmatprep.mubr.bf16.mxu0 %v24610_v23 }
 0x47a   : > { %8915 = vmatpush1.bf16.msra.mxu1 %v21707_v5  ;;  %8947 = vmatprep.subr.bf16.mxu0 %v21718_v50  ;;  %v21758_v50 = vld [vmem:[#allocation10 + $0x6d0] ss:$28 sps:$4 sm:$0xff]  }
 0x47b   : > { %8916 = vmatprep.subr.bf16.mxu1 %v21715_v37  ;;  %v21755_v37 = vld [vmem:[#allocation10 + $0x200] ss:$28 sps:$4 sm:$0xff]  }
 0x47d   : > { %8948 = vmatpush1.bf16.msra.mxu0 %v21716_v27  ;;  %v21766_v27 = vld [vmem:[#allocation10 + $0x69c] ss:$28 sps:$4 sm:$0xff]  }
 0x47e   : > { %8917 = vmatpush1.bf16.msra.mxu1 %v21713_v54  ;;  %8949 = vmatprep.subr.bf16.mxu0 %v21724_v15  ;;  %v21763_v15 = vld [vmem:[#allocation10 + $0x1cc] ss:$28 sps:$4 sm:$0xff]  }
 0x47f   : > { %8918 = vmatprep.subr.bf16.mxu1 %v21721_v44 }
 0x481   : > { %8950 = vmatpush1.bf16.msra.mxu0 %v21722_v16 }
 0x482   : > { %8919 = vmatpush2.bf16.msra.mxu1 %v21719_v55  ;;  %8951 = vmatprep.subr.bf16.mxu0 %v21730_v59  ;;  %v21764_v59 = vld [vmem:[#allocation10 + $0x698] ss:$28 sps:$4 sm:$0xff]  }
 0x483   : > { %8920 = vmatprep.subr.bf16.mxu1 %v21727_v36 }
 0x485   : > { %8952 = vmatpush1.bf16.msra.mxu0 %v21728_v32  ;;  %v21761_v32 = vld [vmem:[#allocation10 + $0x1c8] ss:$28 sps:$4 sm:$0xff]  }
 0x486   : > { %8921 = vmatpush2.bf16.msra.mxu1 %v21725_v30  ;;  %8953 = vmatprep.subr.bf16.mxu0 %v21736_v43  ;;  %v21769_v30 = vld [vmem:[#allocation10 + $0x664] ss:$28 sps:$4 sm:$0xff]  }
 0x487   : > { %8922 = vmatprep.subr.bf16.mxu1 %v21733_v12  ;;  %v21772_v12 = vld [vmem:[#allocation10 + $0x894] ss:$28 sps:$4 sm:$0xff]  }
 0x489   : > { %8954 = vmatpush1.bf16.msra.mxu0 %v21734_v22 }
 0x48a   : > { %8923 = vmatpush2.bf16.msra.mxu1 %v21731_v4  ;;  %8955 = vmatprep.subr.bf16.mxu0 %v21742_v53 }
 0x48b   : > { %8924 = vmatprep.subr.bf16.mxu1 %v21739_v47  ;;  %v21767_v47 = vld [vmem:[#allocation10 + $0x660] ss:$28 sps:$4 sm:$0xff]  }
 0x48d   : > { %8956 = vmatpush1.bf16.msra.mxu0 %v21740_v40 }
 0x48e   : > { %8925 = vmatpush2.bf16.msra.mxu1 %v21737_v25  ;;  %8957 = vmatprep.subr.bf16.mxu0 %v21748_v39  ;;  %v21770_v25 = vld [vmem:[#allocation10 + $0x890] ss:$28 sps:$4 sm:$0xff]  }
 0x48f   : > { %8926 = vmatprep.subr.bf16.mxu1 %v21745_v0  ;;  %v21778_v0 = vld [vmem:[#allocation10 + $0x85c] ss:$28 sps:$4 sm:$0xff]  }
 0x491   : > { %v19894_v28 = vpop.f32.mrf.mxu1  ;;  %8958 = vmatpush1.bf16.msra.mxu0 %v21746_v63 }
 0x492   : > { %8927 = vmatpush2.bf16.msra.mxu1 %v21743_v45  ;;  %8959 = vmatprep.subr.bf16.mxu0 %v21754_v9  ;;  %v21781_v45 = vld [vmem:[#allocation10 + $0x5f4] ss:$28 sps:$4 sm:$0xff]   ;;  %v21784_v9 = vld [vmem:[#allocation10 + $0x824] ss:$28 sps:$4 sm:$0xff]  }
 0x493   : > { %v19895_v14 = vpop.f32.mrf.mxu1  ;;  %8928 = vmatprep.subr.bf16.mxu1 %v21751_v26  ;;  %v21787_v26 = vld [vmem:[#allocation10 + $0x5bc] ss:$28 sps:$4 sm:$0xff]  }
 0x494   : > { %v24668_v17 = vadd.f32 %v19895_v14, %v19894_v28  ;;  %v21790_v28 = vld [vmem:[#allocation10 + $0x7ec] ss:$28 sps:$4 sm:$0xff]   ;;  %v21791_v14 = vld [vmem:[#allocation10 + $0x580] ss:$28 sps:$4 sm:$0xff]  }
 0x495   : > { %v19897_v5 = vpop.f32.mrf.mxu1  ;;  %8960 = vmatpush1.bf16.msra.mxu0 %v21752_v19  ;;  %v21785_v19 = vld [vmem:[#allocation10 + $0x5b8] ss:$28 sps:$4 sm:$0xff]  }
 0x496   : > { %8929 = vmatpush2.bf16.msra.mxu1 %v21749_v13  ;;  %8961 = vmatprep.subr.bf16.mxu0 %v21760_v35  ;;  %v21793_v13 = vld [vmem:[#allocation10 + $0x584] ss:$28 sps:$4 sm:$0xff]   ;;  %v21796_v35 = vld [vmem:[#allocation10 + $0x7b4] ss:$28 sps:$4 sm:$0xff]  }
 0x497   : > { %v19898_v54 = vpop.f32.mrf.mxu1  ;;  %8930 = vmatprep.subr.bf16.mxu1 %v21757_v21  ;;  %v21794_v21 = vld [vmem:[#allocation10 + $0x7b0] ss:$28 sps:$4 sm:$0xff]  }
 0x498   : > { %v24670_v44 = vadd.f32 %v19898_v54, %v19897_v5  ;;  %v6543_v16 = vpop.f32.mrf.mxu0  ;;  %v21799_v5 = vld [vmem:[#allocation10 + $0x54c] ss:$28 sps:$4 sm:$0xff]   ;;  %v21800_v54 = vld [vmem:[#allocation10 + $0x778] ss:$28 sps:$4 sm:$0xff]  }
 0x499   : > { %v6544_v55 = vadd.f32 %v6543_v16, %v24647_v11  ;;  %8962 = vmatpush2.bf16.msra.mxu0 %v21758_v50  ;;  %v21802_v50 = vld [vmem:[#allocation10 + $0x77c] ss:$28 sps:$4 sm:$0xff]  }
 0x49a   : > { %8931 = vmatpush2.bf16.msra.mxu1 %v21755_v37  ;;  %v6545_v36 = vpop.f32.mrf.mxu0  ;;  %8963 = vmatprep.subr.bf16.mxu0 %v21766_v27  ;;  %v21797_v27 = vld [vmem:[#allocation10 + $0x548] ss:$28 sps:$4 sm:$0xff]  }
 0x49b   : > { %v6546_v43 = vadd.f32 %v6545_v36, %v24649_v46  ;;  %8932 = vmatprep.subr.bf16.mxu1 %v21763_v15  ;;  %v24675_v22 = vadd.f32 %v24666_v20, %v6544_v55  ;;  %v21775_v46 = vld [vmem:[#allocation10 + $0x62c] ss:$28 sps:$4 sm:$0xff]   ;;  %v21808_v15 = vld [vmem:[#allocation10 + $0xba4] ss:$28 sps:$4 sm:$0xff]  }
 0x49c   : > { %v6547_v4 = vpop.f32.mrf.mxu0  ;;  %v21773_v20 = vld [vmem:[#allocation10 + $0x628] ss:$28 sps:$4 sm:$0xff]  }
 0x49d   : > { %v6548_v53 = vadd.f32 %v6547_v4, %v24651_v7  ;;  %8964 = vmatpush2.bf16.msra.mxu0 %v21764_v59  ;;  %v24678_v11 = vadd.f32 %v6588_v52, %v6546_v43  ;;  %v21776_v52 = vld [vmem:[#allocation10 + $0x858] ss:$28 sps:$4 sm:$0xff]   ;;  %v21805_v55 = vld [vmem:[#allocation10 + $0x744] ss:$28 sps:$4 sm:$0xff]  }
 0x49e   : > { %8933 = vmatpush2.bf16.msra.mxu1 %v21761_v32  ;;  %v6549_v40 = vpop.f32.mrf.mxu0  ;;  %8965 = vmatprep.subr.bf16.mxu0 %v21769_v30  ;;  %v21806_v32 = vld [vmem:[#allocation10 + $0xba0] ss:$28 sps:$4 sm:$0xff]  }
 0x49f   : > { %v6550_v39 = vadd.f32 %v6549_v40, %v24655_v29  ;;  %8988 = vmatprep.subr.bf16.mxu1 %v21772_v12  ;;  %v24681_v63 = vadd.f32 %v6590_v18, %v6548_v53  ;;  %v21779_v29 = vld [vmem:[#allocation10 + $0x5f0] ss:$28 sps:$4 sm:$0xff]   ;;  %v21782_v18 = vld [vmem:[#allocation10 + $0x820] ss:$28 sps:$4 sm:$0xff]  }
 0x4a0   : > { %v21803_v43 = vld [vmem:[#allocation10 + $0x740] ss:$28 sps:$4 sm:$0xff]   ;;  %v21814_v12 = vld [vmem:[#allocation10 + $0xb6c] ss:$28 sps:$4 sm:$0xff]  }
 0x4a1   : > { %8935 = vmatmul.mubr.bf16.vlgmr.msra.gmra.mxu1 %v24631_v24  ;;  %8966 = vmatpush2.bf16.msra.mxu0 %v21767_v47  ;;  %v24684_v7 = vadd.f32 %v6592_v58, %v6550_v39  ;;  %v21788_v58 = vld [vmem:[#allocation10 + $0x7e8] ss:$28 sps:$4 sm:$0xff]  }
 0x4a2   : > { %8989 = vmatpush1.bf16.msra.mxu1 %v21770_v25  ;;  %9020 = vmatprep.mubr.bf16.mxu1 %v24637_v48  ;;  %v21811_v53 = vld [vmem:[#allocation10 + $0x70c] ss:$28 sps:$4 sm:$0xff]  }
 0x4a3   : > { %8967 = vmatprep.subr.bf16.mxu0 %v21775_v46  ;;  %8990 = vmatprep.subr.bf16.mxu1 %v21778_v0  ;;  %v21812_v25 = vld [vmem:[#allocation10 + $0xb68] ss:$28 sps:$4 sm:$0xff]   ;;  %v21820_v0 = vld [vmem:[#allocation10 + $0xb34] ss:$28 sps:$4 sm:$0xff]  }
 0x4a5   : > { %8968 = vmatpush2.bf16.msra.mxu0 %v21773_v20 }
 0x4a6   : > { %8991 = vmatpush1.bf16.msra.mxu1 %v21776_v52  ;;  %8969 = vmatprep.subr.bf16.mxu0 %v21781_v45  ;;  %v21817_v52 = vld [vmem:[#allocation10 + $0xa54] ss:$28 sps:$4 sm:$0xff]  }
 0x4a7   : > { %8992 = vmatprep.subr.bf16.mxu1 %v21784_v9  ;;  %v21818_v9 = vld [vmem:[#allocation10 + $0xb30] ss:$28 sps:$4 sm:$0xff]  }
 0x4a9   : > { %8970 = vmatpush2.bf16.msra.mxu0 %v21779_v29 }
 0x4aa   : > { %8993 = vmatpush1.bf16.msra.mxu1 %v21782_v18  ;;  %8971 = vmatprep.subr.bf16.mxu0 %v21787_v26  ;;  %v21815_v26 = vld [vmem:[#allocation10 + $0xa50] ss:$28 sps:$4 sm:$0xff]  }
 0x4ab   : > { %8994 = vmatprep.subr.bf16.mxu1 %v21790_v28  ;;  %v21826_v28 = vld [vmem:[#allocation10 + $0xafc] ss:$28 sps:$4 sm:$0xff]  }
 0x4ad   : > { %8972 = vmatpush2.bf16.msra.mxu0 %v21785_v19 }
 0x4ae   : > { %8995 = vmatpush1.bf16.msra.mxu1 %v21788_v58  ;;  %8973 = vmatprep.subr.bf16.mxu0 %v21793_v13  ;;  %v21824_v58 = vld [vmem:[#allocation10 + $0xaf8] ss:$28 sps:$4 sm:$0xff]  }
 0x4af   : > { %8996 = vmatprep.subr.bf16.mxu1 %v21796_v35  ;;  %v21821_v35 = vld [vmem:[#allocation10 + $0xa18] ss:$28 sps:$4 sm:$0xff]  }
 0x4b1   : > { %v19916_v37 = vpop.f32.mrf.mxu1  ;;  %8974 = vmatpush2.bf16.msra.mxu0 %v21791_v14  ;;  %v21832_v14 = vld [vmem:[#allocation10 + $0xac4] ss:$28 sps:$4 sm:$0xff]  }
 0x4b2   : > { %8997 = vmatpush1.bf16.msra.mxu1 %v21794_v21  ;;  %8975 = vmatprep.subr.bf16.mxu0 %v21799_v5  ;;  %v21829_v21 = vld [vmem:[#allocation10 + $0x9e4] ss:$28 sps:$4 sm:$0xff]  }
 0x4b3   : > { %v19917_v16 = vpop.f32.mrf.mxu1  ;;  %8998 = vmatprep.subr.bf16.mxu1 %v21802_v50  ;;  %v21830_v5 = vld [vmem:[#allocation10 + $0xac0] ss:$28 sps:$4 sm:$0xff]  }
 0x4b4   : > { %v19918_v59 = vadd.f32 %v19917_v16, %v19916_v37  ;;  %v21827_v50 = vld [vmem:[#allocation10 + $0x9e0] ss:$28 sps:$4 sm:$0xff]   ;;  %v21838_v37 = vld [vmem:[#allocation10 + $0xa8c] ss:$28 sps:$4 sm:$0xff]  }
 0x4b5   : > { %v19919_v36 = vpop.f32.mrf.mxu1  ;;  %8976 = vmatpush2.bf16.msra.mxu0 %v21797_v27  ;;  %v21835_v27 = vld [vmem:[#allocation10 + $0x9ac] ss:$28 sps:$4 sm:$0xff]  }
 0x4b6   : > { %v6671_v30 = vadd.f32 %v19918_v59, %v24668_v17  ;;  %8999 = vmatpush1.bf16.msra.mxu1 %v21800_v54  ;;  %9035 = vmatprep.subr.bf16.mxu0 %v21808_v15  ;;  %v21809_v17 = vld [vmem:[#allocation10 + $0x708] ss:$28 sps:$4 sm:$0xff]   ;;  %v21844_v59 = vld [vmem:[#allocation10 + $0x19c] ss:$28 sps:$4 sm:$0xff]  }
 0x4b7   : > { %v19920_v4 = vpop.f32.mrf.mxu1  ;;  %9000 = vmatprep.subr.bf16.mxu1 %v21805_v55  ;;  %v21836_v15 = vld [vmem:[#allocation10 + $0xa88] ss:$28 sps:$4 sm:$0xff]  }
 0x4b8   : > { %v19921_v47 = vadd.f32 %v19920_v4, %v19919_v36  ;;  %v19938_v40 = vpop.f32.mrf.mxu0  ;;  %8978 = vmatmul.mubr.bf16.vlgmr.msra.gmra.mxu0 %v24643_v57  ;;  %v21833_v55 = vld [vmem:[#allocation10 + $0x9a8] ss:$28 sps:$4 sm:$0xff]   ;;  %v21839_v4 = vld [vmem:[#allocation10 + $0x970] ss:$28 sps:$4 sm:$0xff]  }
 0x4b9   : > { %9036 = vmatpush1.bf16.msra.mxu0 %v21806_v32  ;;  %9063 = vmatprep.mubr.bf16.mxu0 %v25539_v1  ;;  %v21841_v32 = vld [vmem:[#allocation10 + $0x974] ss:$28 sps:$4 sm:$0xff]  }
 0x4ba   : > { %v6674_v39 = vadd.f32 %v19921_v47, %v24670_v44  ;;  %9001 = vmatpush1.bf16.msra.mxu1 %v21803_v43  ;;  %v19939_v46 = vpop.f32.mrf.mxu0  ;;  %9037 = vmatprep.subr.bf16.mxu0 %v21814_v12  ;;  %v21823_v44 = vld [vmem:[#allocation10 + $0xa1c] ss:$28 sps:$4 sm:$0xff]  }
 0x4bb   : > { %v19940_v20 = vadd.f32 %v19939_v46, %v19938_v40  ;;  %9002 = vmatprep.subr.bf16.mxu1 %v21811_v53  ;;  %v21842_v43 = vld [vmem:[#allocation10 + $0x198] ss:$28 sps:$4 sm:$0xff]   ;;  %v21850_v53 = vld [vmem:[#allocation10 + $0x164] ss:$28 sps:$4 sm:$0xff]   ;;  %v21856_v46 = vld [vmem:[#allocation10 + $0x12c] ss:$28 sps:$4 sm:$0xff]  }
 0x4bc   : > { %v19941_v45 = vpop.f32.mrf.mxu0  ;;  %v21847_v40 = vld [vmem:[#allocation10 + $0x93c] ss:$28 sps:$4 sm:$0xff]  }
 0x4bd   : > { %9038 = vmatpush1.bf16.msra.mxu0 %v21812_v25  ;;  %v6712_v29 = vadd.f32 %v19940_v20, %v6671_v30  ;;  %v21848_v25 = vld [vmem:[#allocation10 + $0x160] ss:$28 sps:$4 sm:$0xff]  }
 0x4be   : > { %9003 = vmatpush1.bf16.msra.mxu1 %v21809_v17  ;;  %v19942_v18 = vpop.f32.mrf.mxu0  ;;  %9039 = vmatprep.subr.bf16.mxu0 %v21820_v0  ;;  %v21853_v17 = vld [vmem:[#allocation10 + $0x904] ss:$28 sps:$4 sm:$0xff]  }
 0x4bf   : > { %v19943_v19 = vadd.f32 %v19942_v18, %v19941_v45  ;;  %9004 = vmatprep.subr.bf16.mxu1 %v21817_v52  ;;  %v21854_v0 = vld [vmem:[#allocation10 + $0x128] ss:$28 sps:$4 sm:$0xff]   ;;  %v21851_v20 = vld [vmem:[#allocation10 + $0x900] ss:$28 sps:$4 sm:$0xff]   ;;  %v21862_v52 = vld [vmem:[#allocation10 + $0xf4] ss:$28 sps:$4 sm:$0xff]  }
 0x4c0   : > { %v21859_v45 = vld [vmem:[#allocation10 + $0x8cc] ss:$28 sps:$4 sm:$0xff]   ;;  %v21865_v18 = vld [vmem:[#allocation10 + $0xbc] ss:$28 sps:$4 sm:$0xff]  }
 0x4c1   : > { %9040 = vmatpush1.bf16.msra.mxu0 %v21818_v9  ;;  %v6715_v13 = vadd.f32 %v19943_v19, %v6674_v39  ;;  %v21845_v39 = vld [vmem:[#allocation10 + $0x938] ss:$28 sps:$4 sm:$0xff]   ;;  %v21860_v9 = vld [vmem:[#allocation10 + $0xf0] ss:$28 sps:$4 sm:$0xff]  }
 0x4c2   : > { %9005 = vmatpush2.bf16.msra.mxu1 %v21815_v26  ;;  %9041 = vmatprep.subr.bf16.mxu0 %v21826_v28  ;;  %v21868_v26 = vld [vmem:[#allocation10 + $0x51c] ss:$28 sps:$4 sm:$0xff]  }
 0x4c3   : > { %9006 = vmatprep.subr.bf16.mxu1 %v21823_v44  ;;  %v21863_v28 = vld [vmem:[#allocation10 + $0xb8] ss:$28 sps:$4 sm:$0xff]   ;;  %v21871_v44 = vld [vmem:[#allocation10 + $0x84] ss:$28 sps:$4 sm:$0xff]  }
 0x4c4   : > { %v21866_v19 = vld [vmem:[#allocation10 + $0x518] ss:$28 sps:$4 sm:$0xff]  }
 0x4c5   : > { %9042 = vmatpush1.bf16.msra.mxu0 %v21824_v58  ;;  %v21874_v58 = vld [vmem:[#allocation10 + $0x4e4] ss:$28 sps:$4 sm:$0xff]  }
 0x4c6   : > { %9007 = vmatpush2.bf16.msra.mxu1 %v21821_v35  ;;  %9043 = vmatprep.subr.bf16.mxu0 %v21832_v14  ;;  %v21872_v35 = vld [vmem:[#allocation10 + $0x4e0] ss:$28 sps:$4 sm:$0xff]   ;;  %v21877_v14 = vld [vmem:[#allocation10 + $0x4c] ss:$28 sps:$4 sm:$0xff]  }
 0x4c7   : > { %9008 = vmatprep.subr.bf16.mxu1 %v21829_v21  ;;  %v21880_v21 = vld [vmem:[#allocation10 + $0x4ac] ss:$28 sps:$4 sm:$0xff]  }
 0x4c9   : > { %v6752_v54 = vpop.f32.mrf.mxu1  ;;  %9044 = vmatpush1.bf16.msra.mxu0 %v21830_v5  ;;  %v21875_v5 = vld [vmem:[#allocation10 + $0x48] ss:$28 sps:$4 sm:$0xff]  }
 0x4ca   : > { %v24691_v16 = vadd.f32 %v6752_v54, %v6712_v29  ;;  %9009 = vmatpush2.bf16.msra.mxu1 %v21827_v50  ;;  %9045 = vmatprep.subr.bf16.mxu0 %v21838_v37  ;;  %v21857_v29 = vld [vmem:[#allocation10 + $0x8c8] ss:$28 sps:$4 sm:$0xff]   ;;  %v21883_v37 = vld [vmem:[#allocation10 + $0x14] ss:$28 sps:$4 sm:$0xff]  }
 0x4cb   : > { %v20641_v36 = vpop.f32.mrf.mxu1  ;;  %9010 = vmatprep.subr.bf16.mxu1 %v21835_v27  ;;  %v21878_v50 = vld [vmem:[#allocation10 + $0x4a8] ss:$28 sps:$4 sm:$0xff]   ;;  %v21886_v27 = vld [vmem:[#allocation10 + $0x474] ss:$28 sps:$4 sm:$0xff]  }
 0x4cc   : > { %v21881_v54 = vld [vmem:[#allocation10 + $0x10] ss:$28 sps:$4 sm:$0xff]   ;;  %v21887_v36 = vld [vmem:[#allocation10 + $0x358] ss:$28 sps:$4 sm:$0xff]  }
 0x4cd   : > { %v6755_v30 = vpop.f32.mrf.mxu1  ;;  %9046 = vmatpush1.bf16.msra.mxu0 %v21836_v15  ;;  %v21884_v15 = vld [vmem:[#allocation10 + $0x470] ss:$28 sps:$4 sm:$0xff]  }
 0x4ce   : > { %v24693_v12 = vadd.f32 %v6755_v30, %v6715_v13  ;;  %9011 = vmatpush2.bf16.msra.mxu1 %v21833_v55  ;;  %9074 = vmatprep.subr.bf16.mxu0 %v21844_v59  ;;  %v21869_v13 = vld [vmem:[#allocation10 + $0x80] ss:$28 sps:$4 sm:$0xff]  }
 0x4cf   : > { %v20642_v47 = vpop.f32.mrf.mxu1  ;;  %9012 = vmatprep.subr.bf16.mxu1 %v21841_v32  ;;  %v21889_v55 = vld [vmem:[#allocation10 + $0x35c] ss:$28 sps:$4 sm:$0xff]   ;;  %v21895_v30 = vld [vmem:[#allocation10 + $0x324] ss:$28 sps:$4 sm:$0xff]  }
 0x4d0   : > { %18947 = vmatmul.mubr.msk.bf16.vlgmr.msra.gmra.mxu0 %vm1872_vm14, %v24653_v3  ;;  %v21892_v59 = vld [vmem:[#allocation10 + $0x43c] ss:$28 sps:$4 sm:$0xff]   ;;  %v21901_v47 = vld [vmem:[#allocation10 + $0x2ec] ss:$28 sps:$4 sm:$0xff]  }
 0x4d1   : > { %9075 = vmatpush1.bf16.msra.mxu0 %v21842_v43  ;;  %9106 = vmatprep.mubr.bf16.mxu0 %v24589_v34  ;;  %v21890_v32 = vld [vmem:[#allocation10 + $0x438] ss:$28 sps:$4 sm:$0xff]   ;;  %v21898_v43 = vld [vmem:[#allocation10 + $0x404] ss:$28 sps:$4 sm:$0xff]  }
 0x4d2   : > { %9013 = vmatpush2.bf16.msra.mxu1 %v21839_v4  ;;  %9076 = vmatprep.subr.bf16.mxu0 %v21850_v53  ;;  %v21893_v4 = vld [vmem:[#allocation10 + $0x320] ss:$28 sps:$4 sm:$0xff]  }
 0x4d3   : > { %9014 = vmatprep.subr.bf16.mxu1 %v21847_v40  ;;  %v21896_v53 = vld [vmem:[#allocation10 + $0x400] ss:$28 sps:$4 sm:$0xff]   ;;  %v21904_v40 = vld [vmem:[#allocation10 + $0x3cc] ss:$28 sps:$4 sm:$0xff]  }
 0x4d5   : > { %9077 = vmatpush1.bf16.msra.mxu0 %v21848_v25  ;;  %v21899_v25 = vld [vmem:[#allocation10 + $0x2e8] ss:$28 sps:$4 sm:$0xff]  }
 0x4d6   : > { %9015 = vmatpush2.bf16.msra.mxu1 %v21845_v39  ;;  %9078 = vmatprep.subr.bf16.mxu0 %v21856_v46  ;;  %v21902_v39 = vld [vmem:[#allocation10 + $0x3c8] ss:$28 sps:$4 sm:$0xff]   ;;  %v21907_v46 = vld [vmem:[#allocation10 + $0x2b4] ss:$28 sps:$4 sm:$0xff]  }
 0x4d7   : > { %9016 = vmatprep.subr.bf16.mxu1 %v21853_v17  ;;  %v21910_v17 = vld [vmem:[#allocation10 + $0x394] ss:$28 sps:$4 sm:$0xff]  }
 0x4d9   : > { %9079 = vmatpush1.bf16.msra.mxu0 %v21854_v0 }
 0x4da   : > { %9017 = vmatpush2.bf16.msra.mxu1 %v21851_v20  ;;  %9080 = vmatprep.subr.bf16.mxu0 %v21862_v52  ;;  %v21905_v52 = vld [vmem:[#allocation10 + $0x2b0] ss:$28 sps:$4 sm:$0xff]  }
 0x4db   : > { %9018 = vmatprep.subr.bf16.mxu1 %v21859_v45 }
 0x4dd   : > { %9081 = vmatpush1.bf16.msra.mxu0 %v21860_v9  ;;  %v21908_v9 = vld [vmem:[#allocation10 + $0x390] ss:$28 sps:$4 sm:$0xff]  }
 0x4de   : > { %9019 = vmatpush2.bf16.msra.mxu1 %v21857_v29  ;;  %9082 = vmatprep.subr.bf16.mxu0 %v21865_v18  ;;  %v21913_v29 = vld [vmem:[#allocation10 + $0x27c] ss:$28 sps:$4 sm:$0xff]  }
 0x4df   : > { %9117 = vmatprep.subr.bf16.mxu1 %v21868_v26  ;;  %v21916_v26 = vld [vmem:[#allocation10 + $0x6dc] ss:$28 sps:$4 sm:$0xff]  }
 0x4e1   : > { %9021 = vmatmul.mubr.bf16.vlgmr.msra.gmra.mxu1 %v24662_v10  ;;  %9083 = vmatpush1.bf16.msra.mxu0 %v21863_v28 }
 0x4e2   : > { %9118 = vmatpush1.bf16.msra.mxu1 %v21866_v19  ;;  %9149 = vmatprep.mubr.bf16.mxu1 %v24610_v23 }
 0x4e3   : > { %9084 = vmatprep.subr.bf16.mxu0 %v21871_v44  ;;  %9119 = vmatprep.subr.bf16.mxu1 %v21874_v58  ;;  %v21911_v44 = vld [vmem:[#allocation10 + $0x278] ss:$28 sps:$4 sm:$0xff]  }
 0x4e5   : > { %9085 = vmatpush1.bf16.msra.mxu0 %v21869_v13  ;;  %v21919_v13 = vld [vmem:[#allocation10 + $0x244] ss:$28 sps:$4 sm:$0xff]  }
 0x4e6   : > { %9120 = vmatpush1.bf16.msra.mxu1 %v21872_v35  ;;  %9086 = vmatprep.subr.bf16.mxu0 %v21877_v14  ;;  %v21922_v14 = vld [vmem:[#allocation10 + $0x6a4] ss:$28 sps:$4 sm:$0xff]  }
 0x4e7   : > { %9121 = vmatprep.subr.bf16.mxu1 %v21880_v21  ;;  %v21917_v21 = vld [vmem:[#allocation10 + $0x240] ss:$28 sps:$4 sm:$0xff]  }
 0x4e9   : > { %9087 = vmatpush1.bf16.msra.mxu0 %v21875_v5  ;;  %v21925_v5 = vld [vmem:[#allocation10 + $0x20c] ss:$28 sps:$4 sm:$0xff]  }
 0x4ea   : > { %9122 = vmatpush1.bf16.msra.mxu1 %v21878_v50  ;;  %9088 = vmatprep.subr.bf16.mxu0 %v21883_v37  ;;  %v21928_v50 = vld [vmem:[#allocation10 + $0x66c] ss:$28 sps:$4 sm:$0xff]  }
 0x4eb   : > { %9123 = vmatprep.subr.bf16.mxu1 %v21886_v27  ;;  %v21926_v37 = vld [vmem:[#allocation10 + $0x668] ss:$28 sps:$4 sm:$0xff]   ;;  %v21931_v27 = vld [vmem:[#allocation10 + $0x1d4] ss:$28 sps:$4 sm:$0xff]  }
 0x4ed   : > { %9089 = vmatpush1.bf16.msra.mxu0 %v21881_v54  ;;  %v21934_v54 = vld [vmem:[#allocation10 + $0x634] ss:$28 sps:$4 sm:$0xff]  }
 0x4ee   : > { %9124 = vmatpush1.bf16.msra.mxu1 %v21884_v15  ;;  %9090 = vmatprep.subr.bf16.mxu0 %v21889_v55 }
 0x4ef   : > { %9125 = vmatprep.subr.bf16.mxu1 %v21892_v59  ;;  %v21932_v59 = vld [vmem:[#allocation10 + $0x630] ss:$28 sps:$4 sm:$0xff]  }
 0x4f1   : > { %9091 = vmatpush2.bf16.msra.mxu0 %v21887_v36  ;;  %v21940_v36 = vld [vmem:[#allocation10 + $0x89c] ss:$28 sps:$4 sm:$0xff]  }
 0x4f2   : > { %9126 = vmatpush1.bf16.msra.mxu1 %v21890_v32  ;;  %9092 = vmatprep.subr.bf16.mxu0 %v21895_v30  ;;  %v21937_v30 = vld [vmem:[#allocation10 + $0x5fc] ss:$28 sps:$4 sm:$0xff]  }
 0x4f3   : > { %9127 = vmatprep.subr.bf16.mxu1 %v21898_v43 }
 0x4f5   : > { %9093 = vmatpush2.bf16.msra.mxu0 %v21893_v4 }
 0x4f6   : > { %9128 = vmatpush1.bf16.msra.mxu1 %v21896_v53  ;;  %9094 = vmatprep.subr.bf16.mxu0 %v21901_v47  ;;  %v21938_v53 = vld [vmem:[#allocation10 + $0x898] ss:$28 sps:$4 sm:$0xff]  }
 0x4f7   : > { %9129 = vmatprep.subr.bf16.mxu1 %v21904_v40  ;;  %v21935_v40 = vld [vmem:[#allocation10 + $0x5f8] ss:$28 sps:$4 sm:$0xff]  }
 0x4f8   : > { %v8764_v0 = vpop.f32.mrf.mxu0 }
 0x4f9   : > { %v8765_v20 = vadd.f32 %v8764_v0, %v24563_v56  ;;  %9095 = vmatpush2.bf16.msra.mxu0 %v21899_v25  ;;  %v21914_v56 = vld [vmem:[#allocation10 + $0x6d8] ss:$28 sps:$4 sm:$0xff]   ;;  %v21946_v25 = vld [vmem:[#allocation10 + $0x864] ss:$28 sps:$4 sm:$0xff]  }
 0x4fa   : > { %9130 = vmatpush1.bf16.msra.mxu1 %v21902_v39  ;;  %v8766_v45 = vpop.f32.mrf.mxu0  ;;  %9096 = vmatprep.subr.bf16.mxu0 %v21907_v46  ;;  %v21943_v46 = vld [vmem:[#allocation10 + $0x5c4] ss:$28 sps:$4 sm:$0xff]  }
 0x4fb   : > { %v8767_v18 = vadd.f32 %v8766_v45, %v24566_v2  ;;  %9131 = vmatprep.subr.bf16.mxu1 %v21910_v17  ;;  %v21920_v2 = vld [vmem:[#allocation10 + $0x6a0] ss:$28 sps:$4 sm:$0xff]   ;;  %v21949_v45 = vld [vmem:[#allocation10 + $0x58c] ss:$28 sps:$4 sm:$0xff]  }
 0x4fc   : > { %v8768_v28 = vpop.f32.mrf.mxu0  ;;  %v21944_v0 = vld [vmem:[#allocation10 + $0x860] ss:$28 sps:$4 sm:$0xff]  }
 0x4fd   : > { %v8769_v19 = vadd.f32 %v8768_v28, %v24569_v61  ;;  %9097 = vmatpush2.bf16.msra.mxu0 %v21905_v52  ;;  %v21923_v61 = vld [vmem:[#allocation10 + $0x208] ss:$28 sps:$4 sm:$0xff]   ;;  %v21956_v28 = vld [vmem:[#allocation10 + $0x7f0] ss:$28 sps:$4 sm:$0xff]  }
 0x4fe   : > { %9132 = vmatpush1.bf16.msra.mxu1 %v21908_v9  ;;  %v8770_v58 = vpop.f32.mrf.mxu0  ;;  %9098 = vmatprep.subr.bf16.mxu0 %v21913_v29  ;;  %v21952_v52 = vld [vmem:[#allocation10 + $0x82c] ss:$28 sps:$4 sm:$0xff]  }
 0x4ff   : > { %v8771_v35 = vadd.f32 %v8770_v58, %v24571_v31  ;;  %9133 = vmatprep.subr.bf16.mxu1 %v21916_v26  ;;  %v21929_v31 = vld [vmem:[#allocation10 + $0x1d0] ss:$28 sps:$4 sm:$0xff]   ;;  %v21950_v9 = vld [vmem:[#allocation10 + $0x828] ss:$28 sps:$4 sm:$0xff]  }
 0x500   : > { %v21947_v29 = vld [vmem:[#allocation10 + $0x588] ss:$28 sps:$4 sm:$0xff]   ;;  %v21955_v26 = vld [vmem:[#allocation10 + $0x554] ss:$28 sps:$4 sm:$0xff]  }
 0x501   : > { %9099 = vmatpush2.bf16.msra.mxu0 %v21911_v44  ;;  %v21961_v44 = vld [vmem:[#allocation10 + $0x7bc] ss:$28 sps:$4 sm:$0xff]   ;;  %v21964_v58 = vld [vmem:[#allocation10 + $0xbac] ss:$28 sps:$4 sm:$0xff]  }
 0x502   : > { %9134 = vmatpush2.bf16.msra.mxu1 %v21914_v56  ;;  %9100 = vmatprep.subr.bf16.mxu0 %v21919_v13  ;;  %v21959_v56 = vld [vmem:[#allocation10 + $0x7b8] ss:$28 sps:$4 sm:$0xff]   ;;  %v21962_v13 = vld [vmem:[#allocation10 + $0xba8] ss:$28 sps:$4 sm:$0xff]  }
 0x503   : > { %9135 = vmatprep.subr.bf16.mxu1 %v21922_v14  ;;  %v21970_v14 = vld [vmem:[#allocation10 + $0xb74] ss:$28 sps:$4 sm:$0xff]  }
 0x505   : > { %9101 = vmatpush2.bf16.msra.mxu0 %v21917_v21  ;;  %v21965_v21 = vld [vmem:[#allocation10 + $0x780] ss:$28 sps:$4 sm:$0xff]  }
 0x506   : > { %9136 = vmatpush2.bf16.msra.mxu1 %v21920_v2  ;;  %9102 = vmatprep.subr.bf16.mxu0 %v21925_v5  ;;  %v21968_v2 = vld [vmem:[#allocation10 + $0xb70] ss:$28 sps:$4 sm:$0xff]  }
 0x507   : > { %9137 = vmatprep.subr.bf16.mxu1 %v21928_v50  ;;  %v21973_v5 = vld [vmem:[#allocation10 + $0x74c] ss:$28 sps:$4 sm:$0xff]   ;;  %v21976_v50 = vld [vmem:[#allocation10 + $0xb3c] ss:$28 sps:$4 sm:$0xff]  }
 0x509   : > { %v8807_v15 = vpop.f32.mrf.mxu1  ;;  %9103 = vmatpush2.bf16.msra.mxu0 %v21923_v61  ;;  %v21971_v61 = vld [vmem:[#allocation10 + $0x748] ss:$28 sps:$4 sm:$0xff]  }
 0x50a   : > { %v24704_v55 = vadd.f32 %v8807_v15, %v8765_v20  ;;  %9138 = vmatpush2.bf16.msra.mxu1 %v21926_v37  ;;  %9104 = vmatprep.subr.bf16.mxu0 %v21931_v27  ;;  %v21941_v20 = vld [vmem:[#allocation10 + $0x5c0] ss:$28 sps:$4 sm:$0xff]   ;;  %v21974_v37 = vld [vmem:[#allocation10 + $0xb38] ss:$28 sps:$4 sm:$0xff]   ;;  %v21977_v15 = vld [vmem:[#allocation10 + $0x710] ss:$28 sps:$4 sm:$0xff]  }
 0x50b   : > { %v8809_v32 = vpop.f32.mrf.mxu1  ;;  %9139 = vmatprep.subr.bf16.mxu1 %v21934_v54  ;;  %v21979_v27 = vld [vmem:[#allocation10 + $0x714] ss:$28 sps:$4 sm:$0xff]   ;;  %v21982_v54 = vld [vmem:[#allocation10 + $0xb04] ss:$28 sps:$4 sm:$0xff]  }
 0x50c   : > { %v24706_v43 = vadd.f32 %v8809_v32, %v8767_v18  ;;  %v21958_v18 = vld [vmem:[#allocation10 + $0x7f4] ss:$28 sps:$4 sm:$0xff]  }
 0x50d   : > { %v8811_v4 = vpop.f32.mrf.mxu1  ;;  %9105 = vmatpush2.bf16.msra.mxu0 %v21929_v31  ;;  %v21980_v31 = vld [vmem:[#allocation10 + $0xb00] ss:$28 sps:$4 sm:$0xff]   ;;  %v21983_v32 = vld [vmem:[#allocation10 + $0xa58] ss:$28 sps:$4 sm:$0xff]  }
 0x50e   : > { %v24708_v47 = vadd.f32 %v8811_v4, %v8769_v19  ;;  %9140 = vmatpush2.bf16.msra.mxu1 %v21932_v59  ;;  %9160 = vmatprep.subr.bf16.mxu0 %v21940_v36  ;;  %v21953_v19 = vld [vmem:[#allocation10 + $0x550] ss:$28 sps:$4 sm:$0xff]   ;;  %v21985_v59 = vld [vmem:[#allocation10 + $0xa5c] ss:$28 sps:$4 sm:$0xff]   ;;  %v21991_v4 = vld [vmem:[#allocation10 + $0xa24] ss:$28 sps:$4 sm:$0xff]  }
 0x50f   : > { %v8813_v39 = vpop.f32.mrf.mxu1  ;;  %9141 = vmatprep.subr.bf16.mxu1 %v21937_v30  ;;  %v21988_v36 = vld [vmem:[#allocation10 + $0xacc] ss:$28 sps:$4 sm:$0xff]  }
 0x510   : > { %v24710_v17 = vadd.f32 %v8813_v39, %v8771_v35  ;;  %9107 = vmatmul.mubr.bf16.vlgmr.msra.gmra.mxu0 %v24631_v24  ;;  %v21967_v35 = vld [vmem:[#allocation10 + $0x784] ss:$28 sps:$4 sm:$0xff]   ;;  %v21997_v39 = vld [vmem:[#allocation10 + $0x9ec] ss:$28 sps:$4 sm:$0xff]  }
 0x511   : > { %9161 = vmatpush1.bf16.msra.mxu0 %v21938_v53  ;;  %9192 = vmatprep.mubr.bf16.mxu0 %v24637_v48  ;;  %v21986_v30 = vld [vmem:[#allocation10 + $0xac8] ss:$28 sps:$4 sm:$0xff]   ;;  %v21994_v53 = vld [vmem:[#allocation10 + $0xa94] ss:$28 sps:$4 sm:$0xff]  }
 0x512   : > { %9142 = vmatpush2.bf16.msra.mxu1 %v21935_v40  ;;  %9162 = vmatprep.subr.bf16.mxu0 %v21946_v25  ;;  %v21989_v40 = vld [vmem:[#allocation10 + $0xa20] ss:$28 sps:$4 sm:$0xff]   ;;  %v21992_v25 = vld [vmem:[#allocation10 + $0xa90] ss:$28 sps:$4 sm:$0xff]  }
 0x513   : > { %9143 = vmatprep.subr.bf16.mxu1 %v21943_v46  ;;  %v21998_v46 = vld [vmem:[#allocation10 + $0x360] ss:$28 sps:$4 sm:$0xff]  }
 0x515   : > { %9163 = vmatpush1.bf16.msra.mxu0 %v21944_v0 }
 0x516   : > { %9144 = vmatpush2.bf16.msra.mxu1 %v21941_v20  ;;  %9164 = vmatprep.subr.bf16.mxu0 %v21952_v52  ;;  %v21995_v20 = vld [vmem:[#allocation10 + $0x9e8] ss:$28 sps:$4 sm:$0xff]   ;;  %v21999_v52 = vld [vmem:[#allocation10 + $0x1a0] ss:$28 sps:$4 sm:$0xff]  }
 0x517   : > { %9145 = vmatprep.subr.bf16.mxu1 %v21949_v45  ;;  %v22002_v45 = vld [vmem:[#allocation10 + $0x9b4] ss:$28 sps:$4 sm:$0xff]  }
 0x519   : > { %9165 = vmatpush1.bf16.msra.mxu0 %v21950_v9  ;;  %v22003_v9 = vld [vmem:[#allocation10 + $0x328] ss:$28 sps:$4 sm:$0xff]  }
 0x51a   : > { %9146 = vmatpush2.bf16.msra.mxu1 %v21947_v29  ;;  %9166 = vmatprep.subr.bf16.mxu0 %v21958_v18 }
 0x51b   : > { %9147 = vmatprep.subr.bf16.mxu1 %v21955_v26 }
 0x51d   : > { %9167 = vmatpush1.bf16.msra.mxu0 %v21956_v28  ;;  %v22000_v28 = vld [vmem:[#allocation10 + $0x9b0] ss:$28 sps:$4 sm:$0xff]  }
 0x51e   : > { %9148 = vmatpush2.bf16.msra.mxu1 %v21953_v19  ;;  %9168 = vmatprep.subr.bf16.mxu0 %v21961_v44  ;;  %v22004_v44 = vld [vmem:[#allocation10 + $0x168] ss:$28 sps:$4 sm:$0xff]  }
 0x51f   : > { %9207 = vmatprep.subr.bf16.mxu1 %v21964_v58  ;;  %v22007_v58 = vld [vmem:[#allocation10 + $0x97c] ss:$28 sps:$4 sm:$0xff]  }
 0x521   : > { %9150 = vmatmul.mubr.bf16.vlgmr.msra.gmra.mxu1 %v24643_v57  ;;  %9169 = vmatpush1.bf16.msra.mxu0 %v21959_v56  ;;  %v8893_v0 = vpop.f32.mrf.mxu1 }
 0x522   : > { %9208 = vmatpush1.bf16.msra.mxu1 %v21962_v13  ;;  %9170 = vmatprep.subr.bf16.mxu0 %v21967_v35  ;;  %v22008_v35 = vld [vmem:[#allocation10 + $0x2f0] ss:$28 sps:$4 sm:$0xff]  }
 0x523   : > { %9209 = vmatprep.subr.bf16.mxu1 %v21970_v14  ;;  %9235 = vmatprep.mubr.bf16.mxu1 %v25539_v1  ;;  %v8895_v29 = vpop.f32.mrf.mxu1 }
 0x525   : > { %9171 = vmatpush1.bf16.msra.mxu0 %v21965_v21  ;;  %v8897_v14 = vpop.f32.mrf.mxu1 }
 0x526   : > { %9210 = vmatpush1.bf16.msra.mxu1 %v21968_v2  ;;  %9172 = vmatprep.subr.bf16.mxu0 %v21973_v5  ;;  %v22005_v5 = vld [vmem:[#allocation10 + $0x978] ss:$28 sps:$4 sm:$0xff]  }
 0x527   : > { %9211 = vmatprep.subr.bf16.mxu1 %v21976_v50  ;;  %v22009_v50 = vld [vmem:[#allocation10 + $0x130] ss:$28 sps:$4 sm:$0xff]  }
 0x529   : > { %9173 = vmatpush1.bf16.msra.mxu0 %v21971_v61  ;;  %v22012_v61 = vld [vmem:[#allocation10 + $0x944] ss:$28 sps:$4 sm:$0xff]  }
 0x52a   : > { %9212 = vmatpush1.bf16.msra.mxu1 %v21974_v37  ;;  %9174 = vmatprep.subr.bf16.mxu0 %v21979_v27  ;;  %v22013_v27 = vld [vmem:[#allocation10 + $0x2b8] ss:$28 sps:$4 sm:$0xff]  }
 0x52b   : > { %9213 = vmatprep.subr.bf16.mxu1 %v21982_v54  ;;  %v8899_v54 = vpop.f32.mrf.mxu1 }
 0x52d   : > { %9175 = vmatpush1.bf16.msra.mxu0 %v21977_v15 }
 0x52e   : > { %9214 = vmatpush1.bf16.msra.mxu1 %v21980_v31  ;;  %9176 = vmatprep.subr.bf16.mxu0 %v21985_v59  ;;  %v22010_v31 = vld [vmem:[#allocation10 + $0x940] ss:$28 sps:$4 sm:$0xff]   ;;  %v22017_v59 = vld [vmem:[#allocation10 + $0x90c] ss:$28 sps:$4 sm:$0xff]  }
 0x52f   : > { %9215 = vmatprep.subr.bf16.mxu1 %v21988_v36  ;;  %v22018_v36 = vld [vmem:[#allocation10 + $0x280] ss:$28 sps:$4 sm:$0xff]  }
 0x531   : > { %9177 = vmatpush2.bf16.msra.mxu0 %v21983_v32  ;;  %v22015_v32 = vld [vmem:[#allocation10 + $0x908] ss:$28 sps:$4 sm:$0xff]  }
 0x532   : > { %9216 = vmatpush1.bf16.msra.mxu1 %v21986_v30  ;;  %9178 = vmatprep.subr.bf16.mxu0 %v21991_v4  ;;  %v22019_v30 = vld [vmem:[#allocation10 + $0xc0] ss:$28 sps:$4 sm:$0xff]   ;;  %v22022_v4 = vld [vmem:[#allocation10 + $0x8d4] ss:$28 sps:$4 sm:$0xff]  }
 0x533   : > { %9217 = vmatprep.subr.bf16.mxu1 %v21994_v53  ;;  %v22020_v53 = vld [vmem:[#allocation10 + $0x8d0] ss:$28 sps:$4 sm:$0xff]  }
 0x535   : > { %9179 = vmatpush2.bf16.msra.mxu0 %v21989_v40  ;;  %v22024_v40 = vld [vmem:[#allocation10 + $0x88] ss:$28 sps:$4 sm:$0xff]  }
 0x536   : > { %9218 = vmatpush1.bf16.msra.mxu1 %v21992_v25  ;;  %9180 = vmatprep.subr.bf16.mxu0 %v21997_v39  ;;  %v22026_v25 = vld [vmem:[#allocation10 + $0x6e0] ss:$28 sps:$4 sm:$0xff]   ;;  %v22025_v39 = vld [vmem:[#allocation10 + $0x210] ss:$28 sps:$4 sm:$0xff]  }
 0x537   : > { %19951 = vmatprep.subr.bf16.mxu1 %v21998_v46  ;;  %v22028_v46 = vld [vmem:[#allocation10 + $0x520] ss:$28 sps:$4 sm:$0xff]  }
 0x538   : > { %v8850_v18 = vpop.f32.mrf.mxu0 }
 0x539   : > { %v8851_v26 = vadd.f32 %v8850_v18, %v24704_v55  ;;  %18948 = vmatmul.mubr.msk.bf16.vlgmr.msra.gmra.mxu1 %vm1872_vm14, %v24653_v3  ;;  %9181 = vmatpush2.bf16.msra.mxu0 %v21995_v20  ;;  %v22030_v20 = vld [vmem:[#allocation10 + $0x6a8] ss:$28 sps:$4 sm:$0xff]   ;;  %v22034_v18 = vld [vmem:[#allocation10 + $0xa60] ss:$28 sps:$4 sm:$0xff]  }
 0x53a   : > { %19952 = vmatpush3.bf16.msra.mxu1 %v21999_v52  ;;  %9278 = vmatprep.mubr.bf16.mxu1 %v24589_v34  ;;  %v8852_v19 = vpop.f32.mrf.mxu0  ;;  %v22029_v52 = vld [vmem:[#allocation10 + $0x1d8] ss:$28 sps:$4 sm:$0xff]  }
 0x53b   : > { %v24720_v56 = vadd.f32 %v8893_v0, %v8851_v26  ;;  %v8853_v13 = vadd.f32 %v8852_v19, %v24706_v43  ;;  %9182 = vmatprep.subr.bf16.mxu0 %v22002_v45  ;;  %19953 = vmatprep.subr.bf16.mxu1 %v22003_v9  ;;  %v22027_v0 = vld [vmem:[#allocation10 + $0x50] ss:$28 sps:$4 sm:$0xff]   ;;  %v22032_v45 = vld [vmem:[#allocation10 + $0x4e8] ss:$28 sps:$4 sm:$0xff]   ;;  %v22031_v9 = vld [vmem:[#allocation10 + $0x18] ss:$28 sps:$4 sm:$0xff]  }
 0x53c   : > { %v8854_v55 = vpop.f32.mrf.mxu0  ;;  %v22035_v26 = vld [vmem:[#allocation10 + $0x4b0] ss:$28 sps:$4 sm:$0xff]   ;;  %v22037_v19 = vld [vmem:[#allocation10 + $0x638] ss:$28 sps:$4 sm:$0xff]  }
 0x53d   : > { %v24723_v21 = vadd.f32 %v8895_v29, %v8853_v13  ;;  %v8855_v2 = vadd.f32 %v8854_v55, %v24708_v47  ;;  %9183 = vmatpush2.bf16.msra.mxu0 %v22000_v28  ;;  %v22014_v47 = vld [vmem:[#allocation10 + $0xf8] ss:$28 sps:$4 sm:$0xff]   ;;  %v22033_v29 = vld [vmem:[#allocation10 + $0x670] ss:$28 sps:$4 sm:$0xff]   ;;  %v22036_v28 = vld [vmem:[#allocation10 + $0x8a0] ss:$28 sps:$4 sm:$0xff]  }
 0x53e   : > { %19954 = vmatpush3.bf16.msra.mxu1 %v22004_v44  ;;  %v8856_v34 = vpop.f32.mrf.mxu0  ;;  %9184 = vmatprep.subr.bf16.mxu0 %v22007_v58  ;;  %v22038_v44 = vld [vmem:[#allocation10 + $0xa28] ss:$28 sps:$4 sm:$0xff]   ;;  %v22039_v58 = vld [vmem:[#allocation10 + $0x478] ss:$28 sps:$4 sm:$0xff]   ;;  %v22041_v13 = vld [vmem:[#allocation10 + $0x600] ss:$28 sps:$4 sm:$0xff]  }
 0x53f   : > { %v24726_v37 = vadd.f32 %v8897_v14, %v8855_v2  ;;  %v8857_v43 = vadd.f32 %v8856_v34, %v24710_v17  ;;  %19955 = vmatprep.subr.bf16.mxu1 %v22008_v35  ;;  %v22023_v17 = vld [vmem:[#allocation10 + $0x248] ss:$28 sps:$4 sm:$0xff]   ;;  %v22042_v35 = vld [vmem:[#allocation10 + $0x9f0] ss:$28 sps:$4 sm:$0xff]   ;;  %v22043_v14 = vld [vmem:[#allocation10 + $0x440] ss:$28 sps:$4 sm:$0xff]  }
 0x540   : > { %v22044_v55 = vld [vmem:[#allocation10 + $0x830] ss:$28 sps:$4 sm:$0xff]   ;;  %v22045_v2 = vld [vmem:[#allocation10 + $0x5c8] ss:$28 sps:$4 sm:$0xff]  }
 0x541   : > { %v24729_v15 = vadd.f32 %v8899_v54, %v8857_v43  ;;  %9185 = vmatpush2.bf16.msra.mxu0 %v22005_v5  ;;  %v22046_v5 = vld [vmem:[#allocation10 + $0x9b8] ss:$28 sps:$4 sm:$0xff]  }
 0x542   : > { %19956 = vmatpush3.bf16.msra.mxu1 %v22009_v50  ;;  %9186 = vmatprep.subr.bf16.mxu0 %v22012_v61  ;;  %v22049_v61 = vld [vmem:[#allocation10 + $0x590] ss:$28 sps:$4 sm:$0xff]  }
 0x543   : > { %19957 = vmatprep.subr.bf16.mxu1 %v22013_v27  ;;  %v22050_v27 = vld [vmem:[#allocation10 + $0x980] ss:$28 sps:$4 sm:$0xff]  }
 0x545   : > { %9187 = vmatpush2.bf16.msra.mxu0 %v22010_v31 }
 0x546   : > { %19958 = vmatpush3.bf16.msra.mxu1 %v22014_v47  ;;  %9188 = vmatprep.subr.bf16.mxu0 %v22017_v59  ;;  %v22051_v47 = vld [vmem:[#allocation10 + $0x3d0] ss:$28 sps:$4 sm:$0xff]  }
 0x547   : > { %19959 = vmatprep.subr.bf16.mxu1 %v22018_v36  ;;  %v22052_v36 = vld [vmem:[#allocation10 + $0x7c0] ss:$28 sps:$4 sm:$0xff]  }
 0x549   : > { %9189 = vmatpush2.bf16.msra.mxu0 %v22015_v32  ;;  %v22053_v32 = vld [vmem:[#allocation10 + $0x558] ss:$28 sps:$4 sm:$0xff]  }
 0x54a   : > { %19960 = vmatpush3.bf16.msra.mxu1 %v22019_v30  ;;  %9190 = vmatprep.subr.bf16.mxu0 %v22022_v4 }
 0x54b   : > { %19961 = vmatprep.subr.bf16.mxu1 %v22023_v17  ;;  %v22055_v17 = vld [vmem:[#allocation10 + $0x398] ss:$28 sps:$4 sm:$0xff]  }
 0x54d   : > { %9191 = vmatpush2.bf16.msra.mxu0 %v22020_v53  ;;  %v22056_v53 = vld [vmem:[#allocation10 + $0x788] ss:$28 sps:$4 sm:$0xff]  }
 0x54e   : > { %19962 = vmatpush3.bf16.msra.mxu1 %v22024_v40  ;;  %19973 = vmatprep.subr.bf16.mxu0 %v22026_v25  ;;  %v22059_v40 = vld [vmem:[#allocation10 + $0xbb0] ss:$28 sps:$4 sm:$0xff]   ;;  %v22060_v25 = vld [vmem:[#allocation10 + $0x8d8] ss:$28 sps:$4 sm:$0xff]  }
 0x54f   : > { %19963 = vmatprep.subr.bf16.mxu1 %v22025_v39  ;;  %v22062_v39 = vld [vmem:[#allocation10 + $0xb78] ss:$28 sps:$4 sm:$0xff]  }
 0x550   : > { %9193 = vmatmul.mubr.bf16.vlgmr.msra.gmra.mxu0 %v24662_v10 }
 0x551   : > { %19974 = vmatpush3.bf16.msra.mxu0 %v22028_v46  ;;  %9319 = vmatprep.mubr.bf16.mxu0 %v24610_v23  ;;  %v22040_v23 = vld [vmem:[#allocation10 + $0x868] ss:$28 sps:$4 sm:$0xff]   ;;  %v22061_v46 = vld [vmem:[#allocation10 + $0x718] ss:$28 sps:$4 sm:$0xff]  }
 0x552   : > { %19964 = vmatpush3.bf16.msra.mxu1 %v22027_v0  ;;  %19975 = vmatprep.subr.bf16.mxu0 %v22030_v20  ;;  %v22065_v0 = vld [vmem:[#allocation10 + $0x192c] ss:$28 sps:$4 sm:$0xff]   ;;  %v24746_v20 = vld [vmem:[#allocation3 + $0x1c] sm:$0xff] }
 0x553   : > { %19965 = vmatprep.subr.bf16.mxu1 %v22029_v52 }
 0x555   : > { %19976 = vmatpush3.bf16.msra.mxu0 %v22032_v45  ;;  %v22063_v45 = vld [vmem:[#allocation10 + $0x1928] ss:$28 sps:$4 sm:$0xff]  }
 0x556   : > { %19966 = vmatpush3.bf16.msra.mxu1 %v22031_v9  ;;  %19977 = vmatprep.subr.bf16.mxu0 %v22033_v29  ;;  %v22069_v9 = vld [vmem:[#allocation10 + $0x18f4] ss:$28 sps:$4 sm:$0xff]  }
 0x557   : > { %19995 = vmatprep.subr.bf16.mxu1 %v22034_v18 }
 0x559   : > { %9279 = vmatmul.mubr.bf16.vlgmr.msra.gmra.mxu1 %v24631_v24  ;;  %19978 = vmatpush3.bf16.msra.mxu0 %v22035_v26  ;;  %v22047_v24 = vld [vmem:[#allocation10 + $0x408] ss:$28 sps:$4 sm:$0xff]  }
 0x55a   : > { %19996 = vmatpush3.bf16.msra.mxu1 %v22036_v28  ;;  %9360 = vmatprep.mubr.bf16.mxu1 %v24637_v48  ;;  %v22048_v48 = vld [vmem:[#allocation10 + $0x7f8] ss:$28 sps:$4 sm:$0xff]   ;;  %v22070_v28 = vld [vmem:[#allocation10 + $0xb08] ss:$28 sps:$4 sm:$0xff]  }
 0x55b   : > { %19979 = vmatprep.subr.bf16.mxu0 %v22037_v19  ;;  %19997 = vmatprep.subr.bf16.mxu1 %v22038_v44  ;;  %v22067_v44 = vld [vmem:[#allocation10 + $0x18f0] ss:$28 sps:$4 sm:$0xff]  }
 0x55d   : > { %19980 = vmatpush3.bf16.msra.mxu0 %v22039_v58 }
 0x55e   : > { %19998 = vmatpush3.bf16.msra.mxu1 %v22040_v23  ;;  %19981 = vmatprep.subr.bf16.mxu0 %v22041_v13  ;;  %v22073_v23 = vld [vmem:[#allocation10 + $0x18bc] ss:$28 sps:$4 sm:$0xff]  }
 0x55f   : > { %19999 = vmatprep.subr.bf16.mxu1 %v22042_v35 }
 0x561   : > { %v8936_v34 = vpop.f32.mrf.mxu1  ;;  %19982 = vmatpush3.bf16.msra.mxu0 %v22043_v14  ;;  %v22074_v14 = vld [vmem:[#allocation10 + $0xad0] ss:$28 sps:$4 sm:$0xff]  }
 0x562   : > { %v8937_v50 = vadd.f32 %v8936_v34, %v24616_v6  ;;  %20000 = vmatpush3.bf16.msra.mxu1 %v22044_v55  ;;  %19983 = vmatprep.subr.bf16.mxu0 %v22045_v2  ;;  %v22054_v6 = vld [vmem:[#allocation10 + $0x948] ss:$28 sps:$4 sm:$0xff]   ;;  %v22071_v55 = vld [vmem:[#allocation10 + $0x18b8] ss:$28 sps:$4 sm:$0xff]  }
 0x563   : > { %v8938_v43 = vpop.f32.mrf.mxu1  ;;  %20001 = vmatprep.subr.bf16.mxu1 %v22046_v5  ;;  %v22077_v5 = vld [vmem:[#allocation10 + $0x1884] ss:$28 sps:$4 sm:$0xff]  }
 0x564   : > { %v8939_v54 = vadd.f32 %v8938_v43, %v24619_v33  ;;  %v22057_v33 = vld [vmem:[#allocation10 + $0x910] ss:$28 sps:$4 sm:$0xff]   ;;  %v24765_v34 = vld [vmem:[#allocation3 + $0x8] sm:$0xee] }
 0x565   : > { %v8940_v31 = vpop.f32.mrf.mxu1  ;;  %19984 = vmatpush3.bf16.msra.mxu0 %v22047_v24  ;;  %v22078_v24 = vld [vmem:[#allocation10 + $0xa98] ss:$28 sps:$4 sm:$0xff]   ;;  %v24768_v43 = vld [vmem:[#allocation3 + $0x24] sm:$0xff] }
 0x566   : > { %v8941_v59 = vadd.f32 %v8940_v31, %v24622_v8  ;;  %20002 = vmatpush3.bf16.msra.mxu1 %v22048_v48  ;;  %19985 = vmatprep.subr.bf16.mxu0 %v22049_v61  ;;  %v22058_v8 = vld [vmem:[#allocation10 + $0x750] ss:$28 sps:$4 sm:$0xff]   ;;  %v22079_v31 = vld [vmem:[#allocation10 + $0x1848] ss:$28 sps:$4 sm:$0xff]  }
 0x567   : > { %v8942_v30 = vpop.f32.mrf.mxu1  ;;  %20003 = vmatprep.subr.bf16.mxu1 %v22050_v27  ;;  %v22084_v48 = vld [vmem:[#allocation10 + $0x1cac] ss:$28 sps:$4 sm:$0xff]   ;;  %v18953_v27 = vcombine.high %v24765_v34, %v24768_v43 }
 0x568   : > { %v8943_v4 = vadd.f32 %v8942_v30, %v24625_v62  ;;  %v24741_v62 = vld [vmem:[#allocation3] sm:$0xee]  ;;  %v22081_v61 = vld [vmem:[#allocation10 + $0x184c] ss:$28 sps:$4 sm:$0xff]  }
 0x569   : > { %19986 = vmatpush3.bf16.msra.mxu0 %v22051_v47  ;;  %v18951_v52 = vcombine.high %v24741_v62, %v24746_v20  ;;  %v22090_v47 = vld [vmem:[#allocation10 + $0x1c74] ss:$28 sps:$4 sm:$0xff]  }
 0x56a   : > { %20004 = vmatpush3.bf16.msra.mxu1 %v22052_v36  ;;  %19987 = vmatprep.subr.bf16.mxu0 %v22053_v32  ;;  %v22087_v36 = vld [vmem:[#allocation10 + $0x1814] ss:$28 sps:$4 sm:$0xff]  }
 0x56b   : > { %20005 = vmatprep.subr.bf16.mxu1 %v22054_v6  ;;  %v24751_v18 = vrot.slane %v18951_v52, 1  ;;  %v22088_v32 = vld [vmem:[#allocation10 + $0x1c70] ss:$28 sps:$4 sm:$0xff]   ;;  %v22096_v6 = vld [vmem:[#allocation10 + $0x1c3c] ss:$28 sps:$4 sm:$0xff]  }
 0x56c   : > { %v22085_v30 = vld [vmem:[#allocation10 + $0x1810] ss:$28 sps:$4 sm:$0xff]  }
 0x56d   : > { %19988 = vmatpush3.bf16.msra.mxu0 %v22055_v17  ;;  %v22094_v17 = vld [vmem:[#allocation10 + $0x1c38] ss:$28 sps:$4 sm:$0xff]  }
 0x56e   : > { %20006 = vmatpush3.bf16.msra.mxu1 %v22056_v53  ;;  %20643 = vmatprep.subr.bf16.mxu0 %v23218_v60  ;;  %v22091_v53 = vld [vmem:[#allocation10 + $0x17d8] ss:$28 sps:$4 sm:$0xff]  }
 0x56f   : > { %20007 = vmatprep.subr.bf16.mxu1 %v22057_v33  ;;  %v22102_v33 = vld [vmem:[#allocation10 + $0x1c04] ss:$28 sps:$4 sm:$0xff]   ;;  %v22114_v52 = vld [vmem:[#allocation10 + $0x1b94] ss:$28 sps:$4 sm:$0xff]  }
 0x570   : > { %9320 = vmatmul.mubr.bf16.vlgmr.msra.gmra.mxu0 %v24643_v57  ;;  %v22066_v57 = vld [vmem:[#allocation10 + $0xb40] ss:$28 sps:$4 sm:$0xff]  }
 0x571   : > { %20644 = vmatpush3.bf16.msra.mxu0 %v22059_v40  ;;  %20655 = vmatprep.mubr.msk.bf16.mxu0 %vm23219_vm6, %v23218_v60  ;;  %v22099_v40 = vld [vmem:[#allocation10 + $0x17a4] ss:$28 sps:$4 sm:$0xff]  }
 0x572   : > { %20008 = vmatpush3.bf16.msra.mxu1 %v22058_v8  ;;  %20645 = vmatprep.subr.bf16.mxu0 %v23218_v60  ;;  %v22097_v8 = vld [vmem:[#allocation10 + $0x17a0] ss:$28 sps:$4 sm:$0xff]  }
 0x573   : > { %20009 = vmatprep.subr.bf16.mxu1 %v22060_v25  ;;  %v22108_v25 = vld [vmem:[#allocation10 + $0x1bcc] ss:$28 sps:$4 sm:$0xff]  }
 0x575   : > { %20646 = vmatpush3.bf16.msra.mxu0 %v22062_v39  ;;  %v22105_v39 = vld [vmem:[#allocation10 + $0x1aec] ss:$28 sps:$4 sm:$0xff]  }
 0x576   : > { %20010 = vmatpush3.bf16.msra.mxu1 %v22061_v46  ;;  %20647 = vmatprep.subr.bf16.mxu0 %v23218_v60  ;;  %v22106_v46 = vld [vmem:[#allocation10 + $0x1bc8] ss:$28 sps:$4 sm:$0xff]  }
 0x577   : > { %11825 = vmatprep.subr.bf16.mxu1 %v22065_v0  ;;  %v22103_v0 = vld [vmem:[#allocation10 + $0x1ae8] ss:$28 sps:$4 sm:$0xff]  }
 0x578   : > { %v8979_v29 = vpop.f32.mrf.mxu0 }
 0x579   : > { %v24753_v26 = vadd.f32 %v8979_v29, %v8937_v50  ;;  %9361 = vmatmul.mubr.bf16.vlgmr.msra.gmra.mxu1 %v24662_v10  ;;  %20648 = vmatpush3.bf16.msra.mxu0 %v22066_v57  ;;  %v22075_v50 = vld [vmem:[#allocation10 + $0x1880] ss:$28 sps:$4 sm:$0xff]   ;;  %v22111_v57 = vld [vmem:[#allocation10 + $0x1ab4] ss:$28 sps:$4 sm:$0xff]  }
 0x57a   : > { %11826 = vmatpush1.bf16.msra.mxu1 %v22063_v45  ;;  %11857 = vmatprep.mubr.bf16.mxu1 %v24751_v18  ;;  %v8981_v19 = vpop.f32.mrf.mxu0  ;;  %v22112_v45 = vld [vmem:[#allocation10 + $0x1b90] ss:$28 sps:$4 sm:$0xff]   ;;  %v22120_v29 = vld [vmem:[#allocation10 + $0x1b5c] ss:$28 sps:$4 sm:$0xff]  }
 0x57b   : > { %v24757_v58 = vadd.f32 %v8981_v19, %v8939_v54  ;;  %20649 = vmatprep.subr.bf16.mxu0 %v23218_v60  ;;  %11827 = vmatprep.subr.bf16.mxu1 %v22069_v9  ;;  %v22082_v54 = vld [vmem:[#allocation10 + $0x1ca8] ss:$28 sps:$4 sm:$0xff]   ;;  %v22109_v9 = vld [vmem:[#allocation10 + $0x1ab0] ss:$28 sps:$4 sm:$0xff]  }
 0x57c   : > { %v8983_v13 = vpop.f32.mrf.mxu0 }
 0x57d   : > { %v24760_v35 = vadd.f32 %v8983_v13, %v8941_v59  ;;  %20650 = vmatpush3.bf16.msra.mxu0 %v22070_v28  ;;  %v24772_v59 = vrot.slane %v18953_v27, 1  ;;  %v22117_v28 = vld [vmem:[#allocation10 + $0x1a7c] ss:$28 sps:$4 sm:$0xff]   ;;  %v22126_v13 = vld [vmem:[#allocation10 + $0x1b24] ss:$28 sps:$4 sm:$0xff]  }
 0x57e   : > { %11828 = vmatpush1.bf16.msra.mxu1 %v22067_v44  ;;  %v8985_v10 = vpop.f32.mrf.mxu0  ;;  %20651 = vmatprep.subr.bf16.mxu0 %v23218_v60  ;;  %v22118_v44 = vld [vmem:[#allocation10 + $0x1b58] ss:$28 sps:$4 sm:$0xff]   ;;  %v22129_v27 = vld [vmem:[#allocation10 + $0x1a0c] ss:$28 sps:$4 sm:$0xff]  }
 0x57f   : > { %v24763_v2 = vadd.f32 %v8985_v10, %v8943_v4  ;;  %11829 = vmatprep.subr.bf16.mxu1 %v22073_v23  ;;  %v22093_v4 = vld [vmem:[#allocation10 + $0x17dc] ss:$28 sps:$4 sm:$0xff]  }
 0x580   : > { %v22115_v23 = vld [vmem:[#allocation10 + $0x1a78] ss:$28 sps:$4 sm:$0xff]  }
 0x581   : > { %20652 = vmatpush3.bf16.msra.mxu0 %v22074_v14  ;;  %v22123_v14 = vld [vmem:[#allocation10 + $0x1a44] ss:$28 sps:$4 sm:$0xff]  }
 0x582   : > { %11830 = vmatpush1.bf16.msra.mxu1 %v22071_v55  ;;  %20653 = vmatprep.subr.bf16.mxu0 %v23218_v60 }
 0x583   : > { %11831 = vmatprep.subr.bf16.mxu1 %v22077_v5  ;;  %v22124_v5 = vld [vmem:[#allocation10 + $0x1b20] ss:$28 sps:$4 sm:$0xff]  }
 0x585   : > { %20654 = vmatpush3.bf16.msra.mxu0 %v22078_v24 }
 0x586   : > { %11832 = vmatpush1.bf16.msra.mxu1 %v22075_v50  ;;  %11868 = vmatprep.subr.bf16.mxu0 %v22084_v48  ;;  %v22121_v50 = vld [vmem:[#allocation10 + $0x1a40] ss:$28 sps:$4 sm:$0xff]   ;;  %v22132_v48 = vld [vmem:[#allocation10 + $0x1e6c] ss:$28 sps:$4 sm:$0xff]  }
 0x587   : > { %11833 = vmatprep.subr.bf16.mxu1 %v22081_v61 }
 0x588   : > { %20656 = vmatmul.mubr.msk.bf16.vlgmr.msra.gmra.mxu0 %vm1872_vm14, %v24653_v3  ;;  %v22100_v3 = vld [vmem:[#allocation10 + $0x1c00] ss:$28 sps:$4 sm:$0xff]  }
 0x589   : > { %11869 = vmatpush1.bf16.msra.mxu0 %v22082_v54  ;;  %11900 = vmatprep.mubr.bf16.mxu0 %v24772_v59 }
 0x58a   : > { %11834 = vmatpush1.bf16.msra.mxu1 %v22079_v31  ;;  %11870 = vmatprep.subr.bf16.mxu0 %v22090_v47 }
 0x58b   : > { %11835 = vmatprep.subr.bf16.mxu1 %v22087_v36 }
 0x58d   : > { %11871 = vmatpush1.bf16.msra.mxu0 %v22088_v32  ;;  %v22130_v32 = vld [vmem:[#allocation10 + $0x1e68] ss:$28 sps:$4 sm:$0xff]  }
 0x58e   : > { %11836 = vmatpush1.bf16.msra.mxu1 %v22085_v30  ;;  %11872 = vmatprep.subr.bf16.mxu0 %v22096_v6 }
 0x58f   : > { %11837 = vmatprep.subr.bf16.mxu1 %v22093_v4  ;;  %v22138_v4 = vld [vmem:[#allocation10 + $0x1e34] ss:$28 sps:$4 sm:$0xff]  }
 0x590   : > { %v9065_v19 = vpop.f32.mrf.mxu0 }
 0x591   : > { %11873 = vmatpush1.bf16.msra.mxu0 %v22094_v17 }
 0x592   : > { %11838 = vmatpush1.bf16.msra.mxu1 %v22091_v53  ;;  %11874 = vmatprep.subr.bf16.mxu0 %v22102_v33  ;;  %v9067_v10 = vpop.f32.mrf.mxu0  ;;  %v22135_v53 = vld [vmem:[#allocation10 + $0x19d4] ss:$28 sps:$4 sm:$0xff]  }
 0x593   : > { %11839 = vmatprep.subr.bf16.mxu1 %v22099_v40 }
 0x594   : > { %v9069_v47 = vpop.f32.mrf.mxu0 }
 0x595   : > { %11875 = vmatpush1.bf16.msra.mxu0 %v22100_v3  ;;  %v22136_v3 = vld [vmem:[#allocation10 + $0x1e30] ss:$28 sps:$4 sm:$0xff]  }
 0x596   : > { %11840 = vmatpush1.bf16.msra.mxu1 %v22097_v8  ;;  %11876 = vmatprep.subr.bf16.mxu0 %v22108_v25  ;;  %v22133_v25 = vld [vmem:[#allocation10 + $0x19d0] ss:$28 sps:$4 sm:$0xff]  }
 0x597   : > { %11841 = vmatprep.subr.bf16.mxu1 %v22105_v39  ;;  %v22141_v39 = vld [vmem:[#allocation10 + $0x199c] ss:$28 sps:$4 sm:$0xff]  }
 0x599   : > { %11877 = vmatpush1.bf16.msra.mxu0 %v22106_v46  ;;  %v22142_v46 = vld [vmem:[#allocation10 + $0x1df8] ss:$28 sps:$4 sm:$0xff]  }
 0x59a   : > { %11842 = vmatpush2.bf16.msra.mxu1 %v22103_v0  ;;  %11878 = vmatprep.subr.bf16.mxu0 %v22114_v52  ;;  %v22139_v0 = vld [vmem:[#allocation10 + $0x1998] ss:$28 sps:$4 sm:$0xff]   ;;  %v22150_v52 = vld [vmem:[#allocation10 + $0x1dc4] ss:$28 sps:$4 sm:$0xff]  }
 0x59b   : > { %11843 = vmatprep.subr.bf16.mxu1 %v22111_v57  ;;  %v22147_v57 = vld [vmem:[#allocation10 + $0x1964] ss:$28 sps:$4 sm:$0xff]  }
 0x59d   : > { %11879 = vmatpush1.bf16.msra.mxu0 %v22112_v45  ;;  %v24789_v45 = vld [vmem:[#allocation3 + $0x10] sm:$0xee] }
 0x59e   : > { %11844 = vmatpush2.bf16.msra.mxu1 %v22109_v9  ;;  %11880 = vmatprep.subr.bf16.mxu0 %v22120_v29  ;;  %v22145_v9 = vld [vmem:[#allocation10 + $0x1960] ss:$28 sps:$4 sm:$0xff]   ;;  %v22153_v29 = vld [vmem:[#allocation10 + $0x1d8c] ss:$28 sps:$4 sm:$0xff]  }
 0x59f   : > { %11845 = vmatprep.subr.bf16.mxu1 %v22117_v28  ;;  %v18950_v28 = vcombine.low %v24741_v62, %v24746_v20  ;;  %v22157_v62 = vld [vmem:[#allocation10 + $0x1d50] ss:$28 sps:$4 sm:$0xff]  }
 0x5a0   : > { %v22160_v20 = vld [vmem:[#allocation10 + $0x1ff0] ss:$28 sps:$4 sm:$0xff]  }
 0x5a1   : > { %v9022_v55 = vpop.f32.mrf.mxu1  ;;  %11881 = vmatpush1.bf16.msra.mxu0 %v22118_v44  ;;  %v24793_v44 = vld [vmem:[#allocation3 + $0x2c] sm:$0xff] }
 0x5a2   : > { %v9023_v24 = vadd.f32 %v9022_v55, %v24753_v26  ;;  %11846 = vmatpush2.bf16.msra.mxu1 %v22115_v23  ;;  %11882 = vmatprep.subr.bf16.mxu0 %v22126_v13  ;;  %v22127_v26 = vld [vmem:[#allocation10 + $0x1a08] ss:$28 sps:$4 sm:$0xff]   ;;  %v18955_v23 = vcombine.high %v24789_v45, %v24793_v44  ;;  %v22159_v55 = vld [vmem:[#allocation10 + $0x1d54] ss:$28 sps:$4 sm:$0xff]  }
 0x5a3   : > { %v9024_v61 = vpop.f32.mrf.mxu1  ;;  %11847 = vmatprep.subr.bf16.mxu1 %v22123_v14  ;;  %v22151_v13 = vld [vmem:[#allocation10 + $0x1d88] ss:$28 sps:$4 sm:$0xff]  }
 0x5a4   : > { %v24778_v54 = vadd.f32 %v9065_v19, %v9023_v24  ;;  %v9025_v31 = vadd.f32 %v9024_v61, %v24757_v58  ;;  %v9071_v58 = vpop.f32.mrf.mxu0  ;;  %v22156_v19 = vld [vmem:[#allocation10 + $0x202c] ss:$28 sps:$4 sm:$0xff]   ;;  %v24799_v24 = vrot.slane %v18955_v23, 1  ;;  %v22163_v61 = vld [vmem:[#allocation10 + $0x1d18] ss:$28 sps:$4 sm:$0xff]  }
 0x5a5   : > { %v9026_v36 = vpop.f32.mrf.mxu1  ;;  %11883 = vmatpush1.bf16.msra.mxu0 %v22124_v5  ;;  %v22154_v14 = vld [vmem:[#allocation10 + $0x2028] ss:$28 sps:$4 sm:$0xff]   ;;  %v22162_v5 = vld [vmem:[#allocation10 + $0x1ff4] ss:$28 sps:$4 sm:$0xff]  }
 0x5a6   : > { %v24781_v30 = vadd.f32 %v9067_v10, %v9025_v31  ;;  %v9027_v6 = vadd.f32 %v9026_v36, %v24760_v35  ;;  %11848 = vmatpush2.bf16.msra.mxu1 %v22121_v50  ;;  %11884 = vmatprep.subr.bf16.mxu0 %v22132_v48  ;;  %v22144_v35 = vld [vmem:[#allocation10 + $0x1dfc] ss:$28 sps:$4 sm:$0xff]   ;;  %v24797_v10 = vrot.slane %v18950_v28, 1  ;;  %v22171_v31 = vld [vmem:[#allocation10 + $0x1ce4] ss:$28 sps:$4 sm:$0xff]  }
 0x5a7   : > { %v9028_v17 = vpop.f32.mrf.mxu1  ;;  %11849 = vmatprep.subr.bf16.mxu1 %v22129_v27  ;;  %v22165_v50 = vld [vmem:[#allocation10 + $0x1d1c] ss:$28 sps:$4 sm:$0xff]  }
 0x5a8   : > { %v24784_v33 = vadd.f32 %v9069_v47, %v9027_v6  ;;  %v9029_v40 = vadd.f32 %v9028_v17, %v24763_v2  ;;  %v22148_v2 = vld [vmem:[#allocation10 + $0x1dc0] ss:$28 sps:$4 sm:$0xff]   ;;  %v22166_v27 = vld [vmem:[#allocation10 + $0x1fb8] ss:$28 sps:$4 sm:$0xff]   ;;  %v18952_v6 = vcombine.low %v24765_v34, %v24768_v43  ;;  %v22181_v34 = vld [vmem:[#allocation10 + $0x1f10] ss:$28 sps:$4 sm:$0xff]  }
 0x5a9   : > { %11885 = vmatpush2.bf16.msra.mxu0 %v22130_v32  ;;  %v22168_v48 = vld [vmem:[#allocation10 + $0x1fbc] ss:$28 sps:$4 sm:$0xff]   ;;  %v22174_v47 = vld [vmem:[#allocation10 + $0x1f84] ss:$28 sps:$4 sm:$0xff]   ;;  %v22192_v43 = vld [vmem:[#allocation10 + $0x22cc] ss:$28 sps:$4 sm:$0xff]  }
 0x5aa   : > { %v24787_v8 = vadd.f32 %v9071_v58, %v9029_v40  ;;  %11850 = vmatpush2.bf16.msra.mxu1 %v22127_v26  ;;  %11886 = vmatprep.subr.bf16.mxu0 %v22138_v4  ;;  %v22169_v36 = vld [vmem:[#allocation10 + $0x1ce0] ss:$28 sps:$4 sm:$0xff]   ;;  %v22177_v4 = vld [vmem:[#allocation10 + $0x1f4c] ss:$28 sps:$4 sm:$0xff]   ;;  %v22178_v17 = vld [vmem:[#allocation10 + $0x2338] ss:$28 sps:$4 sm:$0xff]  }
 0x5ab   : > { %11851 = vmatprep.subr.bf16.mxu1 %v22135_v53  ;;  %v22172_v32 = vld [vmem:[#allocation10 + $0x1f80] ss:$28 sps:$4 sm:$0xff]   ;;  %v24805_v53 = vrot.slane %v18952_v6, 1  ;;  %v22175_v40 = vld [vmem:[#allocation10 + $0x1f48] ss:$28 sps:$4 sm:$0xff]  }
 0x5ac   : > { %v22180_v26 = vld [vmem:[#allocation10 + $0x233c] ss:$28 sps:$4 sm:$0xff]   ;;  %v22186_v58 = vld [vmem:[#allocation10 + $0x2304] ss:$28 sps:$4 sm:$0xff]  }
 0x5ad   : > { %11887 = vmatpush2.bf16.msra.mxu0 %v22136_v3  ;;  %v22183_v3 = vld [vmem:[#allocation10 + $0x1f14] ss:$28 sps:$4 sm:$0xff]   ;;  %v22193_v28 = vld [vmem:[#allocation10 + $0x1ea0] ss:$28 sps:$4 sm:$0xff]  }
 0x5ae   : > { %11852 = vmatpush2.bf16.msra.mxu1 %v22133_v25  ;;  %11888 = vmatprep.subr.bf16.mxu0 %v22144_v35  ;;  %v22184_v25 = vld [vmem:[#allocation10 + $0x2300] ss:$28 sps:$4 sm:$0xff]   ;;  %v22211_v6 = vld [vmem:[#allocation10 + $0x2178] ss:$28 sps:$4 sm:$0xff]  }
 0x5af   : > { %11853 = vmatprep.subr.bf16.mxu1 %v22141_v39  ;;  %v22189_v35 = vld [vmem:[#allocation10 + $0x1edc] ss:$28 sps:$4 sm:$0xff]   ;;  %v22190_v39 = vld [vmem:[#allocation10 + $0x22c8] ss:$28 sps:$4 sm:$0xff]  }
 0x5b1   : > { %11889 = vmatpush2.bf16.msra.mxu0 %v22142_v46  ;;  %v22187_v46 = vld [vmem:[#allocation10 + $0x1ed8] ss:$28 sps:$4 sm:$0xff]  }
 0x5b2   : > { %11854 = vmatpush2.bf16.msra.mxu1 %v22139_v0  ;;  %11890 = vmatprep.subr.bf16.mxu0 %v22150_v52  ;;  %v22198_v0 = vld [vmem:[#allocation10 + $0x2294] ss:$28 sps:$4 sm:$0xff]   ;;  %v22195_v52 = vld [vmem:[#allocation10 + $0x1ea4] ss:$28 sps:$4 sm:$0xff]  }
 0x5b3   : > { %11855 = vmatprep.subr.bf16.mxu1 %v22147_v57 }
 0x5b5   : > { %11891 = vmatpush2.bf16.msra.mxu0 %v22148_v2 }
 0x5b6   : > { %11856 = vmatpush2.bf16.msra.mxu1 %v22145_v9  ;;  %11892 = vmatprep.subr.bf16.mxu0 %v22153_v29  ;;  %v22196_v9 = vld [vmem:[#allocation10 + $0x2290] ss:$28 sps:$4 sm:$0xff]  }
 0x5b7   : > { %11911 = vmatprep.subr.bf16.mxu1 %v22156_v19  ;;  %v22204_v19 = vld [vmem:[#allocation10 + $0x225c] ss:$28 sps:$4 sm:$0xff]  }
 0x5b9   : > { %11858 = vmatmul.mubr.bf16.vlgmr.msra.gmra.mxu1 %v24797_v10  ;;  %11893 = vmatpush2.bf16.msra.mxu0 %v22151_v13  ;;  %v22201_v13 = vld [vmem:[#allocation10 + $0x21ec] ss:$28 sps:$4 sm:$0xff]  }
 0x5ba   : > { %11912 = vmatpush1.bf16.msra.mxu1 %v22154_v14  ;;  %11943 = vmatprep.mubr.bf16.mxu1 %v24799_v24 }
 0x5bb   : > { %11894 = vmatprep.subr.bf16.mxu0 %v22159_v55  ;;  %11913 = vmatprep.subr.bf16.mxu1 %v22162_v5  ;;  %v22202_v5 = vld [vmem:[#allocation10 + $0x2258] ss:$28 sps:$4 sm:$0xff]  }
 0x5bd   : > { %11895 = vmatpush2.bf16.msra.mxu0 %v22157_v62 }
 0x5be   : > { %11914 = vmatpush1.bf16.msra.mxu1 %v22160_v20  ;;  %11896 = vmatprep.subr.bf16.mxu0 %v22165_v50  ;;  %v22199_v20 = vld [vmem:[#allocation10 + $0x21e8] ss:$28 sps:$4 sm:$0xff]  }
 0x5bf   : > { %11915 = vmatprep.subr.bf16.mxu1 %v22168_v48  ;;  %v22207_v48 = vld [vmem:[#allocation10 + $0x21b4] ss:$28 sps:$4 sm:$0xff]  }
 0x5c1   : > { %11897 = vmatpush2.bf16.msra.mxu0 %v22163_v61  ;;  %v9413_v61 = vld [vmem:[#allocation3 + $0x18] sm:$0xe] }
 0x5c2   : > { %11916 = vmatpush1.bf16.msra.mxu1 %v22166_v27  ;;  %11898 = vmatprep.subr.bf16.mxu0 %v22171_v31  ;;  %v22208_v27 = vld [vmem:[#allocation10 + $0x2220] ss:$28 sps:$4 sm:$0xff]   ;;  %v22615_v31 = vld [vmem:[#allocation3 + $0x34] sm:$0xf] }
 0x5c3   : > { %11917 = vmatprep.subr.bf16.mxu1 %v22174_v47  ;;  %v18956_v47 = vcombine.low %v9413_v61, %v22615_v31  ;;  %v22253_v61 = vld [vmem:[#allocation10 + $0x1cb4] ss:$28 sps:$4 sm:$0xff]  }
 0x5c5   : > { %11899 = vmatpush2.bf16.msra.mxu0 %v22169_v36  ;;  %v22213_v36 = vld [vmem:[#allocation10 + $0x217c] ss:$28 sps:$4 sm:$0xff]  }
 0x5c6   : > { %11918 = vmatpush1.bf16.msra.mxu1 %v22172_v32  ;;  %11958 = vmatprep.subr.bf16.mxu0 %v22180_v26  ;;  %v22215_v32 = vld [vmem:[#allocation10 + $0x1930] ss:$28 sps:$4 sm:$0xff]   ;;  %v24813_v26 = vrot.slane %v18956_v47, 1 }
 0x5c7   : > { %11919 = vmatprep.subr.bf16.mxu1 %v22177_v4  ;;  %v22220_v4 = vld [vmem:[#allocation10 + $0x2144] ss:$28 sps:$4 sm:$0xff]   ;;  %v22256_v47 = vld [vmem:[#allocation10 + $0x17ac] ss:$28 sps:$4 sm:$0xff]  }
 0x5c8   : > { %11901 = vmatmul.mubr.bf16.vlgmr.msra.gmra.mxu0 %v24805_v53 }
 0x5c9   : > { %11959 = vmatpush1.bf16.msra.mxu0 %v22178_v17  ;;  %11986 = vmatprep.mubr.bf16.mxu0 %v25539_v1 }
 0x5ca   : > { %11920 = vmatpush1.bf16.msra.mxu1 %v22175_v40  ;;  %11960 = vmatprep.subr.bf16.mxu0 %v22186_v58  ;;  %v22221_v40 = vld [vmem:[#allocation10 + $0x18f8] ss:$28 sps:$4 sm:$0xff]  }
 0x5cb   : > { %11921 = vmatprep.subr.bf16.mxu1 %v22183_v3  ;;  %v22218_v3 = vld [vmem:[#allocation10 + $0x2140] ss:$28 sps:$4 sm:$0xff]  }
 0x5cd   : > { %11961 = vmatpush1.bf16.msra.mxu0 %v22184_v25  ;;  %v22229_v25 = vld [vmem:[#allocation10 + $0x18c4] ss:$28 sps:$4 sm:$0xff]  }
 0x5ce   : > { %11922 = vmatpush1.bf16.msra.mxu1 %v22181_v34  ;;  %11962 = vmatprep.subr.bf16.mxu0 %v22192_v43  ;;  %v22226_v43 = vld [vmem:[#allocation10 + $0x210c] ss:$28 sps:$4 sm:$0xff]  }
 0x5cf   : > { %11923 = vmatprep.subr.bf16.mxu1 %v22189_v35 }
 0x5d0   : > { %v9108_v57 = vpop.f32.mrf.mxu0 }
 0x5d1   : > { %v9109_v2 = vadd.f32 %v9108_v57, %v24675_v22  ;;  %11963 = vmatpush1.bf16.msra.mxu0 %v22190_v39  ;;  %v22210_v22 = vld [vmem:[#allocation10 + $0x2224] ss:$28 sps:$4 sm:$0xff]   ;;  %v22235_v57 = vld [vmem:[#allocation10 + $0x188c] ss:$28 sps:$4 sm:$0xff]  }
 0x5d2   : > { %11924 = vmatpush1.bf16.msra.mxu1 %v22187_v46  ;;  %v9110_v29 = vpop.f32.mrf.mxu0  ;;  %11964 = vmatprep.subr.bf16.mxu0 %v22198_v0  ;;  %v22227_v46 = vld [vmem:[#allocation10 + $0x18c0] ss:$28 sps:$4 sm:$0xff]  }
 0x5d3   : > { %v9111_v23 = vadd.f32 %v9110_v29, %v24678_v11  ;;  %11925 = vmatprep.subr.bf16.mxu1 %v22195_v52  ;;  %v22205_v11 = vld [vmem:[#allocation10 + $0x21b0] ss:$28 sps:$4 sm:$0xff]   ;;  %v22224_v52 = vld [vmem:[#allocation10 + $0x2108] ss:$28 sps:$4 sm:$0xff]  }
 0x5d4   : > { %v9112_v14 = vpop.f32.mrf.mxu0 }
 0x5d5   : > { %v9113_v55 = vadd.f32 %v9112_v14, %v24681_v63  ;;  %11965 = vmatpush1.bf16.msra.mxu0 %v22196_v9  ;;  %v22217_v63 = vld [vmem:[#allocation10 + $0x1934] ss:$28 sps:$4 sm:$0xff]  }
 0x5d6   : > { %11926 = vmatpush1.bf16.msra.mxu1 %v22193_v28  ;;  %v9114_v62 = vpop.f32.mrf.mxu0  ;;  %11966 = vmatprep.subr.bf16.mxu0 %v22204_v19  ;;  %v22232_v9 = vld [vmem:[#allocation10 + $0x20d4] ss:$28 sps:$4 sm:$0xff]   ;;  %v22233_v28 = vld [vmem:[#allocation10 + $0x1888] ss:$28 sps:$4 sm:$0xff]  }
 0x5d7   : > { %v9115_v50 = vadd.f32 %v9114_v62, %v24684_v7  ;;  %11927 = vmatprep.subr.bf16.mxu1 %v22201_v13  ;;  %v22223_v7 = vld [vmem:[#allocation10 + $0x18fc] ss:$28 sps:$4 sm:$0xff]   ;;  %v22230_v19 = vld [vmem:[#allocation10 + $0x20d0] ss:$28 sps:$4 sm:$0xff]   ;;  %v22244_v62 = vld [vmem:[#allocation10 + $0x2064] ss:$28 sps:$4 sm:$0xff]  }
 0x5d8   : > { %v22238_v13 = vld [vmem:[#allocation10 + $0x209c] ss:$28 sps:$4 sm:$0xff]   ;;  %v22239_v14 = vld [vmem:[#allocation10 + $0x1850] ss:$28 sps:$4 sm:$0xff]  }
 0x5d9   : > { %11967 = vmatpush1.bf16.msra.mxu0 %v22202_v5  ;;  %v22247_v5 = vld [vmem:[#allocation10 + $0x181c] ss:$28 sps:$4 sm:$0xff]  }
 0x5da   : > { %11928 = vmatpush2.bf16.msra.mxu1 %v22199_v20  ;;  %11968 = vmatprep.subr.bf16.mxu0 %v22210_v22  ;;  %v22245_v20 = vld [vmem:[#allocation10 + $0x1818] ss:$28 sps:$4 sm:$0xff]   ;;  %v22242_v22 = vld [vmem:[#allocation10 + $0x2060] ss:$28 sps:$4 sm:$0xff]  }
 0x5db   : > { %11929 = vmatprep.subr.bf16.mxu1 %v22207_v48  ;;  %v18954_v48 = vcombine.low %v24789_v45, %v24793_v44  ;;  %v22262_v45 = vld [vmem:[#allocation10 + $0x1af4] ss:$28 sps:$4 sm:$0xff]   ;;  %v22265_v44 = vld [vmem:[#allocation10 + $0x1c44] ss:$28 sps:$4 sm:$0xff]  }
 0x5dd   : > { %11969 = vmatpush1.bf16.msra.mxu0 %v22208_v27  ;;  %v22248_v27 = vld [vmem:[#allocation10 + $0x17e0] ss:$28 sps:$4 sm:$0xff]   ;;  %v24828_v31 = vrot.slane %v18954_v48, 1  ;;  %v22293_v48 = vld [vmem:[#allocation10 + $0x1b28] ss:$28 sps:$4 sm:$0xff]  }
 0x5de   : > { %11930 = vmatpush2.bf16.msra.mxu1 %v22205_v11  ;;  %11997 = vmatprep.subr.bf16.mxu0 %v22217_v63  ;;  %v22251_v11 = vld [vmem:[#allocation10 + $0x1cb0] ss:$28 sps:$4 sm:$0xff]   ;;  %v22259_v63 = vld [vmem:[#allocation10 + $0x1c7c] ss:$28 sps:$4 sm:$0xff]  }
 0x5df   : > { %11931 = vmatprep.subr.bf16.mxu1 %v22213_v36  ;;  %v22254_v36 = vld [vmem:[#allocation10 + $0x17a8] ss:$28 sps:$4 sm:$0xff]  }
 0x5e0   : > { %19335 = vmatmul.mubr.msk.bf16.vlgmr.msra.gmra.mxu0 %vm1872_vm14, %v24813_v26 }
 0x5e1   : > { %v9151_v17 = vpop.f32.mrf.mxu1  ;;  %11998 = vmatpush1.bf16.msra.mxu0 %v22215_v32  ;;  %12029 = vmatprep.mubr.bf16.mxu0 %v24751_v18  ;;  %v22257_v32 = vld [vmem:[#allocation10 + $0x1c78] ss:$28 sps:$4 sm:$0xff]  }
 0x5e2   : > { %v24818_v58 = vadd.f32 %v9151_v17, %v9109_v2  ;;  %11932 = vmatpush2.bf16.msra.mxu1 %v22211_v6  ;;  %11999 = vmatprep.subr.bf16.mxu0 %v22223_v7  ;;  %v22260_v6 = vld [vmem:[#allocation10 + $0x1af0] ss:$28 sps:$4 sm:$0xff]   ;;  %v22263_v7 = vld [vmem:[#allocation10 + $0x1c40] ss:$28 sps:$4 sm:$0xff]  }
 0x5e3   : > { %v9153_v34 = vpop.f32.mrf.mxu1  ;;  %11933 = vmatprep.subr.bf16.mxu1 %v22220_v4  ;;  %v22268_v4 = vld [vmem:[#allocation10 + $0x1abc] ss:$28 sps:$4 sm:$0xff]   ;;  %v22271_v17 = vld [vmem:[#allocation10 + $0x1c0c] ss:$28 sps:$4 sm:$0xff]  }
 0x5e4   : > { %v24820_v35 = vadd.f32 %v9153_v34, %v9111_v23  ;;  %v22241_v23 = vld [vmem:[#allocation10 + $0x1854] ss:$28 sps:$4 sm:$0xff]  }
 0x5e5   : > { %v9155_v39 = vpop.f32.mrf.mxu1  ;;  %12000 = vmatpush1.bf16.msra.mxu0 %v22221_v40  ;;  %v22266_v40 = vld [vmem:[#allocation10 + $0x1ab8] ss:$28 sps:$4 sm:$0xff]  }
 0x5e6   : > { %v24822_v0 = vadd.f32 %v9155_v39, %v9113_v55  ;;  %11934 = vmatpush2.bf16.msra.mxu1 %v22218_v3  ;;  %12001 = vmatprep.subr.bf16.mxu0 %v22229_v25  ;;  %v22236_v55 = vld [vmem:[#allocation10 + $0x2098] ss:$28 sps:$4 sm:$0xff]   ;;  %v22269_v3 = vld [vmem:[#allocation10 + $0x1c08] ss:$28 sps:$4 sm:$0xff]   ;;  %v22275_v39 = vld [vmem:[#allocation10 + $0x1bd0] ss:$28 sps:$4 sm:$0xff]  }
 0x5e7   : > { %v9157_v2 = vpop.f32.mrf.mxu1  ;;  %11935 = vmatprep.subr.bf16.mxu1 %v22226_v43  ;;  %v22274_v25 = vld [vmem:[#allocation10 + $0x1a84] ss:$28 sps:$4 sm:$0xff]   ;;  %v22277_v34 = vld [vmem:[#allocation10 + $0x1bd4] ss:$28 sps:$4 sm:$0xff]  }
 0x5e8   : > { %v24824_v29 = vadd.f32 %v9157_v2, %v9115_v50  ;;  %v22250_v50 = vld [vmem:[#allocation10 + $0x17e4] ss:$28 sps:$4 sm:$0xff]   ;;  %v22281_v2 = vld [vmem:[#allocation10 + $0x1b98] ss:$28 sps:$4 sm:$0xff]  }
 0x5e9   : > { %12002 = vmatpush1.bf16.msra.mxu0 %v22227_v46  ;;  %v22272_v43 = vld [vmem:[#allocation10 + $0x1a80] ss:$28 sps:$4 sm:$0xff]   ;;  %v22280_v46 = vld [vmem:[#allocation10 + $0x1a4c] ss:$28 sps:$4 sm:$0xff]  }
 0x5ea   : > { %11936 = vmatpush2.bf16.msra.mxu1 %v22224_v52  ;;  %12003 = vmatprep.subr.bf16.mxu0 %v22235_v57  ;;  %v22283_v52 = vld [vmem:[#allocation10 + $0x1b9c] ss:$28 sps:$4 sm:$0xff]   ;;  %v22278_v57 = vld [vmem:[#allocation10 + $0x1a48] ss:$28 sps:$4 sm:$0xff]  }
 0x5eb   : > { %11937 = vmatprep.subr.bf16.mxu1 %v22232_v9  ;;  %v22286_v9 = vld [vmem:[#allocation10 + $0x1a14] ss:$28 sps:$4 sm:$0xff]  }
 0x5ed   : > { %12004 = vmatpush1.bf16.msra.mxu0 %v22233_v28 }
 0x5ee   : > { %11938 = vmatpush2.bf16.msra.mxu1 %v22230_v19  ;;  %12005 = vmatprep.subr.bf16.mxu0 %v22241_v23  ;;  %v22289_v19 = vld [vmem:[#allocation10 + $0x1b64] ss:$28 sps:$4 sm:$0xff]   ;;  %v22284_v23 = vld [vmem:[#allocation10 + $0x1a10] ss:$28 sps:$4 sm:$0xff]  }
 0x5ef   : > { %11939 = vmatprep.subr.bf16.mxu1 %v22238_v13  ;;  %v22287_v13 = vld [vmem:[#allocation10 + $0x1b60] ss:$28 sps:$4 sm:$0xff]  }
 0x5f1   : > { %12006 = vmatpush1.bf16.msra.mxu0 %v22239_v14  ;;  %v22292_v14 = vld [vmem:[#allocation10 + $0x19dc] ss:$28 sps:$4 sm:$0xff]  }
 0x5f2   : > { %11940 = vmatpush2.bf16.msra.mxu1 %v22236_v55  ;;  %12007 = vmatprep.subr.bf16.mxu0 %v22247_v5  ;;  %v22295_v5 = vld [vmem:[#allocation10 + $0x1b2c] ss:$28 sps:$4 sm:$0xff]  }
 0x5f3   : > { %11941 = vmatprep.subr.bf16.mxu1 %v22244_v62 }
 0x5f5   : > { %12008 = vmatpush1.bf16.msra.mxu0 %v22245_v20 }
 0x5f6   : > { %11942 = vmatpush2.bf16.msra.mxu1 %v22242_v22  ;;  %12009 = vmatprep.subr.bf16.mxu0 %v22250_v50  ;;  %v22290_v22 = vld [vmem:[#allocation10 + $0x19d8] ss:$28 sps:$4 sm:$0xff]  }
 0x5f7   : > { %12040 = vmatprep.subr.bf16.mxu1 %v22253_v61  ;;  %v22298_v61 = vld [vmem:[#allocation10 + $0x19a4] ss:$28 sps:$4 sm:$0xff]  }
 0x5f9   : > { %11944 = vmatmul.mubr.bf16.vlgmr.msra.gmra.mxu1 %v24828_v31  ;;  %12010 = vmatpush1.bf16.msra.mxu0 %v22248_v27  ;;  %v9237_v28 = vpop.f32.mrf.mxu1 }
 0x5fa   : > { %12041 = vmatpush1.bf16.msra.mxu1 %v22251_v11  ;;  %12072 = vmatprep.mubr.bf16.mxu1 %v24772_v59 }
 0x5fb   : > { %12011 = vmatprep.subr.bf16.mxu0 %v22256_v47  ;;  %12042 = vmatprep.subr.bf16.mxu1 %v22259_v63  ;;  %v9239_v55 = vpop.f32.mrf.mxu1  ;;  %v22301_v63 = vld [vmem:[#allocation10 + $0x1e74] ss:$28 sps:$4 sm:$0xff]  }
 0x5fd   : > { %12012 = vmatpush1.bf16.msra.mxu0 %v22254_v36  ;;  %v9241_v27 = vpop.f32.mrf.mxu1 }
 0x5fe   : > { %12043 = vmatpush1.bf16.msra.mxu1 %v22257_v32  ;;  %12013 = vmatprep.subr.bf16.mxu0 %v22262_v45 }
 0x5ff   : > { %12044 = vmatprep.subr.bf16.mxu1 %v22265_v44 }
 0x601   : > { %12014 = vmatpush2.bf16.msra.mxu0 %v22260_v6  ;;  %v22299_v6 = vld [vmem:[#allocation10 + $0x1e70] ss:$28 sps:$4 sm:$0xff]  }
 0x602   : > { %12045 = vmatpush1.bf16.msra.mxu1 %v22263_v7  ;;  %12015 = vmatprep.subr.bf16.mxu0 %v22268_v4  ;;  %v22304_v7 = vld [vmem:[#allocation10 + $0x196c] ss:$28 sps:$4 sm:$0xff]   ;;  %v9243_v4 = vpop.f32.mrf.mxu1 }
 0x603   : > { %12046 = vmatprep.subr.bf16.mxu1 %v22271_v17 }
 0x605   : > { %12016 = vmatpush2.bf16.msra.mxu0 %v22266_v40 }
 0x606   : > { %12047 = vmatpush1.bf16.msra.mxu1 %v22269_v3  ;;  %12017 = vmatprep.subr.bf16.mxu0 %v22274_v25 }
 0x607   : > { %12048 = vmatprep.subr.bf16.mxu1 %v22277_v34  ;;  %v22302_v34 = vld [vmem:[#allocation10 + $0x1968] ss:$28 sps:$4 sm:$0xff]  }
 0x609   : > { %12018 = vmatpush2.bf16.msra.mxu0 %v22272_v43  ;;  %v22313_v43 = vld [vmem:[#allocation10 + $0x2034] ss:$28 sps:$4 sm:$0xff]  }
 0x60a   : > { %12049 = vmatpush1.bf16.msra.mxu1 %v22275_v39  ;;  %12019 = vmatprep.subr.bf16.mxu0 %v22280_v46  ;;  %v22310_v46 = vld [vmem:[#allocation10 + $0x1e04] ss:$28 sps:$4 sm:$0xff]  }
 0x60b   : > { %12050 = vmatprep.subr.bf16.mxu1 %v22283_v52 }
 0x60d   : > { %12020 = vmatpush2.bf16.msra.mxu0 %v22278_v57 }
 0x60e   : > { %12051 = vmatpush1.bf16.msra.mxu1 %v22281_v2  ;;  %12021 = vmatprep.subr.bf16.mxu0 %v22286_v9  ;;  %v22311_v2 = vld [vmem:[#allocation10 + $0x2030] ss:$28 sps:$4 sm:$0xff]   ;;  %v22308_v9 = vld [vmem:[#allocation10 + $0x1e00] ss:$28 sps:$4 sm:$0xff]  }
 0x60f   : > { %12052 = vmatprep.subr.bf16.mxu1 %v22289_v19 }
 0x610   : > { %v9194_v62 = vpop.f32.mrf.mxu0 }
 0x611   : > { %v9195_v20 = vadd.f32 %v9194_v62, %v24818_v58  ;;  %12022 = vmatpush2.bf16.msra.mxu0 %v22284_v23  ;;  %v22296_v58 = vld [vmem:[#allocation10 + $0x19a0] ss:$28 sps:$4 sm:$0xff]   ;;  %v22316_v23 = vld [vmem:[#allocation10 + $0x1dcc] ss:$28 sps:$4 sm:$0xff]   ;;  %v22322_v62 = vld [vmem:[#allocation10 + $0x1d94] ss:$28 sps:$4 sm:$0xff]  }
 0x612   : > { %12053 = vmatpush1.bf16.msra.mxu1 %v22287_v13  ;;  %v9196_v50 = vpop.f32.mrf.mxu0  ;;  %12023 = vmatprep.subr.bf16.mxu0 %v22292_v14  ;;  %v22317_v14 = vld [vmem:[#allocation10 + $0x1ff8] ss:$28 sps:$4 sm:$0xff]  }
 0x613   : > { %v24833_v11 = vadd.f32 %v9237_v28, %v9195_v20  ;;  %v9197_v47 = vadd.f32 %v9196_v50, %v24820_v35  ;;  %12054 = vmatprep.subr.bf16.mxu1 %v22295_v5  ;;  %v22307_v35 = vld [vmem:[#allocation10 + $0x1e3c] ss:$28 sps:$4 sm:$0xff]   ;;  %v22314_v5 = vld [vmem:[#allocation10 + $0x1dc8] ss:$28 sps:$4 sm:$0xff]  }
 0x614   : > { %v9198_v36 = vpop.f32.mrf.mxu0  ;;  %v22319_v28 = vld [vmem:[#allocation10 + $0x1ffc] ss:$28 sps:$4 sm:$0xff]   ;;  %v22331_v50 = vld [vmem:[#allocation10 + $0x1f8c] ss:$28 sps:$4 sm:$0xff]  }
 0x615   : > { %v24836_v32 = vadd.f32 %v9239_v55, %v9197_v47  ;;  %v9199_v45 = vadd.f32 %v9198_v36, %v24822_v0  ;;  %12024 = vmatpush2.bf16.msra.mxu0 %v22290_v22  ;;  %v22305_v0 = vld [vmem:[#allocation10 + $0x1e38] ss:$28 sps:$4 sm:$0xff]   ;;  %v22323_v20 = vld [vmem:[#allocation10 + $0x1fc0] ss:$28 sps:$4 sm:$0xff]   ;;  %v22320_v22 = vld [vmem:[#allocation10 + $0x1d90] ss:$28 sps:$4 sm:$0xff]  }
 0x616   : > { %12055 = vmatpush1.bf16.msra.mxu1 %v22293_v48  ;;  %v9200_v44 = vpop.f32.mrf.mxu0  ;;  %12025 = vmatprep.subr.bf16.mxu0 %v22298_v61  ;;  %v22328_v48 = vld [vmem:[#allocation10 + $0x1d5c] ss:$28 sps:$4 sm:$0xff]   ;;  %v22329_v61 = vld [vmem:[#allocation10 + $0x1f88] ss:$28 sps:$4 sm:$0xff]  }
 0x617   : > { %v24839_v17 = vadd.f32 %v9241_v27, %v9199_v45  ;;  %v9201_v40 = vadd.f32 %v9200_v44, %v24824_v29  ;;  %12056 = vmatprep.subr.bf16.mxu1 %v22301_v63  ;;  %v22326_v27 = vld [vmem:[#allocation10 + $0x1d58] ss:$28 sps:$4 sm:$0xff]   ;;  %v22334_v47 = vld [vmem:[#allocation10 + $0x1d24] ss:$28 sps:$4 sm:$0xff]   ;;  %v22335_v63 = vld [vmem:[#allocation10 + $0x1f50] ss:$28 sps:$4 sm:$0xff]  }
 0x618   : > { %v22332_v36 = vld [vmem:[#allocation10 + $0x1d20] ss:$28 sps:$4 sm:$0xff]  }
 0x619   : > { %v24842_v3 = vadd.f32 %v9243_v4, %v9201_v40  ;;  %v19967_v25 = vpop.f32.mrf.mxu1  ;;  %12026 = vmatpush2.bf16.msra.mxu0 %v22296_v58  ;;  %v22343_v45 = vld [vmem:[#allocation10 + $0x1f1c] ss:$28 sps:$4 sm:$0xff]   ;;  %v22340_v58 = vld [vmem:[#allocation10 + $0x1cec] ss:$28 sps:$4 sm:$0xff]   ;;  %v22346_v40 = vld [vmem:[#allocation10 + $0x1ee4] ss:$28 sps:$4 sm:$0xff]  }
 0x61a   : > { %12057 = vmatpush2.bf16.msra.mxu1 %v22299_v6  ;;  %12027 = vmatprep.subr.bf16.mxu0 %v22304_v7  ;;  %v22341_v6 = vld [vmem:[#allocation10 + $0x1f18] ss:$28 sps:$4 sm:$0xff]   ;;  %v22338_v4 = vld [vmem:[#allocation10 + $0x1ce8] ss:$28 sps:$4 sm:$0xff]  }
 0x61b   : > { %v19968_v39 = vpop.f32.mrf.mxu1  ;;  %12058 = vmatprep.subr.bf16.mxu1 %v22307_v35 }
 0x61c   : > { %v19969_v52 = vadd.f32 %v19968_v39, %v19967_v25  ;;  %v22349_v25 = vld [vmem:[#allocation10 + $0x2344] ss:$28 sps:$4 sm:$0xff]  }
 0x61d   : > { %v19970_v57 = vpop.f32.mrf.mxu1  ;;  %12028 = vmatpush2.bf16.msra.mxu0 %v22302_v34 }
 0x61e   : > { %v9281_v29 = vadd.f32 %v19969_v52, %v24691_v16  ;;  %12059 = vmatpush2.bf16.msra.mxu1 %v22305_v0  ;;  %12083 = vmatprep.subr.bf16.mxu0 %v22313_v43  ;;  %v22325_v16 = vld [vmem:[#allocation10 + $0x1fc4] ss:$28 sps:$4 sm:$0xff]   ;;  %v22352_v52 = vld [vmem:[#allocation10 + $0x1eac] ss:$28 sps:$4 sm:$0xff]  }
 0x61f   : > { %v19971_v19 = vpop.f32.mrf.mxu1  ;;  %12060 = vmatprep.subr.bf16.mxu1 %v22310_v46  ;;  %v22344_v43 = vld [vmem:[#allocation10 + $0x1ee0] ss:$28 sps:$4 sm:$0xff]  }
 0x620   : > { %v19972_v13 = vadd.f32 %v19971_v19, %v19970_v57  ;;  %12030 = vmatmul.mubr.bf16.vlgmr.msra.gmra.mxu0 %v24797_v10  ;;  %v22347_v46 = vld [vmem:[#allocation10 + $0x2340] ss:$28 sps:$4 sm:$0xff]   ;;  %v22350_v19 = vld [vmem:[#allocation10 + $0x1ea8] ss:$28 sps:$4 sm:$0xff]  }
 0x621   : > { %12084 = vmatpush1.bf16.msra.mxu0 %v22311_v2  ;;  %12115 = vmatprep.mubr.bf16.mxu0 %v24799_v24  ;;  %v22355_v2 = vld [vmem:[#allocation10 + $0x230c] ss:$28 sps:$4 sm:$0xff]  }
 0x622   : > { %v9284_v55 = vadd.f32 %v19972_v13, %v24693_v12  ;;  %12061 = vmatpush2.bf16.msra.mxu1 %v22308_v9  ;;  %12085 = vmatprep.subr.bf16.mxu0 %v22319_v28  ;;  %v22337_v12 = vld [vmem:[#allocation10 + $0x1f54] ss:$28 sps:$4 sm:$0xff]  }
 0x623   : > { %12062 = vmatprep.subr.bf16.mxu1 %v22316_v23  ;;  %v22353_v23 = vld [vmem:[#allocation10 + $0x2308] ss:$28 sps:$4 sm:$0xff]  }
 0x625   : > { %12086 = vmatpush1.bf16.msra.mxu0 %v22317_v14  ;;  %v22361_v14 = vld [vmem:[#allocation10 + $0x22d4] ss:$28 sps:$4 sm:$0xff]  }
 0x626   : > { %12063 = vmatpush2.bf16.msra.mxu1 %v22314_v5  ;;  %12087 = vmatprep.subr.bf16.mxu0 %v22325_v16  ;;  %v22356_v16 = vld [vmem:[#allocation10 + $0x21f0] ss:$28 sps:$4 sm:$0xff]  }
 0x627   : > { %12064 = vmatprep.subr.bf16.mxu1 %v22322_v62  ;;  %v22364_v62 = vld [vmem:[#allocation10 + $0x21bc] ss:$28 sps:$4 sm:$0xff]  }
 0x629   : > { %12088 = vmatpush1.bf16.msra.mxu0 %v22323_v20 }
 0x62a   : > { %12065 = vmatpush2.bf16.msra.mxu1 %v22320_v22  ;;  %12089 = vmatprep.subr.bf16.mxu0 %v22331_v50  ;;  %v22367_v22 = vld [vmem:[#allocation10 + $0x229c] ss:$28 sps:$4 sm:$0xff]  }
 0x62b   : > { %12066 = vmatprep.subr.bf16.mxu1 %v22328_v48  ;;  %v22362_v48 = vld [vmem:[#allocation10 + $0x21b8] ss:$28 sps:$4 sm:$0xff]  }
 0x62d   : > { %12090 = vmatpush1.bf16.msra.mxu0 %v22329_v61  ;;  %v22365_v61 = vld [vmem:[#allocation10 + $0x2298] ss:$28 sps:$4 sm:$0xff]  }
 0x62e   : > { %12067 = vmatpush2.bf16.msra.mxu1 %v22326_v27  ;;  %12091 = vmatprep.subr.bf16.mxu0 %v22337_v12  ;;  %v22370_v27 = vld [vmem:[#allocation10 + $0x2184] ss:$28 sps:$4 sm:$0xff]  }
 0x62f   : > { %12068 = vmatprep.subr.bf16.mxu1 %v22334_v47 }
 0x630   : > { %v19989_v44 = vpop.f32.mrf.mxu0 }
 0x631   : > { %12092 = vmatpush1.bf16.msra.mxu0 %v22335_v63  ;;  %v22373_v63 = vld [vmem:[#allocation10 + $0x2264] ss:$28 sps:$4 sm:$0xff]  }
 0x632   : > { %12069 = vmatpush2.bf16.msra.mxu1 %v22332_v36  ;;  %v19990_v7 = vpop.f32.mrf.mxu0  ;;  %12093 = vmatprep.subr.bf16.mxu0 %v22343_v45  ;;  %v22368_v36 = vld [vmem:[#allocation10 + $0x2180] ss:$28 sps:$4 sm:$0xff]  }
 0x633   : > { %v19991_v35 = vadd.f32 %v19990_v7, %v19989_v44  ;;  %12070 = vmatprep.subr.bf16.mxu1 %v22340_v58  ;;  %v22371_v45 = vld [vmem:[#allocation10 + $0x2260] ss:$28 sps:$4 sm:$0xff]   ;;  %v22376_v58 = vld [vmem:[#allocation10 + $0x214c] ss:$28 sps:$4 sm:$0xff]  }
 0x634   : > { %v19992_v34 = vpop.f32.mrf.mxu0 }
 0x635   : > { %v9322_v0 = vadd.f32 %v19991_v35, %v9281_v29  ;;  %12094 = vmatpush1.bf16.msra.mxu0 %v22341_v6  ;;  %v22358_v29 = vld [vmem:[#allocation10 + $0x21f4] ss:$28 sps:$4 sm:$0xff]   ;;  %v22379_v6 = vld [vmem:[#allocation10 + $0x222c] ss:$28 sps:$4 sm:$0xff]  }
 0x636   : > { %12071 = vmatpush2.bf16.msra.mxu1 %v22338_v4  ;;  %v19993_v39 = vpop.f32.mrf.mxu0  ;;  %12095 = vmatprep.subr.bf16.mxu0 %v22346_v40  ;;  %v22374_v40 = vld [vmem:[#allocation10 + $0x2148] ss:$28 sps:$4 sm:$0xff]  }
 0x637   : > { %v19994_v57 = vadd.f32 %v19993_v39, %v19992_v34  ;;  %12130 = vmatprep.subr.bf16.mxu1 %v22349_v25  ;;  %v22377_v25 = vld [vmem:[#allocation10 + $0x2228] ss:$28 sps:$4 sm:$0xff]   ;;  %v22382_v34 = vld [vmem:[#allocation10 + $0x2114] ss:$28 sps:$4 sm:$0xff]  }
 0x639   : > { %v9325_v9 = vadd.f32 %v19994_v57, %v9284_v55  ;;  %v20011_v28 = vpop.f32.mrf.mxu1  ;;  %12073 = vmatmul.mubr.bf16.vlgmr.msra.gmra.mxu1 %v24805_v53  ;;  %12096 = vmatpush1.bf16.msra.mxu0 %v22344_v43  ;;  %v22359_v55 = vld [vmem:[#allocation10 + $0x22d0] ss:$28 sps:$4 sm:$0xff]   ;;  %v22385_v43 = vld [vmem:[#allocation10 + $0x193c] ss:$28 sps:$4 sm:$0xff]  }
 0x63a   : > { %12131 = vmatpush1.bf16.msra.mxu1 %v22347_v46  ;;  %12097 = vmatprep.subr.bf16.mxu0 %v22352_v52  ;;  %v22380_v52 = vld [vmem:[#allocation10 + $0x2110] ss:$28 sps:$4 sm:$0xff]   ;;  %v22383_v57 = vld [vmem:[#allocation10 + $0x1938] ss:$28 sps:$4 sm:$0xff]  }
 0x63b   : > { %v20012_v13 = vpop.f32.mrf.mxu1  ;;  %12132 = vmatprep.subr.bf16.mxu1 %v22355_v2  ;;  %12158 = vmatprep.mubr.bf16.mxu1 %v25539_v1  ;;  %v22388_v2 = vld [vmem:[#allocation10 + $0x20dc] ss:$28 sps:$4 sm:$0xff]  }
 0x63c   : > { %v20013_v47 = vadd.f32 %v20012_v13, %v20011_v28  ;;  %v22386_v28 = vld [vmem:[#allocation10 + $0x20d8] ss:$28 sps:$4 sm:$0xff]   ;;  %v22392_v13 = vld [vmem:[#allocation10 + $0x20a0] ss:$28 sps:$4 sm:$0xff]  }
 0x63d   : > { %v20014_v5 = vpop.f32.mrf.mxu1  ;;  %12098 = vmatpush1.bf16.msra.mxu0 %v22350_v19  ;;  %v22389_v19 = vld [vmem:[#allocation10 + $0x1900] ss:$28 sps:$4 sm:$0xff]  }
 0x63e   : > { %12133 = vmatpush1.bf16.msra.mxu1 %v22353_v23  ;;  %12099 = vmatprep.subr.bf16.mxu0 %v22358_v29  ;;  %v9363_v44 = vadd.f32 %v20013_v47, %v9322_v0  ;;  %v22394_v23 = vld [vmem:[#allocation10 + $0x20a4] ss:$28 sps:$4 sm:$0xff]   ;;  %v22397_v29 = vld [vmem:[#allocation10 + $0x18cc] ss:$28 sps:$4 sm:$0xff]  }
 0x63f   : > { %v20015_v20 = vpop.f32.mrf.mxu1  ;;  %12134 = vmatprep.subr.bf16.mxu1 %v22361_v14  ;;  %v22395_v14 = vld [vmem:[#allocation10 + $0x18c8] ss:$28 sps:$4 sm:$0xff]   ;;  %v22410_v47 = vld [vmem:[#allocation10 + $0x1820] ss:$28 sps:$4 sm:$0xff]  }
 0x640   : > { %v20016_v50 = vadd.f32 %v20015_v20, %v20014_v5  ;;  %v22400_v5 = vld [vmem:[#allocation10 + $0x206c] ss:$28 sps:$4 sm:$0xff]   ;;  %v22409_v20 = vld [vmem:[#allocation10 + $0x1cbc] ss:$28 sps:$4 sm:$0xff]  }
 0x641   : > { %12100 = vmatpush2.bf16.msra.mxu0 %v22356_v16  ;;  %v22403_v16 = vld [vmem:[#allocation10 + $0x1894] ss:$28 sps:$4 sm:$0xff]  }
 0x642   : > { %12135 = vmatpush1.bf16.msra.mxu1 %v22359_v55  ;;  %12101 = vmatprep.subr.bf16.mxu0 %v22364_v62  ;;  %v9366_v12 = vadd.f32 %v20016_v50, %v9325_v9  ;;  %v22391_v9 = vld [vmem:[#allocation10 + $0x1904] ss:$28 sps:$4 sm:$0xff]   ;;  %v22401_v62 = vld [vmem:[#allocation10 + $0x1890] ss:$28 sps:$4 sm:$0xff]   ;;  %v22407_v50 = vld [vmem:[#allocation10 + $0x1cb8] ss:$28 sps:$4 sm:$0xff]  }
 0x643   : > { %12136 = vmatprep.subr.bf16.mxu1 %v22367_v22  ;;  %v22398_v55 = vld [vmem:[#allocation10 + $0x2068] ss:$28 sps:$4 sm:$0xff]   ;;  %v22406_v22 = vld [vmem:[#allocation10 + $0x185c] ss:$28 sps:$4 sm:$0xff]  }
 0x645   : > { %12102 = vmatpush2.bf16.msra.mxu0 %v22362_v48  ;;  %v22404_v48 = vld [vmem:[#allocation10 + $0x1858] ss:$28 sps:$4 sm:$0xff]  }
 0x646   : > { %12137 = vmatpush1.bf16.msra.mxu1 %v22365_v61  ;;  %12103 = vmatprep.subr.bf16.mxu0 %v22370_v27  ;;  %v22415_v61 = vld [vmem:[#allocation10 + $0x1c84] ss:$28 sps:$4 sm:$0xff]  }
 0x647   : > { %12138 = vmatprep.subr.bf16.mxu1 %v22373_v63  ;;  %v22412_v27 = vld [vmem:[#allocation10 + $0x1824] ss:$28 sps:$4 sm:$0xff]   ;;  %v22421_v63 = vld [vmem:[#allocation10 + $0x1c4c] ss:$28 sps:$4 sm:$0xff]  }
 0x648   : > { %v9403_v7 = vpop.f32.mrf.mxu0 }
 0x649   : > { %v24850_v4 = vadd.f32 %v9403_v7, %v9363_v44  ;;  %12104 = vmatpush2.bf16.msra.mxu0 %v22368_v36  ;;  %v22418_v36 = vld [vmem:[#allocation10 + $0x17ec] ss:$28 sps:$4 sm:$0xff]   ;;  %v22427_v44 = vld [vmem:[#allocation10 + $0x1c14] ss:$28 sps:$4 sm:$0xff]  }
 0x64a   : > { %12139 = vmatpush1.bf16.msra.mxu1 %v22371_v45  ;;  %v20657_v35 = vpop.f32.mrf.mxu0  ;;  %12105 = vmatprep.subr.bf16.mxu0 %v22376_v58  ;;  %v22419_v45 = vld [vmem:[#allocation10 + $0x1c48] ss:$28 sps:$4 sm:$0xff]   ;;  %v22425_v7 = vld [vmem:[#allocation10 + $0x1c10] ss:$28 sps:$4 sm:$0xff]  }
 0x64b   : > { %12140 = vmatprep.subr.bf16.mxu1 %v22379_v6  ;;  %v22416_v58 = vld [vmem:[#allocation10 + $0x17e8] ss:$28 sps:$4 sm:$0xff]   ;;  %v22424_v6 = vld [vmem:[#allocation10 + $0x17b4] ss:$28 sps:$4 sm:$0xff]   ;;  %v22433_v35 = vld [vmem:[#allocation10 + $0x1bdc] ss:$28 sps:$4 sm:$0xff]  }
 0x64c   : > { %v9406_v39 = vpop.f32.mrf.mxu0 }
 0x64d   : > { %v24852_v46 = vadd.f32 %v9406_v39, %v9366_v12  ;;  %12106 = vmatpush2.bf16.msra.mxu0 %v22374_v40  ;;  %v22413_v12 = vld [vmem:[#allocation10 + $0x1c80] ss:$28 sps:$4 sm:$0xff]   ;;  %v22422_v40 = vld [vmem:[#allocation10 + $0x17b0] ss:$28 sps:$4 sm:$0xff]  }
 0x64e   : > { %12141 = vmatpush1.bf16.msra.mxu1 %v22377_v25  ;;  %v20658_v0 = vpop.f32.mrf.mxu0  ;;  %12107 = vmatprep.subr.bf16.mxu0 %v22382_v34  ;;  %v22430_v25 = vld [vmem:[#allocation10 + $0x1afc] ss:$28 sps:$4 sm:$0xff]   ;;  %v22439_v39 = vld [vmem:[#allocation10 + $0x1ba4] ss:$28 sps:$4 sm:$0xff]  }
 0x64f   : > { %12169 = vmatprep.subr.bf16.mxu1 %v22385_v43  ;;  %v22431_v34 = vld [vmem:[#allocation10 + $0x1bd8] ss:$28 sps:$4 sm:$0xff]   ;;  %v22437_v0 = vld [vmem:[#allocation10 + $0x1ba0] ss:$28 sps:$4 sm:$0xff]  }
 0x650   : > { %v22428_v43 = vld [vmem:[#allocation10 + $0x1af8] ss:$28 sps:$4 sm:$0xff]  }
 0x651   : > { %19336 = vmatmul.mubr.msk.bf16.vlgmr.msra.gmra.mxu1 %vm1872_vm14, %v24813_v26  ;;  %12108 = vmatpush2.bf16.msra.mxu0 %v22380_v52  ;;  %v22436_v52 = vld [vmem:[#allocation10 + $0x1ac4] ss:$28 sps:$4 sm:$0xff]  }
 0x652   : > { %12170 = vmatpush1.bf16.msra.mxu1 %v22383_v57  ;;  %12201 = vmatprep.mubr.bf16.mxu1 %v24751_v18  ;;  %v22434_v57 = vld [vmem:[#allocation10 + $0x1ac0] ss:$28 sps:$4 sm:$0xff]  }
 0x653   : > { %12109 = vmatprep.subr.bf16.mxu0 %v22388_v2  ;;  %12171 = vmatprep.subr.bf16.mxu1 %v22391_v9  ;;  %v22445_v2 = vld [vmem:[#allocation10 + $0x1b6c] ss:$28 sps:$4 sm:$0xff]  }
 0x654   : > { %v22442_v9 = vld [vmem:[#allocation10 + $0x1a8c] ss:$28 sps:$4 sm:$0xff]  }
 0x655   : > { %12110 = vmatpush2.bf16.msra.mxu0 %v22386_v28  ;;  %v22443_v28 = vld [vmem:[#allocation10 + $0x1b68] ss:$28 sps:$4 sm:$0xff]  }
 0x656   : > { %12172 = vmatpush1.bf16.msra.mxu1 %v22389_v19  ;;  %12111 = vmatprep.subr.bf16.mxu0 %v22394_v23  ;;  %v22440_v19 = vld [vmem:[#allocation10 + $0x1a88] ss:$28 sps:$4 sm:$0xff]   ;;  %v22451_v23 = vld [vmem:[#allocation10 + $0x1b34] ss:$28 sps:$4 sm:$0xff]  }
 0x657   : > { %12173 = vmatprep.subr.bf16.mxu1 %v22397_v29  ;;  %v22448_v29 = vld [vmem:[#allocation10 + $0x1a54] ss:$28 sps:$4 sm:$0xff]  }
 0x659   : > { %12112 = vmatpush2.bf16.msra.mxu0 %v22392_v13  ;;  %v22449_v13 = vld [vmem:[#allocation10 + $0x1b30] ss:$28 sps:$4 sm:$0xff]  }
 0x65a   : > { %12174 = vmatpush1.bf16.msra.mxu1 %v22395_v14  ;;  %12113 = vmatprep.subr.bf16.mxu0 %v22400_v5  ;;  %v22446_v14 = vld [vmem:[#allocation10 + $0x1a50] ss:$28 sps:$4 sm:$0xff]   ;;  %v22457_v5 = vld [vmem:[#allocation10 + $0x1e7c] ss:$28 sps:$4 sm:$0xff]  }
 0x65b   : > { %12175 = vmatprep.subr.bf16.mxu1 %v22403_v16  ;;  %v22454_v16 = vld [vmem:[#allocation10 + $0x1a1c] ss:$28 sps:$4 sm:$0xff]  }
 0x65d   : > { %12114 = vmatpush2.bf16.msra.mxu0 %v22398_v55  ;;  %v22455_v55 = vld [vmem:[#allocation10 + $0x1e78] ss:$28 sps:$4 sm:$0xff]  }
 0x65e   : > { %12176 = vmatpush1.bf16.msra.mxu1 %v22401_v62  ;;  %12212 = vmatprep.subr.bf16.mxu0 %v22409_v20  ;;  %v22452_v62 = vld [vmem:[#allocation10 + $0x1a18] ss:$28 sps:$4 sm:$0xff]   ;;  %v22463_v20 = vld [vmem:[#allocation10 + $0x1e44] ss:$28 sps:$4 sm:$0xff]  }
 0x65f   : > { %12177 = vmatprep.subr.bf16.mxu1 %v22406_v22  ;;  %v22460_v22 = vld [vmem:[#allocation10 + $0x19e4] ss:$28 sps:$4 sm:$0xff]  }
 0x660   : > { %12116 = vmatmul.mubr.bf16.vlgmr.msra.gmra.mxu0 %v24828_v31 }
 0x661   : > { %12213 = vmatpush1.bf16.msra.mxu0 %v22407_v50  ;;  %12244 = vmatprep.mubr.bf16.mxu0 %v24772_v59  ;;  %v22461_v50 = vld [vmem:[#allocation10 + $0x1e40] ss:$28 sps:$4 sm:$0xff]  }
 0x662   : > { %12178 = vmatpush1.bf16.msra.mxu1 %v22404_v48  ;;  %12214 = vmatprep.subr.bf16.mxu0 %v22415_v61  ;;  %v22458_v48 = vld [vmem:[#allocation10 + $0x19e0] ss:$28 sps:$4 sm:$0xff]   ;;  %v22469_v61 = vld [vmem:[#allocation10 + $0x1e0c] ss:$28 sps:$4 sm:$0xff]  }
 0x663   : > { %12179 = vmatprep.subr.bf16.mxu1 %v22412_v27  ;;  %v22466_v27 = vld [vmem:[#allocation10 + $0x19ac] ss:$28 sps:$4 sm:$0xff]  }
 0x665   : > { %12215 = vmatpush1.bf16.msra.mxu0 %v22413_v12  ;;  %v22467_v12 = vld [vmem:[#allocation10 + $0x1e08] ss:$28 sps:$4 sm:$0xff]  }
 0x666   : > { %12180 = vmatpush1.bf16.msra.mxu1 %v22410_v47  ;;  %12216 = vmatprep.subr.bf16.mxu0 %v22421_v63  ;;  %v22464_v47 = vld [vmem:[#allocation10 + $0x19a8] ss:$28 sps:$4 sm:$0xff]   ;;  %v22475_v63 = vld [vmem:[#allocation10 + $0x1dd4] ss:$28 sps:$4 sm:$0xff]  }
 0x667   : > { %12181 = vmatprep.subr.bf16.mxu1 %v22418_v36  ;;  %v22472_v36 = vld [vmem:[#allocation10 + $0x1974] ss:$28 sps:$4 sm:$0xff]  }
 0x669   : > { %12217 = vmatpush1.bf16.msra.mxu0 %v22419_v45  ;;  %v22473_v45 = vld [vmem:[#allocation10 + $0x1dd0] ss:$28 sps:$4 sm:$0xff]  }
 0x66a   : > { %12182 = vmatpush1.bf16.msra.mxu1 %v22416_v58  ;;  %12218 = vmatprep.subr.bf16.mxu0 %v22427_v44  ;;  %v22470_v58 = vld [vmem:[#allocation10 + $0x1970] ss:$28 sps:$4 sm:$0xff]   ;;  %v22478_v44 = vld [vmem:[#allocation10 + $0x1d9c] ss:$28 sps:$4 sm:$0xff]  }
 0x66b   : > { %12183 = vmatprep.subr.bf16.mxu1 %v22424_v6  ;;  %v22481_v6 = vld [vmem:[#allocation10 + $0x203c] ss:$28 sps:$4 sm:$0xff]  }
 0x66d   : > { %12219 = vmatpush1.bf16.msra.mxu0 %v22425_v7  ;;  %v22476_v7 = vld [vmem:[#allocation10 + $0x1d98] ss:$28 sps:$4 sm:$0xff]  }
 0x66e   : > { %12184 = vmatpush1.bf16.msra.mxu1 %v22422_v40  ;;  %12220 = vmatprep.subr.bf16.mxu0 %v22433_v35  ;;  %v22479_v40 = vld [vmem:[#allocation10 + $0x2038] ss:$28 sps:$4 sm:$0xff]   ;;  %v22484_v35 = vld [vmem:[#allocation10 + $0x1d64] ss:$28 sps:$4 sm:$0xff]  }
 0x66f   : > { %12185 = vmatprep.subr.bf16.mxu1 %v22430_v25  ;;  %v22487_v25 = vld [vmem:[#allocation10 + $0x2004] ss:$28 sps:$4 sm:$0xff]  }
 0x671   : > { %12221 = vmatpush1.bf16.msra.mxu0 %v22431_v34  ;;  %v22482_v34 = vld [vmem:[#allocation10 + $0x1d60] ss:$28 sps:$4 sm:$0xff]  }
 0x672   : > { %12186 = vmatpush2.bf16.msra.mxu1 %v22428_v43  ;;  %12222 = vmatprep.subr.bf16.mxu0 %v22439_v39  ;;  %v22485_v43 = vld [vmem:[#allocation10 + $0x2000] ss:$28 sps:$4 sm:$0xff]   ;;  %v22490_v39 = vld [vmem:[#allocation10 + $0x1d2c] ss:$28 sps:$4 sm:$0xff]  }
 0x673   : > { %12187 = vmatprep.subr.bf16.mxu1 %v22436_v52  ;;  %v22493_v52 = vld [vmem:[#allocation10 + $0x1fcc] ss:$28 sps:$4 sm:$0xff]  }
 0x675   : > { %12223 = vmatpush1.bf16.msra.mxu0 %v22437_v0  ;;  %v22488_v0 = vld [vmem:[#allocation10 + $0x1d28] ss:$28 sps:$4 sm:$0xff]  }
 0x676   : > { %12188 = vmatpush2.bf16.msra.mxu1 %v22434_v57  ;;  %12224 = vmatprep.subr.bf16.mxu0 %v22445_v2  ;;  %v22491_v57 = vld [vmem:[#allocation10 + $0x1fc8] ss:$28 sps:$4 sm:$0xff]   ;;  %v22496_v2 = vld [vmem:[#allocation10 + $0x1cf4] ss:$28 sps:$4 sm:$0xff]  }
 0x677   : > { %12189 = vmatprep.subr.bf16.mxu1 %v22442_v9  ;;  %v22499_v9 = vld [vmem:[#allocation10 + $0x1f94] ss:$28 sps:$4 sm:$0xff]  }
 0x679   : > { %12225 = vmatpush1.bf16.msra.mxu0 %v22443_v28  ;;  %v22494_v28 = vld [vmem:[#allocation10 + $0x1cf0] ss:$28 sps:$4 sm:$0xff]  }
 0x67a   : > { %12190 = vmatpush2.bf16.msra.mxu1 %v22440_v19  ;;  %12226 = vmatprep.subr.bf16.mxu0 %v22451_v23  ;;  %v22497_v19 = vld [vmem:[#allocation10 + $0x1f90] ss:$28 sps:$4 sm:$0xff]  }
 0x67b   : > { %12191 = vmatprep.subr.bf16.mxu1 %v22448_v29  ;;  %v22505_v23 = vld [vmem:[#allocation10 + $0x234c] ss:$28 sps:$4 sm:$0xff]   ;;  %v22502_v29 = vld [vmem:[#allocation10 + $0x1f5c] ss:$28 sps:$4 sm:$0xff]  }
 0x67d   : > { %12227 = vmatpush1.bf16.msra.mxu0 %v22449_v13  ;;  %v22503_v13 = vld [vmem:[#allocation10 + $0x2348] ss:$28 sps:$4 sm:$0xff]  }
 0x67e   : > { %12192 = vmatpush2.bf16.msra.mxu1 %v22446_v14  ;;  %12228 = vmatprep.subr.bf16.mxu0 %v22457_v5  ;;  %v22500_v14 = vld [vmem:[#allocation10 + $0x1f58] ss:$28 sps:$4 sm:$0xff]  }
 0x67f   : > { %12193 = vmatprep.subr.bf16.mxu1 %v22454_v16  ;;  %v22511_v5 = vld [vmem:[#allocation10 + $0x2314] ss:$28 sps:$4 sm:$0xff]   ;;  %v22508_v16 = vld [vmem:[#allocation10 + $0x1f24] ss:$28 sps:$4 sm:$0xff]  }
 0x681   : > { %12229 = vmatpush2.bf16.msra.mxu0 %v22455_v55  ;;  %v22509_v55 = vld [vmem:[#allocation10 + $0x2310] ss:$28 sps:$4 sm:$0xff]  }
 0x682   : > { %12194 = vmatpush2.bf16.msra.mxu1 %v22452_v62  ;;  %12230 = vmatprep.subr.bf16.mxu0 %v22463_v20  ;;  %v22506_v62 = vld [vmem:[#allocation10 + $0x1f20] ss:$28 sps:$4 sm:$0xff]  }
 0x683   : > { %12195 = vmatprep.subr.bf16.mxu1 %v22460_v22  ;;  %v22517_v20 = vld [vmem:[#allocation10 + $0x22dc] ss:$28 sps:$4 sm:$0xff]   ;;  %v22514_v22 = vld [vmem:[#allocation10 + $0x1eec] ss:$28 sps:$4 sm:$0xff]  }
 0x685   : > { %12231 = vmatpush2.bf16.msra.mxu0 %v22461_v50  ;;  %v22515_v50 = vld [vmem:[#allocation10 + $0x22d8] ss:$28 sps:$4 sm:$0xff]  }
 0x686   : > { %12196 = vmatpush2.bf16.msra.mxu1 %v22458_v48  ;;  %12232 = vmatprep.subr.bf16.mxu0 %v22469_v61  ;;  %v22512_v48 = vld [vmem:[#allocation10 + $0x1ee8] ss:$28 sps:$4 sm:$0xff]  }
 0x687   : > { %12197 = vmatprep.subr.bf16.mxu1 %v22466_v27  ;;  %v22523_v61 = vld [vmem:[#allocation10 + $0x22a4] ss:$28 sps:$4 sm:$0xff]  }
 0x688   : > { %v11902_v27 = vpop.f32.mrf.mxu0 }
 0x689   : > { %12233 = vmatpush2.bf16.msra.mxu0 %v22467_v12  ;;  %v22520_v12 = vld [vmem:[#allocation10 + $0x1eb4] ss:$28 sps:$4 sm:$0xff]  }
 0x68a   : > { %12198 = vmatpush2.bf16.msra.mxu1 %v22464_v47  ;;  %12234 = vmatprep.subr.bf16.mxu0 %v22475_v63  ;;  %v22521_v47 = vld [vmem:[#allocation10 + $0x22a0] ss:$28 sps:$4 sm:$0xff]   ;;  %v22518_v63 = vld [vmem:[#allocation10 + $0x1eb0] ss:$28 sps:$4 sm:$0xff]  }
 0x68b   : > { %12199 = vmatprep.subr.bf16.mxu1 %v22472_v36  ;;  %v11859_v36 = vpop.f32.mrf.mxu1 }
 0x68d   : > { %12235 = vmatpush2.bf16.msra.mxu0 %v22473_v45  ;;  %v11904_v45 = vpop.f32.mrf.mxu0 }
 0x68e   : > { %12200 = vmatpush2.bf16.msra.mxu1 %v22470_v58  ;;  %12236 = vmatprep.subr.bf16.mxu0 %v22478_v44  ;;  %v22526_v58 = vld [vmem:[#allocation10 + $0x21fc] ss:$28 sps:$4 sm:$0xff]   ;;  %v22527_v44 = vld [vmem:[#allocation10 + $0x2268] ss:$28 sps:$4 sm:$0xff]  }
 0x68f   : > { %12255 = vmatprep.subr.bf16.mxu1 %v22481_v6  ;;  %v22524_v6 = vld [vmem:[#allocation10 + $0x21f8] ss:$28 sps:$4 sm:$0xff]  }
 0x691   : > { %12202 = vmatmul.mubr.bf16.vlgmr.msra.gmra.mxu1 %v24797_v10  ;;  %12237 = vmatpush2.bf16.msra.mxu0 %v22476_v7  ;;  %v22535_v7 = vld [vmem:[#allocation10 + $0x2234] ss:$28 sps:$4 sm:$0xff]  }
 0x692   : > { %12256 = vmatpush1.bf16.msra.mxu1 %v22479_v40  ;;  %12287 = vmatprep.mubr.bf16.mxu1 %v24799_v24  ;;  %v11861_v40 = vpop.f32.mrf.mxu1 }
 0x693   : > { %12238 = vmatprep.subr.bf16.mxu0 %v22484_v35  ;;  %12257 = vmatprep.subr.bf16.mxu1 %v22487_v25  ;;  %v11906_v35 = vpop.f32.mrf.mxu0  ;;  %v22532_v25 = vld [vmem:[#allocation10 + $0x21c4] ss:$28 sps:$4 sm:$0xff]  }
 0x695   : > { %12239 = vmatpush2.bf16.msra.mxu0 %v22482_v34  ;;  %v22533_v34 = vld [vmem:[#allocation10 + $0x2230] ss:$28 sps:$4 sm:$0xff]  }
 0x696   : > { %12258 = vmatpush1.bf16.msra.mxu1 %v22485_v43  ;;  %12240 = vmatprep.subr.bf16.mxu0 %v22490_v39  ;;  %v22530_v43 = vld [vmem:[#allocation10 + $0x21c0] ss:$28 sps:$4 sm:$0xff]  }
 0x697   : > { %12259 = vmatprep.subr.bf16.mxu1 %v22493_v52  ;;  %v22539_v39 = vld [vmem:[#allocation10 + $0x1b00] ss:$28 sps:$4 sm:$0xff]   ;;  %v11863_v52 = vpop.f32.mrf.mxu1 }
 0x699   : > { %12241 = vmatpush2.bf16.msra.mxu0 %v22488_v0  ;;  %v11908_v0 = vpop.f32.mrf.mxu0 }
 0x69a   : > { %12260 = vmatpush1.bf16.msra.mxu1 %v22491_v57  ;;  %12242 = vmatprep.subr.bf16.mxu0 %v22496_v2  ;;  %v22538_v57 = vld [vmem:[#allocation10 + $0x218c] ss:$28 sps:$4 sm:$0xff]  }
 0x69b   : > { %12261 = vmatprep.subr.bf16.mxu1 %v22499_v9  ;;  %v22540_v9 = vld [vmem:[#allocation10 + $0x1940] ss:$28 sps:$4 sm:$0xff]  }
 0x69d   : > { %12243 = vmatpush2.bf16.msra.mxu0 %v22494_v28  ;;  %v22536_v28 = vld [vmem:[#allocation10 + $0x2188] ss:$28 sps:$4 sm:$0xff]  }
 0x69e   : > { %12262 = vmatpush1.bf16.msra.mxu1 %v22497_v19  ;;  %12302 = vmatprep.subr.bf16.mxu0 %v22505_v23  ;;  %v22544_v19 = vld [vmem:[#allocation10 + $0x1ac8] ss:$28 sps:$4 sm:$0xff]   ;;  %v11865_v23 = vpop.f32.mrf.mxu1 }
 0x69f   : > { %12263 = vmatprep.subr.bf16.mxu1 %v22502_v29  ;;  %v22543_v29 = vld [vmem:[#allocation10 + $0x2154] ss:$28 sps:$4 sm:$0xff]  }
 0x6a0   : > { %12245 = vmatmul.mubr.bf16.vlgmr.msra.gmra.mxu0 %v24805_v53  ;;  %v11988_v2 = vpop.f32.mrf.mxu0 }
 0x6a1   : > { %12303 = vmatpush1.bf16.msra.mxu0 %v22503_v13  ;;  %12330 = vmatprep.mubr.bf16.mxu0 %v25539_v1  ;;  %v22529_v1 = vld [vmem:[#allocation10 + $0x226c] ss:$28 sps:$4 sm:$0xff]   ;;  %v11903_v13 = vadd.f32 %v11902_v27, %v11859_v36  ;;  %v11907_v27 = vadd.f32 %v11906_v35, %v11863_v52  ;;  %v22546_v35 = vld [vmem:[#allocation10 + $0x2118] ss:$28 sps:$4 sm:$0xff]  }
 0x6a2   : > { %12264 = vmatpush1.bf16.msra.mxu1 %v22500_v14  ;;  %12304 = vmatprep.subr.bf16.mxu0 %v22511_v5  ;;  %v11990_v14 = vpop.f32.mrf.mxu0 }
 0x6a3   : > { %12265 = vmatprep.subr.bf16.mxu1 %v22508_v16  ;;  %v24865_v16 = vld [vmem:[#allocation11] sm:$0xff] }
 0x6a4   : > { %v11992_v36 = vpop.f32.mrf.mxu0 }
 0x6a5   : > { %12305 = vmatpush1.bf16.msra.mxu0 %v22509_v55  ;;  %v22545_v55 = vld [vmem:[#allocation10 + $0x1908] ss:$28 sps:$4 sm:$0xff]  }
 0x6a6   : > { %12266 = vmatpush1.bf16.msra.mxu1 %v22506_v62  ;;  %12306 = vmatprep.subr.bf16.mxu0 %v22517_v20  ;;  %v11905_v62 = vadd.f32 %v11904_v45, %v11861_v40 }
 0x6a7   : > { %12267 = vmatprep.subr.bf16.mxu1 %v22514_v22  ;;  %v22541_v22 = vld [vmem:[#allocation10 + $0x2150] ss:$28 sps:$4 sm:$0xff]  }
 0x6a9   : > { %12307 = vmatpush1.bf16.msra.mxu0 %v22515_v50  ;;  %v22549_v50 = vld [vmem:[#allocation10 + $0x1a90] ss:$28 sps:$4 sm:$0xff]  }
 0x6aa   : > { %12268 = vmatpush1.bf16.msra.mxu1 %v22512_v48  ;;  %12308 = vmatprep.subr.bf16.mxu0 %v22523_v61  ;;  %v22548_v61 = vld [vmem:[#allocation10 + $0x211c] ss:$28 sps:$4 sm:$0xff]  }
 0x6ab   : > { %12269 = vmatprep.subr.bf16.mxu1 %v22520_v12 }
 0x6ad   : > { %12309 = vmatpush1.bf16.msra.mxu0 %v22521_v47  ;;  %v12524_v47 = vrot.slane %v24865_v16, %v25491_v49 }
 0x6ae   : > { %12270 = vmatpush1.bf16.msra.mxu1 %v22518_v63  ;;  %12310 = vmatprep.subr.bf16.mxu0 %v22529_v1  ;;  %v11909_v1 = vadd.f32 %v11908_v0, %v11865_v23 }
 0x6af   : > { %12271 = vmatprep.subr.bf16.mxu1 %v22526_v58  ;;  %v25540_v58 = vld [vmem:[#allocation30_spill] sm:$0xff] }
 0x6b1   : > { %12311 = vmatpush1.bf16.msra.mxu0 %v22527_v44 }
 0x6b2   : > { %12272 = vmatpush2.bf16.msra.mxu1 %v22524_v6  ;;  %12312 = vmatprep.subr.bf16.mxu0 %v22535_v7  ;;  %v22550_v6 = vld [vmem:[#allocation10 + $0x18d0] ss:$28 sps:$4 sm:$0xff]  }
 0x6b3   : > { %12273 = vmatprep.subr.bf16.mxu1 %v22532_v25 }
 0x6b5   : > { %12313 = vmatpush1.bf16.msra.mxu0 %v22533_v34  ;;  %v22554_v34 = vld [vmem:[#allocation10 + $0x1a58] ss:$28 sps:$4 sm:$0xff]  }
 0x6b6   : > { %12274 = vmatpush2.bf16.msra.mxu1 %v22530_v43  ;;  %20024 = vmatprep.subr.bf16.mxu0 %v22539_v39  ;;  %v22553_v39 = vld [vmem:[#allocation10 + $0x20e4] ss:$28 sps:$4 sm:$0xff]  }
 0x6b7   : > { %12275 = vmatprep.subr.bf16.mxu1 %v22538_v57 }
 0x6b8   : > { %19337 = vmatmul.mubr.msk.bf16.vlgmr.msra.gmra.mxu0 %vm1872_vm14, %v24813_v26 }
 0x6b9   : > { %v11945_v5 = vpop.f32.mrf.mxu1  ;;  %20025 = vmatpush3.bf16.msra.mxu0 %v22540_v9  ;;  %12373 = vmatprep.mubr.bf16.mxu0 %v24751_v18  ;;  %v25541_v18 = vsub.s32 1, %v25540_v58  ;;  %v11994_v9 = vpop.f32.mrf.mxu0 }
 0x6ba   : > { %v11946_v20 = vadd.f32 %v11945_v5, %v11903_v13  ;;  %12276 = vmatpush2.bf16.msra.mxu1 %v22536_v28  ;;  %20026 = vmatprep.subr.bf16.mxu0 %v22544_v19  ;;  %v22555_v28 = vld [vmem:[#allocation10 + $0x1898] ss:$28 sps:$4 sm:$0xff]   ;;  %v22559_v13 = vld [vmem:[#allocation10 + $0x1a20] ss:$28 sps:$4 sm:$0xff]  }
 0x6bb   : > { %v11947_v48 = vpop.f32.mrf.mxu1  ;;  %12277 = vmatprep.subr.bf16.mxu1 %v22543_v29  ;;  %v12528_v45 = vrot.slane %v24865_v16, %v25541_v18  ;;  %v22551_v29 = vld [vmem:[#allocation10 + $0x20e0] ss:$28 sps:$4 sm:$0xff]   ;;  %v22566_v18 = vld [vmem:[#allocation10 + $0x19b0] ss:$28 sps:$4 sm:$0xff]  }
 0x6bc   : > { %v11989_v12 = vadd.f32 %v11988_v2, %v11946_v20  ;;  %v11948_v63 = vadd.f32 %v11947_v48, %v11905_v62  ;;  %v22560_v20 = vld [vmem:[#allocation10 + $0x1860] ss:$28 sps:$4 sm:$0xff]  }
 0x6bd   : > { %v11949_v44 = vpop.f32.mrf.mxu1  ;;  %20027 = vmatpush3.bf16.msra.mxu0 %v22545_v55 }
 0x6be   : > { %v12505_v7 = vadd.f32 %v11989_v12, %v24720_v56  ;;  %v11991_v40 = vadd.f32 %v11990_v14, %v11948_v63  ;;  %v11950_v25 = vadd.f32 %v11949_v44, %v11907_v27  ;;  %12278 = vmatpush2.bf16.msra.mxu1 %v22541_v22  ;;  %20028 = vmatprep.subr.bf16.mxu0 %v22549_v50  ;;  %v22558_v14 = vld [vmem:[#allocation10 + $0x20ac] ss:$28 sps:$4 sm:$0xff]   ;;  %v22563_v27 = vld [vmem:[#allocation10 + $0x2074] ss:$28 sps:$4 sm:$0xff]  }
 0x6bf   : > { %v11951_v43 = vpop.f32.mrf.mxu1  ;;  %12279 = vmatprep.subr.bf16.mxu1 %v22548_v61  ;;  %v22564_v61 = vld [vmem:[#allocation10 + $0x19e8] ss:$28 sps:$4 sm:$0xff]   ;;  %v22568_v44 = vld [vmem:[#allocation10 + $0x17f0] ss:$28 sps:$4 sm:$0xff]  }
 0x6c0   : > { %v12556_v52 = vadd.f32 %v12524_v47, %v12505_v7  ;;  %v12506_v0 = vadd.f32 %v11991_v40, %v24723_v21  ;;  %v11993_v57 = vadd.f32 %v11992_v36, %v11950_v25  ;;  %v11952_v2 = vadd.f32 %v11951_v43, %v11909_v1  ;;  %v22565_v1 = vld [vmem:[#allocation10 + $0x1828] ss:$28 sps:$4 sm:$0xff]   ;;  %v22561_v36 = vld [vmem:[#allocation10 + $0x2070] ss:$28 sps:$4 sm:$0xff]   ;;  %v22570_v7 = vld [vmem:[#allocation10 + $0x1978] ss:$28 sps:$4 sm:$0xff]  }
 0x6c1   : > { %20029 = vmatpush3.bf16.msra.mxu0 %v22550_v6  ;;  %v22569_v6 = vld [vmem:[#allocation10 + $0x1cc0] ss:$28 sps:$4 sm:$0xff]   ;;  %v22571_v40 = vld [vmem:[#allocation10 + $0x1e48] ss:$28 sps:$4 sm:$0xff]   ;;  %v22572_v25 = vld [vmem:[#allocation10 + $0x17b8] ss:$28 sps:$4 sm:$0xff]  }
 0x6c2   : > { %v12557_v19 = vadd.f32 %v12528_v45, %v12506_v0  ;;  %v12512_v56 = vadd.f32 %v11993_v57, %v24726_v37  ;;  %v11995_v23 = vadd.f32 %v11994_v9, %v11952_v2  ;;  %12280 = vmatpush2.bf16.msra.mxu1 %v22546_v35  ;;  %20030 = vmatprep.subr.bf16.mxu0 %v22554_v34  ;;  %v12570_v5 = vmax.f32 %v12556_v52, 0.0  ;;  %v22556_v37 = vld [vmem:[#allocation10 + $0x20a8] ss:$28 sps:$4 sm:$0xff]   ;;  %v22575_v34 = vld [vmem:[#allocation10 + $0x2200] ss:$28 sps:$4 sm:$0xff]  }
 0x6c3   : > { %12281 = vmatprep.subr.bf16.mxu1 %v22553_v39  ;;  %v22573_v35 = vld [vmem:[#allocation10 + $0x1c88] ss:$28 sps:$4 sm:$0xff]   ;;  %v22574_v43 = vld [vmem:[#allocation10 + $0x1e10] ss:$28 sps:$4 sm:$0xff]   ;;  %v22577_v39 = vld [vmem:[#allocation10 + $0x2040] ss:$28 sps:$4 sm:$0xff]  }
 0x6c4   : > { %v12571_v55 = vmax.f32 %v12557_v19, 0.0  ;;  %v12563_v62 = vadd.f32 %v12524_v47, %v12512_v56  ;;  %v12513_v21 = vadd.f32 %v11995_v23, %v24729_v15  ;;  %v22576_v52 = vld [vmem:[#allocation10 + $0x1c50] ss:$28 sps:$4 sm:$0xff]   ;;  %v22579_v0 = vld [vmem:[#allocation10 + $0x21c8] ss:$28 sps:$4 sm:$0xff]  }
 0x6c5   : > { %20031 = vmatpush3.bf16.msra.mxu0 %v22555_v28  ;;  %v22578_v57 = vld [vmem:[#allocation10 + $0x1dd8] ss:$28 sps:$4 sm:$0xff]   ;;  %v22581_v2 = vld [vmem:[#allocation10 + $0x2008] ss:$28 sps:$4 sm:$0xff]   ;;  %v22583_v9 = vld [vmem:[#allocation10 + $0x2190] ss:$28 sps:$4 sm:$0xff]  }
 0x6c6   : > { %v24877_v22 = vcombine.low %v12570_v5, %v12571_v55  ;;  %v24879_v50 = vcombine.high %v12570_v5, %v12571_v55  ;;  %v12564_v48 = vadd.f32 %v12528_v45, %v12513_v21  ;;  %12282 = vmatpush2.bf16.msra.mxu1 %v22551_v29  ;;  %20032 = vmatprep.subr.bf16.mxu0 %v22559_v13  ;;  %v12577_v12 = vmax.f32 %v12563_v62, 0.0  ;;  %v22567_v45 = vld [vmem:[#allocation10 + $0x1e80] ss:$28 sps:$4 sm:$0xff]   ;;  %v22585_v19 = vld [vmem:[#allocation10 + $0x1fd0] ss:$28 sps:$4 sm:$0xff]  }
 0x6c7   : > { %12283 = vmatprep.subr.bf16.mxu1 %v22558_v14  ;;  %v22582_v28 = vld [vmem:[#allocation10 + $0x1da0] ss:$28 sps:$4 sm:$0xff]   ;;  %v22587_v23 = vld [vmem:[#allocation10 + $0x2158] ss:$28 sps:$4 sm:$0xff]   ;;  %v22586_v29 = vld [vmem:[#allocation10 + $0x1d68] ss:$28 sps:$4 sm:$0xff]  }
 0x6c8   : > { %v12578_v63 = vmax.f32 %v12564_v48, 0.0  ;;  %v22584_v56 = vld [vmem:[#allocation10 + $0x1be0] ss:$28 sps:$4 sm:$0xff]   ;;  %v22590_v14 = vld [vmem:[#allocation10 + $0x1d30] ss:$28 sps:$4 sm:$0xff]  }
 0x6c9   : > { %20033 = vmatpush3.bf16.msra.mxu0 %v22560_v20  ;;  %v22591_v13 = vld [vmem:[#allocation10 + $0x2120] ss:$28 sps:$4 sm:$0xff]   ;;  %v22592_v55 = vld [vmem:[#allocation10 + $0x1b70] ss:$28 sps:$4 sm:$0xff]   ;;  %v22595_v62 = vld [vmem:[#allocation10 + $0x20e8] ss:$28 sps:$4 sm:$0xff]  }
 0x6ca   : > { %v24881_v47 = vcombine.low %v12577_v12, %v12578_v63  ;;  %v24883_v15 = vcombine.high %v12577_v12, %v12578_v63  ;;  %12284 = vmatpush2.bf16.msra.mxu1 %v22556_v37  ;;  %20034 = vmatprep.subr.bf16.mxu0 %v22564_v61  ;;  %v22593_v5 = vld [vmem:[#allocation10 + $0x1f60] ss:$28 sps:$4 sm:$0xff]   ;;  %v22594_v21 = vld [vmem:[#allocation10 + $0x1cf8] ss:$28 sps:$4 sm:$0xff]   ;;  %v22597_v20 = vld [vmem:[#allocation10 + $0x1f28] ss:$28 sps:$4 sm:$0xff]  }
 0x6cb   : > { %12285 = vmatprep.subr.bf16.mxu1 %v22563_v27  ;;  %v22596_v48 = vld [vmem:[#allocation10 + $0x1b38] ss:$28 sps:$4 sm:$0xff]   ;;  %v22598_v37 = vld [vmem:[#allocation10 + $0x20b0] ss:$28 sps:$4 sm:$0xff]  }
 0x6cc   : > { %v22599_v61 = vld [vmem:[#allocation10 + $0x1ef0] ss:$28 sps:$4 sm:$0xff]   ;;  %v22601_v12 = vld [vmem:[#allocation10 + $0x2078] ss:$28 sps:$4 sm:$0xff]  }
 0x6cd   : > { %20035 = vmatpush3.bf16.msra.mxu0 %v22565_v1  ;;  %v22600_v27 = vld [vmem:[#allocation10 + $0x2350] ss:$28 sps:$4 sm:$0xff]   ;;  %v22602_v63 = vld [vmem:[#allocation10 + $0x1eb8] ss:$28 sps:$4 sm:$0xff]  }
 0x6ce   : > { %12286 = vmatpush2.bf16.msra.mxu1 %v22561_v36  ;;  %20036 = vmatprep.subr.bf16.mxu0 %v22566_v18  ;;  %v22603_v1 = vld [vmem:[#allocation10 + $0x2318] ss:$28 sps:$4 sm:$0xff]   ;;  %v22604_v36 = vld [vmem:[#allocation10 + $0x22e0] ss:$28 sps:$4 sm:$0xff]   ;;  %v22605_v18 = vld [vmem:[#allocation10 + $0x22a8] ss:$28 sps:$4 sm:$0xff]  }
 0x6cf   : > { %20046 = vmatprep.subr.bf16.mxu1 %v22567_v45  ;;  %v22607_v45 = vld [vmem:[#allocation10 + $0x2238] ss:$28 sps:$4 sm:$0xff]  }
 0x6d1   : > { %12288 = vmatmul.mubr.bf16.vlgmr.msra.gmra.mxu1 %v24828_v31  ;;  %20037 = vmatpush3.bf16.msra.mxu0 %v22568_v44 }
 0x6d2   : > { %20047 = vmatpush3.bf16.msra.mxu1 %v22569_v6  ;;  %12414 = vmatprep.mubr.bf16.mxu1 %v24772_v59  ;;  %v22580_v59 = vld [vmem:[#allocation10 + $0x1c18] ss:$28 sps:$4 sm:$0xff]  }
 0x6d3   : > { %20038 = vmatprep.subr.bf16.mxu0 %v22570_v7  ;;  %20048 = vmatprep.subr.bf16.mxu1 %v22571_v40 }
 0x6d5   : > { %20039 = vmatpush3.bf16.msra.mxu0 %v22572_v25 }
 0x6d6   : > { %20049 = vmatpush3.bf16.msra.mxu1 %v22573_v35  ;;  %20068 = vmatprep.subr.bf16.mxu0 %v22575_v34 }
 0x6d7   : > { %20050 = vmatprep.subr.bf16.mxu1 %v22574_v43 }
 0x6d8   : > { %12374 = vmatmul.mubr.bf16.vlgmr.msra.gmra.mxu0 %v24797_v10  ;;  %v22589_v10 = vld [vmem:[#allocation10 + $0x1f98] ss:$28 sps:$4 sm:$0xff]  }
 0x6d9   : > { %20069 = vmatpush3.bf16.msra.mxu0 %v22577_v39  ;;  %12455 = vmatprep.mubr.bf16.mxu0 %v24799_v24  ;;  %v22588_v24 = vld [vmem:[#allocation10 + $0x1ba8] ss:$28 sps:$4 sm:$0xff]  }
 0x6da   : > { %20051 = vmatpush3.bf16.msra.mxu1 %v22576_v52  ;;  %20070 = vmatprep.subr.bf16.mxu0 %v22579_v0 }
 0x6db   : > { %20052 = vmatprep.subr.bf16.mxu1 %v22578_v57 }
 0x6dd   : > { %20071 = vmatpush3.bf16.msra.mxu0 %v22581_v2 }
 0x6de   : > { %20053 = vmatpush3.bf16.msra.mxu1 %v22580_v59  ;;  %20072 = vmatprep.subr.bf16.mxu0 %v22583_v9 }
 0x6df   : > { %20054 = vmatprep.subr.bf16.mxu1 %v22582_v28 }
 0x6e0   : > { %v12031_v6 = vpop.f32.mrf.mxu0 }
 0x6e1   : > { %20073 = vmatpush3.bf16.msra.mxu0 %v22585_v19 }
 0x6e2   : > { %20055 = vmatpush3.bf16.msra.mxu1 %v22584_v56  ;;  %20074 = vmatprep.subr.bf16.mxu0 %v22587_v23  ;;  %v25542_v56 = vsub.s32 3, %v25540_v58 }
 0x6e3   : > { %20056 = vmatprep.subr.bf16.mxu1 %v22586_v29 }
 0x6e4   : > { %v12536_v23 = vrot.slane %v24865_v16, %v25542_v56 }
 0x6e5   : > { %20075 = vmatpush3.bf16.msra.mxu0 %v22589_v10 }
 0x6e6   : > { %20057 = vmatpush3.bf16.msra.mxu1 %v22588_v24  ;;  %20076 = vmatprep.subr.bf16.mxu0 %v22591_v13 }
 0x6e7   : > { %20058 = vmatprep.subr.bf16.mxu1 %v22590_v14 }
 0x6e9   : > { %20077 = vmatpush3.bf16.msra.mxu0 %v22593_v5 }
 0x6ea   : > { %20059 = vmatpush3.bf16.msra.mxu1 %v22592_v55  ;;  %20078 = vmatprep.subr.bf16.mxu0 %v22595_v62 }
 0x6eb   : > { %20060 = vmatprep.subr.bf16.mxu1 %v22594_v21 }
 0x6ed   : > { %20079 = vmatpush3.bf16.msra.mxu0 %v22597_v20 }
 0x6ee   : > { %20061 = vmatpush3.bf16.msra.mxu1 %v22596_v48  ;;  %20080 = vmatprep.subr.bf16.mxu0 %v22598_v37 }
 0x6ef   : > { %20659 = vmatprep.subr.bf16.mxu1 %v23218_v60 }
 0x6f1   : > { %12415 = vmatmul.mubr.bf16.vlgmr.msra.gmra.mxu1 %v24805_v53  ;;  %20081 = vmatpush3.bf16.msra.mxu0 %v22599_v61  ;;  %v22606_v53 = vld [vmem:[#allocation10 + $0x2270] ss:$28 sps:$4 sm:$0xff]  }
 0x6f2   : > { %20660 = vmatpush3.bf16.msra.mxu1 %v22600_v27  ;;  %20082 = vmatprep.subr.bf16.mxu0 %v22601_v12 }
 0x6f3   : > { %20661 = vmatprep.subr.bf16.mxu1 %v23218_v60  ;;  %20671 = vmatprep.mubr.msk.bf16.mxu1 %vm23219_vm6, %v23218_v60  ;;  %vm25552_vm6 = vcmask 1044484  }
 0x6f5   : > { %20083 = vmatpush3.bf16.msra.mxu0 %v22602_v63 }
 0x6f6   : > { %20662 = vmatpush3.bf16.msra.mxu1 %v22603_v1 }
 0x6f7   : > { %20663 = vmatprep.subr.bf16.mxu1 %v23218_v60 }
 0x6f8   : > { %12456 = vmatmul.mubr.bf16.vlgmr.msra.gmra.mxu0 %v24828_v31  ;;  %v12033_v31 = vpop.f32.mrf.mxu0 }
 0x6f9   : > { %v12074_v44 = vpop.f32.mrf.mxu1 }
 0x6fa   : > { %20664 = vmatpush3.bf16.msra.mxu1 %v22604_v36  ;;  %v12035_v25 = vpop.f32.mrf.mxu0  ;;  %v12075_v39 = vadd.f32 %v12074_v44, %v12031_v6 }
 0x6fb   : > { %20665 = vmatprep.subr.bf16.mxu1 %v23218_v60  ;;  %v12076_v7 = vpop.f32.mrf.mxu1 }
 0x6fc   : > { %v12037_v43 = vpop.f32.mrf.mxu0  ;;  %v12077_v57 = vadd.f32 %v12076_v7, %v12033_v31 }
 0x6fd   : > { %v12078_v40 = vpop.f32.mrf.mxu1 }
 0x6fe   : > { %20666 = vmatpush3.bf16.msra.mxu1 %v22605_v18 }
 0x6ff   : > { %20667 = vmatprep.subr.bf16.mxu1 %v23218_v60  ;;  %v12080_v35 = vpop.f32.mrf.mxu1 }
 0x700   : > { %v12081_v10 = vadd.f32 %v12080_v35, %v12037_v43 }
 0x702   : > { %20668 = vmatpush3.bf16.msra.mxu1 %v22606_v53 }
 0x703   : > { %20669 = vmatprep.subr.bf16.mxu1 %v23218_v60  ;;  %v12079_v60 = vadd.f32 %v12078_v40, %v12035_v25 }
 0x706   : > { %20670 = vmatpush3.bf16.msra.mxu1 %v22607_v45  ;;  %v25543_v45 = vld [vmem:[#allocation35_spill] sm:$0xff] }
 0x707   : > { %v12608_v44 = vrot.slane %v24877_v22, %v25543_v45  ;;  %v12679_v22 = vrot.slane %v24881_v47, %v25543_v45 }
 0x709   : > { %20672 = vmatmul.mubr.msk.bf16.vlgmr.msra.gmra.mxu1 %vm1872_vm14, %v24813_v26  ;;  %v12532_v26 = vrot.slane %v24865_v16, %v25492_v41  ;;  %vm12865_vm14 = vcmask 523264  }
 0x711   : > { %v12160_v34 = vpop.f32.mrf.mxu1 }
 0x713   : > { %v12162_v52 = vpop.f32.mrf.mxu1 }
 0x715   : > { %v12164_v19 = vpop.f32.mrf.mxu1 }
 0x717   : > { %v12166_v48 = vpop.f32.mrf.mxu1 }
 0x720   : > { %v12117_v0 = vpop.f32.mrf.mxu0 }
 0x721   : > { %v12118_v2 = vadd.f32 %v12117_v0, %v12075_v39 }
 0x722   : > { %v12119_v59 = vpop.f32.mrf.mxu0 }
 0x723   : > { %v12161_v9 = vadd.f32 %v12160_v34, %v12118_v2  ;;  %v12120_v28 = vadd.f32 %v12119_v59, %v12077_v57 }
 0x724   : > { %v12121_v29 = vpop.f32.mrf.mxu0 }
 0x725   : > { %v12507_v24 = vadd.f32 %v12161_v9, %v24778_v54  ;;  %v12163_v13 = vadd.f32 %v12162_v52, %v12120_v28  ;;  %v12122_v14 = vadd.f32 %v12121_v29, %v12079_v60  ;;  %v12686_v52 = vrot.slane %v24883_v15, %v25543_v45 }
 0x726   : > { %v12123_v5 = vpop.f32.mrf.mxu0 }
 0x727   : > { %v12558_v55 = vadd.f32 %v12532_v26, %v12507_v24  ;;  %v12508_v62 = vadd.f32 %v12163_v13, %v24781_v30  ;;  %v12165_v21 = vadd.f32 %v12164_v19, %v12122_v14  ;;  %v12124_v20 = vadd.f32 %v12123_v5, %v12081_v10 }
 0x728   : > { %v12615_v30 = vrot.slane %v24879_v50, %v25543_v45 }
 0x729   : > { %v12559_v37 = vadd.f32 %v12536_v23, %v12508_v62  ;;  %v12514_v61 = vadd.f32 %v12165_v21, %v24784_v33  ;;  %v12167_v27 = vadd.f32 %v12166_v48, %v12124_v20  ;;  %v12572_v12 = vmax.f32 %v12558_v55, 0.0 }
 0x72a   : > { %v12540_v62 = vrot.slane %v24865_v16, %v25493_v51  ;;  %v25544_v48 = vsub.s32 5, %v25540_v58 }
 0x72b   : > { %v12573_v63 = vmax.f32 %v12559_v37, 0.0  ;;  %v12565_v1 = vadd.f32 %v12532_v26, %v12514_v61  ;;  %v12515_v36 = vadd.f32 %v12167_v27, %v24787_v8 }
 0x72c   : > { %v12544_v37 = vrot.slane %v24865_v16, %v25544_v48 }
 0x72d   : > { %v12600_v18 = vcombine.low %v12572_v12, %v12573_v63  ;;  %v12601_v54 = vcombine.high %v12572_v12, %v12573_v63  ;;  %v12566_v53 = vadd.f32 %v12536_v23, %v12515_v36  ;;  %v12579_v6 = vmax.f32 %v12565_v1, 0.0 }
 0x72f   : > { %v12580_v7 = vmax.f32 %v12566_v53, 0.0  ;;  %v12622_v31 = vrot.slane %v12600_v18, %v25543_v45  ;;  %v12629_v33 = vrot.slane %v12601_v54, %v25543_v45 }
 0x731   : > { %v12671_v40 = vcombine.low %v12579_v6, %v12580_v7  ;;  %v12672_v25 = vcombine.high %v12579_v6, %v12580_v7  ;;  %v24916_v35 = vcombine.high %v12608_v44, %v12622_v31  ;;  %v24918_v8 = vcombine.low %v12615_v30, %v12629_v33 }
 0x732   : > { %v24920_v34 = vcombine.low %v12608_v44, %v12622_v31  ;;  %v24922_v43 = vcombine.high %v12615_v30, %v12629_v33 }
 0x733   : > { %v12693_v50 = vrot.slane %v12671_v40, %v25543_v45  ;;  %v12700_v39 = vrot.slane %v12672_v25, %v25543_v45 }
 0x735   : > { %v24930_v0 = vcombine.low %v12679_v22, %v12693_v50  ;;  %v24932_v57 = vcombine.high %v12679_v22, %v12693_v50  ;;  %v24934_v2 = vcombine.low %v12686_v52, %v12700_v39 }
 0x751   : > { %v12203_v60 = vpop.f32.mrf.mxu1 }
 0x753   : > { %v12205_v26 = vpop.f32.mrf.mxu1 }
 0x755   : > { %v12207_v19 = vpop.f32.mrf.mxu1 }
 0x757   : > { %v12209_v23 = vpop.f32.mrf.mxu1 }
 0x760   : > { %v12246_v59 = vpop.f32.mrf.mxu0 }
 0x761   : > { %v12247_v29 = vadd.f32 %v12246_v59, %v12203_v60 }
 0x762   : > { %v12248_v9 = vpop.f32.mrf.mxu0 }
 0x763   : > { %v12249_v13 = vadd.f32 %v12248_v9, %v12205_v26 }
 0x764   : > { %v12250_v28 = vpop.f32.mrf.mxu0 }
 0x765   : > { %v12251_v5 = vadd.f32 %v12250_v28, %v12207_v19 }
 0x766   : > { %v12252_v47 = vpop.f32.mrf.mxu0 }
 0x767   : > { %v12253_v27 = vadd.f32 %v12252_v47, %v12209_v23 }
 0x778   : > { %v12332_v56 = vpop.f32.mrf.mxu0 }
 0x77a   : > { %v12334_v10 = vpop.f32.mrf.mxu0 }
 0x77c   : > { %v12336_v20 = vpop.f32.mrf.mxu0 }
 0x77e   : > { %v12338_v30 = vpop.f32.mrf.mxu0 }
 0x791   : > { %v12289_v24 = vpop.f32.mrf.mxu1 }
 0x792   : > { %v12290_v15 = vadd.f32 %v12289_v24, %v12247_v29 }
 0x793   : > { %v12291_v14 = vpop.f32.mrf.mxu1 }
 0x794   : > { %v12333_v55 = vadd.f32 %v12332_v56, %v12290_v15  ;;  %v12292_v21 = vadd.f32 %v12291_v14, %v12249_v13 }
 0x795   : > { %v12293_v61 = vpop.f32.mrf.mxu1 }
 0x796   : > { %v12509_v12 = vadd.f32 %v12333_v55, %v24833_v11  ;;  %v12335_v63 = vadd.f32 %v12334_v10, %v12292_v21  ;;  %v12294_v1 = vadd.f32 %v12293_v61, %v12251_v5  ;;  %v12548_v61 = vrot.slane %v24865_v16, %v25494_v42 }
 0x797   : > { %v12295_v36 = vpop.f32.mrf.mxu1 }
 0x798   : > { %v12560_v18 = vadd.f32 %v12540_v62, %v12509_v12  ;;  %v12510_v54 = vadd.f32 %v12335_v63, %v24836_v32  ;;  %v12337_v53 = vadd.f32 %v12336_v20, %v12294_v1  ;;  %v12296_v44 = vadd.f32 %v12295_v36, %v12253_v27  ;;  %v20040_v32 = vpop.f32.mrf.mxu0 }
 0x79a   : > { %v12561_v6 = vadd.f32 %v12544_v37, %v12510_v54  ;;  %v12516_v7 = vadd.f32 %v12337_v53, %v24839_v17  ;;  %v12339_v31 = vadd.f32 %v12338_v30, %v12296_v44  ;;  %v12574_v58 = vmax.f32 %v12560_v18, 0.0  ;;  %v20041_v9 = vpop.f32.mrf.mxu0 }
 0x79b   : > { %v20042_v24 = vadd.f32 %v20041_v9, %v20040_v32 }
 0x79c   : > { %v12575_v33 = vmax.f32 %v12561_v6, 0.0  ;;  %v12567_v40 = vadd.f32 %v12540_v62, %v12516_v7  ;;  %v12517_v25 = vadd.f32 %v12339_v31, %v24842_v3  ;;  %v20043_v26 = vpop.f32.mrf.mxu0 }
 0x79e   : > { %v12634_v22 = vcombine.low %v12574_v58, %v12575_v33  ;;  %v12635_v11 = vcombine.high %v12574_v58, %v12575_v33  ;;  %v12568_v50 = vadd.f32 %v12544_v37, %v12517_v25  ;;  %v12581_v39 = vmax.f32 %v12567_v40, 0.0  ;;  %v20044_v28 = vpop.f32.mrf.mxu0 }
 0x79f   : > { %v20045_v55 = vadd.f32 %v20044_v28, %v20043_v26  ;;  %v19341_v58 = vrot.slane %v24916_v35, 9 }
 0x7a0   : > { %v12582_v52 = vmax.f32 %v12568_v50, 0.0  ;;  %v12643_v31 = vrot.slane %v12634_v22, %v25543_v45  ;;  %v12650_v16 = vrot.slane %v12635_v11, %v25543_v45  ;;  %v19343_v50 = vrot.slane %v24918_v8, 9 }
 0x7a1   : > { %v12796_v11 = vmax.f32 %v24916_v35, %v19341_v58 }
 0x7a2   : > { %v12704_v59 = vcombine.low %v12581_v39, %v12582_v52  ;;  %v24945_v60 = vcombine.high %v12581_v39, %v12582_v52  ;;  %v19339_v39 = vrot.slane %v24920_v34, 9 }
 0x7a4   : > { %v12713_v52 = vrot.slane %v12704_v59, %v25543_v45 }
 0x7b1   : > { %v20062_v19 = vpop.f32.mrf.mxu1 }
 0x7b3   : > { %v20063_v47 = vpop.f32.mrf.mxu1 }
 0x7b4   : > { %v20064_v10 = vadd.f32 %v20063_v47, %v20062_v19 }
 0x7b5   : > { %v20065_v23 = vpop.f32.mrf.mxu1 }
 0x7b6   : > { %v12417_v14 = vadd.f32 %v20064_v10, %v20042_v24  ;;  %v24966_v10 = vmax.f32 %v24918_v8, %v19343_v50  ;;  %v19347_v8 = vrot.slane %v24930_v0, 9 }
 0x7b7   : > { %v20066_v3 = vpop.f32.mrf.mxu1 }
 0x7b8   : > { %v20084_v17 = vpop.f32.mrf.mxu0  ;;  %v20067_v5 = vadd.f32 %v20066_v3, %v20065_v23 }
 0x7ba   : > { %v20085_v56 = vpop.f32.mrf.mxu0  ;;  %v12420_v48 = vadd.f32 %v20067_v5, %v20045_v55  ;;  %v24971_v5 = vmax.f32 %v24920_v34, %v19339_v39  ;;  %v19349_v34 = vrot.slane %v24932_v57, 9 }
 0x7bb   : > { %v20086_v13 = vadd.f32 %v20085_v56, %v20084_v17  ;;  %v12720_v17 = vrot.slane %v24945_v60, %v25543_v45 }
 0x7bc   : > { %v20087_v29 = vpop.f32.mrf.mxu0 }
 0x7bd   : > { %v12458_v21 = vadd.f32 %v20086_v13, %v12417_v14 }
 0x7be   : > { %v20088_v15 = vpop.f32.mrf.mxu0 }
 0x7bf   : > { %v20089_v62 = vadd.f32 %v20088_v15, %v20087_v29 }
 0x7c1   : > { %v12461_v63 = vadd.f32 %v20089_v62, %v12420_v48 }
 0x7c9   : > { %v12498_v20 = vpop.f32.mrf.mxu1 }
 0x7ca   : > { %v12499_v37 = vadd.f32 %v12498_v20, %v12458_v21 }
 0x7cb   : > { %v20673_v27 = vpop.f32.mrf.mxu1 }
 0x7cc   : > { %v12511_v12 = vadd.f32 %v12499_v37, %v24850_v4 }
 0x7cd   : > { %v12501_v1 = vpop.f32.mrf.mxu1 }
 0x7ce   : > { %v12562_v36 = vadd.f32 %v12548_v61, %v12511_v12  ;;  %v12502_v18 = vadd.f32 %v12501_v1, %v12461_v63  ;;  %v24996_v63 = vmax.f32 %v24932_v57, %v19349_v34 }
 0x7cf   : > { %v20674_v54 = vpop.f32.mrf.mxu1 }
 0x7d0   : > { %v12576_v53 = vmax.f32 %v12562_v36, 0.0  ;;  %v12518_v44 = vadd.f32 %v12502_v18, %v24852_v46  ;;  %v19345_v46 = vrot.slane %v24922_v43, 9 }
 0x7d2   : > { %v12636_v30 = vcombine.high %v12576_v53, %v12576_v53  ;;  %v12657_v6 = vrot.slane %v12576_v53, %v25543_v45  ;;  %v12569_v7 = vadd.f32 %v12548_v61, %v12518_v44  ;;  %v24978_v62 = vmax.f32 %v24922_v43, %v19345_v46 }
 0x7d3   : > { %v24988_v61 = vmax.f32 %v24930_v0, %v19347_v8  ;;  %v19351_v43 = vrot.slane %v24934_v2, 9 }
 0x7d4   : > { %v12664_v4 = vrot.slane %v12636_v30, %v25543_v45  ;;  %v12583_v33 = vmax.f32 %v12569_v7, 0.0  ;;  %v12666_v40 = vcombine.high %v12643_v31, %v12657_v6  ;;  %v12665_v25 = vcombine.low %v12643_v31, %v12657_v6 }
 0x7d5   : > { %v25003_v0 = vmax.f32 %v24934_v2, %v19351_v43 }
 0x7d6   : > { %v12706_v32 = vcombine.high %v12583_v33, %v12583_v33  ;;  %v12727_v22 = vrot.slane %v12583_v33, %v25543_v45  ;;  %v19342_v9 = vrot.slane %v12666_v40, 9  ;;  %v12667_v26 = vcombine.low %v12650_v16, %v12664_v4 }
 0x7d7   : > { %v19340_v28 = vrot.slane %v12665_v25, 9  ;;  %v12668_v19 = vcombine.high %v12650_v16, %v12664_v4 }
 0x7d8   : > { %v12734_v47 = vrot.slane %v12706_v32, %v25543_v45  ;;  %v12797_v56 = vmax.f32 %v12666_v40, %v19342_v9  ;;  %v19344_v23 = vrot.slane %v12667_v26, 9  ;;  %v12735_v29 = vcombine.low %v12713_v52, %v12727_v22 }
 0x7d9   : > { %v24968_v59 = vmax.f32 %v12665_v25, %v19340_v28  ;;  %v19346_v3 = vrot.slane %v12668_v19, 9  ;;  %v12736_v24 = vcombine.high %v12713_v52, %v12727_v22 }
 0x7da   : > { %v20886_v13 = vpack.i.bf16 %v12797_v56, %v12796_v11  ;;  %v12799_v15 = vmax.f32 %v12667_v26, %v19344_v23  ;;  %v19348_v35 = vrot.slane %v12735_v29, 9  ;;  %v12737_v14 = vcombine.low %v12720_v17, %v12734_v47 }
 0x7db   : > { %v24974_v60 = vmax.f32 %v12668_v19, %v19346_v3  ;;  %v19350_v55 = vrot.slane %v12736_v24, 9  ;;  %v20891_v21 = vpack.i.bf16 %v24968_v59, %v24971_v5 }
 0x7dc   : > { %20887 = vrot.lane.b32.xlu0 %v20886_v13, %s23220_s11  ;;  %v20896_v45 = vpack.i.bf16 %v12799_v15, %v24966_v10  ;;  %v24982_v20 = vmax.f32 %v12735_v29, %v19348_v35  ;;  %v19352_v48 = vrot.slane %v12737_v14, 9 }
 0x7dd   : > { %v20901_v37 = vpack.i.bf16 %v24974_v60, %v24978_v62  ;;  %v24990_v27 = vmax.f32 %v12736_v24, %v19350_v55 }
 0x7de   : > { %20897 = vrot.lane.b32.xlu1 %v20896_v45, %s23220_s11  ;;  %v20906_v12 = vpack.i.bf16 %v24982_v20, %v24988_v61  ;;  %v24998_v1 = vmax.f32 %v12737_v14, %v19352_v48 }
 0x7df   : > { %v20911_v36 = vpack.i.bf16 %v24990_v27, %v24996_v63 }
 0x7e0   : > { %20892 = vrot.lane.b32.xlu0 %v20891_v21, %s23220_s11  ;;  %v20916_v18 = vpack.i.bf16 %v24998_v1, %v25003_v0 }
 0x7e2   : > { %20902 = vrot.lane.b32.xlu1 %v20901_v37, %s23220_s11 }
 0x7e4   : > { %20907 = vrot.lane.b32.xlu0 %v20906_v12, %s23220_s11 }
 0x7e6   : > { %20912 = vrot.lane.b32.xlu1 %v20911_v36, %s23220_s11 }
 0x7e8   : > { %20917 = vrot.lane.b32.xlu0 %v20916_v18, %s23220_s11 }
 0x84e   : > { %v20888_v54 = vpop.permute.xlu0 %20887 }
 0x84f   : > { %v20890_v53 = vunpack.i.h.bf16 %v20888_v54  ;;  %v20889_v44 = vunpack.i.l.bf16 %v20888_v54 }
 0x850   : > { %v20898_v57 = vpop.permute.xlu1 %20897 }
 0x851   : > { %v12853_v30 = vrot.slane %v20890_v53, 2  ;;  %v12852_v6 = vrot.slane %v20889_v44, 2  ;;  %v20900_v7 = vunpack.i.h.bf16 %v20898_v57  ;;  %v20899_v31 = vunpack.i.l.bf16 %v20898_v57 }
 0x852   : > { %v20893_v47 = vpop.permute.xlu0 %20892 }
 0x853   : > { %v12870_v58 = vsel %vm12865_vm14, %v20890_v53, %v12853_v30  ;;  %v12868_v16 = vsel %vm365_vm3, %v12852_v6, %v12853_v30  ;;  %v12855_v2 = vrot.slane %v20900_v7, 2  ;;  %v12854_v40 = vrot.slane %v20899_v31, 2 }
 0x854   : > { %v12903_v4 = vmax.f32 %v12797_v56, %v12870_v58  ;;  %v12869_v33 = vsel %vm12865_vm14, %v20889_v44, %v12868_v16  ;;  %v25019_v56 = vpop.permute.xlu1 %20902  ;;  %v20894_v35 = vunpack.i.l.bf16 %v20893_v47 }
 0x855   : > { %v12902_v25 = vmax.f32 %v12796_v11, %v12869_v33  ;;  %v12873_v50 = vsel %vm12865_vm14, %v20900_v7, %v12855_v2  ;;  %v12871_v11 = vsel %vm365_vm3, %v12854_v40, %v12855_v2  ;;  %v20905_v14 = vunpack.i.h.bf16 %v25019_v56 }
 0x856   : > { %v12975_v39 = vrot.slane %v12903_v4, %v25491_v49  ;;  %v12979_v46 = vrot.slane %v12903_v4, %v25492_v41  ;;  %v12983_v52 = vrot.slane %v12903_v4, %v25493_v51  ;;  %v12905_v32 = vmax.f32 %v12799_v15, %v12873_v50 }
 0x857   : > { %v12959_v22 = vrot.slane %v12902_v25, %v25491_v49  ;;  %v12963_v9 = vrot.slane %v12902_v25, %v25492_v41  ;;  %v12967_v26 = vrot.slane %v12902_v25, %v25493_v51  ;;  %v12971_v28 = vrot.slane %v12902_v25, %v25494_v42 }
 0x858   : > { %v19843_v19 = vpack.c.bf16 %v12979_v46, %v12975_v39  ;;  %v19844_v17 = vpack.c.bf16 %v12983_v52, %v12983_v52  ;;  %v13003_v23 = vrot.slane %v12905_v32, %v25491_v49  ;;  %v13007_v29 = vrot.slane %v12905_v32, %v25492_v41 }
 0x859   : > { %v19841_v3 = vpack.c.bf16 %v12963_v9, %v12959_v22  ;;  %v25023_v24 = vpack.c.bf16 %v12971_v28, %v12967_v26  ;;  %v12872_v13 = vsel %vm12865_vm14, %v20899_v31, %v12871_v11  ;;  %v20895_v15 = vunpack.i.h.bf16 %v20893_v47 }
 0x85a   : > { %v13359_v45 = vunpack.c.l.b16 %v19843_v19  ;;  %v13360_v8 = vunpack.c.h.b16 %v19843_v19  ;;  %v25027_v55 = vunpack.c.l.b16 %v19844_v17  ;;  %v13011_v21 = vrot.slane %v12905_v32, %v25493_v51 }
 0x85b   : > { %v19847_v34 = vpack.c.bf16 %v13007_v29, %v13003_v23  ;;  %v13355_v48 = vunpack.c.l.b16 %v19841_v3  ;;  %v13356_v37 = vunpack.c.h.b16 %v19841_v3  ;;  %v13357_v43 = vunpack.c.l.b16 %v25023_v24 }
 0x85c   : > { %v12904_v12 = vmax.f32 %v24966_v10, %v12872_v13  ;;  %v13358_v36 = vunpack.c.h.b16 %v25023_v24  ;;  %v12851_v18 = vrot.slane %v20895_v15, 2  ;;  %v12850_v54 = vrot.slane %v20894_v35, 2 }
 0x85d   : > { %v12857_v53 = vrot.slane %v20905_v14, 2  ;;  %v13445_v44 = vrot.slane %v13359_v45, 7  ;;  %v13457_v57 = vrot.slane %v13360_v8, 7  ;;  %v13469_v30 = vrot.slane %v25027_v55, 7 }
 0x85e   : > { %v19848_v6 = vpack.c.bf16 %v13011_v21, %v13011_v21  ;;  %v13366_v7 = vunpack.c.l.b16 %v19847_v34  ;;  %v12987_v31 = vrot.slane %v12904_v12, %v25491_v49  ;;  %v12991_v58 = vrot.slane %v12904_v12, %v25492_v41 }
 0x85f   : > { %v12867_v16 = vsel %vm12865_vm14, %v20895_v15, %v12851_v18  ;;  %v13367_v2 = vunpack.c.h.b16 %v19847_v34  ;;  %v12864_v4 = vsel %vm365_vm3, %v12850_v54, %v12851_v18  ;;  %v12876_v33 = vsel %vm12865_vm14, %v20905_v14, %v12857_v53 }
 0x860   : > { %v12901_v10 = vmax.f32 %v24968_v59, %v12867_v16  ;;  %v12995_v40 = vrot.slane %v12904_v12, %v25493_v51  ;;  %v12999_v25 = vrot.slane %v12904_v12, %v25494_v42  ;;  %v12866_v50 = vsel %vm12865_vm14, %v20894_v35, %v12864_v4 }
 0x861   : > { %v20904_v39 = vunpack.i.l.bf16 %v25019_v56  ;;  %v12900_v59 = vmax.f32 %v24971_v5, %v12866_v50  ;;  %v13397_v22 = vrot.slane %v13355_v48, 7  ;;  %v13409_v9 = vrot.slane %v13356_v37, 7  ;;  %v20908_v48 = vpop.permute.xlu0 %20907 }
 0x862   : > { %v12947_v46 = vrot.slane %v12901_v10, %v25491_v49  ;;  %v12951_v52 = vrot.slane %v12901_v10, %v25492_v41  ;;  %v12955_v32 = vrot.slane %v12901_v10, %v25493_v51  ;;  %v19845_v26 = vpack.c.bf16 %v12991_v58, %v12987_v31 }
 0x863   : > { %v12907_v28 = vmax.f32 %v24974_v60, %v12876_v33  ;;  %v12931_v11 = vrot.slane %v12900_v59, %v25491_v49  ;;  %v12935_v47 = vrot.slane %v12900_v59, %v25492_v41  ;;  %v13421_v56 = vrot.slane %v13357_v43, 7 }
 0x864   : > { %v19839_v19 = vpack.c.bf16 %v12951_v52, %v12947_v46  ;;  %v19840_v17 = vpack.c.bf16 %v12955_v32, %v12955_v32  ;;  %v13368_v23 = vunpack.c.l.b16 %v19848_v6  ;;  %v13447_v29 = vrot.slane %v13366_v7, 6 }
 0x865   : > { %v19846_v3 = vpack.c.bf16 %v12999_v25, %v12995_v40  ;;  %v13459_v24 = vrot.slane %v13367_v2, 6  ;;  %v12856_v35 = vrot.slane %v20904_v39, 2  ;;  %v12939_v14 = vrot.slane %v12900_v59, %v25493_v51 }
 0x866   : > { %v13352_v13 = vunpack.c.l.b16 %v19839_v19  ;;  %v13353_v15 = vunpack.c.h.b16 %v19839_v19  ;;  %v13354_v5 = vunpack.c.l.b16 %v19840_v17  ;;  %v12943_v45 = vrot.slane %v12900_v59, %v25494_v42 }
 0x867   : > { %v19837_v60 = vpack.c.bf16 %v12935_v47, %v12931_v11  ;;  %v13362_v8 = vunpack.c.l.b16 %v19845_v26  ;;  %v13363_v55 = vunpack.c.h.b16 %v19845_v26  ;;  %v13031_v21 = vrot.slane %v12907_v28, %v25491_v49 }
 0x868   : > { %v13035_v34 = vrot.slane %v12907_v28, %v25492_v41  ;;  %v13471_v37 = vrot.slane %v13368_v23, 6  ;;  %v13364_v43 = vunpack.c.l.b16 %v19846_v3  ;;  %v13365_v12 = vunpack.c.h.b16 %v19846_v3  ;;  %v20913_v23 = vpop.permute.xlu1 %20912 }
 0x869   : > { %v13446_v18 = vsel %vm3034_vm5, %v13445_v44, %v13352_v13  ;;  %v13458_v54 = vsel %vm3034_vm5, %v13457_v57, %v13353_v15  ;;  %v13348_v6 = vunpack.c.l.b16 %v19837_v60  ;;  %v13349_v7 = vunpack.c.h.b16 %v19837_v60 }
 0x86a   : > { %v13039_v31 = vrot.slane %v12907_v28, %v25493_v51  ;;  %v13433_v58 = vrot.slane %v13358_v36, 7  ;;  %v13470_v16 = vsel %vm3034_vm5, %v13469_v30, %v13354_v5  ;;  %v19838_v2 = vpack.c.bf16 %v12943_v45, %v12939_v14 }
 0x86b   : > { %v20910_v10 = vunpack.i.h.bf16 %v20908_v48  ;;  %v13399_v4 = vrot.slane %v13362_v8, 6  ;;  %v13411_v33 = vrot.slane %v13363_v55, 6  ;;  %v19851_v40 = vpack.c.bf16 %v13035_v34, %v13031_v21 }
 0x86c   : > { %v12874_v25 = vsel %vm365_vm3, %v12856_v35, %v12857_v53  ;;  %v13423_v50 = vrot.slane %v13364_v43, 6  ;;  %v13435_v46 = vrot.slane %v13365_v12, 6  ;;  %v13448_v44 = vsel %vm2938_vm15, %v13447_v29, %v13446_v18 }
 0x86d   : > { %v13460_v57 = vsel %vm2938_vm15, %v13459_v24, %v13458_v54  ;;  %v25063_v52 = vsel %vm2938_vm15, %v13471_v37, %v13470_v16  ;;  %v13398_v36 = vsel %vm3034_vm5, %v13397_v22, %v13348_v6  ;;  %v13410_v30 = vsel %vm3034_vm5, %v13409_v9, %v13349_v7 }
 0x86e   : > { %v19852_v32 = vpack.c.bf16 %v13039_v31, %v13039_v31  ;;  %v13350_v59 = vunpack.c.l.b16 %v19838_v2  ;;  %v12875_v26 = vsel %vm12865_vm14, %v20904_v39, %v12874_v25  ;;  %v12859_v28 = vrot.slane %v20910_v10, 2 }
 0x86f   : > { %v20909_v19 = vunpack.i.l.bf16 %v20908_v48  ;;  %v13351_v53 = vunpack.c.h.b16 %v19838_v2  ;;  %v13373_v17 = vunpack.c.l.b16 %v19851_v40  ;;  %v13374_v11 = vunpack.c.h.b16 %v19851_v40 }
 0x870   : > { %v12906_v47 = vmax.f32 %v24978_v62, %v12875_v26  ;;  %v13400_v29 = vsel %vm2938_vm15, %v13399_v4, %v13398_v36  ;;  %v13412_v3 = vsel %vm2938_vm15, %v13411_v33, %v13410_v30  ;;  %v12879_v22 = vsel %vm12865_vm14, %v20910_v10, %v12859_v28 }
 0x871   : > { %v12858_v24 = vrot.slane %v20909_v19, 2  ;;  %v13422_v35 = vsel %vm3034_vm5, %v13421_v56, %v13350_v59  ;;  %v12909_v62 = vmax.f32 %v24982_v20, %v12879_v22  ;;  %v20915_v14 = vunpack.i.h.bf16 %v20913_v23 }
 0x872   : > { %v13015_v9 = vrot.slane %v12906_v47, %v25491_v49  ;;  %v13019_v13 = vrot.slane %v12906_v47, %v25492_v41  ;;  %v13023_v39 = vrot.slane %v12906_v47, %v25493_v51  ;;  %v13027_v15 = vrot.slane %v12906_v47, %v25494_v42 }
 0x873   : > { %v12877_v5 = vsel %vm365_vm3, %v12858_v24, %v12859_v28  ;;  %v20914_v55 = vunpack.i.l.bf16 %v20913_v23  ;;  %v13375_v21 = vunpack.c.l.b16 %v19852_v32  ;;  %v13059_v34 = vrot.slane %v12909_v62, %v25491_v49  ;;  %v25092_v32 = vpop.permute.xlu0 %20917 }
 0x874   : > { %v19849_v45 = vpack.c.bf16 %v13019_v13, %v13015_v9  ;;  %v19850_v60 = vpack.c.bf16 %v13027_v15, %v13023_v39  ;;  %v12878_v8 = vsel %vm12865_vm14, %v20909_v19, %v12877_v5  ;;  %v13063_v48 = vrot.slane %v12909_v62, %v25492_v41 }
 0x875   : > { %v12908_v37 = vmax.f32 %v24988_v61, %v12878_v8  ;;  %v13434_v43 = vsel %vm3034_vm5, %v13433_v58, %v13351_v53  ;;  %v13449_v56 = vrot.slane %v13373_v17, 5  ;;  %v13461_v12 = vrot.slane %v13374_v11, 5 }
 0x876   : > { %v13067_v20 = vrot.slane %v12909_v62, %v25493_v51  ;;  %v13369_v18 = vunpack.c.l.b16 %v19849_v45  ;;  %v13370_v54 = vunpack.c.h.b16 %v19849_v45  ;;  %v13371_v6 = vunpack.c.l.b16 %v19850_v60 }
 0x877   : > { %v12861_v7 = vrot.slane %v20915_v14, 2  ;;  %v13372_v31 = vunpack.c.h.b16 %v19850_v60  ;;  %v13043_v16 = vrot.slane %v12908_v37, %v25491_v49  ;;  %v13047_v2 = vrot.slane %v12908_v37, %v25492_v41 }
 0x878   : > { %v12860_v10 = vrot.slane %v20914_v55, 2  ;;  %v13424_v4 = vsel %vm2938_vm15, %v13423_v50, %v13422_v35  ;;  %v13436_v61 = vsel %vm2938_vm15, %v13435_v46, %v13434_v43  ;;  %v13473_v33 = vrot.slane %v13375_v21, 5  ;;  %vm25547_vm15 = vmmov %vm25546_vm0 }
 0x879   : > { %v19855_v58 = vpack.c.bf16 %v13063_v48, %v13059_v34  ;;  %v13450_v40 = vsel %vm25545_vm11, %v13449_v56, %v13448_v44  ;;  %v13462_v25 = vsel %vm25546_vm0, %v13461_v12, %v13460_v57  ;;  %v19856_v36 = vpack.c.bf16 %v13067_v20, %v13067_v20  ;;  %vm25553_vm0 = vmmov %vm25552_vm6 }
 0x87a   : > { %v13051_v30 = vrot.slane %v12908_v37, %v25493_v51  ;;  %v13401_v59 = vrot.slane %v13369_v18, 5  ;;  %v13413_v26 = vrot.slane %v13370_v54, 5  ;;  %v13425_v28 = vrot.slane %v13371_v6, 5 }
 0x87b   : > { %v13055_v19 = vrot.slane %v12908_v37, %v25494_v42  ;;  %v13437_v53 = vrot.slane %v13372_v31, 5  ;;  %v19853_v50 = vpack.c.bf16 %v13047_v2, %v13043_v16  ;;  %v12882_v46 = vsel %vm12865_vm14, %v20915_v14, %v12861_v7 }
 0x87c   : > { %v12880_v17 = vsel %vm365_vm3, %v12860_v10, %v12861_v7  ;;  %v13474_v44 = vsel %vm25547_vm15, %v13473_v33, %v25063_v52  ;;  %v13380_v57 = vunpack.c.l.b16 %v19855_v58  ;;  %v13381_v11 = vunpack.c.h.b16 %v19855_v58  ;;  %vm25554_vm15 = vmmov %vm25553_vm0 }
 0x87d   : > { %v20920_v47 = vunpack.i.h.bf16 %v25092_v32  ;;  %v13382_v23 = vunpack.c.l.b16 %v19856_v36  ;;  %v19854_v22 = vpack.c.bf16 %v13055_v19, %v13051_v30  ;;  %v12911_v24 = vmax.f32 %v24990_v27, %v12882_v46 }
 0x87e   : > { %v12881_v9 = vsel %vm12865_vm14, %v20914_v55, %v12880_v17  ;;  %v13402_v13 = vsel %vm25548_vm1, %v13401_v59, %v13400_v29  ;;  %v13414_v39 = vsel %vm25549_vm4, %v13413_v26, %v13412_v3  ;;  %v13426_v15 = vsel %vm25550_vm9, %v13425_v28, %v13424_v4  ;;  %vm25555_vm1 = vmmov %vm25553_vm0 }
 0x87f   : > { %v12910_v35 = vmax.f32 %v24996_v63, %v12881_v9  ;;  %v13438_v52 = vsel %vm25551_vm12, %v13437_v53, %v13436_v61  ;;  %v13376_v62 = vunpack.c.l.b16 %v19853_v50  ;;  %v13087_v5 = vrot.slane %v12911_v24, %v25491_v49  ;;  %vm25556_vm4 = vmmov %vm25553_vm0 }
 0x880   : > { %v13091_v14 = vrot.slane %v12911_v24, %v25492_v41  ;;  %v13377_v45 = vunpack.c.h.b16 %v19853_v50  ;;  %v13095_v27 = vrot.slane %v12911_v24, %v25493_v51  ;;  %v12863_v8 = vrot.slane %v20920_v47, 2  ;;  %vm25557_vm9 = vmmov %vm25553_vm0 }
 0x881   : > { %v13071_v60 = vrot.slane %v12910_v35, %v25491_v49  ;;  %v13451_v29 = vrot.slane %v13380_v57, 4  ;;  %v13378_v55 = vunpack.c.l.b16 %v19854_v22  ;;  %v13075_v21 = vrot.slane %v12910_v35, %v25492_v41  ;;  %vm25558_vm12 = vmmov %vm25553_vm0 }
 0x882   : > { %v19859_v3 = vpack.c.bf16 %v13091_v14, %v13087_v5  ;;  %v13463_v34 = vrot.slane %v13381_v11, 4  ;;  %v13379_v63 = vunpack.c.h.b16 %v19854_v22  ;;  %v19860_v48 = vpack.c.bf16 %v13095_v27, %v13095_v27 }
 0x883   : > { %v13079_v37 = vrot.slane %v12910_v35, %v25493_v51  ;;  %v13475_v43 = vrot.slane %v13382_v23, 4  ;;  %v13403_v56 = vrot.slane %v13376_v62, 4  ;;  %v13083_v12 = vrot.slane %v12910_v35, %v25494_v42 }
 0x884   : > { %v19857_v20 = vpack.c.bf16 %v13075_v21, %v13071_v60  ;;  %v13415_v18 = vrot.slane %v13377_v45, 4  ;;  %v13387_v54 = vunpack.c.l.b16 %v19859_v3  ;;  %v12885_v6 = vsel %vm12865_vm14, %v20920_v47, %v12863_v8 }
 0x885   : > { %v20919_v7 = vunpack.i.l.bf16 %v25092_v32  ;;  %v13452_v31 = vsel %vm25552_vm6, %v13451_v29, %v13450_v40  ;;  %v13427_v16 = vrot.slane %v13378_v55, 4  ;;  %v13388_v2 = vunpack.c.h.b16 %v19859_v3 }
 0x886   : > { %v13389_v10 = vunpack.c.l.b16 %v19860_v48  ;;  %v13439_v4 = vrot.slane %v13379_v63, 4  ;;  %v19858_v61 = vpack.c.bf16 %v13083_v12, %v13079_v37  ;;  %v12913_v33 = vmax.f32 %v24998_v1, %v12885_v6  ;;  %v13503_v37 = vld [vmem:[%s25140_s13 + $0x18] sm:$0xf] }
 0x887   : > { %v12862_v58 = vrot.slane %v20919_v7, 2  ;;  %vm13501_vm11 = vcmask 519168   ;;  %v13464_v36 = vsel %vm25553_vm0, %v13463_v34, %v13462_v25  ;;  %v13476_v30 = vsel %vm25554_vm15, %v13475_v43, %v13474_v44 }
 0x888   : > { %v13404_v59 = vsel %vm25555_vm1, %v13403_v56, %v13402_v13  ;;  %v13383_v26 = vunpack.c.l.b16 %v19857_v20  ;;  %v13416_v32 = vsel %vm25556_vm4, %v13415_v18, %v13414_v39  ;;  %v13453_v40 = vrot.slane %v13387_v54, 3 }
 0x889   : > { %v13384_v28 = vunpack.c.h.b16 %v19857_v20  ;;  %v13115_v19 = vrot.slane %v12913_v33, %v25491_v49  ;;  %v13428_v53 = vsel %vm25557_vm9, %v13427_v16, %v13426_v15  ;;  %v13465_v50 = vrot.slane %v13388_v2, 3 }
 0x88a   : > { %v13477_v46 = vrot.slane %v13389_v10, 3  ;;  %v13119_v1 = vrot.slane %v12913_v33, %v25492_v41  ;;  %v13440_v25 = vsel %vm25558_vm12, %v13439_v4, %v13438_v52  ;;  %v13385_v17 = vunpack.c.l.b16 %v19858_v61 }
 0x88b   : > { %v13123_v44 = vrot.slane %v12913_v33, %v25493_v51  ;;  %v12883_v57 = vsel %vm365_vm3, %v12862_v58, %v12863_v8  ;;  %v13386_v11 = vunpack.c.h.b16 %v19858_v61  ;;  %v13405_v47 = vrot.slane %v13383_v26, 3  ;;  %vm25147_vm3 = vmand %vm13501_vm11, %vm3154_vm10  ;;  %v13492_v58 = vld [vmem:[%s25140_s13] sm:$0xff] }
 0x88c   : > { %v19863_v23 = vpack.c.bf16 %v13119_v1, %v13115_v19  ;;  %v12884_v22 = vsel %vm12865_vm14, %v20919_v7, %v12883_v57  ;;  %v13417_v24 = vrot.slane %v13384_v28, 3  ;;  %v13454_v9 = vsel %vm2947_vm8, %v13453_v40, %v13452_v31  ;;  %v22618_v1 = vld [vmem:[#allocation13 + $0x1d8] sm:$0xff] (%p152_p12)   ;;  %v22623_v57 = vld [vmem:[#allocation13 + $0x250] sm:$0xff] (%p152_p12)  }
 0x88d   : > { %v19864_v13 = vpack.c.bf16 %v13123_v44, %v13123_v44  ;;  %v12912_v39 = vmax.f32 %v25003_v0, %v12884_v22  ;;  %v13466_v15 = vsel %vm2947_vm8, %v13465_v50, %v13464_v36  ;;  %v13478_v35 = vsel %vm2947_vm8, %v13477_v46, %v13476_v30  ;;  %v22616_v50 = vld [vmem:[#allocation13 + $0x218] sm:$0xff] (%p152_p12)   ;;  %v22621_v44 = vld [vmem:[#allocation13 + $0x290] sm:$0xff] (%p152_p12)   ;;  %v22627_v22 = vld [vmem:[#allocation13 + $0x248] sm:$0xff] (%p152_p12)  }
 0x88e   : > { %v13394_v52 = vunpack.c.l.b16 %v19863_v23  ;;  %v13395_v62 = vunpack.c.h.b16 %v19863_v23  ;;  %v13429_v60 = vrot.slane %v13385_v17, 3  ;;  %v13406_v0 = vsel %vm2947_vm8, %v13405_v47, %v13404_v59  ;;  %v13495_v59 = vld [vmem:[%s25140_s13 + $0x8] sm:$0xff]  ;;  %20097 = vmatprep.subr.bf16.mxu0 (%p152_p12), %v22616_v50  ;;  %v22620_v17 = vld [vmem:[#allocation13 + $0x210] sm:$0xff] (%p152_p12)   ;;  %v22625_v47 = vld [vmem:[#allocation13 + $0x288] sm:$0xff] (%p152_p12)  }
 0x88f   : > { %v13396_v5 = vunpack.c.l.b16 %v19864_v13  ;;  %v13099_v14 = vrot.slane %v12912_v39, %v25491_v49  ;;  %v13103_v45 = vrot.slane %v12912_v39, %v25492_v41  ;;  %v13107_v27 = vrot.slane %v12912_v39, %v25493_v51  ;;  %v13498_v49 = vld [vmem:[%s25140_s13 + $0x10] sm:$0xff]  ;;  %v22617_v46 = vld [vmem:[#allocation13 + $0x298] sm:$0xff] (%p152_p12)   ;;  %20098 = vmatpush3.bf16.msra.mxu0 (%p152_p12), %v22618_v1  ;;  %v22626_v23 = vld [vmem:[#allocation13 + $0x1c8] sm:$0xff] (%p152_p12)  }
 0x890   : > { %v13455_v8 = vrot.slane %v13394_v52, 2  ;;  %v13467_v29 = vrot.slane %v13395_v62, 2  ;;  %v13111_v55 = vrot.slane %v12912_v39, %v25494_v42  ;;  %v13441_v3 = vrot.slane %v13386_v11, 3  ;;  %20119 = vmatprep.subr.bf16.mxu1 (%p152_p12), %v22617_v46  ;;  %20099 = vmatprep.subr.bf16.mxu0 (%p152_p12), %v22620_v17  ;;  %v22624_v11 = vld [vmem:[#allocation13 + $0x208] sm:$0xff] (%p152_p12)   ;;  %v22630_v13 = vld [vmem:[#allocation13 + $0x1c0] sm:$0xff] (%p152_p12)   ;;  %v22634_v52 = vld [vmem:[#allocation13 + $0x1b8] sm:$0xff] (%p152_p12)  }
 0x891   : > { %v13479_v21 = vrot.slane %v13396_v5, 2  ;;  %v19861_v34 = vpack.c.bf16 %v13103_v45, %v13099_v14  ;;  %v13418_v63 = vsel %vm2947_vm8, %v13417_v24, %v13416_v32  ;;  %v13430_v18 = vsel %vm2947_vm8, %v13429_v60, %v13428_v53  ;;  %v22628_v24 = vld [vmem:[#allocation13 + $0x200] sm:$0xff] (%p152_p12)   ;;  %v22635_v62 = vld [vmem:[#allocation13 + $0x238] sm:$0xff] (%p152_p12)   ;;  %v22636_v5 = vld [vmem:[#allocation13 + $0x1f0] sm:$0xff] (%p152_p12)  }
 0x892   : > { %v19862_v41 = vpack.c.bf16 %v13111_v55, %v13107_v27  ;;  %v13456_v51 = vsel %vm2950_vm13, %v13455_v8, %v13454_v9  ;;  %v13468_v48 = vsel %vm2950_vm13, %v13467_v29, %v13466_v15  ;;  %v13442_v31 = vsel %vm2947_vm8, %v13441_v3, %v13440_v25  ;;  %v22619_v25 = vld [vmem:[#allocation13 + $0x258] sm:$0xff] (%p152_p12)   ;;  %v22629_v9 = vld [vmem:[#allocation13 + $0x280] sm:$0xff] (%p152_p12)   ;;  %v22637_v14 = vld [vmem:[#allocation13 + $0x270] sm:$0xff] (%p152_p12)  }
 0x893   : > { %v13390_v43 = vunpack.c.l.b16 %v19861_v34  ;;  %v13391_v56 = vunpack.c.h.b16 %v19861_v34  ;;  %v13480_v12 = vsel %vm2950_vm13, %v13479_v21, %v13478_v35  ;;  %v13483_v20 = vpack.c.b16 %v13468_v48, %v13456_v51  ;;  %20120 = vmatpush3.bf16.msra.mxu1 (%p152_p12), %v22619_v25  ;;  %20100 = vmatpush3.bf16.msra.mxu0 (%p152_p12), %v22622_v38  ;;  %v22631_v39 = vld [vmem:[#allocation13 + $0x240] sm:$0xff] (%p152_p12)   ;;  %v22632_v15 = vld [vmem:[#allocation13 + $0x1f8] sm:$0xff] (%p152_p12)   ;;  %v22638_v45 = vld [vmem:[#allocation13 + $0x1b0] sm:$0xff] (%p152_p12)  }
 0x894   : > { %v13392_v54 = vunpack.c.l.b16 %v19862_v41  ;;  %v13393_v6 = vunpack.c.h.b16 %v19862_v41  ;;  %v13484_v7 = vpack.c.b16 %v13480_v12, %v13480_v12  ;;  %20121 = vmatprep.subr.bf16.mxu1 (%p152_p12), %v22621_v44  ;;  %20101 = vmatprep.subr.bf16.mxu0 (%p152_p12), %v22624_v11  ;;  %v22633_v35 = vld [vmem:[#allocation13 + $0x278] sm:$0xff] (%p152_p12)   ;;  %v22639_v27 = vld [vmem:[#allocation13 + $0x230] sm:$0xff] (%p152_p12)   ;;  %v22640_v60 = vld [vmem:[#allocation13 + $0x1e8] sm:$0xff] (%p152_p12)  }
 0x895   : > { %v13407_v16 = vrot.slane %v13390_v43, 2  ;;  %v13419_v2 = vrot.slane %v13391_v56, 2  ;;  %v13499_v10 = vsel %vm24388_vm7, %v13483_v20, %v13498_v49  ;;  %v22641_v8 = vld [vmem:[#allocation13 + $0x268] sm:$0xff] (%p152_p12)   ;;  %v22645_v3 = vld [vmem:[#allocation13 + $0x260] sm:$0xff] (%p152_p12)   ;;  %v22658_v46 = vld [vmem:[#allocation13 + $0x338] sm:$0xff] (%p152_p12)  }
 0x896   : > { %v13431_v4 = vrot.slane %v13392_v54, 2  ;;  %v13443_v61 = vrot.slane %v13393_v6, 2  ;;  %13500 = vst [vmem:[%s25140_s13 + $0x10] sm:$0xff] %v13499_v10  ;;  %v13504_v33 = vsel %vm25147_vm3, %v13484_v7, %v13503_v37  ;;  %v22642_v29 = vld [vmem:[#allocation13 + $0x1a8] sm:$0xff] (%p152_p12)   ;;  %v22646_v21 = vld [vmem:[#allocation13 + $0x1a0] sm:$0xff] (%p152_p12)   ;;  %v22656_v54 = vld [vmem:[#allocation13 + $0x318] sm:$0xff] (%p152_p12)  }
 0x897   : > { %v13408_v36 = vsel %vm2950_vm13, %v13407_v16, %v13406_v0  ;;  %v13420_v30 = vsel %vm2950_vm13, %v13419_v2, %v13418_v63  ;;  %13505 = vst [vmem:[%s25140_s13 + $0x18] sm:$0xf] %v13504_v33  ;;  %20122 = vmatpush3.bf16.msra.mxu1 (%p152_p12), %v22623_v57  ;;  %20102 = vmatpush3.bf16.msra.mxu0 (%p152_p12), %v22626_v23  ;;  %v22643_v55 = vld [vmem:[#allocation13 + $0x228] sm:$0xff] (%p152_p12)   ;;  %v22644_v0 = vld [vmem:[#allocation13 + $0x1e0] sm:$0xff] (%p152_p12)   ;;  %v23221_v6 = vmov (%p152_p12), 0.0   ;;  %v22659_v17 = vld [vmem:[#allocation13 + $0x310] sm:$0xff] (%p152_p12)  }
 0x898   : > { %v13432_v26 = vsel %vm2950_vm13, %v13431_v4, %v13430_v18  ;;  %v13444_v32 = vsel %vm2950_vm13, %v13443_v61, %v13442_v31  ;;  %v13481_v40 = vpack.c.b16 %v13420_v30, %v13408_v36  ;;  %154 = sbr.rel (!%p152_p12) target bundleno = 107 (0x6b), region = 107  ;;  %20123 = vmatprep.subr.bf16.mxu1 (%p152_p12), %v22625_v47  ;;  %20103 = vmatprep.subr.bf16.mxu0 (%p152_p12), %v22628_v24  ;;  %v22647_v34 = vld [vmem:[#allocation13 + $0x220] sm:$0xff] (%p152_p12)   ;;  %v22660_v44 = vld [vmem:[#allocation13 + $0x2d0] sm:$0xff] (%p152_p12)   ;;  %v22662_v57 = vld [vmem:[#allocation13 + $0x308] sm:$0xff] (%p152_p12)  }
 0x899   : > { %v13482_v28 = vpack.c.b16 %v13444_v32, %v13432_v26  ;;  %v22661_v38 = vld [vmem:[#allocation13 + $0x330] sm:$0xff] (%p152_p12)   ;;  %v22663_v11 = vld [vmem:[#allocation13 + $0x2c8] sm:$0xff] (%p152_p12)   ;;  %v22665_v23 = vld [vmem:[#allocation13 + $0x300] sm:$0xff] (%p152_p12)  }
 0x89a   : > { %v13493_v19 = vsel %vm24388_vm7, %v13481_v40, %v13492_v58  ;;  %v22657_v40 = vld [vmem:[#allocation13 + $0x2d8] sm:$0xff] (%p152_p12)   ;;  %v22664_v47 = vld [vmem:[#allocation13 + $0x328] sm:$0xff] (%p152_p12)  }
 0x89b   : > { %13494 = vst [vmem:[%s25140_s13] sm:$0xff] %v13493_v19  ;;  %v13496_v53 = vsel %vm24388_vm7, %v13482_v28, %v13495_v59  ;;  %20124 = vmatpush3.bf16.msra.mxu1 (%p152_p12), %v22627_v22  ;;  %20104 = vmatpush3.bf16.msra.mxu0 (%p152_p12), %v22630_v13  ;;  %v22667_v13 = vld [vmem:[#allocation13 + $0x320] sm:$0xff] (%p152_p12)  }
 0x89c   : > { %13497 = vst [vmem:[%s25140_s13 + $0x8] sm:$0xff] %v13496_v53  ;;  %20125 = vmatprep.subr.bf16.mxu1 (%p152_p12), %v22629_v9  ;;  %20105 = vmatprep.subr.bf16.mxu0 (%p152_p12), %v22632_v15  ;;  %v22666_v9 = vld [vmem:[#allocation13 + $0x2c0] sm:$0xff] (%p152_p12)  }
 0x89f   :  { %20126 = vmatpush3.bf16.msra.mxu1 %v22631_v39  ;;  %20106 = vmatpush3.bf16.msra.mxu0 %v22634_v52  ;;  %v22668_v52 = vld [vmem:[#allocation13 + $0x2f8] sm:$0xff]  }
 0x8a0   :  { %20127 = vmatprep.subr.bf16.mxu1 %v22633_v35  ;;  %20107 = vmatprep.subr.bf16.mxu0 %v22636_v5 }
 0x8a3   :  { %20128 = vmatpush3.bf16.msra.mxu1 %v22635_v62  ;;  %20108 = vmatpush3.bf16.msra.mxu0 %v22638_v45  ;;  %v13506_v63 = vld [vmem:[#allocation4] sm:$0xff]  ;;  %v13507_v41 = vld [vmem:[#allocation4 + $0x8] sm:$0xff]  ;;  %v22671_v22 = vld [vmem:[#allocation4 + $0x18] ss:$0 sps:$4 sm:$0xff]  }
 0x8a4   :  { %20129 = vmatprep.subr.bf16.mxu1 %v22637_v14  ;;  %20109 = vmatprep.subr.bf16.mxu0 %v22640_v60  ;;  %v13510_v49 = vld [vmem:[#allocation4 + $0x1c] sm:$0xff]  ;;  %v19382_v51 = vcombine.low %v13506_v63, %v13506_v63  ;;  %v19383_v48 = vcombine.high %v13506_v63, %v13506_v63  ;;  %v13511_v43 = vld [vmem:[#allocation4 + $0x24] sm:$0xff]  ;;  %v19384_v56 = vcombine.low %v13507_v41, %v13507_v41  ;;  %v22672_v24 = vld [vmem:[#allocation4 + $0x34] ss:$0 sps:$4 sm:$0xff]   ;;  %v25209_v39 = vunpack.c.l.b16 %v22671_v22 }
 0x8a5   :  { %v19389_v42 = vcombine.low %v13510_v49, %v13510_v49  ;;  %v19390_v37 = vcombine.high %v13510_v49, %v13510_v49  ;;  %v19385_v12 = vcombine.high %v13507_v41, %v13507_v41  ;;  %v19391_v20 = vcombine.low %v13511_v43, %v13511_v43  ;;  %v22669_v62 = vld [vmem:[#allocation13 + $0x78] sm:$0xff]   ;;  %v22679_v63 = vld [vmem:[#allocation13 + $0x68] sm:$0xff]  }
 0x8a6   :  { %v19392_v18 = vcombine.high %v13511_v43, %v13511_v43  ;;  %v25177_v7 = vunpack.c.l.b16 %v19382_v51  ;;  %v25179_v31 = vunpack.c.l.b16 %v19383_v48  ;;  %v25185_v10 = vunpack.c.l.b16 %v19384_v56  ;;  %v22670_v14 = vld [vmem:[#allocation13 + $0x2b8] sm:$0xff]   ;;  %v22680_v49 = vld [vmem:[#allocation13 + $0x2a8] sm:$0xff]  }
 0x8a7   :  { %20130 = vmatpush3.bf16.msra.mxu1 %v22639_v27  ;;  %20110 = vmatpush3.bf16.msra.mxu0 %v22642_v29  ;;  %v25181_v16 = vunpack.c.l.b16 %v19389_v42  ;;  %v25183_v2 = vunpack.c.l.b16 %v19390_v37  ;;  %v25187_v4 = vunpack.c.l.b16 %v19385_v12  ;;  %v25189_v61 = vunpack.c.l.b16 %v19391_v20  ;;  %v22673_v27 = vld [vmem:[#allocation13 + $0x38] sm:$0xff]   ;;  %v22674_v29 = vld [vmem:[#allocation13 + $0x2f0] sm:$0xff]   ;;  %v13508_v41 = vld [vmem:[#allocation4 + $0x10] sm:$0xff] }
 0x8a8   :  { %20131 = vmatprep.subr.bf16.mxu1 %v22641_v8  ;;  %20111 = vmatprep.subr.bf16.mxu0 %v22644_v0  ;;  %v25191_v33 = vunpack.c.l.b16 %v19392_v18  ;;  %v13776_v58 = vrot.slane %v25179_v31, 1  ;;  %v13773_v36 = vrot.slane %v25177_v7, 1  ;;  %v13778_v59 = vrot.slane %v25185_v10, 1  ;;  %v22676_v0 = vld [vmem:[#allocation13 + $0x2b0] sm:$0xff]   ;;  %v13512_v51 = vld [vmem:[#allocation4 + $0x2c] sm:$0xff] }
 0x8a9   :  { %v13780_v30 = vrot.slane %v25187_v4, 1  ;;  %v25211_v15 = vunpack.c.l.b16 %v22672_v24  ;;  %v14279_v35 = vrot.slane %v25183_v2, 7  ;;  %v13786_v5 = vrot.slane %v25209_v39, 1  ;;  %v22681_v48 = vld [vmem:[#allocation13 + $0x28] sm:$0xff]   ;;  %v22682_v12 = vld [vmem:[#allocation13 + $0x2e0] sm:$0xff]  }
 0x8aa   :  { %v13777_v26 = vsel %vm3034_vm5, %v25183_v2, %v13776_v58  ;;  %v13775_v32 = vsel %vm3034_vm5, %v25181_v16, %v13773_v36  ;;  %v13779_v50 = vsel %vm3034_vm5, %v25189_v61, %v13778_v59  ;;  %v19386_v42 = vcombine.low %v13508_v41, %v13508_v41  ;;  %v22683_v18 = vld [vmem:[#allocation13 + $0x60] sm:$0xff]   ;;  %v22699_v22 = vld [vmem:[#allocation13 + $0xe8] sm:$0xff]  }
 0x8ab   :  { %20132 = vmatpush3.bf16.msra.mxu1 %v22643_v55  ;;  %20112 = vmatpush3.bf16.msra.mxu0 %v22646_v21  ;;  %v13789_v28 = vpack.c.b16 %v13777_v26, %v13777_v26  ;;  %v13781_v19 = vsel %vm3034_vm5, %v25191_v33, %v13780_v30  ;;  %v13788_v53 = vpack.c.b16 %v13775_v32, %v13775_v32  ;;  %v22675_v55 = vld [vmem:[#allocation13 + $0x70] sm:$0xff]   ;;  %v14283_v20 = vrot.slane %v25191_v33, 7  ;;  %v22684_v59 = vld [vmem:[#allocation13 + $0x2a0] sm:$0xff]   ;;  %v22698_v24 = vld [vmem:[#allocation13 + $0x48] sm:$0xff]  }
 0x8ac   :  { %20133 = vmatprep.subr.bf16.mxu1 %v22645_v3  ;;  %20141 = vmatprep.subr.bf16.mxu0 %v22656_v54  ;;  %v13791_v1 = vpack.c.b16 %v13781_v19, %v13781_v19  ;;  %v13790_v25 = vpack.c.b16 %v13779_v50, %v13779_v50  ;;  %v13787_v45 = vsel %vm3034_vm5, %v25211_v15, %v13786_v5  ;;  %v22677_v21 = vld [vmem:[#allocation13 + $0x30] sm:$0xff]   ;;  %v25222_v54 = vunpack.c.l.b16 %v19386_v42  ;;  %v22685_v26 = vld [vmem:[#allocation13 + $0x20] sm:$0xff]   ;;  %v22716_v42 = vld [vmem:[#allocation13 + $0x88] sm:$0xff]  }
 0x8ad   :  { %14149 = vmatprep.mubr.bf16.mxu0 %v13789_v28  ;;  %v14280_v60 = vsel %vm3034_vm5, %v14279_v35, %v25179_v31  ;;  %v13794_v8 = vpack.c.b16 %v13787_v45, %v13787_v45  ;;  %v19387_v37 = vcombine.high %v13508_v41, %v13508_v41  ;;  %v19393_v43 = vcombine.low %v13512_v51, %v13512_v51  ;;  %v22690_v28 = vld [vmem:[#allocation13 + $0x58] sm:$0xff]   ;;  %v22703_v35 = vld [vmem:[#allocation13 + $0xe0] sm:$0xff]   ;;  %v22713_v41 = vld [vmem:[#allocation13 + $0x130] sm:$0xff]  }
 0x8ae   :  { %14189 = vmatprep.mubr.bf16.mxu1 %v13791_v1  ;;  %14150 = vmatmul.mubr.bf16.vlgmr.msra.gmra.mxu0 %v13788_v53  ;;  %v14292_v3 = vpack.c.b16 %v14280_v60, %v14280_v60  ;;  %v19394_v56 = vcombine.high %v13512_v51, %v13512_v51  ;;  %v14284_v19 = vsel %vm3034_vm5, %v14283_v20, %v25187_v4  ;;  %v22704_v5 = vld [vmem:[#allocation13] sm:$0xff]   ;;  %v22706_v60 = vld [vmem:[#allocation13 + $0xd8] sm:$0xff]   ;;  %v22714_v51 = vld [vmem:[#allocation13 + $0xc8] sm:$0xff]  }
 0x8af   :  { %20134 = vmatpush3.bf16.msra.mxu1 %v22647_v34  ;;  %20142 = vmatpush3.bf16.msra.mxu0 %v22657_v40  ;;  %v22678_v34 = vld [vmem:[#allocation13 + $0x2e8] sm:$0xff]   ;;  %v25224_v58 = vunpack.c.l.b16 %v19387_v37  ;;  %v25226_v36 = vunpack.c.l.b16 %v19393_v43  ;;  %v13782_v40 = vrot.slane %v25222_v54, 1  ;;  %v22705_v45 = vld [vmem:[#allocation13 + $0xa0] sm:$0xff]   ;;  %v14281_v43 = vrot.slane %v25189_v61, 7 }
 0x8b0   :  { %20675 = vmatprep.subr.bf16.mxu1 %v23221_v6  ;;  %20143 = vmatprep.subr.bf16.mxu0 %v22659_v17  ;;  %v25228_v30 = vunpack.c.l.b16 %v19394_v56  ;;  %v22692_v17 = vld [vmem:[#allocation13 + $0x18] sm:$0xff]   ;;  %v22717_v37 = vld [vmem:[#allocation13 + $0x128] sm:$0xff]   ;;  %v22718_v56 = vld [vmem:[#allocation13 + $0xc0] sm:$0xff]  }
 0x8b1   :  { %v13784_v32 = vrot.slane %v25224_v58, 1  ;;  %v13783_v50 = vsel %vm3034_vm5, %v25226_v36, %v13782_v40  ;;  %v22720_v20 = vld [vmem:[#allocation13 + $0x80] sm:$0xff]   ;;  %v22724_v40 = vld [vmem:[#allocation13 + $0x198] sm:$0xff]  }
 0x8b2   :  { %14190 = vmatmul.mubr.bf16.vlgmr.msra.gmra.mxu1 %v13790_v25  ;;  %v13792_v25 = vpack.c.b16 %v13783_v50, %v13783_v50  ;;  %v22726_v50 = vld [vmem:[#allocation13 + $0x110] sm:$0xff]  }
 0x8b3   :  { %20676 = vmatpush3.bf16.msra.mxu1 %v22658_v46  ;;  %20683 = vmatprep.mubr.msk.bf16.mxu1 %vm23222_vm2, %v23221_v6  ;;  %v13785_v53 = vsel %vm3034_vm5, %v25228_v30, %v13784_v32  ;;  %v22691_v46 = vld [vmem:[#allocation13 + $0xf8] sm:$0xff]  }
 0x8b4   :  { %20677 = vmatprep.subr.bf16.mxu1 %v23221_v6  ;;  %20144 = vmatpush3.bf16.msra.mxu0 %v22660_v44  ;;  %v13793_v1 = vpack.c.b16 %v13785_v53, %v13785_v53  ;;  %v22693_v44 = vld [vmem:[#allocation13 + $0xb8] sm:$0xff]   ;;  %v22727_v53 = vld [vmem:[#allocation13 + $0x190] sm:$0xff]  }
 0x8b5   :  { %20145 = vmatprep.subr.bf16.mxu0 %v22662_v57  ;;  %v22695_v57 = vld [vmem:[#allocation13 + $0xf0] sm:$0xff]  }
 0x8b6   :  { %14229 = vmatprep.mubr.bf16.mxu0 %v13793_v1  ;;  %v14887_v1 = vrot.slane %v25179_v31, 2 }
 0x8b7   :  { %20678 = vmatpush3.bf16.msra.mxu1 %v22661_v38  ;;  %v14294_v38 = vpack.c.b16 %v14284_v19, %v14284_v19  ;;  %v22725_v19 = vld [vmem:[#allocation13 + $0x150] sm:$0xff]  }
 0x8b8   :  { %20679 = vmatprep.subr.bf16.mxu1 %v23221_v6  ;;  %20146 = vmatpush3.bf16.msra.mxu0 %v22663_v11  ;;  %v22694_v11 = vld [vmem:[#allocation13 + $0x50] sm:$0xff]  }
 0x8b9   :  { %20147 = vmatprep.subr.bf16.mxu0 %v22665_v23  ;;  %v22697_v23 = vld [vmem:[#allocation13 + $0xb0] sm:$0xff]  }
 0x8bb   :  { %20680 = vmatpush3.bf16.msra.mxu1 %v22664_v47  ;;  %v22696_v47 = vld [vmem:[#allocation13 + $0x10] sm:$0xff]  }
 0x8bc   :  { %20681 = vmatprep.subr.bf16.mxu1 %v23221_v6  ;;  %20148 = vmatpush3.bf16.msra.mxu0 %v22666_v9  ;;  %v22700_v9 = vld [vmem:[#allocation13 + $0x8] sm:$0xff]  }
 0x8bd   :  { %20149 = vmatprep.subr.bf16.mxu0 %v22668_v52  ;;  %v14277_v52 = vrot.slane %v25181_v16, 7 }
 0x8bf   :  { %20682 = vmatpush3.bf16.msra.mxu1 %v22667_v13  ;;  %v22701_v13 = vld [vmem:[#allocation13 + $0xa8] sm:$0xff]  }
 0x8c0   :  { %20168 = vmatprep.subr.bf16.mxu1 %v22669_v62  ;;  %20150 = vmatpush3.bf16.msra.mxu0 %v22670_v14  ;;  %v22702_v62 = vld [vmem:[#allocation13 + $0x40] sm:$0xff]   ;;  %v14287_v14 = vrot.slane %v25228_v30, 7 }
 0x8c1   :  { %20151 = vmatprep.subr.bf16.mxu0 %v22674_v29  ;;  %v22708_v29 = vld [vmem:[#allocation13 + $0x98] sm:$0xff]  }
 0x8c2   :  { %20684 = vmatmul.mubr.msk.bf16.vlgmr.msra.gmra.mxu1 %vm12865_vm14, %v13794_v8  ;;  %v22707_v8 = vld [vmem:[#allocation13 + $0x178] sm:$0xff]  }
 0x8c3   :  { %20169 = vmatpush3.bf16.msra.mxu1 %v22673_v27  ;;  %14651 = vmatprep.mubr.bf16.mxu1 %v14292_v3  ;;  %v14278_v27 = vsel %vm3034_vm5, %v14277_v52, %v25177_v7  ;;  %v22709_v3 = vld [vmem:[#allocation13 + $0x138] sm:$0xff]  }
 0x8c4   :  { %20170 = vmatprep.subr.bf16.mxu1 %v22675_v55  ;;  %20152 = vmatpush3.bf16.msra.mxu0 %v22676_v0  ;;  %v14288_v55 = vsel %vm3034_vm5, %v14287_v14, %v25224_v58  ;;  %v14291_v0 = vpack.c.b16 %v14278_v27, %v14278_v27  ;;  %v22735_v52 = vld [vmem:[#allocation13 + $0x438] sm:$0xff]  }
 0x8c5   :  { %20153 = vmatprep.subr.bf16.mxu0 %v22678_v34  ;;  %v22711_v34 = vld [vmem:[#allocation13 + $0x170] sm:$0xff]   ;;  %v22737_v27 = vld [vmem:[#allocation13 + $0x3f8] sm:$0xff]  }
 0x8c7   :  { %20171 = vmatpush3.bf16.msra.mxu1 %v22677_v21  ;;  %v22710_v21 = vld [vmem:[#allocation13 + $0xd0] sm:$0xff]  }
 0x8c8   :  { %20172 = vmatprep.subr.bf16.mxu1 %v22679_v63  ;;  %20154 = vmatpush3.bf16.msra.mxu0 %v22680_v49  ;;  %v14296_v63 = vpack.c.b16 %v14288_v55, %v14288_v55  ;;  %v22712_v49 = vld [vmem:[#allocation13 + $0x90] sm:$0xff]  }
 0x8c9   :  { %20155 = vmatprep.subr.bf16.mxu0 %v22682_v12  ;;  %v22719_v12 = vld [vmem:[#allocation13 + $0x160] sm:$0xff]  }
 0x8cb   :  { %20173 = vmatpush3.bf16.msra.mxu1 %v22681_v48  ;;  %v22715_v48 = vld [vmem:[#allocation13 + $0x168] sm:$0xff]  }
 0x8cc   :  { %20174 = vmatprep.subr.bf16.mxu1 %v22683_v18  ;;  %20156 = vmatpush3.bf16.msra.mxu0 %v22684_v59  ;;  %v14282_v18 = vsel %vm3034_vm5, %v14281_v43, %v25185_v10  ;;  %v22721_v59 = vld [vmem:[#allocation13 + $0x120] sm:$0xff]   ;;  %v22750_v43 = vld [vmem:[#allocation13 + $0x398] sm:$0xff]  }
 0x8cd   :  { %20190 = vmatprep.subr.bf16.mxu0 %v22691_v46  ;;  %v14293_v32 = vpack.c.b16 %v14282_v18, %v14282_v18  ;;  %v22728_v46 = vld [vmem:[#allocation13 + $0x148] sm:$0xff]   ;;  %v22754_v18 = vld [vmem:[#allocation13 + $0x390] sm:$0xff]  }
 0x8cf   :  { %20175 = vmatpush3.bf16.msra.mxu1 %v22685_v26  ;;  %14230 = vmatmul.mubr.bf16.vlgmr.msra.gmra.mxu0 %v13792_v25  ;;  %v22722_v26 = vld [vmem:[#allocation13 + $0x158] sm:$0xff]   ;;  %v22730_v25 = vld [vmem:[#allocation13 + $0x188] sm:$0xff]  }
 0x8d0   :  { %20176 = vmatprep.subr.bf16.mxu1 %v22690_v28  ;;  %20191 = vmatpush3.bf16.msra.mxu0 %v22693_v44  ;;  %v22723_v28 = vld [vmem:[#allocation13 + $0x118] sm:$0xff]   ;;  %v22729_v44 = vld [vmem:[#allocation13 + $0x108] sm:$0xff]  }
 0x8d1   :  { %14691 = vmatprep.mubr.bf16.mxu0 %v14294_v38  ;;  %20192 = vmatprep.subr.bf16.mxu0 %v22695_v57  ;;  %v14285_v38 = vrot.slane %v25226_v36, 7  ;;  %v22731_v57 = vld [vmem:[#allocation13 + $0x140] sm:$0xff]  }
 0x8d3   :  { %20177 = vmatpush3.bf16.msra.mxu1 %v22692_v17  ;;  %v14289_v17 = vrot.slane %v25211_v15, 7 }
 0x8d4   :  { %20178 = vmatprep.subr.bf16.mxu1 %v22694_v11  ;;  %20193 = vmatpush3.bf16.msra.mxu0 %v22697_v23  ;;  %v14888_v11 = vrot.slane %v25183_v2, 1  ;;  %v14893_v23 = vrot.slane %v25187_v4, 2 }
 0x8d5   :  { %20194 = vmatprep.subr.bf16.mxu0 %v22699_v22  ;;  %v22733_v22 = vld [vmem:[#allocation13 + $0x180] sm:$0xff]  }
 0x8d6   :  { %v14889_v14 = vsel %vm3034_vm5, %v14888_v11, %v14887_v1  ;;  %v14890_v1 = vrot.slane %v25185_v10, 2  ;;  %v22765_v11 = vld [vmem:[#allocation13 + $0x3c0] sm:$0xff]  }
 0x8d7   :  { %20179 = vmatpush3.bf16.msra.mxu1 %v22696_v47  ;;  %v22732_v47 = vld [vmem:[#allocation13 + $0x100] sm:$0xff]   ;;  %v14906_v55 = vpack.c.b16 %v14889_v14, %v14889_v14  ;;  %v22770_v14 = vld [vmem:[#allocation13 + $0x470] sm:$0xff]  }
 0x8d8   :  { %20180 = vmatprep.subr.bf16.mxu1 %v22698_v24  ;;  %20195 = vmatpush3.bf16.msra.mxu0 %v22701_v13  ;;  %v14290_v24 = vsel %vm3034_vm5, %v14289_v17, %v25209_v39  ;;  %v14286_v13 = vsel %vm3034_vm5, %v14285_v38, %v25222_v54  ;;  %v14891_v17 = vrot.slane %v25189_v61, 1  ;;  %v22764_v38 = vld [vmem:[#allocation13 + $0x340] sm:$0xff]  }
 0x8d9   :  { %20196 = vmatprep.subr.bf16.mxu0 %v22703_v35  ;;  %v22734_v35 = vld [vmem:[#allocation13 + $0x3b8] sm:$0xff]  }
 0x8db   :  { %20181 = vmatpush3.bf16.msra.mxu1 %v22700_v9  ;;  %v14894_v9 = vrot.slane %v25191_v33, 1 }
 0x8dc   :  { %20182 = vmatprep.subr.bf16.mxu1 %v22702_v62  ;;  %20197 = vmatpush3.bf16.msra.mxu0 %v22705_v45  ;;  %v14297_v62 = vpack.c.b16 %v14290_v24, %v14290_v24  ;;  %v14295_v45 = vpack.c.b16 %v14286_v13, %v14286_v13  ;;  %v22766_v24 = vld [vmem:[#allocation13 + $0x4b8] sm:$0xff]  }
 0x8dd   :  { %20198 = vmatprep.subr.bf16.mxu0 %v22706_v60  ;;  %v14895_v60 = vsel %vm3034_vm5, %v14894_v9, %v14893_v23  ;;  %v14900_v23 = vrot.slane %v25228_v30, 1  ;;  %v22767_v13 = vld [vmem:[#allocation13 + $0x478] sm:$0xff]  }
 0x8df   :  { %20183 = vmatpush3.bf16.msra.mxu1 %v22704_v5  ;;  %v22736_v5 = vld [vmem:[#allocation13 + $0x378] sm:$0xff]  }
 0x8e0   :  { %20212 = vmatprep.subr.bf16.mxu1 %v22707_v8  ;;  %20199 = vmatpush3.bf16.msra.mxu0 %v22708_v29  ;;  %v22738_v8 = vld [vmem:[#allocation13 + $0x3b0] sm:$0xff]  }
 0x8e1   :  { %20200 = vmatprep.subr.bf16.mxu0 %v22710_v21  ;;  %v22739_v29 = vld [vmem:[#allocation13 + $0x430] sm:$0xff]  }
 0x8e2   :  { %14652 = vmatmul.mubr.bf16.vlgmr.msra.gmra.mxu1 %v14291_v0  ;;  %v22740_v0 = vld [vmem:[#allocation13 + $0x370] sm:$0xff]  }
 0x8e3   :  { %20213 = vmatpush3.bf16.msra.mxu1 %v22709_v3  ;;  %14731 = vmatprep.mubr.bf16.mxu1 %v14296_v63  ;;  %v14908_v3 = vpack.c.b16 %v14895_v60, %v14895_v60  ;;  %v22741_v21 = vld [vmem:[#allocation13 + $0x3f0] sm:$0xff]   ;;  %v22743_v63 = vld [vmem:[#allocation13 + $0x428] sm:$0xff]  }
 0x8e4   :  { %20214 = vmatprep.subr.bf16.mxu1 %v22711_v34  ;;  %20201 = vmatpush3.bf16.msra.mxu0 %v22712_v49  ;;  %v22742_v34 = vld [vmem:[#allocation13 + $0x3a8] sm:$0xff]  }
 0x8e5   :  { %20202 = vmatprep.subr.bf16.mxu0 %v22714_v51  ;;  %v22744_v49 = vld [vmem:[#allocation13 + $0x368] sm:$0xff]   ;;  %v22746_v51 = vld [vmem:[#allocation13 + $0x3a0] sm:$0xff]  }
 0x8e6   :  { %v22772_v60 = vld [vmem:[#allocation13 + $0x4a8] sm:$0xff]  }
 0x8e7   :  { %20215 = vmatpush3.bf16.msra.mxu1 %v22713_v41  ;;  %v22745_v41 = vld [vmem:[#allocation13 + $0x3e8] sm:$0xff]  }
 0x8e8   :  { %20216 = vmatprep.subr.bf16.mxu1 %v22715_v48  ;;  %20203 = vmatpush3.bf16.msra.mxu0 %v22716_v42  ;;  %v22747_v48 = vld [vmem:[#allocation13 + $0x420] sm:$0xff]  }
 0x8e9   :  { %20204 = vmatprep.subr.bf16.mxu0 %v22718_v56  ;;  %v22748_v42 = vld [vmem:[#allocation13 + $0x360] sm:$0xff]   ;;  %v22751_v56 = vld [vmem:[#allocation13 + $0x418] sm:$0xff]  }
 0x8eb   :  { %20217 = vmatpush3.bf16.msra.mxu1 %v22717_v37  ;;  %v22749_v37 = vld [vmem:[#allocation13 + $0x3e0] sm:$0xff]  }
 0x8ec   :  { %20218 = vmatprep.subr.bf16.mxu1 %v22719_v12  ;;  %20205 = vmatpush3.bf16.msra.mxu0 %v22720_v20  ;;  %v22752_v12 = vld [vmem:[#allocation13 + $0x358] sm:$0xff]  }
 0x8ed   :  { %20687 = vmatprep.subr.bf16.mxu0 %v23221_v6  ;;  %v22753_v20 = vld [vmem:[#allocation13 + $0x3d8] sm:$0xff]  }
 0x8ef   :  { %20219 = vmatpush3.bf16.msra.mxu1 %v22721_v59  ;;  %14692 = vmatmul.mubr.bf16.vlgmr.msra.gmra.mxu0 %v14293_v32  ;;  %v22755_v59 = vld [vmem:[#allocation13 + $0x410] sm:$0xff]  }
 0x8f0   :  { %20220 = vmatprep.subr.bf16.mxu1 %v22722_v26  ;;  %20688 = vmatpush3.bf16.msra.mxu0 %v22724_v40  ;;  %v22756_v26 = vld [vmem:[#allocation13 + $0x350] sm:$0xff]   ;;  %v22758_v40 = vld [vmem:[#allocation13 + $0x388] sm:$0xff]  }
 0x8f1   :  { %20695 = vmatprep.mubr.msk.bf16.mxu0 %vm23222_vm2, %v23221_v6  ;;  %20689 = vmatprep.subr.bf16.mxu0 %v23221_v6  ;;  %v22757_v32 = vld [vmem:[#allocation13 + $0x3d0] sm:$0xff]  }
 0x8f3   :  { %20221 = vmatpush3.bf16.msra.mxu1 %v22723_v28  ;;  %v22759_v28 = vld [vmem:[#allocation13 + $0x408] sm:$0xff]  }
 0x8f4   :  { %20222 = vmatprep.subr.bf16.mxu1 %v22725_v19  ;;  %20690 = vmatpush3.bf16.msra.mxu0 %v22727_v53  ;;  %v14884_v19 = vrot.slane %v25177_v7, 2  ;;  %v22760_v53 = vld [vmem:[#allocation13 + $0x348] sm:$0xff]  }
 0x8f5   :  { %20691 = vmatprep.subr.bf16.mxu0 %v23221_v6 }
 0x8f7   :  { %20223 = vmatpush3.bf16.msra.mxu1 %v22726_v50  ;;  %v14885_v50 = vrot.slane %v25181_v16, 1 }
 0x8f8   :  { %20224 = vmatprep.subr.bf16.mxu1 %v22728_v46  ;;  %20692 = vmatpush3.bf16.msra.mxu0 %v22730_v25  ;;  %v22761_v46 = vld [vmem:[#allocation13 + $0x3c8] sm:$0xff]   ;;  %v22762_v25 = vld [vmem:[#allocation13 + $0x380] sm:$0xff]  }
 0x8f9   :  { %20693 = vmatprep.subr.bf16.mxu0 %v23221_v6 }
 0x8fb   :  { %20225 = vmatpush3.bf16.msra.mxu1 %v22729_v44  ;;  %v22763_v44 = vld [vmem:[#allocation13 + $0x400] sm:$0xff]  }
 0x8fc   :  { %20226 = vmatprep.subr.bf16.mxu1 %v22731_v57  ;;  %20694 = vmatpush3.bf16.msra.mxu0 %v22733_v22  ;;  %v14899_v57 = vrot.slane %v25224_v58, 2  ;;  %v14892_v22 = vsel %vm3034_vm5, %v14891_v17, %v14890_v1  ;;  %v22790_v1 = vld [vmem:[#allocation13 + $0x480] sm:$0xff]  }
 0x8fd   :  { %20239 = vmatprep.subr.bf16.mxu0 %v22734_v35  ;;  %v14907_v35 = vpack.c.b16 %v14892_v22, %v14892_v22  ;;  %v22791_v17 = vld [vmem:[#allocation13 + $0x540] sm:$0xff]  }
 0x8ff   :  { %20227 = vmatpush3.bf16.msra.mxu1 %v22732_v47  ;;  %20696 = vmatmul.mubr.msk.bf16.vlgmr.msra.gmra.mxu0 %vm12865_vm14, %v14297_v62  ;;  %v14886_v47 = vsel %vm3034_vm5, %v14885_v50, %v14884_v19  ;;  %v14901_v62 = vsel %vm3034_vm5, %v14900_v23, %v14899_v57  ;;  %v22788_v19 = vld [vmem:[#allocation13 + $0x448] sm:$0xff]   ;;  %v22794_v23 = vld [vmem:[#allocation13 + $0x538] sm:$0xff]  }
 0x900   :  { %20261 = vmatprep.subr.bf16.mxu1 %v22735_v52  ;;  %20240 = vmatpush3.bf16.msra.mxu0 %v22736_v5  ;;  %v14905_v9 = vpack.c.b16 %v14886_v47, %v14886_v47  ;;  %v22768_v52 = vld [vmem:[#allocation13 + $0x4d8] sm:$0xff]   ;;  %v22769_v5 = vld [vmem:[#allocation13 + $0x4b0] sm:$0xff]   ;;  %v22789_v50 = vld [vmem:[#allocation13 + $0x508] sm:$0xff]  }
 0x901   :  { %20241 = vmatprep.subr.bf16.mxu0 %v22738_v8  ;;  %15265 = vmatprep.mubr.bf16.mxu0 %v14906_v55  ;;  %v22773_v8 = vld [vmem:[#allocation13 + $0x468] sm:$0xff]   ;;  %v14902_v55 = vrot.slane %v25209_v39, 2 }
 0x902   :  { %14732 = vmatmul.mubr.bf16.vlgmr.msra.gmra.mxu1 %v14295_v45  ;;  %v14910_v45 = vpack.c.b16 %v14901_v62, %v14901_v62  ;;  %v22800_v62 = vld [vmem:[#allocation13 + $0x4f0] sm:$0xff]  }
 0x903   :  { %20262 = vmatpush3.bf16.msra.mxu1 %v22737_v27  ;;  %15305 = vmatprep.mubr.bf16.mxu1 %v14908_v3  ;;  %v22771_v27 = vld [vmem:[#allocation13 + $0x4d0] sm:$0xff]   ;;  %v14903_v3 = vrot.slane %v25211_v15, 1 }
 0x904   :  { %20263 = vmatprep.subr.bf16.mxu1 %v22739_v29  ;;  %20242 = vmatpush3.bf16.msra.mxu0 %v22740_v0  ;;  %v22774_v29 = vld [vmem:[#allocation13 + $0x4c8] sm:$0xff]   ;;  %v22775_v0 = vld [vmem:[#allocation13 + $0x4a0] sm:$0xff]  }
 0x905   :  { %20243 = vmatprep.subr.bf16.mxu0 %v22742_v34  ;;  %v22776_v34 = vld [vmem:[#allocation13 + $0x460] sm:$0xff]  }
 0x907   :  { %20264 = vmatpush3.bf16.msra.mxu1 %v22741_v21  ;;  %v15502_v21 = vrot.slane %v25179_v31, 3 }
 0x908   :  { %20265 = vmatprep.subr.bf16.mxu1 %v22743_v63  ;;  %20244 = vmatpush3.bf16.msra.mxu0 %v22744_v49  ;;  %v15503_v63 = vrot.slane %v25183_v2, 2  ;;  %v22777_v49 = vld [vmem:[#allocation13 + $0x4c0] sm:$0xff]  }
 0x909   :  { %20245 = vmatprep.subr.bf16.mxu0 %v22746_v51  ;;  %v14904_v51 = vsel %vm3034_vm5, %v14903_v3, %v14902_v55  ;;  %v15500_v55 = vrot.slane %v25181_v16, 2  ;;  %v15514_v3 = vrot.slane %v25224_v58, 3 }
 0x90b   :  { %20266 = vmatpush3.bf16.msra.mxu1 %v22745_v41  ;;  %v22778_v41 = vld [vmem:[#allocation13 + $0x498] sm:$0xff]  }
 0x90c   :  { %20267 = vmatprep.subr.bf16.mxu1 %v22747_v48  ;;  %20246 = vmatpush3.bf16.msra.mxu0 %v22748_v42  ;;  %v22779_v48 = vld [vmem:[#allocation13 + $0x558] sm:$0xff]  }
 0x90d   :  { %20247 = vmatprep.subr.bf16.mxu0 %v22750_v43  ;;  %v22780_v42 = vld [vmem:[#allocation13 + $0x458] sm:$0xff]   ;;  %v14911_v43 = vpack.c.b16 %v14904_v51, %v14904_v51 }
 0x90e   :  { %v22811_v51 = vld [vmem:[#allocation13 + $0x658] sm:$0xff]  }
 0x90f   :  { %20268 = vmatpush3.bf16.msra.mxu1 %v22749_v37  ;;  %v15504_v37 = vsel %vm3034_vm5, %v15503_v63, %v15502_v21  ;;  %v22808_v21 = vld [vmem:[#allocation13 + $0x4e0] sm:$0xff]  }
 0x910   :  { %20269 = vmatprep.subr.bf16.mxu1 %v22751_v56  ;;  %20248 = vmatpush3.bf16.msra.mxu0 %v22752_v12  ;;  %v22781_v56 = vld [vmem:[#allocation13 + $0x518] sm:$0xff]   ;;  %v22782_v12 = vld [vmem:[#allocation13 + $0x490] sm:$0xff]   ;;  %v22809_v63 = vld [vmem:[#allocation13 + $0x580] sm:$0xff]  }
 0x911   :  { %20249 = vmatprep.subr.bf16.mxu0 %v22754_v18  ;;  %v15521_v18 = vpack.c.b16 %v15504_v37, %v15504_v37 }
 0x913   :  { %20270 = vmatpush3.bf16.msra.mxu1 %v22753_v20  ;;  %v22783_v20 = vld [vmem:[#allocation13 + $0x550] sm:$0xff]  }
 0x914   :  { %20271 = vmatprep.subr.bf16.mxu1 %v22755_v59  ;;  %20250 = vmatpush3.bf16.msra.mxu0 %v22756_v26  ;;  %v22784_v59 = vld [vmem:[#allocation13 + $0x450] sm:$0xff]  }
 0x915   :  { %20251 = vmatprep.subr.bf16.mxu0 %v22758_v40  ;;  %v22785_v26 = vld [vmem:[#allocation13 + $0x510] sm:$0xff]   ;;  %v22787_v40 = vld [vmem:[#allocation13 + $0x548] sm:$0xff]  }
 0x917   :  { %20272 = vmatpush3.bf16.msra.mxu1 %v22757_v32  ;;  %v22786_v32 = vld [vmem:[#allocation13 + $0x488] sm:$0xff]  }
 0x918   :  { %20273 = vmatprep.subr.bf16.mxu1 %v22759_v28  ;;  %20252 = vmatpush3.bf16.msra.mxu0 %v22760_v53  ;;  %v14896_v28 = vrot.slane %v25222_v54, 2  ;;  %v14897_v53 = vrot.slane %v25226_v36, 1 }
 0x919   :  { %20253 = vmatprep.subr.bf16.mxu0 %v22762_v25  ;;  %v15509_v25 = vrot.slane %v25191_v33, 2 }
 0x91a   :  { %v14898_v57 = vsel %vm3034_vm5, %v14897_v53, %v14896_v28  ;;  %v15505_v28 = vrot.slane %v25185_v10, 3  ;;  %v15506_v53 = vrot.slane %v25189_v61, 2 }
 0x91b   :  { %20274 = vmatpush3.bf16.msra.mxu1 %v22761_v46  ;;  %v15508_v46 = vrot.slane %v25187_v4, 3  ;;  %v14909_v22 = vpack.c.b16 %v14898_v57, %v14898_v57  ;;  %v22828_v57 = vld [vmem:[#allocation13 + $0x678] sm:$0xff]  }
 0x91c   :  { %20275 = vmatprep.subr.bf16.mxu1 %v22763_v44  ;;  %20254 = vmatpush3.bf16.msra.mxu0 %v22764_v38  ;;  %v22792_v44 = vld [vmem:[#allocation13 + $0x440] sm:$0xff]  }
 0x91d   :  { %20283 = vmatprep.subr.bf16.mxu0 %v22766_v24  ;;  %v22793_v38 = vld [vmem:[#allocation13 + $0x500] sm:$0xff]   ;;  %v15510_v47 = vsel %vm3034_vm5, %v15509_v25, %v15508_v46  ;;  %v22796_v24 = vld [vmem:[#allocation13 + $0x4f8] sm:$0xff]   ;;  %v15507_v25 = vsel %vm3034_vm5, %v15506_v53, %v15505_v28  ;;  %v22847_v53 = vld [vmem:[#allocation13 + $0x768] sm:$0xff]  }
 0x91e   :  { %v22823_v46 = vld [vmem:[#allocation13 + $0x640] sm:$0xff]  }
 0x91f   :  { %20276 = vmatpush3.bf16.msra.mxu1 %v22765_v11  ;;  %15266 = vmatmul.mubr.bf16.vlgmr.msra.gmra.mxu0 %v14905_v9  ;;  %v22795_v11 = vld [vmem:[#allocation13 + $0x5d8] sm:$0xff]  }
 0x920   :  { %20699 = vmatprep.subr.bf16.mxu1 %v23221_v6  ;;  %20284 = vmatpush3.bf16.msra.mxu0 %v22767_v13  ;;  %v22797_v9 = vld [vmem:[#allocation13 + $0x598] sm:$0xff]   ;;  %v15523_v13 = vpack.c.b16 %v15510_v47, %v15510_v47  ;;  %v22829_v47 = vld [vmem:[#allocation13 + $0x630] sm:$0xff]  }
 0x921   :  { %20285 = vmatprep.subr.bf16.mxu0 %v22769_v5  ;;  %15345 = vmatprep.mubr.bf16.mxu0 %v14910_v45  ;;  %v22801_v5 = vld [vmem:[#allocation13 + $0x590] sm:$0xff]   ;;  %v22802_v45 = vld [vmem:[#allocation13 + $0x528] sm:$0xff]  }
 0x922   :  { %15306 = vmatmul.mubr.bf16.vlgmr.msra.gmra.mxu1 %v14907_v35  ;;  %v22799_v35 = vld [vmem:[#allocation13 + $0x5d0] sm:$0xff]  }
 0x923   :  { %20700 = vmatpush3.bf16.msra.mxu1 %v22768_v52  ;;  %20707 = vmatprep.mubr.msk.bf16.mxu1 %vm23222_vm2, %v23221_v6  ;;  %v22798_v52 = vld [vmem:[#allocation13 + $0x530] sm:$0xff]  }
 0x924   :  { %20701 = vmatprep.subr.bf16.mxu1 %v23221_v6  ;;  %20286 = vmatpush3.bf16.msra.mxu0 %v22770_v14  ;;  %v22803_v14 = vld [vmem:[#allocation13 + $0x5c8] sm:$0xff]  }
 0x925   :  { %20287 = vmatprep.subr.bf16.mxu0 %v22772_v60  ;;  %v22805_v60 = vld [vmem:[#allocation13 + $0x588] sm:$0xff]  }
 0x927   :  { %20702 = vmatpush3.bf16.msra.mxu1 %v22771_v27  ;;  %v22804_v27 = vld [vmem:[#allocation13 + $0x4e8] sm:$0xff]  }
 0x928   :  { %20703 = vmatprep.subr.bf16.mxu1 %v23221_v6  ;;  %20288 = vmatpush3.bf16.msra.mxu0 %v22773_v8  ;;  %v15499_v8 = vrot.slane %v25177_v7, 3 }
 0x929   :  { %20289 = vmatprep.subr.bf16.mxu0 %v22775_v0  ;;  %v22806_v0 = vld [vmem:[#allocation13 + $0x520] sm:$0xff]  }
 0x92b   :  { %20704 = vmatpush3.bf16.msra.mxu1 %v22774_v29  ;;  %v22807_v29 = vld [vmem:[#allocation13 + $0x5c0] sm:$0xff]  }
 0x92c   :  { %20705 = vmatprep.subr.bf16.mxu1 %v23221_v6  ;;  %20290 = vmatpush3.bf16.msra.mxu0 %v22776_v34  ;;  %v15515_v34 = vrot.slane %v25228_v30, 2 }
 0x92d   :  { %20291 = vmatprep.subr.bf16.mxu0 %v22778_v41  ;;  %v15501_v41 = vsel %vm3034_vm5, %v15500_v55, %v15499_v8  ;;  %v16123_v8 = vrot.slane %v25187_v4, 4 }
 0x92e   :  { %v15520_v37 = vpack.c.b16 %v15501_v41, %v15501_v41 }
 0x92f   :  { %20706 = vmatpush3.bf16.msra.mxu1 %v22777_v49  ;;  %v22810_v49 = vld [vmem:[#allocation13 + $0x5b8] sm:$0xff]  }
 0x930   :  { %20310 = vmatprep.subr.bf16.mxu1 %v22779_v48  ;;  %20292 = vmatpush3.bf16.msra.mxu0 %v22780_v42  ;;  %v22812_v48 = vld [vmem:[#allocation13 + $0x578] sm:$0xff]   ;;  %v15516_v42 = vsel %vm3034_vm5, %v15515_v34, %v15514_v3 }
 0x931   :  { %20293 = vmatprep.subr.bf16.mxu0 %v22782_v12  ;;  %v22815_v12 = vld [vmem:[#allocation13 + $0x650] sm:$0xff]   ;;  %v22839_v34 = vld [vmem:[#allocation13 + $0x778] sm:$0xff]  }
 0x932   :  { %20708 = vmatmul.mubr.msk.bf16.vlgmr.msra.gmra.mxu1 %vm12865_vm14, %v14911_v43  ;;  %v22813_v43 = vld [vmem:[#allocation13 + $0x618] sm:$0xff]  }
 0x933   :  { %20311 = vmatpush3.bf16.msra.mxu1 %v22781_v56  ;;  %15880 = vmatprep.mubr.bf16.mxu1 %v15521_v18  ;;  %v22814_v56 = vld [vmem:[#allocation13 + $0x5b0] sm:$0xff]  }
 0x934   :  { %20312 = vmatprep.subr.bf16.mxu1 %v22783_v20  ;;  %20294 = vmatpush3.bf16.msra.mxu0 %v22784_v59  ;;  %v15525_v20 = vpack.c.b16 %v15516_v42, %v15516_v42  ;;  %v22816_v18 = vld [vmem:[#allocation13 + $0x570] sm:$0xff]  }
 0x935   :  { %20295 = vmatprep.subr.bf16.mxu0 %v22786_v32  ;;  %v22817_v59 = vld [vmem:[#allocation13 + $0x610] sm:$0xff]   ;;  %v22819_v32 = vld [vmem:[#allocation13 + $0x648] sm:$0xff]  }
 0x937   :  { %20313 = vmatpush3.bf16.msra.mxu1 %v22785_v26  ;;  %v22818_v26 = vld [vmem:[#allocation13 + $0x5a8] sm:$0xff]  }
 0x938   :  { %20314 = vmatprep.subr.bf16.mxu1 %v22787_v40  ;;  %20296 = vmatpush3.bf16.msra.mxu0 %v22788_v19  ;;  %v22820_v40 = vld [vmem:[#allocation13 + $0x568] sm:$0xff]  }
 0x939   :  { %20297 = vmatprep.subr.bf16.mxu0 %v22790_v1  ;;  %v22821_v19 = vld [vmem:[#allocation13 + $0x608] sm:$0xff]   ;;  %v22824_v1 = vld [vmem:[#allocation13 + $0x560] sm:$0xff]  }
 0x93b   :  { %20315 = vmatpush3.bf16.msra.mxu1 %v22789_v50  ;;  %v22822_v50 = vld [vmem:[#allocation13 + $0x5a0] sm:$0xff]  }
 0x93c   :  { %20316 = vmatprep.subr.bf16.mxu1 %v22791_v17  ;;  %20298 = vmatpush3.bf16.msra.mxu0 %v22792_v44  ;;  %v22825_v17 = vld [vmem:[#allocation13 + $0x600] sm:$0xff]   ;;  %v22826_v44 = vld [vmem:[#allocation13 + $0x638] sm:$0xff]  }
 0x93d   :  { %20332 = vmatprep.subr.bf16.mxu0 %v22795_v11  ;;  %v22827_v11 = vld [vmem:[#allocation13 + $0x5f8] sm:$0xff]  }
 0x93f   :  { %20317 = vmatpush3.bf16.msra.mxu1 %v22793_v38  ;;  %15346 = vmatmul.mubr.bf16.vlgmr.msra.gmra.mxu0 %v14909_v22  ;;  %v15522_v38 = vpack.c.b16 %v15507_v25, %v15507_v25  ;;  %v22830_v22 = vld [vmem:[#allocation13 + $0x5f0] sm:$0xff]   ;;  %v22849_v25 = vld [vmem:[#allocation13 + $0x728] sm:$0xff]  }
 0x940   :  { %20318 = vmatprep.subr.bf16.mxu1 %v22794_v23  ;;  %20333 = vmatpush3.bf16.msra.mxu0 %v22797_v9  ;;  %v22831_v23 = vld [vmem:[#allocation13 + $0x670] sm:$0xff]   ;;  %v15511_v9 = vrot.slane %v25222_v54, 3 }
 0x941   :  { %15920 = vmatprep.mubr.bf16.mxu0 %v15523_v13  ;;  %20334 = vmatprep.subr.bf16.mxu0 %v22799_v35  ;;  %v15512_v13 = vrot.slane %v25226_v36, 2  ;;  %v15517_v35 = vrot.slane %v25209_v39, 3 }
 0x943   :  { %20319 = vmatpush3.bf16.msra.mxu1 %v22796_v24  ;;  %v22832_v24 = vld [vmem:[#allocation13 + $0x628] sm:$0xff]   ;;  %v15513_v3 = vsel %vm3034_vm5, %v15512_v13, %v15511_v9  ;;  %v22855_v9 = vld [vmem:[#allocation13 + $0x758] sm:$0xff]  }
 0x944   :  { %20320 = vmatprep.subr.bf16.mxu1 %v22798_v52  ;;  %20335 = vmatpush3.bf16.msra.mxu0 %v22801_v5  ;;  %v22834_v52 = vld [vmem:[#allocation13 + $0x668] sm:$0xff]   ;;  %v22856_v13 = vld [vmem:[#allocation13 + $0x698] sm:$0xff]  }
 0x945   :  { %20336 = vmatprep.subr.bf16.mxu0 %v22803_v14  ;;  %v22833_v5 = vld [vmem:[#allocation13 + $0x5e8] sm:$0xff]   ;;  %v16117_v14 = vrot.slane %v25179_v31, 4 }
 0x947   :  { %20321 = vmatpush3.bf16.msra.mxu1 %v22800_v62  ;;  %v15518_v62 = vrot.slane %v25211_v15, 2 }
 0x948   :  { %20322 = vmatprep.subr.bf16.mxu1 %v22802_v45  ;;  %20337 = vmatpush3.bf16.msra.mxu0 %v22805_v60  ;;  %v22835_v45 = vld [vmem:[#allocation13 + $0x620] sm:$0xff]  }
 0x949   :  { %20338 = vmatprep.subr.bf16.mxu0 %v22807_v29  ;;  %v22836_v60 = vld [vmem:[#allocation13 + $0x5e0] sm:$0xff]   ;;  %v15519_v55 = vsel %vm3034_vm5, %v15518_v62, %v15517_v35  ;;  %v22857_v35 = vld [vmem:[#allocation13 + $0x718] sm:$0xff]   ;;  %v22859_v62 = vld [vmem:[#allocation13 + $0x750] sm:$0xff]  }
 0x94a   :  { %v22837_v29 = vld [vmem:[#allocation13 + $0x660] sm:$0xff]  }
 0x94b   :  { %20323 = vmatpush3.bf16.msra.mxu1 %v22804_v27  ;;  %v16118_v27 = vrot.slane %v25183_v2, 3 }
 0x94c   :  { %20324 = vmatprep.subr.bf16.mxu1 %v22806_v0  ;;  %20339 = vmatpush3.bf16.msra.mxu0 %v22809_v63  ;;  %v16124_v0 = vrot.slane %v25191_v33, 3  ;;  %v15526_v63 = vpack.c.b16 %v15519_v55, %v15519_v55  ;;  %v22864_v55 = vld [vmem:[#allocation13 + $0x688] sm:$0xff]  }
 0x94d   :  { %20340 = vmatprep.subr.bf16.mxu0 %v22810_v49  ;;  %v22840_v49 = vld [vmem:[#allocation13 + $0x6b8] sm:$0xff]   ;;  %v16119_v41 = vsel %vm3034_vm5, %v16118_v27, %v16117_v14  ;;  %v22861_v14 = vld [vmem:[#allocation13 + $0x710] sm:$0xff]   ;;  %v22862_v27 = vld [vmem:[#allocation13 + $0x6c8] sm:$0xff]  }
 0x94e   :  { %v16125_v42 = vsel %vm3034_vm5, %v16124_v0, %v16123_v8  ;;  %v16114_v8 = vrot.slane %v25177_v7, 4  ;;  %v16115_v0 = vrot.slane %v25181_v16, 3 }
 0x94f   :  { %20325 = vmatpush3.bf16.msra.mxu1 %v22808_v21  ;;  %v22838_v21 = vld [vmem:[#allocation13 + $0x6f8] sm:$0xff]  }
 0x950   :  { %20354 = vmatprep.subr.bf16.mxu1 %v22811_v51  ;;  %20341 = vmatpush3.bf16.msra.mxu0 %v22812_v48  ;;  %v15524_v51 = vpack.c.b16 %v15513_v3, %v15513_v3  ;;  %v22841_v48 = vld [vmem:[#allocation13 + $0x738] sm:$0xff]   ;;  %v22865_v3 = vld [vmem:[#allocation13 + $0x708] sm:$0xff]  }
 0x951   :  { %20342 = vmatprep.subr.bf16.mxu0 %v22814_v56  ;;  %v16136_v56 = vpack.c.b16 %v16119_v41, %v16119_v41  ;;  %v22867_v41 = vld [vmem:[#allocation13 + $0x740] sm:$0xff]  }
 0x952   :  { %15881 = vmatmul.mubr.bf16.vlgmr.msra.gmra.mxu1 %v15520_v37  ;;  %v22842_v37 = vld [vmem:[#allocation13 + $0x6f0] sm:$0xff]  }
 0x953   :  { %20355 = vmatpush3.bf16.msra.mxu1 %v22813_v43  ;;  %15960 = vmatprep.mubr.bf16.mxu1 %v15525_v20  ;;  %v22843_v43 = vld [vmem:[#allocation13 + $0x770] sm:$0xff]  }
 0x954   :  { %20356 = vmatprep.subr.bf16.mxu1 %v22815_v12  ;;  %20343 = vmatpush3.bf16.msra.mxu0 %v22816_v18  ;;  %v22844_v20 = vld [vmem:[#allocation13 + $0x6b0] sm:$0xff]   ;;  %v16138_v18 = vpack.c.b16 %v16125_v42, %v16125_v42  ;;  %v16129_v42 = vrot.slane %v25224_v58, 4 }
 0x955   :  { %20344 = vmatprep.subr.bf16.mxu0 %v22818_v26  ;;  %v22845_v26 = vld [vmem:[#allocation13 + $0x730] sm:$0xff]  }
 0x957   :  { %20357 = vmatpush3.bf16.msra.mxu1 %v22817_v59 }
 0x958   :  { %20358 = vmatprep.subr.bf16.mxu1 %v22819_v32  ;;  %20345 = vmatpush3.bf16.msra.mxu0 %v22820_v40  ;;  %v22846_v40 = vld [vmem:[#allocation13 + $0x6e8] sm:$0xff]  }
 0x959   :  { %20346 = vmatprep.subr.bf16.mxu0 %v22822_v50 }
 0x95b   :  { %20359 = vmatpush3.bf16.msra.mxu1 %v22821_v19 }
 0x95c   :  { %20360 = vmatprep.subr.bf16.mxu1 %v22823_v46  ;;  %20347 = vmatpush3.bf16.msra.mxu0 %v22824_v1  ;;  %v22848_v1 = vld [vmem:[#allocation13 + $0x6a8] sm:$0xff]  }
 0x95d   :  { %20711 = vmatprep.subr.bf16.mxu0 %v23221_v6 }
 0x95f   :  { %20361 = vmatpush3.bf16.msra.mxu1 %v22825_v17  ;;  %15921 = vmatmul.mubr.bf16.vlgmr.msra.gmra.mxu0 %v15522_v38 }
 0x960   :  { %20362 = vmatprep.subr.bf16.mxu1 %v22826_v44  ;;  %20712 = vmatpush3.bf16.msra.mxu0 %v22828_v57  ;;  %v22850_v57 = vld [vmem:[#allocation13 + $0x6e0] sm:$0xff]  }
 0x961   :  { %20719 = vmatprep.mubr.msk.bf16.mxu0 %vm23222_vm2, %v23221_v6  ;;  %20713 = vmatprep.subr.bf16.mxu0 %v23221_v6 }
 0x963   :  { %20363 = vmatpush3.bf16.msra.mxu1 %v22827_v11  ;;  %v22851_v11 = vld [vmem:[#allocation13 + $0x760] sm:$0xff]  }
 0x964   :  { %20364 = vmatprep.subr.bf16.mxu1 %v22829_v47  ;;  %20714 = vmatpush3.bf16.msra.mxu0 %v22831_v23  ;;  %v22852_v23 = vld [vmem:[#allocation13 + $0x6a0] sm:$0xff]  }
 0x965   :  { %20715 = vmatprep.subr.bf16.mxu0 %v23221_v6 }
 0x967   :  { %20365 = vmatpush3.bf16.msra.mxu1 %v22830_v22  ;;  %v22853_v22 = vld [vmem:[#allocation13 + $0x720] sm:$0xff]  }
 0x968   :  { %20366 = vmatprep.subr.bf16.mxu1 %v22832_v24  ;;  %20716 = vmatpush3.bf16.msra.mxu0 %v22834_v52  ;;  %v22854_v24 = vld [vmem:[#allocation13 + $0x6d8] sm:$0xff]   ;;  %v22858_v52 = vld [vmem:[#allocation13 + $0x6d0] sm:$0xff]  }
 0x969   :  { %20717 = vmatprep.subr.bf16.mxu0 %v23221_v6 }
 0x96b   :  { %20367 = vmatpush3.bf16.msra.mxu1 %v22833_v5  ;;  %v22860_v5 = vld [vmem:[#allocation13 + $0x690] sm:$0xff]  }
 0x96c   :  { %20368 = vmatprep.subr.bf16.mxu1 %v22835_v45  ;;  %20718 = vmatpush3.bf16.msra.mxu0 %v22837_v29 }
 0x96d   :  { %20381 = vmatprep.subr.bf16.mxu0 %v22838_v21  ;;  %v16120_v21 = vrot.slane %v25185_v10, 4 }
 0x96e   :  { %v20113_v12 = vpop.f32.mrf.mxu0 }
 0x96f   :  { %20369 = vmatpush3.bf16.msra.mxu1 %v22836_v60  ;;  %20720 = vmatmul.mubr.msk.bf16.vlgmr.msra.gmra.mxu0 %vm12865_vm14, %v15526_v63  ;;  %v22863_v60 = vld [vmem:[#allocation13 + $0x748] sm:$0xff]   ;;  %v22866_v63 = vld [vmem:[#allocation13 + $0x6c0] sm:$0xff]  }
 0x970   :  { %20403 = vmatprep.subr.bf16.mxu1 %v22839_v34  ;;  %20382 = vmatpush3.bf16.msra.mxu0 %v22840_v49  ;;  %v20114_v32 = vpop.f32.mrf.mxu0  ;;  %v16121_v49 = vrot.slane %v25189_v61, 3 }
 0x971   :  { %20383 = vmatprep.subr.bf16.mxu0 %v22842_v37  ;;  %v20115_v28 = vadd.f32 %v20114_v32, %v20113_v12  ;;  %16495 = vmatprep.mubr.bf16.mxu0 %v16136_v56  ;;  %v22869_v37 = vld [vmem:[#allocation13 + $0x700] sm:$0xff]   ;;  %v16130_v56 = vrot.slane %v25228_v30, 3  ;;  %v22872_v32 = vld [vmem:[#allocation13 + $0x818] sm:$0xff]  }
 0x972   :  { %v20135_v59 = vpop.f32.mrf.mxu1  ;;  %15961 = vmatmul.mubr.bf16.vlgmr.msra.gmra.mxu1 %v15524_v51  ;;  %v20116_v46 = vpop.f32.mrf.mxu0  ;;  %v16122_v12 = vsel %vm3034_vm5, %v16121_v49, %v16120_v21  ;;  %v22888_v21 = vld [vmem:[#allocation13 + $0x790] sm:$0xff]   ;;  %v22890_v49 = vld [vmem:[#allocation13 + $0x7c8] sm:$0xff]  }
 0x973   :  { %20404 = vmatpush3.bf16.msra.mxu1 %v22841_v48  ;;  %16535 = vmatprep.mubr.bf16.mxu1 %v16138_v18  ;;  %v22868_v48 = vld [vmem:[#allocation13 + $0x680] sm:$0xff]   ;;  %v22875_v46 = vld [vmem:[#allocation13 + $0x810] sm:$0xff]  }
 0x974   :  { %v20136_v19 = vpop.f32.mrf.mxu1  ;;  %20405 = vmatprep.subr.bf16.mxu1 %v22843_v43  ;;  %20384 = vmatpush3.bf16.msra.mxu0 %v22844_v20  ;;  %v20117_v38 = vpop.f32.mrf.mxu0  ;;  %v16116_v43 = vsel %vm3034_vm5, %v16115_v0, %v16114_v8  ;;  %v22870_v20 = vld [vmem:[#allocation13 + $0x7f8] sm:$0xff]   ;;  %v22887_v0 = vld [vmem:[#allocation13 + $0x890] sm:$0xff]  }
 0x975   :  { %v20137_v50 = vadd.f32 %v20136_v19, %v20135_v59  ;;  %20385 = vmatprep.subr.bf16.mxu0 %v22846_v40  ;;  %v16135_v18 = vpack.c.b16 %v16116_v43, %v16116_v43  ;;  %v22871_v59 = vld [vmem:[#allocation13 + $0x7b8] sm:$0xff]   ;;  %v16131_v40 = vsel %vm3034_vm5, %v16130_v56, %v16129_v42  ;;  %v16127_v43 = vrot.slane %v25226_v36, 3  ;;  %v22893_v56 = vld [vmem:[#allocation13 + $0x848] sm:$0xff]  }
 0x976   :  { %v20138_v17 = vpop.f32.mrf.mxu1 }
 0x977   :  { %v25322_v44 = vadd.f32 %v20137_v50, %v20115_v28  ;;  %20406 = vmatpush3.bf16.msra.mxu1 %v22845_v26  ;;  %v16137_v26 = vpack.c.b16 %v16122_v12, %v16122_v12  ;;  %v22873_v28 = vld [vmem:[#allocation13 + $0x7f0] sm:$0xff]   ;;  %v16140_v50 = vpack.c.b16 %v16131_v40, %v16131_v40 }
 0x978   :  { %20407 = vmatprep.subr.bf16.mxu1 %v22847_v53  ;;  %v20139_v47 = vpop.f32.mrf.mxu1  ;;  %20386 = vmatpush3.bf16.msra.mxu0 %v22848_v1  ;;  %v22874_v53 = vld [vmem:[#allocation13 + $0x7b0] sm:$0xff]  }
 0x979   :  { %20387 = vmatprep.subr.bf16.mxu0 %v22850_v57  ;;  %v22877_v57 = vld [vmem:[#allocation13 + $0x7a8] sm:$0xff]  }
 0x97a   :  { %v22878_v47 = vld [vmem:[#allocation13 + $0x808] sm:$0xff]  }
 0x97b   :  { %20408 = vmatpush3.bf16.msra.mxu1 %v22849_v25  ;;  %v22876_v25 = vld [vmem:[#allocation13 + $0x7e8] sm:$0xff]  }
 0x97c   :  { %20409 = vmatprep.subr.bf16.mxu1 %v22851_v11  ;;  %20388 = vmatpush3.bf16.msra.mxu0 %v22852_v23  ;;  %v16132_v23 = vrot.slane %v25209_v39, 4 }
 0x97d   :  { %20389 = vmatprep.subr.bf16.mxu0 %v22854_v24  ;;  %v22879_v24 = vld [vmem:[#allocation13 + $0x7e0] sm:$0xff]  }
 0x97f   :  { %20410 = vmatpush3.bf16.msra.mxu1 %v22853_v22 }
 0x980   :  { %20411 = vmatprep.subr.bf16.mxu1 %v22855_v9  ;;  %20390 = vmatpush3.bf16.msra.mxu0 %v22856_v13  ;;  %v16133_v9 = vrot.slane %v25211_v15, 3 }
 0x981   :  { %20391 = vmatprep.subr.bf16.mxu0 %v22858_v52  ;;  %v22880_v52 = vld [vmem:[#allocation13 + $0x7a0] sm:$0xff]  }
 0x982   :  { %v25324_v45 = vpop.f32.mrf.mxu1 }
 0x983   :  { %20412 = vmatpush3.bf16.msra.mxu1 %v22857_v35  ;;  %v16732_v35 = vrot.slane %v25179_v31, 5 }
 0x984   :  { %20413 = vmatprep.subr.bf16.mxu1 %v22859_v62  ;;  %v20685_v29 = vpop.f32.mrf.mxu1  ;;  %20392 = vmatpush3.bf16.msra.mxu0 %v22860_v5  ;;  %v16733_v62 = vrot.slane %v25183_v2, 4  ;;  %v22882_v5 = vld [vmem:[#allocation13 + $0x7d8] sm:$0xff]  }
 0x985   :  { %20393 = vmatprep.subr.bf16.mxu0 %v22862_v27  ;;  %v22883_v27 = vld [vmem:[#allocation13 + $0x898] sm:$0xff]  }
 0x986   :  { %v14274_v34 = vpop.f32.mrf.mxu1  ;;  %v16734_v8 = vsel %vm3034_vm5, %v16733_v62, %v16732_v35  ;;  %v22885_v29 = vld [vmem:[#allocation13 + $0x858] sm:$0xff]  }
 0x987   :  { %20414 = vmatpush3.bf16.msra.mxu1 %v22861_v14  ;;  %v16134_v14 = vsel %vm3034_vm5, %v16133_v9, %v16132_v23 }
 0x988   :  { %20415 = vmatprep.subr.bf16.mxu1 %v22863_v60  ;;  %v20686_v51 = vpop.f32.mrf.mxu1  ;;  %20394 = vmatpush3.bf16.msra.mxu0 %v22864_v55  ;;  %v22884_v60 = vld [vmem:[#allocation13 + $0x798] sm:$0xff]   ;;  %v22886_v55 = vld [vmem:[#allocation13 + $0x7d0] sm:$0xff]  }
 0x989   :  { %20395 = vmatprep.subr.bf16.mxu0 %v22866_v63  ;;  %v22889_v63 = vld [vmem:[#allocation13 + $0x850] sm:$0xff]   ;;  %v22891_v51 = vld [vmem:[#allocation13 + $0x888] sm:$0xff]  }
 0x98b   :  { %20416 = vmatpush3.bf16.msra.mxu1 %v22865_v3  ;;  %v16751_v3 = vpack.c.b16 %v16734_v8, %v16734_v8  ;;  %v22911_v8 = vld [vmem:[#allocation13 + $0x900] sm:$0xff]  }
 0x98c   :  { %20417 = vmatprep.subr.bf16.mxu1 %v22867_v41  ;;  %20396 = vmatpush3.bf16.msra.mxu0 %v22868_v48  ;;  %v16126_v48 = vrot.slane %v25222_v54, 4 }
 0x98d   :  { %20425 = vmatprep.subr.bf16.mxu0 %v22870_v20  ;;  %v16738_v20 = vrot.slane %v25187_v4, 5 }
 0x98f   :  { %20418 = vmatpush3.bf16.msra.mxu1 %v22869_v37  ;;  %v20157_v19 = vpop.f32.mrf.mxu0  ;;  %16496 = vmatmul.mubr.bf16.vlgmr.msra.gmra.mxu0 %v16135_v18  ;;  %v22892_v37 = vld [vmem:[#allocation13 + $0x788] sm:$0xff]  }
 0x990   :  { %20723 = vmatprep.subr.bf16.mxu1 %v23221_v6  ;;  %20426 = vmatpush3.bf16.msra.mxu0 %v22871_v59  ;;  %v22894_v59 = vld [vmem:[#allocation13 + $0x7c0] sm:$0xff]  }
 0x991   :  { %v20158_v1 = vpop.f32.mrf.mxu0  ;;  %20427 = vmatprep.subr.bf16.mxu0 %v22873_v28  ;;  %16575 = vmatprep.mubr.bf16.mxu0 %v16140_v50  ;;  %v22896_v28 = vld [vmem:[#allocation13 + $0x780] sm:$0xff]   ;;  %v22899_v50 = vld [vmem:[#allocation13 + $0x918] sm:$0xff]  }
 0x992   :  { %16536 = vmatmul.mubr.bf16.vlgmr.msra.gmra.mxu1 %v16137_v26  ;;  %v20159_v17 = vadd.f32 %v20158_v1, %v20157_v19  ;;  %v16739_v26 = vrot.slane %v25191_v33, 4  ;;  %v22897_v19 = vld [vmem:[#allocation13 + $0x840] sm:$0xff]   ;;  %v22898_v1 = vld [vmem:[#allocation13 + $0x878] sm:$0xff]  }
 0x993   :  { %20724 = vmatpush3.bf16.msra.mxu1 %v22872_v32  ;;  %20731 = vmatprep.mubr.msk.bf16.mxu1 %vm23222_vm2, %v23221_v6  ;;  %v20160_v38 = vpop.f32.mrf.mxu0  ;;  %v22895_v32 = vld [vmem:[#allocation13 + $0x880] sm:$0xff]  }
 0x994   :  { %20725 = vmatprep.subr.bf16.mxu1 %v23221_v6  ;;  %v14232_v11 = vadd.f32 %v20159_v17, %v25322_v44  ;;  %20428 = vmatpush3.bf16.msra.mxu0 %v22874_v53  ;;  %v22881_v44 = vld [vmem:[#allocation13 + $0x800] sm:$0xff]   ;;  %v16128_v53 = vsel %vm3034_vm5, %v16127_v43, %v16126_v48  ;;  %v22900_v17 = vld [vmem:[#allocation13 + $0x838] sm:$0xff]   ;;  %v22919_v43 = vld [vmem:[#allocation13 + $0x990] sm:$0xff]  }
 0x995   :  { %v20161_v22 = vpop.f32.mrf.mxu0  ;;  %20429 = vmatprep.subr.bf16.mxu0 %v22876_v25  ;;  %v16139_v25 = vpack.c.b16 %v16128_v53, %v16128_v53  ;;  %v22901_v38 = vld [vmem:[#allocation13 + $0x8d8] sm:$0xff]  }
 0x996   :  { %v14272_v13 = vadd.f32 %v25324_v45, %v14232_v11  ;;  %v16141_v45 = vpack.c.b16 %v16134_v14, %v16134_v14  ;;  %v22903_v11 = vld [vmem:[#allocation13 + $0x910] sm:$0xff]   ;;  %v22909_v14 = vld [vmem:[#allocation13 + $0x8c8] sm:$0xff]  }
 0x997   :  { %20726 = vmatpush3.bf16.msra.mxu1 %v22875_v46  ;;  %v16740_v46 = vsel %vm3034_vm5, %v16739_v26, %v16738_v20  ;;  %v22904_v22 = vld [vmem:[#allocation13 + $0x830] sm:$0xff]  }
 0x998   :  { %20727 = vmatprep.subr.bf16.mxu1 %v23221_v6  ;;  %20430 = vmatpush3.bf16.msra.mxu0 %v22877_v57  ;;  %v16753_v57 = vpack.c.b16 %v16740_v46, %v16740_v46  ;;  %v22920_v20 = vld [vmem:[#allocation13 + $0x8b0] sm:$0xff]   ;;  %v16735_v46 = vrot.slane %v25185_v10, 5 }
 0x999   :  { %20431 = vmatprep.subr.bf16.mxu0 %v22879_v24  ;;  %v22905_v24 = vld [vmem:[#allocation13 + $0x8d0] sm:$0xff]  }
 0x99b   :  { %20728 = vmatpush3.bf16.msra.mxu1 %v22878_v47  ;;  %v22902_v47 = vld [vmem:[#allocation13 + $0x870] sm:$0xff]  }
 0x99c   :  { %20729 = vmatprep.subr.bf16.mxu1 %v23221_v6  ;;  %20432 = vmatpush3.bf16.msra.mxu0 %v22880_v52  ;;  %v22906_v52 = vld [vmem:[#allocation13 + $0x868] sm:$0xff]  }
 0x99d   :  { %20433 = vmatprep.subr.bf16.mxu0 %v22882_v5 }
 0x99f   :  { %20730 = vmatpush3.bf16.msra.mxu1 %v22881_v44  ;;  %v22908_v44 = vld [vmem:[#allocation13 + $0x828] sm:$0xff]  }
 0x9a0   :  { %20452 = vmatprep.subr.bf16.mxu1 %v22883_v27  ;;  %20434 = vmatpush3.bf16.msra.mxu0 %v22884_v60  ;;  %v16729_v27 = vrot.slane %v25177_v7, 5 }
 0x9a1   :  { %20435 = vmatprep.subr.bf16.mxu0 %v22886_v55  ;;  %v16744_v55 = vrot.slane %v25224_v58, 5 }
 0x9a2   :  { %v20184_v34 = vpop.f32.mrf.mxu1  ;;  %20732 = vmatmul.mubr.msk.bf16.vlgmr.msra.gmra.mxu1 %vm12865_vm14, %v16141_v45  ;;  %v16730_v45 = vrot.slane %v25181_v16, 4 }
 0x9a3   :  { %20453 = vmatpush3.bf16.msra.mxu1 %v22885_v29  ;;  %17110 = vmatprep.mubr.bf16.mxu1 %v16751_v3  ;;  %v22910_v29 = vld [vmem:[#allocation13 + $0x860] sm:$0xff]   ;;  %v16745_v3 = vrot.slane %v25228_v30, 4 }
 0x9a4   :  { %v20185_v41 = vpop.f32.mrf.mxu1  ;;  %20454 = vmatprep.subr.bf16.mxu1 %v22887_v0  ;;  %20436 = vmatpush3.bf16.msra.mxu0 %v22888_v21  ;;  %v22912_v0 = vld [vmem:[#allocation13 + $0x820] sm:$0xff]  }
 0x9a5   :  { %v20186_v42 = vadd.f32 %v20185_v41, %v20184_v34  ;;  %20437 = vmatprep.subr.bf16.mxu0 %v22890_v49  ;;  %v22913_v21 = vld [vmem:[#allocation13 + $0x8c0] sm:$0xff]   ;;  %v22914_v34 = vld [vmem:[#allocation13 + $0x8f8] sm:$0xff]  }
 0x9a6   :  { %v20187_v12 = vpop.f32.mrf.mxu1  ;;  %v22915_v49 = vld [vmem:[#allocation13 + $0x998] sm:$0xff]  }
 0x9a7   :  { %v14654_v18 = vadd.f32 %v20186_v42, %v14272_v13  ;;  %20455 = vmatpush3.bf16.msra.mxu1 %v22889_v63  ;;  %v22907_v13 = vld [vmem:[#allocation13 + $0x908] sm:$0xff]   ;;  %v16731_v63 = vsel %vm3034_vm5, %v16730_v45, %v16729_v27  ;;  %v22916_v41 = vld [vmem:[#allocation13 + $0x8b8] sm:$0xff]   ;;  %v22934_v27 = vld [vmem:[#allocation13 + $0x930] sm:$0xff]   ;;  %v16742_v45 = vrot.slane %v25226_v36, 4 }
 0x9a8   :  { %20456 = vmatprep.subr.bf16.mxu1 %v22891_v51  ;;  %v20188_v40 = vpop.f32.mrf.mxu1  ;;  %20438 = vmatpush3.bf16.msra.mxu0 %v22892_v37  ;;  %v16746_v51 = vsel %vm3034_vm5, %v16745_v3, %v16744_v55  ;;  %v16750_v48 = vpack.c.b16 %v16731_v63, %v16731_v63  ;;  %v22917_v42 = vld [vmem:[#allocation13 + $0x958] sm:$0xff]   ;;  %v22918_v37 = vld [vmem:[#allocation13 + $0x8f0] sm:$0xff]   ;;  %v22938_v55 = vld [vmem:[#allocation13 + $0x9a8] sm:$0xff]   ;;  %v17348_v63 = vrot.slane %v25183_v2, 5 }
 0x9a9   :  { %20439 = vmatprep.subr.bf16.mxu0 %v22894_v59  ;;  %v22921_v59 = vld [vmem:[#allocation13 + $0x950] sm:$0xff]   ;;  %v22937_v3 = vld [vmem:[#allocation13 + $0x928] sm:$0xff]   ;;  %v22945_v2 = vld [vmem:[#allocation13 + $0xa78] sm:$0xff]  }
 0x9ab   :  { %20457 = vmatpush3.bf16.msra.mxu1 %v22893_v56  ;;  %v16755_v56 = vpack.c.b16 %v16746_v51, %v16746_v51  ;;  %v17353_v51 = vrot.slane %v25187_v4, 6 }
 0x9ac   :  { %20458 = vmatprep.subr.bf16.mxu1 %v22895_v32  ;;  %20440 = vmatpush3.bf16.msra.mxu0 %v22896_v28  ;;  %v22922_v32 = vld [vmem:[#allocation13 + $0x8e8] sm:$0xff]  }
 0x9ad   :  { %20474 = vmatprep.subr.bf16.mxu0 %v22899_v50  ;;  %v22923_v28 = vld [vmem:[#allocation13 + $0x988] sm:$0xff]  }
 0x9ae   :  { %v22924_v50 = vld [vmem:[#allocation13 + $0x8a8] sm:$0xff]  }
 0x9af   :  { %20459 = vmatpush3.bf16.msra.mxu1 %v22897_v19  ;;  %v20206_v23 = vpop.f32.mrf.mxu0  ;;  %16576 = vmatmul.mubr.bf16.vlgmr.msra.gmra.mxu0 %v16139_v25  ;;  %v16736_v25 = vrot.slane %v25189_v61, 4 }
 0x9b0   :  { %20460 = vmatprep.subr.bf16.mxu1 %v22898_v1  ;;  %20475 = vmatpush3.bf16.msra.mxu0 %v22901_v38  ;;  %v22925_v1 = vld [vmem:[#allocation13 + $0x948] sm:$0xff]  }
 0x9b1   :  { %17150 = vmatprep.mubr.bf16.mxu0 %v16753_v57  ;;  %v20207_v9 = vpop.f32.mrf.mxu0  ;;  %20476 = vmatprep.subr.bf16.mxu0 %v22903_v11  ;;  %v22926_v11 = vld [vmem:[#allocation13 + $0x8e0] sm:$0xff]  }
 0x9b2   :  { %v20208_v35 = vadd.f32 %v20207_v9, %v20206_v23  ;;  %v16737_v9 = vsel %vm3034_vm5, %v16736_v25, %v16735_v46 }
 0x9b3   :  { %20461 = vmatpush3.bf16.msra.mxu1 %v22900_v17  ;;  %v20209_v62 = vpop.f32.mrf.mxu0 }
 0x9b4   :  { %20462 = vmatprep.subr.bf16.mxu1 %v22902_v47  ;;  %v14694_v5 = vadd.f32 %v20208_v35, %v14654_v18  ;;  %20477 = vmatpush3.bf16.msra.mxu0 %v22905_v24  ;;  %v22927_v47 = vld [vmem:[#allocation13 + $0x980] sm:$0xff]   ;;  %v22930_v35 = vld [vmem:[#allocation13 + $0x978] sm:$0xff]  }
 0x9b5   :  { %v20210_v60 = vpop.f32.mrf.mxu0  ;;  %20478 = vmatprep.subr.bf16.mxu0 %v22907_v13  ;;  %v22928_v24 = vld [vmem:[#allocation13 + $0x8a0] sm:$0xff]   ;;  %v22932_v62 = vld [vmem:[#allocation13 + $0x9b8] sm:$0xff]  }
 0x9b6   :  { %v22929_v13 = vld [vmem:[#allocation13 + $0x940] sm:$0xff]   ;;  %v22936_v60 = vld [vmem:[#allocation13 + $0x968] sm:$0xff]  }
 0x9b7   :  { %20463 = vmatpush3.bf16.msra.mxu1 %v22904_v22 }
 0x9b8   :  { %20464 = vmatprep.subr.bf16.mxu1 %v22906_v52  ;;  %20479 = vmatpush3.bf16.msra.mxu0 %v22909_v14  ;;  %v16752_v52 = vpack.c.b16 %v16737_v9, %v16737_v9  ;;  %v22935_v14 = vld [vmem:[#allocation13 + $0x9b0] sm:$0xff]  }
 0x9b9   :  { %20480 = vmatprep.subr.bf16.mxu0 %v22911_v8  ;;  %v16741_v8 = vrot.slane %v25222_v54, 5 }
 0x9bb   :  { %20465 = vmatpush3.bf16.msra.mxu1 %v22908_v44  ;;  %v22931_v44 = vld [vmem:[#allocation13 + $0x938] sm:$0xff]  }
 0x9bc   :  { %20466 = vmatprep.subr.bf16.mxu1 %v22910_v29  ;;  %20481 = vmatpush3.bf16.msra.mxu0 %v22913_v21  ;;  %v16747_v29 = vrot.slane %v25209_v39, 5  ;;  %v17347_v21 = vrot.slane %v25179_v31, 6  ;;  %v22943_v31 = vld [vmem:[#allocation13 + $0xab8] sm:$0xff]  }
 0x9bd   :  { %20482 = vmatprep.subr.bf16.mxu0 %v22914_v34  ;;  %v22939_v34 = vld [vmem:[#allocation13 + $0x960] sm:$0xff]  }
 0x9bf   :  { %20467 = vmatpush3.bf16.msra.mxu1 %v22912_v0  ;;  %v14773_v12 = vpop.f32.mrf.mxu0  ;;  %v16748_v0 = vrot.slane %v25211_v15, 4 }
 0x9c0   :  { %20496 = vmatprep.subr.bf16.mxu1 %v22915_v49  ;;  %20483 = vmatpush3.bf16.msra.mxu0 %v22916_v41  ;;  %v22940_v49 = vld [vmem:[#allocation13 + $0x920] sm:$0xff]  }
 0x9c1   :  { %v20697_v26 = vpop.f32.mrf.mxu0  ;;  %20484 = vmatprep.subr.bf16.mxu0 %v22918_v37  ;;  %v22941_v41 = vld [vmem:[#allocation13 + $0x9a0] sm:$0xff]   ;;  %v17354_v37 = vrot.slane %v25191_v33, 5  ;;  %v22947_v33 = vld [vmem:[#allocation13 + $0xab0] sm:$0xff]  }
 0x9c2   :  { %v20228_v18 = vpop.f32.mrf.mxu1  ;;  %17111 = vmatmul.mubr.bf16.vlgmr.msra.gmra.mxu1 %v16750_v48  ;;  %v16749_v48 = vsel %vm3034_vm5, %v16748_v0, %v16747_v29  ;;  %v22948_v26 = vld [vmem:[#allocation13 + $0x9f0] sm:$0xff]  }
 0x9c3   :  { %20497 = vmatpush3.bf16.msra.mxu1 %v22917_v42  ;;  %17190 = vmatprep.mubr.bf16.mxu1 %v16755_v56  ;;  %v14776_v53 = vpop.f32.mrf.mxu0  ;;  %v22942_v42 = vld [vmem:[#allocation13 + $0xa38] sm:$0xff]   ;;  %v22964_v29 = vld [vmem:[#allocation13 + $0x9d0] sm:$0xff]  }
 0x9c4   :  { %v20229_v40 = vpop.f32.mrf.mxu1  ;;  %20498 = vmatprep.subr.bf16.mxu1 %v22919_v43  ;;  %20485 = vmatpush3.bf16.msra.mxu0 %v22920_v20  ;;  %v16743_v43 = vsel %vm3034_vm5, %v16742_v45, %v16741_v8  ;;  %v22944_v56 = vld [vmem:[#allocation13 + $0x9f8] sm:$0xff]   ;;  %v17349_v20 = vsel %vm3034_vm5, %v17348_v63, %v17347_v21  ;;  %v22962_v8 = vld [vmem:[#allocation13 + $0xa10] sm:$0xff]   ;;  %v22966_v21 = vld [vmem:[#allocation13 + $0xa08] sm:$0xff]  }
 0x9c5   :  { %v20230_v19 = vadd.f32 %v20229_v40, %v20228_v18  ;;  %v20698_v57 = vpop.f32.mrf.mxu0  ;;  %20486 = vmatprep.subr.bf16.mxu0 %v22922_v32  ;;  %v16754_v4 = vpack.c.b16 %v16743_v43, %v16743_v43  ;;  %v22946_v18 = vld [vmem:[#allocation13 + $0xa30] sm:$0xff]   ;;  %v17366_v32 = vpack.c.b16 %v17349_v20, %v17349_v20  ;;  %v22971_v43 = vld [vmem:[#allocation13 + $0xa80] sm:$0xff]  }
 0x9c6   :  { %v20231_v17 = vpop.f32.mrf.mxu1  ;;  %v22963_v45 = vld [vmem:[#allocation13 + $0xa90] sm:$0xff]  }
 0x9c7   :  { %v14734_v38 = vadd.f32 %v20230_v19, %v14694_v5  ;;  %20499 = vmatpush3.bf16.msra.mxu1 %v22921_v59  ;;  %v22933_v5 = vld [vmem:[#allocation13 + $0x970] sm:$0xff]   ;;  %v17355_v59 = vsel %vm3034_vm5, %v17354_v37, %v17353_v51  ;;  %v22968_v51 = vld [vmem:[#allocation13 + $0x9c8] sm:$0xff]   ;;  %v22970_v37 = vld [vmem:[#allocation13 + $0xa00] sm:$0xff]  }
 0x9c8   :  { %20500 = vmatprep.subr.bf16.mxu1 %v22923_v28  ;;  %v20232_v23 = vpop.f32.mrf.mxu1  ;;  %20487 = vmatpush3.bf16.msra.mxu0 %v22924_v50  ;;  %v22949_v28 = vld [vmem:[#allocation13 + $0xa70] sm:$0xff]   ;;  %v17368_v19 = vpack.c.b16 %v17355_v59, %v17355_v59  ;;  %v22950_v50 = vld [vmem:[#allocation13 + $0xa28] sm:$0xff]  }
 0x9c9   :  { %v25364_v22 = vadd.f32 %v14773_v12, %v14734_v38  ;;  %20488 = vmatprep.subr.bf16.mxu0 %v22926_v11  ;;  %v16756_v12 = vpack.c.b16 %v16749_v48, %v16749_v48  ;;  %v22952_v38 = vld [vmem:[#allocation13 + $0x9e8] sm:$0xff]   ;;  %v22954_v23 = vld [vmem:[#allocation13 + $0xa20] sm:$0xff]   ;;  %v22965_v0 = vld [vmem:[#allocation13 + $0xa50] sm:$0xff]  }
 0x9ca   :  { %v22976_v59 = vld [vmem:[#allocation13 + $0xb30] sm:$0xff]  }
 0x9cb   :  { %20501 = vmatpush3.bf16.msra.mxu1 %v22925_v1  ;;  %v22951_v1 = vld [vmem:[#allocation13 + $0xaa8] sm:$0xff]  }
 0x9cc   :  { %20502 = vmatprep.subr.bf16.mxu1 %v22927_v47  ;;  %20489 = vmatpush3.bf16.msra.mxu0 %v22928_v24  ;;  %v22953_v47 = vld [vmem:[#allocation13 + $0xa68] sm:$0xff]  }
 0x9cd   :  { %20735 = vmatprep.subr.bf16.mxu0 %v23221_v6 }
 0x9cf   :  { %20503 = vmatpush3.bf16.msra.mxu1 %v22929_v13  ;;  %17151 = vmatmul.mubr.bf16.vlgmr.msra.gmra.mxu0 %v16752_v52  ;;  %v22956_v52 = vld [vmem:[#allocation13 + $0x9e0] sm:$0xff]  }
 0x9d0   :  { %20504 = vmatprep.subr.bf16.mxu1 %v22930_v35  ;;  %20736 = vmatpush3.bf16.msra.mxu0 %v22932_v62  ;;  %v22955_v35 = vld [vmem:[#allocation13 + $0xaa0] sm:$0xff]  }
 0x9d1   :  { %20743 = vmatprep.mubr.msk.bf16.mxu0 %vm23222_vm2, %v23221_v6  ;;  %20737 = vmatprep.subr.bf16.mxu0 %v23221_v6 }
 0x9d3   :  { %20505 = vmatpush3.bf16.msra.mxu1 %v22931_v44  ;;  %v22957_v44 = vld [vmem:[#allocation13 + $0xa60] sm:$0xff]  }
 0x9d4   :  { %20506 = vmatprep.subr.bf16.mxu1 %v22933_v5  ;;  %20738 = vmatpush3.bf16.msra.mxu0 %v22935_v14  ;;  %v22958_v5 = vld [vmem:[#allocation13 + $0xa18] sm:$0xff]  }
 0x9d5   :  { %20739 = vmatprep.subr.bf16.mxu0 %v23221_v6  ;;  %v22959_v14 = vld [vmem:[#allocation13 + $0xa98] sm:$0xff]  }
 0x9d7   :  { %20507 = vmatpush3.bf16.msra.mxu1 %v22934_v27  ;;  %v22960_v27 = vld [vmem:[#allocation13 + $0x9d8] sm:$0xff]  }
 0x9d8   :  { %20508 = vmatprep.subr.bf16.mxu1 %v22936_v60  ;;  %20740 = vmatpush3.bf16.msra.mxu0 %v22938_v55  ;;  %v22961_v60 = vld [vmem:[#allocation13 + $0xa58] sm:$0xff]   ;;  %v17344_v55 = vrot.slane %v25177_v7, 6  ;;  %v22969_v7 = vld [vmem:[#allocation13 + $0xa48] sm:$0xff]  }
 0x9d9   :  { %20741 = vmatprep.subr.bf16.mxu0 %v23221_v6 }
 0x9db   :  { %20509 = vmatpush3.bf16.msra.mxu1 %v22937_v3  ;;  %v17345_v3 = vrot.slane %v25181_v16, 5  ;;  %v17360_v16 = vrot.slane %v25228_v30, 5 }
 0x9dc   :  { %20510 = vmatprep.subr.bf16.mxu1 %v22939_v34  ;;  %20742 = vmatpush3.bf16.msra.mxu0 %v22941_v41  ;;  %v17350_v34 = vrot.slane %v25185_v10, 6  ;;  %v17351_v41 = vrot.slane %v25189_v61, 5  ;;  %v22972_v10 = vld [vmem:[#allocation13 + $0x9c0] sm:$0xff]  }
 0x9dd   :  { %20523 = vmatprep.subr.bf16.mxu0 %v22942_v42  ;;  %v17359_v42 = vrot.slane %v25224_v58, 6  ;;  %v17346_v61 = vsel %vm3034_vm5, %v17345_v3, %v17344_v55  ;;  %v22991_v55 = vld [vmem:[#allocation13 + $0xb00] sm:$0xff]  }
 0x9de   :  { %v17352_v58 = vsel %vm3034_vm5, %v17351_v41, %v17350_v34  ;;  %v17365_v20 = vpack.c.b16 %v17346_v61, %v17346_v61  ;;  %v22992_v3 = vld [vmem:[#allocation13 + $0xac0] sm:$0xff]  }
 0x9df   :  { %20511 = vmatpush3.bf16.msra.mxu1 %v22940_v49  ;;  %v20255_v40 = vpop.f32.mrf.mxu0  ;;  %20744 = vmatmul.mubr.msk.bf16.vlgmr.msra.gmra.mxu0 %vm12865_vm14, %v16756_v12  ;;  %v22967_v49 = vld [vmem:[#allocation13 + $0xa88] sm:$0xff]   ;;  %v22973_v12 = vld [vmem:[#allocation13 + $0xa40] sm:$0xff]   ;;  %v17361_v30 = vsel %vm3034_vm5, %v17360_v16, %v17359_v42 }
 0x9e0   :  { %20545 = vmatprep.subr.bf16.mxu1 %v22943_v31  ;;  %20524 = vmatpush3.bf16.msra.mxu0 %v22944_v56 }
 0x9e1   :  { %v20256_v46 = vpop.f32.mrf.mxu0  ;;  %20525 = vmatprep.subr.bf16.mxu0 %v22946_v18  ;;  %17725 = vmatprep.mubr.bf16.mxu0 %v17366_v32  ;;  %v22975_v18 = vld [vmem:[#allocation13 + $0xaf8] sm:$0xff]  }
 0x9e2   :  { %v20277_v53 = vpop.f32.mrf.mxu1  ;;  %17191 = vmatmul.mubr.bf16.vlgmr.msra.gmra.mxu1 %v16754_v4  ;;  %v20257_v25 = vadd.f32 %v20256_v46, %v20255_v40  ;;  %v17367_v4 = vpack.c.b16 %v17352_v58, %v17352_v58  ;;  %v22977_v40 = vld [vmem:[#allocation13 + $0xaf0] sm:$0xff]  }
 0x9e3   :  { %20546 = vmatpush3.bf16.msra.mxu1 %v22945_v2  ;;  %v20258_v11 = vpop.f32.mrf.mxu0  ;;  %17765 = vmatprep.mubr.bf16.mxu1 %v17368_v19  ;;  %v22974_v2 = vld [vmem:[#allocation13 + $0xb38] sm:$0xff]   ;;  %v22978_v19 = vld [vmem:[#allocation13 + $0xb28] sm:$0xff]  }
 0x9e4   :  { %v20278_v17 = vpop.f32.mrf.mxu1  ;;  %20547 = vmatprep.subr.bf16.mxu1 %v22947_v33  ;;  %20526 = vmatpush3.bf16.msra.mxu0 %v22948_v26  ;;  %v22984_v33 = vld [vmem:[#allocation13 + $0xb58] sm:$0xff]   ;;  %v17370_v26 = vpack.c.b16 %v17361_v30, %v17361_v30  ;;  %v17362_v11 = vrot.slane %v25209_v39, 6  ;;  %v22996_v30 = vld [vmem:[#allocation16 + $0x28] sm:$0xff]  }
 0x9e5   :  { %v20279_v57 = vadd.f32 %v20278_v17, %v20277_v53  ;;  %v20259_v13 = vpop.f32.mrf.mxu0  ;;  %20527 = vmatprep.subr.bf16.mxu0 %v22950_v50  ;;  %v22987_v53 = vld [vmem:[#allocation13 + $0xb50] sm:$0xff]   ;;  %v22983_v39 = vld [vmem:[#allocation13 + $0xad8] sm:$0xff]  }
 0x9e6   :  { %v20280_v24 = vpop.f32.mrf.mxu1  ;;  %v22981_v13 = vld [vmem:[#allocation13 + $0xae0] sm:$0xff]  }
 0x9e7   :  { %v25386_v9 = vadd.f32 %v20279_v57, %v20257_v25  ;;  %20548 = vmatpush3.bf16.msra.mxu1 %v22949_v28  ;;  %v22979_v25 = vld [vmem:[#allocation13 + $0xae8] sm:$0xff]  }
 0x9e8   :  { %20549 = vmatprep.subr.bf16.mxu1 %v22951_v1  ;;  %v20281_v62 = vpop.f32.mrf.mxu1  ;;  %20528 = vmatpush3.bf16.msra.mxu0 %v22952_v38  ;;  %v22980_v38 = vld [vmem:[#allocation13 + $0xb20] sm:$0xff]   ;;  %v22990_v57 = vld [vmem:[#allocation13 + $0xb48] sm:$0xff]  }
 0x9e9   :  { %20529 = vmatprep.subr.bf16.mxu0 %v22954_v23 }
 0x9eb   :  { %20550 = vmatpush3.bf16.msra.mxu1 %v22953_v47  ;;  %v17363_v47 = vrot.slane %v25211_v15, 5  ;;  %v22985_v15 = vld [vmem:[#allocation13 + $0xb10] sm:$0xff]  }
 0x9ec   :  { %20551 = vmatprep.subr.bf16.mxu1 %v22955_v35  ;;  %20530 = vmatpush3.bf16.msra.mxu0 %v22956_v52  ;;  %v22993_v35 = vld [vmem:[#allocation13 + $0xb40] sm:$0xff]  }
 0x9ed   :  { %20531 = vmatprep.subr.bf16.mxu0 %v22958_v5  ;;  %v17364_v52 = vsel %vm3034_vm5, %v17363_v47, %v17362_v11  ;;  %v22988_v5 = vld [vmem:[#allocation13 + $0xb08] sm:$0xff]  }
 0x9ee   :  { %v17371_v62 = vpack.c.b16 %v17364_v52, %v17364_v52  ;;  %v23000_v47 = vld [vmem:[#allocation16 + $0x8] sm:$0xff]  }
 0x9ef   :  { %20552 = vmatpush3.bf16.msra.mxu1 %v22957_v44 }
 0x9f0   :  { %20553 = vmatprep.subr.bf16.mxu1 %v22959_v14  ;;  %20532 = vmatpush3.bf16.msra.mxu0 %v22960_v27 }
 0x9f1   :  { %20533 = vmatprep.subr.bf16.mxu0 %v22962_v8  ;;  %v17356_v8 = vrot.slane %v25222_v54, 6 }
 0x9f2   :  { %v25391_v63 = vpop.f32.mrf.mxu1 }
 0x9f3   :  { %20554 = vmatpush3.bf16.msra.mxu1 %v22961_v60  ;;  %v22989_v60 = vld [vmem:[#allocation13 + $0xac8] sm:$0xff]  }
 0x9f4   :  { %20555 = vmatprep.subr.bf16.mxu1 %v22963_v45  ;;  %v20709_v48 = vpop.f32.mrf.mxu1  ;;  %20534 = vmatpush3.bf16.msra.mxu0 %v22964_v29  ;;  %v17357_v45 = vrot.slane %v25226_v36, 5 }
 0x9f5   :  { %20535 = vmatprep.subr.bf16.mxu0 %v22966_v21 }
 0x9f6   :  { %v15390_v31 = vpop.f32.mrf.mxu1  ;;  %v17358_v21 = vsel %vm3034_vm5, %v17357_v45, %v17356_v8 }
 0x9f7   :  { %20556 = vmatpush3.bf16.msra.mxu1 %v22965_v0  ;;  %v17369_v34 = vpack.c.b16 %v17358_v21, %v17358_v21 }
 0x9f8   :  { %20557 = vmatprep.subr.bf16.mxu1 %v22967_v49  ;;  %v20710_v56 = vpop.f32.mrf.mxu1  ;;  %20536 = vmatpush3.bf16.msra.mxu0 %v22968_v51 }
 0x9f9   :  { %20537 = vmatprep.subr.bf16.mxu0 %v22970_v37 }
 0x9fb   :  { %20558 = vmatpush3.bf16.msra.mxu1 %v22969_v7 }
 0x9fc   :  { %20559 = vmatprep.subr.bf16.mxu1 %v22971_v43  ;;  %20538 = vmatpush3.bf16.msra.mxu0 %v22972_v10 }
 0x9fd   :  { %20567 = vmatprep.subr.bf16.mxu0 %v22974_v2  ;;  %v22994_v2 = vld [vmem:[#allocation16 + $0x38] sm:$0xff]  }
 0x9ff   :  { %20560 = vmatpush3.bf16.msra.mxu1 %v22973_v12  ;;  %v20299_v32 = vpop.f32.mrf.mxu0  ;;  %17726 = vmatmul.mubr.bf16.vlgmr.msra.gmra.mxu0 %v17365_v20  ;;  %v22995_v20 = vld [vmem:[#allocation16 + $0x30] sm:$0xff]  }
 0xa00   :  { %20747 = vmatprep.subr.bf16.mxu1 %v23221_v6  ;;  %20568 = vmatpush3.bf16.msra.mxu0 %v22975_v18  ;;  %v22997_v18 = vld [vmem:[#allocation16 + $0x20] sm:$0xff]  }
 0xa01   :  { %v20300_v28 = vpop.f32.mrf.mxu0  ;;  %20569 = vmatprep.subr.bf16.mxu0 %v22976_v59  ;;  %17805 = vmatprep.mubr.bf16.mxu0 %v17370_v26 }
 0xa02   :  { %17766 = vmatmul.mubr.bf16.vlgmr.msra.gmra.mxu1 %v17367_v4  ;;  %v20301_v50 = vadd.f32 %v20300_v28, %v20299_v32 }
 0xa03   :  { %20748 = vmatpush3.bf16.msra.mxu1 %v22984_v33  ;;  %v20302_v46 = vpop.f32.mrf.mxu0  ;;  %20755 = vmatprep.mubr.msk.bf16.mxu1 %vm23222_vm2, %v23221_v6 }
 0xa04   :  { %20749 = vmatprep.subr.bf16.mxu1 %v23221_v6  ;;  %v15348_v1 = vadd.f32 %v20301_v50, %v25386_v9  ;;  %20570 = vmatpush3.bf16.msra.mxu0 %v22977_v40  ;;  %v22982_v9 = vld [vmem:[#allocation13 + $0xb18] sm:$0xff]  }
 0xa05   :  { %v20303_v17 = vpop.f32.mrf.mxu0  ;;  %20571 = vmatprep.subr.bf16.mxu0 %v22978_v19 }
 0xa06   :  { %v15388_v23 = vadd.f32 %v25391_v63, %v15348_v1 }
 0xa07   :  { %20750 = vmatpush3.bf16.msra.mxu1 %v22987_v53 }
 0xa08   :  { %20751 = vmatprep.subr.bf16.mxu1 %v23221_v6  ;;  %v15393_v24 = vadd.f32 %v15388_v23, %v25364_v22  ;;  %20572 = vmatpush3.bf16.msra.mxu0 %v22979_v25  ;;  %v22986_v22 = vld [vmem:[#allocation13 + $0xad0] sm:$0xff]   ;;  %v22998_v25 = vld [vmem:[#allocation16 + $0x18] sm:$0xff]   ;;  %v23001_v23 = vld [vmem:[#allocation16] sm:$0xff]  }
 0xa09   :  { %20573 = vmatprep.subr.bf16.mxu0 %v22980_v38 }
 0xa0b   :  { %20752 = vmatpush3.bf16.msra.mxu1 %v22990_v57  ;;  %v22999_v57 = vld [vmem:[#allocation16 + $0x10] sm:$0xff]  }
 0xa0c   :  { %20753 = vmatprep.subr.bf16.mxu1 %v23221_v6  ;;  %20574 = vmatpush3.bf16.msra.mxu0 %v22981_v13 }
 0xa0d   :  { %20575 = vmatprep.subr.bf16.mxu0 %v22982_v9 }
 0xa0f   :  { %20754 = vmatpush3.bf16.msra.mxu1 %v22993_v35 }
 0xa10   :  { %20759 = vmatprep.subr.bf16.mxu1 %v23221_v6  ;;  %20576 = vmatpush3.bf16.msra.mxu0 %v22983_v39 }
 0xa11   :  { %20577 = vmatprep.subr.bf16.mxu0 %v22985_v15 }
 0xa12   :  { %v20326_v44 = vpop.f32.mrf.mxu1  ;;  %20756 = vmatmul.mubr.msk.bf16.vlgmr.msra.gmra.mxu1 %vm12865_vm14, %v17371_v62 }
 0xa13   :  { %20775 = vmatprep.mubr.msk.bf16.mxu1 %vm23222_vm2, %v23221_v6  ;;  %20760 = vmatpush3.bf16.msra.mxu1 %v22994_v2 }
 0xa14   :  { %v20327_v14 = vpop.f32.mrf.mxu1  ;;  %20578 = vmatpush3.bf16.msra.mxu0 %v22986_v22  ;;  %20761 = vmatprep.subr.bf16.mxu1 %v23221_v6 }
 0xa15   :  { %v20328_v27 = vadd.f32 %v20327_v14, %v20326_v44  ;;  %20579 = vmatprep.subr.bf16.mxu0 %v22988_v5 }
 0xa16   :  { %v20329_v29 = vpop.f32.mrf.mxu1 }
 0xa17   :  { %20762 = vmatpush3.bf16.msra.mxu1 %v22995_v20 }
 0xa18   :  { %v20330_v0 = vpop.f32.mrf.mxu1  ;;  %20580 = vmatpush3.bf16.msra.mxu0 %v22989_v60  ;;  %20763 = vmatprep.subr.bf16.mxu1 %v23221_v6 }
 0xa19   :  { %20581 = vmatprep.subr.bf16.mxu0 %v22991_v55 }
 0xa1b   :  { %20764 = vmatpush3.bf16.msra.mxu1 %v22996_v30 }
 0xa1c   :  { %20582 = vmatpush3.bf16.msra.mxu0 %v22992_v3  ;;  %20765 = vmatprep.subr.bf16.mxu1 %v23221_v6 }
 0xa1f   :  { %v20348_v63 = vpop.f32.mrf.mxu0  ;;  %17806 = vmatmul.mubr.bf16.vlgmr.msra.gmra.mxu0 %v17369_v34  ;;  %20766 = vmatpush3.bf16.msra.mxu1 %v22997_v18 }
 0xa20   :  { %20767 = vmatprep.subr.bf16.mxu1 %v23221_v6 }
 0xa21   :  { %v20349_v49 = vpop.f32.mrf.mxu0 }
 0xa22   :  { %v20350_v41 = vadd.f32 %v20349_v49, %v20348_v63 }
 0xa23   :  { %v20351_v51 = vpop.f32.mrf.mxu0  ;;  %20768 = vmatpush3.bf16.msra.mxu1 %v22998_v25 }
 0xa24   :  { %v15923_v48 = vadd.f32 %v20350_v41, %v20328_v27  ;;  %20769 = vmatprep.subr.bf16.mxu1 %v23221_v6 }
 0xa25   :  { %v20352_v54 = vpop.f32.mrf.mxu0 }
 0xa27   :  { %20770 = vmatpush3.bf16.msra.mxu1 %v22999_v57 }
 0xa28   :  { %20771 = vmatprep.subr.bf16.mxu1 %v23221_v6 }
 0xa2b   :  { %20772 = vmatpush3.bf16.msra.mxu1 %v23000_v47 }
 0xa2c   :  { %20773 = vmatprep.subr.bf16.mxu1 %v23221_v6 }
 0xa2f   :  { %v16002_v42 = vpop.f32.mrf.mxu0  ;;  %20774 = vmatpush3.bf16.msra.mxu1 %v23001_v23 }
 0xa31   :  { %v20721_v7 = vpop.f32.mrf.mxu0 }
 0xa32   :  { %v20370_v36 = vpop.f32.mrf.mxu1 }
 0xa33   :  { %v16005_v43 = vpop.f32.mrf.mxu0 }
 0xa34   :  { %v20371_v37 = vpop.f32.mrf.mxu1 }
 0xa35   :  { %v20372_v16 = vadd.f32 %v20371_v37, %v20370_v36  ;;  %v20722_v56 = vpop.f32.mrf.mxu0 }
 0xa36   :  { %v20373_v31 = vpop.f32.mrf.mxu1 }
 0xa37   :  { %v15963_v10 = vadd.f32 %v20372_v16, %v15923_v48 }
 0xa38   :  { %v20374_v61 = vpop.f32.mrf.mxu1 }
 0xa39   :  { %v16003_v12 = vadd.f32 %v16002_v42, %v15963_v10 }
 0xa3b   :  { %v16008_v58 = vadd.f32 %v16003_v12, %v15393_v24 }
 0xa4f   :  { %v20397_v4 = vpop.f32.mrf.mxu0 }
 0xa51   :  { %v20398_v33 = vpop.f32.mrf.mxu0 }
 0xa52   :  { %v20419_v59 = vpop.f32.mrf.mxu1  ;;  %v20399_v26 = vadd.f32 %v20398_v33, %v20397_v4 }
 0xa53   :  { %v20400_v28 = vpop.f32.mrf.mxu0 }
 0xa54   :  { %v20420_v32 = vpop.f32.mrf.mxu1 }
 0xa55   :  { %v20421_v40 = vadd.f32 %v20420_v32, %v20419_v59  ;;  %v20401_v50 = vpop.f32.mrf.mxu0 }
 0xa56   :  { %v20422_v19 = vpop.f32.mrf.mxu1 }
 0xa57   :  { %v16538_v53 = vadd.f32 %v20421_v40, %v20399_v26 }
 0xa58   :  { %v20423_v46 = vpop.f32.mrf.mxu1 }
 0xa62   :  { %v16617_v1 = vpop.f32.mrf.mxu1 }
 0xa64   :  { %v20733_v17 = vpop.f32.mrf.mxu1 }
 0xa65   :  { %v19768_v17 = vld [vmem:[#allocation17] ss:$0 sm:$0xff] }
 0xa66   :  { %v16620_v38 = vpop.f32.mrf.mxu1 }
 0xa68   :  { %v20734_v11 = vpop.f32.mrf.mxu1 }
 0xa6f   :  { %v20441_v24 = vpop.f32.mrf.mxu0 }
 0xa71   :  { %v20442_v13 = vpop.f32.mrf.mxu0 }
 0xa72   :  { %v20443_v9 = vadd.f32 %v20442_v13, %v20441_v24 }
 0xa73   :  { %v20444_v35 = vpop.f32.mrf.mxu0 }
 0xa74   :  { %v16578_v52 = vadd.f32 %v20443_v9, %v16538_v53  ;;  %v19767_v53 = vld [vmem:[#allocation14] ss:$0 sm:$0xff] }
 0xa75   :  { %v20445_v39 = vpop.f32.mrf.mxu0 }
 0xa76   :  { %v16618_v62 = vadd.f32 %v16617_v1, %v16578_v52 }
 0xa78   :  { %v16623_v15 = vadd.f32 %v16618_v62, %v16008_v58 }
 0xa82   :  { %v20468_v22 = vpop.f32.mrf.mxu1 }
 0xa84   :  { %v20469_v44 = vpop.f32.mrf.mxu1 }
 0xa85   :  { %v20470_v5 = vadd.f32 %v20469_v44, %v20468_v22 }
 0xa86   :  { %v20471_v14 = vpop.f32.mrf.mxu1 }
 0xa88   :  { %v20472_v27 = vpop.f32.mrf.mxu1 }
 0xa8f   :  { %v20490_v60 = vpop.f32.mrf.mxu0 }
 0xa91   :  { %v20491_v8 = vpop.f32.mrf.mxu0 }
 0xa92   :  { %v20492_v45 = vadd.f32 %v20491_v8, %v20490_v60 }
 0xa93   :  { %v20493_v29 = vpop.f32.mrf.mxu0 }
 0xa94   :  { %v17153_v55 = vadd.f32 %v20492_v45, %v20470_v5 }
 0xa95   :  { %v20494_v6 = vpop.f32.mrf.mxu0 }
 0xa9f   :  { %v17232_v0 = vpop.f32.mrf.mxu0 }
 0xaa1   :  { %v20745_v21 = vpop.f32.mrf.mxu0 }
 0xaa2   :  { %v20512_v3 = vpop.f32.mrf.mxu1 }
 0xaa3   :  { %v17235_v49 = vpop.f32.mrf.mxu0 }
 0xaa4   :  { %v20513_v34 = vpop.f32.mrf.mxu1 }
 0xaa5   :  { %v20514_v63 = vadd.f32 %v20513_v34, %v20512_v3  ;;  %v20746_v48 = vpop.f32.mrf.mxu0 }
 0xaa6   :  { %v20515_v41 = vpop.f32.mrf.mxu1 }
 0xaa7   :  { %v17193_v51 = vadd.f32 %v20514_v63, %v17153_v55 }
 0xaa8   :  { %v20516_v54 = vpop.f32.mrf.mxu1 }
 0xaa9   :  { %v17233_v42 = vadd.f32 %v17232_v0, %v17193_v51 }
 0xaab   :  { %v17238_v36 = vadd.f32 %v17233_v42, %v16623_v15 }
 0xabf   :  { %v20539_v7 = vpop.f32.mrf.mxu0 }
 0xac1   :  { %v20540_v16 = vpop.f32.mrf.mxu0 }
 0xac2   :  { %v20561_v37 = vpop.f32.mrf.mxu1  ;;  %v20541_v30 = vadd.f32 %v20540_v16, %v20539_v7 }
 0xac3   :  { %v20542_v31 = vpop.f32.mrf.mxu0 }
 0xac4   :  { %v20562_v43 = vpop.f32.mrf.mxu1 }
 0xac5   :  { %v20543_v56 = vpop.f32.mrf.mxu0  ;;  %v20563_v4 = vadd.f32 %v20562_v43, %v20561_v37 }
 0xac6   :  { %v20564_v10 = vpop.f32.mrf.mxu1 }
 0xac7   :  { %v17768_v33 = vadd.f32 %v20563_v4, %v20541_v30 }
 0xac8   :  { %v20565_v61 = vpop.f32.mrf.mxu1 }
 0xad2   :  { %v17847_v12 = vpop.f32.mrf.mxu1 }
 0xad4   :  { %v20757_v58 = vpop.f32.mrf.mxu1 }
 0xad6   :  { %v17850_v2 = vpop.f32.mrf.mxu1 }
 0xad8   :  { %v20758_v20 = vpop.f32.mrf.mxu1 }
 0xadf   :  { %v20583_v18 = vpop.f32.mrf.mxu0 }
 0xae1   :  { %v20584_v59 = vpop.f32.mrf.mxu0 }
 0xae2   :  { %v20585_v26 = vadd.f32 %v20584_v59, %v20583_v18 }
 0xae3   :  { %v20586_v32 = vpop.f32.mrf.mxu0 }
 0xae4   :  { %v17808_v40 = vadd.f32 %v20585_v26, %v17768_v33 }
 0xae5   :  { %v20587_v28 = vpop.f32.mrf.mxu0 }
 0xae6   :  { %v17848_v19 = vadd.f32 %v17847_v12, %v17808_v40 }
 0xae8   :  { %v17853_v50 = vadd.f32 %v17848_v19, %v17238_v36 }
 0xaea   :  { %v17861_v46 = vadd.f32 %v19767_v53, %v17853_v50 }
 0xaec   :  { %v17862_v1 = vmax.f32 %v17861_v46, 0.0 }
 0xaee   :  { %v17863_v25 = vpack.c.bf16 %v17862_v1, %v17862_v1 }
 0xaf0   :  { %20776 = vmatmul.mubr.bf16.vlgmr.msra.gmra.mxu1 %v17863_v25 }
 0xbb0   :  { %v17969_v38 = vpop.f32.mrf.mxu1 }
 0xbb1   :  { %v17970_v57 = vadd.f32 %v19768_v17, %v17969_v38 }
 0xbb2   :  { %v20777_v11 = vpop.f32.mrf.mxu1 }
 0xbb3   :  { %17975 = vst [vmem:[#allocation19] sm:$0x3] %v17970_v57 }
 0xbb4   :  { %v17972_v47 = vpop.f32.mrf.mxu1 }
 0xbb5   :  { %23173 = shalt.err (!%p23170_p3)
}
 0xbb6   :  { %17985 = dma.vmem_to_hbm [thread:$0]  %s17983_s14, 32, %s25437_s9, [#allocation7]   ;;  %v20778_v23 = vpop.f32.mrf.mxu1 }
 0xbb7   :  { %23196 = dma.done.wait [#allocation7], 32  }
 0xbb8   :  { %23197 = vsyncadd [#allocation7], 4294967264 }
 0xbb9   :  { %17989 = vsyncpa [#allocation6], 1 }
 0xbba   :  { %17990 = vsyncpa [#allocation9], 1 }
 0xbbb   :  { %17991 = vsyncpa [#allocation12], 1 }
 0xbbc   :  { %17992 = vsyncpa [#allocation15], 1 }
 0xbbd   :  { %17993 = vsyncpa [#allocation18], 1 }
 0xbbe   :  { %17994 = vsyncpa [#allocation7], 1 }

</bundles_post_ra>
